<compile_context>
chip_gen: v7x
topology: tpu7x:2x2x1
jax: 0.10.0
libtpu: 0.0.40
codegen_flags: <defaults>
</compile_context>

<pallas_src>
import jax
import jax.numpy as jnp
from jax.experimental import pallas as pl
from jax.experimental.pallas import tpu as pltpu

EPS = 1e-5
_LANE = 128
_TM_TARGET = 1024                 # rows per tile for the mem-bound row passes


# --------------------------------------------------------------------------- helpers
def _rup(x, m=_LANE):
    return ((x + m - 1) // m) * m


def _vmem_limit_bytes():
    """Generation-aware scoped-VMEM limit: ~3/4 of physical, capped at 100 MiB.
    -> ~48 MiB on v7x (64 MiB physical), ~96 MiB on v5e/v6e (128 MiB physical)."""
    cap = 64 * 1024 * 1024
    try:
        cap = int(getattr(pltpu.get_tpu_info(), "vmem_capacity_bytes", cap))
    except Exception:
        pass
    return min(cap * 3 // 4, 100 * 1024 * 1024)


def _pick_tile(m, target=_TM_TARGET):
    """Largest divisor of m that is a multiple of 16 (bf16 sublane pack) <= target."""
    for step in (16, 8):
        best = 0
        for cand in range(step, min(target, m) + 1, step):
            if m % cand == 0:
                best = cand
        if best:
            return best
    # TODO(synk): awkward M with no small divisor should use a cdiv grid with a
    # masked remainder tile instead of mapping the whole row axis into one block.
    return m


def _pad_cols(a, target, value=0.0):
    pad = target - a.shape[-1]
    if pad == 0:
        return a
    cfg = [(0, 0)] * (a.ndim - 1) + [(0, pad)]
    return jnp.pad(a, cfg, constant_values=value)


def _pad_mat(w, rows, cols):
    return jnp.pad(w, ((0, rows - w.shape[0]), (0, cols - w.shape[1])))


def _fold_bn(s, q, gamma, beta, m):
    """Fold batch stats + affine into y*scale + shift (all (1, C) f32, tiny)."""
    mean = s / m
    var = jnp.maximum(q / m - mean * mean, 0.0)   # guard against f32 cancellation
    inv = jax.lax.rsqrt(var + EPS)
    scale = gamma * inv
    shift = beta - mean * scale
    return scale, shift


# --------------------------------------------------------------------------- kernels
def _stats1_kernel(x_ref, w1_ref, ws_ref, s1_ref, q1_ref, ss_ref, qs_ref):
    """Per-tile partial sum / sum-of-squares of y1 = x@w1 and ys = x@ws (shortcut)."""
    x = x_ref[...]
    y1 = jnp.dot(x, w1_ref[...], preferred_element_type=jnp.float32)
    ys = jnp.dot(x, ws_ref[...], preferred_element_type=jnp.float32)
    s1_ref[0] = jnp.sum(y1, axis=0, keepdims=True)
    q1_ref[0] = jnp.sum(y1 * y1, axis=0, keepdims=True)
    ss_ref[0] = jnp.sum(ys, axis=0, keepdims=True)
    qs_ref[0] = jnp.sum(ys * ys, axis=0, keepdims=True)


def _make_conv2_kernel(H, W):
    """conv1(1x1)+bn1+relu recompute, then 3x3 conv as 9 aligned-slice matmuls."""
    HW = H * W
    PAD_R = (H + 2) * W     # flat padded row space: (H+2) image rows of W pixels

    def kernel(x_ref, w1_ref, w2_ref, a1_ref, c1_ref,
               y2_ref, s2_ref, q2_ref, halo_ref):
        pp = y2_ref.shape[-1]

        # stage 1 (recomputed per image): conv1 (1x1) + folded bn1 + relu
        y1 = jnp.dot(x_ref[...], w1_ref[...], preferred_element_type=jnp.float32)
        out1 = jnp.maximum(y1 * a1_ref[...] + c1_ref[...], 0.0)        # (HW, Pp) f32

        # Build 3 horizontally pre-shifted bf16 copies of out1 in the flat padded
        # row space: halo_ref[kw][r] == out1[r//W - 1, r%W + kw - 1] (0 if OOB).
        # Every 3x3 tap then becomes a contiguous row-offset slice (no reshape,
        # no sublane-unaligned per-tap copy, no per-tap cast).
        col = jax.lax.broadcasted_iota(jnp.int32, (HW, pp), 0) % W
        out1_c = out1.astype(jnp.bfloat16)
        out1_l = jnp.where(col == W - 1, 0.0, out1).astype(jnp.bfloat16)
        out1_r = jnp.where(col == 0, 0.0, out1).astype(jnp.bfloat16)

        # Zero only the small top/bottom halo bands (re-written every step so the
        # kernel stays correct under "parallel" grid semantics / megacore).
        band = jnp.zeros((3, W + 1, pp), jnp.bfloat16)
        halo_ref[:, 0:W + 1, :] = band
        halo_ref[:, HW + W - 1:PAD_R, :] = band

        halo_ref[0, W + 1:W + 1 + HW, :] = out1_l       # tap column kw = 0
        halo_ref[1, W:W + HW, :] = out1_c               # tap column kw = 1
        halo_ref[2, W - 1:W - 1 + HW, :] = out1_r       # tap column kw = 2

        # conv2 (3x3, pad=1): 9 matmuls accumulated into one local f32 value,
        # written back to HBM (bf16) exactly once.
        y2 = None
        for k in range(9):
            kh, kw = divmod(k, 3)
            tap = halo_ref[kw, kh * W:kh * W + HW, :]                  # (HW, Pp) bf16
            contrib = jnp.dot(tap, w2_ref[k], preferred_element_type=jnp.float32)
            y2 = contrib if y2 is None else y2 + contrib

        # bn2 batch-statistic partials in f32, before the bf16 downcast.
        s2_ref[0] = jnp.sum(y2, axis=0, keepdims=True)
        q2_ref[0] = jnp.sum(y2 * y2, axis=0, keepdims=True)
        y2_ref[...] = y2.astype(jnp.bfloat16)

    return kernel


def _stats3_kernel(y2_ref, a2_ref, c2_ref, w3_ref, s3_ref, q3_ref):
    """Per-tile partial stats of y3 = relu(bn2(y2)) @ w3."""
    out2 = jnp.maximum(y2_ref[...] * a2_ref[...] + c2_ref[...], 0.0)
    y3 = jnp.dot(out2.astype(jnp.bfloat16), w3_ref[...],
                 preferred_element_type=jnp.float32)
    s3_ref[0] = jnp.sum(y3, axis=0, keepdims=True)
    q3_ref[0] = jnp.sum(y3 * y3, axis=0, keepdims=True)


def _final_kernel(y2_ref, x_ref, a2_ref, c2_ref, w3_ref, a3_ref, c3_ref,
                  ws_ref, as_ref, cs_ref, o_ref):
    """out = relu(bn3(relu(bn2(y2)) @ w3) + bn_s(x @ ws))."""
    out2 = jnp.maximum(y2_ref[...] * a2_ref[...] + c2_ref[...], 0.0)
    y3 = jnp.dot(out2.astype(jnp.bfloat16), w3_ref[...],
                 preferred_element_type=jnp.float32)
    ys = jnp.dot(x_ref[...], ws_ref[...], preferred_element_type=jnp.float32)
    o_ref[...] = jnp.maximum((y3 * a3_ref[...] + c3_ref[...]) +
                             (ys * as_ref[...] + cs_ref[...]), 0.0)


# --------------------------------------------------------------------------- wrapper
@jax.jit
def bottleneck_forward(x_nchw, params):
    """Forward pass of Bottleneck(in_planes, planes, stride=1). NCHW in / NCHW out."""
    N, Cin, H, W = x_nchw.shape
    P = params["w1"].shape[1]
    E = params["w3"].shape[1]
    M, HW = N * H * W, H * W
    Cp, Pp, Ep = _rup(Cin), _rup(P), _rup(E)
    TM = _pick_tile(M)
    nM = M // TM
    vmem_limit = _vmem_limit_bytes()

    # layout glue: NCHW -> NHWC directly in bf16 -> (M, Cp), channel zero-padded
    x_flat = _pad_cols(
        jnp.transpose(x_nchw, (0, 2, 3, 1)).astype(jnp.bfloat16).reshape(M, Cin), Cp)

    # weights / affine params, zero-padded to lane-dense (multiple-of-128) dims
    w1p = _pad_mat(params["w1"], Cp, Pp).astype(jnp.bfloat16)
    w2p = jnp.pad(params["w2"].reshape(9, P, P),
                  ((0, 0), (0, Pp - P), (0, Pp - P))).astype(jnp.bfloat16)
    w3p = _pad_mat(params["w3"], Pp, Ep).astype(jnp.bfloat16)
    wsp = _pad_mat(params["ws"], Cp, Ep).astype(jnp.bfloat16)
    g1p, b1p = _pad_cols(params["g1"], Pp, 1.0), _pad_cols(params["b1"], Pp)
    g2p, b2p = _pad_cols(params["g2"], Pp, 1.0), _pad_cols(params["b2"], Pp)
    g3p, b3p = _pad_cols(params["g3"], Ep, 1.0), _pad_cols(params["b3"], Ep)
    gsp, bsp = _pad_cols(params["gs"], Ep, 1.0), _pad_cols(params["bs"], Ep)

    def row_spec(tile, cols):
        return pl.BlockSpec((tile, cols), lambda i: (i, 0))

    def const_spec(*shape):
        n = len(shape)
        return pl.BlockSpec(shape, lambda i: (0,) * n)

    def part_spec(cols):                       # per-grid-step partial stat block
        return pl.BlockSpec((1, 1, cols), lambda i: (i, 0, 0))

    partMP = jax.ShapeDtypeStruct((nM, 1, Pp), jnp.float32)
    partME = jax.ShapeDtypeStruct((nM, 1, Ep), jnp.float32)
    partNP = jax.ShapeDtypeStruct((N, 1, Pp), jnp.float32)

    # ---- pass 1: partial batch statistics of conv1 and shortcut-conv outputs --
    s1p, q1p, ssp_, qsp_ = pl.pallas_call(
        _stats1_kernel,
        grid=(nM,),
        in_specs=[row_spec(TM, Cp), const_spec(Cp, Pp), const_spec(Cp, Ep)],
        out_specs=(part_spec(Pp), part_spec(Pp), part_spec(Ep), part_spec(Ep)),
        out_shape=(partMP, partMP, partME, partME),
        compiler_params=pltpu.CompilerParams(
            dimension_semantics=("parallel",), vmem_limit_bytes=vmem_limit),
        cost_estimate=pl.CostEstimate(
            flops=2 * M * Cp * (Pp + Ep), transcendentals=0,
            bytes_accessed=2 * M * Cp + 2 * Cp * (Pp + Ep) + 8 * nM * (Pp + Ep)),
    )(x_flat, w1p, wsp)

    a1, c1 = _fold_bn(jnp.sum(s1p, 0), jnp.sum(q1p, 0), g1p, b1p, M)
    as_, cs_ = _fold_bn(jnp.sum(ssp_, 0), jnp.sum(qsp_, 0), gsp, bsp, M)

    # ---- pass 2: conv1+bn1+relu + 3x3 conv (flat bf16 halo in VMEM) + stats2 ---
    y2, s2p, q2p = pl.pallas_call(
        _make_conv2_kernel(H, W),
        grid=(N,),
        in_specs=[row_spec(HW, Cp), const_spec(Cp, Pp), const_spec(9, Pp, Pp),
                  const_spec(1, Pp), const_spec(1, Pp)],
        out_specs=(row_spec(HW, Pp), part_spec(Pp), part_spec(Pp)),
        out_shape=(jax.ShapeDtypeStruct((M, Pp), jnp.bfloat16), partNP, partNP),
        scratch_shapes=[pltpu.VMEM((3, (H + 2) * W, Pp), jnp.bfloat16)],
        compiler_params=pltpu.CompilerParams(
            dimension_semantics=("parallel",), vmem_limit_bytes=vmem_limit),
        cost_estimate=pl.CostEstimate(
            flops=2 * M * Pp * (Cp + 9 * Pp), transcendentals=0,
            bytes_accessed=2 * M * Cp + 2 * M * Pp + 2 * Pp * (Cp + 9 * Pp)),
    )(x_flat, w1p, w2p, a1, c1)

    a2, c2 = _fold_bn(jnp.sum(s2p, 0), jnp.sum(q2p, 0), g2p, b2p, M)

    # ---- pass 3: partial batch statistics of conv3 output ----------------------
    s3p, q3p = pl.pallas_call(
        _stats3_kernel,
        grid=(nM,),
        in_specs=[row_spec(TM, Pp), const_spec(1, Pp), const_spec(1, Pp),
                  const_spec(Pp, Ep)],
        out_specs=(part_spec(Ep), part_spec(Ep)),
        out_shape=(partME, partME),
        compiler_params=pltpu.CompilerParams(
            dimension_semantics=("parallel",), vmem_limit_bytes=vmem_limit),
        cost_estimate=pl.CostEstimate(
            flops=2 * M * Pp * Ep, transcendentals=0,
            bytes_accessed=2 * M * Pp + 2 * Pp * Ep + 8 * nM * Ep),
    )(y2, a2, c2, w3p)

    a3, c3 = _fold_bn(jnp.sum(s3p, 0), jnp.sum(q3p, 0), g3p, b3p, M)

    # ---- pass 4: conv3+bn3 + shortcut conv+bn + add + relu (parallel over M) ---
    out_p = pl.pallas_call(
        _final_kernel,
        grid=(nM,),
        in_specs=[row_spec(TM, Pp), row_spec(TM, Cp),
                  const_spec(1, Pp), const_spec(1, Pp),
                  const_spec(Pp, Ep), const_spec(1, Ep), const_spec(1, Ep),
                  const_spec(Cp, Ep), const_spec(1, Ep), const_spec(1, Ep)],
        out_specs=pl.BlockSpec((TM, Ep), lambda i: (i, 0)),
        out_shape=jax.ShapeDtypeStruct((M, Ep), jnp.float32),
        compiler_params=pltpu.CompilerParams(
            dimension_semantics=("parallel",), vmem_limit_bytes=vmem_limit),
        cost_estimate=pl.CostEstimate(
            flops=2 * M * Ep * (Pp + Cp), transcendentals=0,
            bytes_accessed=2 * M * Pp + 2 * M * Cp + 4 * M * Ep
                           + 2 * Ep * (Pp + Cp)),
    )(y2, x_flat, a2, c2, w3p, a3, c3, wsp, as_, cs_)

    # layout glue: strip channel padding, (M, E) -> NHWC -> NCHW (f32 module output)
    out = out_p[:, :E].reshape(N, H, W, E)
    return jnp.transpose(out, (0, 3, 1, 2))


# --------------------------------------------------------------------------- reference
def reference_forward(x_nchw, params):
    """Pure-JAX reference mirroring the kernel arithmetic (bf16 matmul operands)."""
    N, Cin, H, W = x_nchw.shape
    P = params["w1"].shape[1]
    E = params["w3"].shape[1]
    M = N * H * W

    def mm(a, w):
        return jnp.dot(a.astype(jnp.bfloat16), w.astype(jnp.bfloat16),
                       preferred_element_type=jnp.float32)

    def bn(y, g, b):
        s = jnp.sum(y, axis=0, keepdims=True)
        q = jnp.sum(y * y, axis=0, keepdims=True)
        scale, shift = _fold_bn(s, q, g, b, M)
        return y * scale + shift

    x = jnp.transpose(x_nchw, (0, 2, 3, 1)).astype(jnp.float32).reshape(M, Cin)

    out1 = jnp.maximum(bn(mm(x, params["w1"]), params["g1"], params["b1"]), 0.0)

    op = jnp.pad(out1.reshape(N, H, W, P), ((0, 0), (1, 1), (1, 1), (0, 0)))
    y2 = jnp.zeros((M, P), jnp.float32)
    for kh in range(3):
        for kw in range(3):
            tap = op[:, kh:kh + H, kw:kw + W, :].reshape(M, P)
            y2 = y2 + mm(tap, params["w2"][kh, kw])
    out2 = jnp.maximum(bn(y2, params["g2"], params["b2"]), 0.0)

    y3 = mm(out2, params["w3"])
    ys = mm(x, params["ws"])
    out = jnp.maximum(bn(y3, params["g3"], params["b3"]) +
                      bn(ys, params["gs"], params["bs"]), 0.0)
    return jnp.transpose(out.reshape(N, H, W, E), (0, 3, 1, 2))


# --------------------------------------------------------------------------- params
def init_params(key, in_planes, planes, expansion=4):
    """Deterministic synthetic parameters (shapes match the torch module)."""
    E = expansion * planes
    ks = jax.random.split(key, 12)
    f32 = jnp.float32

    w1 = 0.1 * jax.random.normal(ks[0], (in_planes, planes), f32)       # conv1 1x1
    w2 = 0.1 * jax.random.normal(ks[1], (3, 3, planes, planes), f32)    # conv2 3x3 [kh,kw,ci,co]
    w3 = 0.1 * jax.random.normal(ks[2], (planes, E), f32)               # conv3 1x1
    ws = 0.1 * jax.random.normal(ks[3], (in_planes, E), f32)            # shortcut 1x1

    def affine(kg, kb, c):
        g = 1.0 + 0.1 * jax.random.normal(kg, (1, c), f32)
        b = 0.1 * jax.random.normal(kb, (1, c), f32)
        return g, b

    g1, b1 = affine(ks[4], ks[5], planes)
    g2, b2 = affine(ks[6], ks[7], planes)
    g3, b3 = affine(ks[8], ks[9], E)
    gs, bs = affine(ks[10], ks[11], E)

    return dict(w1=w1, w2=w2, w3=w3, ws=ws, g1=g1, b1=b1, g2=g2, b2=b2,
                g3=g3, b3=b3, gs=gs, bs=bs)


if __name__ == "__main__":
    # Small shapes: batch=2, in_planes=4, planes=4 (=> out channels 16), spatial 16x16.
    N, Cin, H, W = 2, 4, 16, 16
    planes = 4

    key = jax.random.PRNGKey(0)
    kx, kp = jax.random.split(key)
    x = jax.random.normal(kx, (N, Cin, H, W), jnp.float32)
    params = init_params(kp, Cin, planes)

    out = jax.block_until_ready(bottleneck_forward(x, params))

    assert out.shape == (N, 4 * planes, H, W), out.shape
    assert bool(jnp.all(out >= 0.0)), "final ReLU violated"
    assert bool(jnp.all(jnp.isfinite(out))), "non-finite output"

    ref = jax.block_until_ready(reference_forward(x, params))
    err = float(jnp.max(jnp.abs(out - ref)))
    assert err < 5e-2, f"max |pallas - reference| = {err}"

    print("KERNEL_OK")
</pallas_src>

<mosaic_0001>
module attributes {stable_mosaic.version = 11 : i64} {
  func.func @_stats1_kernel(%arg0: i32, %arg1: memref<512x128xbf16, #tpu.memory_space<vmem>>, %arg2: memref<128x128xbf16, #tpu.memory_space<vmem>>, %arg3: memref<128x128xbf16, #tpu.memory_space<vmem>>, %arg4: memref<1x1x128xf32, #tpu.memory_space<vmem>>, %arg5: memref<1x1x128xf32, #tpu.memory_space<vmem>>, %arg6: memref<1x1x128xf32, #tpu.memory_space<vmem>>, %arg7: memref<1x1x128xf32, #tpu.memory_space<vmem>>) attributes {dimension_semantics = [#tpu.dimension_semantics<parallel>], iteration_bounds = array<i64: 1>, scalar_prefetch = 0 : i64, scratch_operands = 0 : i64, tpu.core_type = #tpu.core_type<tc>, window_params = [{transform_indices = @transform_0, window_bounds = array<i64: 512, 128>}, {pipeline_mode = #tpu.pipeline_mode<synchronous>, transform_indices = @transform_1, window_bounds = array<i64: 128, 128>}, {pipeline_mode = #tpu.pipeline_mode<synchronous>, transform_indices = @transform_2, window_bounds = array<i64: 128, 128>}, {transform_indices = @transform_3, window_bounds = array<i64: 1, 1, 128>}, {transform_indices = @transform_4, window_bounds = array<i64: 1, 1, 128>}, {transform_indices = @transform_5, window_bounds = array<i64: 1, 1, 128>}, {transform_indices = @transform_6, window_bounds = array<i64: 1, 1, 128>}]} {
    %c0 = arith.constant 0 : index
    %c0_0 = arith.constant 0 : index
    %0 = vector.load %arg1[%c0, %c0_0] : memref<512x128xbf16, #tpu.memory_space<vmem>>, vector<512x128xbf16>
    %c0_1 = arith.constant 0 : index
    %c0_2 = arith.constant 0 : index
    %1 = vector.load %arg2[%c0_1, %c0_2] : memref<128x128xbf16, #tpu.memory_space<vmem>>, vector<128x128xbf16>
    %cst = arith.constant dense<0.000000e+00> : vector<512x128xf32>
    %2 = tpu.matmul %0, %1, %cst {dimension_numbers = #tpu.dot_dimension_numbers<[1], [0], [0], [1], [0, 0, 1, 1], [], []>} : vector<512x128xbf16>, vector<128x128xbf16>, vector<512x128xf32> -> vector<512x128xf32>
    %c0_3 = arith.constant 0 : index
    %c0_4 = arith.constant 0 : index
    %3 = vector.load %arg3[%c0_3, %c0_4] : memref<128x128xbf16, #tpu.memory_space<vmem>>, vector<128x128xbf16>
    %cst_5 = arith.constant dense<0.000000e+00> : vector<512x128xf32>
    %4 = tpu.matmul %0, %3, %cst_5 {dimension_numbers = #tpu.dot_dimension_numbers<[1], [0], [0], [1], [0, 0, 1, 1], [], []>} : vector<512x128xbf16>, vector<128x128xbf16>, vector<512x128xf32> -> vector<512x128xf32>
    %cst_6 = arith.constant dense<0.000000e+00> : vector<128xf32>
    %5 = vector.multi_reduction <add>, %2, %cst_6 [0] : vector<512x128xf32> to vector<128xf32>
    %6 = vector.shape_cast %5 : vector<128xf32> to vector<1x128xf32>
    %c0_7 = arith.constant 0 : index
    %c0_8 = arith.constant 0 : index
    %c0_9 = arith.constant 0 : index
    %7 = vector.load %arg4[%c0_7, %c0_8, %c0_9] : memref<1x1x128xf32, #tpu.memory_space<vmem>>, vector<1x1x128xf32>
    %8 = vector.shape_cast %7 : vector<1x1x128xf32> to vector<1x128xf32>
    %9 = vector.shape_cast %6 : vector<1x128xf32> to vector<1x1x128xf32>
    tpu.vector_store %arg4[%c0_7, %c0_8, %c0_9], %9 {strides = array<i32>} : memref<1x1x128xf32, #tpu.memory_space<vmem>>, vector<1x1x128xf32>,
    %10 = arith.mulf %2, %2 : vector<512x128xf32>
    %cst_10 = arith.constant dense<0.000000e+00> : vector<128xf32>
    %11 = vector.multi_reduction <add>, %10, %cst_10 [0] : vector<512x128xf32> to vector<128xf32>
    %12 = vector.shape_cast %11 : vector<128xf32> to vector<1x128xf32>
    %c0_11 = arith.constant 0 : index
    %c0_12 = arith.constant 0 : index
    %c0_13 = arith.constant 0 : index
    %13 = vector.load %arg5[%c0_11, %c0_12, %c0_13] : memref<1x1x128xf32, #tpu.memory_space<vmem>>, vector<1x1x128xf32>
    %14 = vector.shape_cast %13 : vector<1x1x128xf32> to vector<1x128xf32>
    %15 = vector.shape_cast %12 : vector<1x128xf32> to vector<1x1x128xf32>
    tpu.vector_store %arg5[%c0_11, %c0_12, %c0_13], %15 {strides = array<i32>} : memref<1x1x128xf32, #tpu.memory_space<vmem>>, vector<1x1x128xf32>,
    %cst_14 = arith.constant dense<0.000000e+00> : vector<128xf32>
    %16 = vector.multi_reduction <add>, %4, %cst_14 [0] : vector<512x128xf32> to vector<128xf32>
    %17 = vector.shape_cast %16 : vector<128xf32> to vector<1x128xf32>
    %c0_15 = arith.constant 0 : index
    %c0_16 = arith.constant 0 : index
    %c0_17 = arith.constant 0 : index
    %18 = vector.load %arg6[%c0_15, %c0_16, %c0_17] : memref<1x1x128xf32, #tpu.memory_space<vmem>>, vector<1x1x128xf32>
    %19 = vector.shape_cast %18 : vector<1x1x128xf32> to vector<1x128xf32>
    %20 = vector.shape_cast %17 : vector<1x128xf32> to vector<1x1x128xf32>
    tpu.vector_store %arg6[%c0_15, %c0_16, %c0_17], %20 {strides = array<i32>} : memref<1x1x128xf32, #tpu.memory_space<vmem>>, vector<1x1x128xf32>,
    %21 = arith.mulf %4, %4 : vector<512x128xf32>
    %cst_18 = arith.constant dense<0.000000e+00> : vector<128xf32>
    %22 = vector.multi_reduction <add>, %21, %cst_18 [0] : vector<512x128xf32> to vector<128xf32>
    %23 = vector.shape_cast %22 : vector<128xf32> to vector<1x128xf32>
    %c0_19 = arith.constant 0 : index
    %c0_20 = arith.constant 0 : index
    %c0_21 = arith.constant 0 : index
    %24 = vector.load %arg7[%c0_19, %c0_20, %c0_21] : memref<1x1x128xf32, #tpu.memory_space<vmem>>, vector<1x1x128xf32>
    %25 = vector.shape_cast %24 : vector<1x1x128xf32> to vector<1x128xf32>
    %26 = vector.shape_cast %23 : vector<1x128xf32> to vector<1x1x128xf32>
    tpu.vector_store %arg7[%c0_19, %c0_20, %c0_21], %26 {strides = array<i32>} : memref<1x1x128xf32, #tpu.memory_space<vmem>>, vector<1x1x128xf32>,
    return
  }
  func.func @transform_0(%arg0: i32) -> (i32, i32) {
    %c0_i32 = arith.constant 0 : i32
    %c0_i32_0 = arith.constant 0 : i32
    return %arg0, %c0_i32 : i32, i32
  }
  func.func @transform_1(%arg0: i32) -> (i32, i32) {
    %c0_i32 = arith.constant 0 : i32
    %c0_i32_0 = arith.constant 0 : i32
    %c0_i32_1 = arith.constant 0 : i32
    return %c0_i32, %c0_i32_0 : i32, i32
  }
  func.func @transform_2(%arg0: i32) -> (i32, i32) {
    %c0_i32 = arith.constant 0 : i32
    %c0_i32_0 = arith.constant 0 : i32
    %c0_i32_1 = arith.constant 0 : i32
    return %c0_i32, %c0_i32_0 : i32, i32
  }
  func.func @transform_3(%arg0: i32) -> (i32, i32, i32) {
    %c0_i32 = arith.constant 0 : i32
    %c0_i32_0 = arith.constant 0 : i32
    %c0_i32_1 = arith.constant 0 : i32
    return %arg0, %c0_i32, %c0_i32_0 : i32, i32, i32
  }
  func.func @transform_4(%arg0: i32) -> (i32, i32, i32) {
    %c0_i32 = arith.constant 0 : i32
    %c0_i32_0 = arith.constant 0 : i32
    %c0_i32_1 = arith.constant 0 : i32
    return %arg0, %c0_i32, %c0_i32_0 : i32, i32, i32
  }
  func.func @transform_5(%arg0: i32) -> (i32, i32, i32) {
    %c0_i32 = arith.constant 0 : i32
    %c0_i32_0 = arith.constant 0 : i32
    %c0_i32_1 = arith.constant 0 : i32
    return %arg0, %c0_i32, %c0_i32_0 : i32, i32, i32
  }
  func.func @transform_6(%arg0: i32) -> (i32, i32, i32) {
    %c0_i32 = arith.constant 0 : i32
    %c0_i32_0 = arith.constant 0 : i32
    %c0_i32_1 = arith.constant 0 : i32
    return %arg0, %c0_i32, %c0_i32_0 : i32, i32, i32
  }
}

module attributes {stable_mosaic.version = 11 : i64} {
  func.func @kernel(%arg0: i32, %arg1: memref<256x128xbf16, #tpu.memory_space<vmem>>, %arg2: memref<128x128xbf16, #tpu.memory_space<vmem>>, %arg3: memref<9x128x128xbf16, #tpu.memory_space<vmem>>, %arg4: memref<1x128xf32, #tpu.memory_space<vmem>>, %arg5: memref<1x128xf32, #tpu.memory_space<vmem>>, %arg6: memref<256x128xbf16, #tpu.memory_space<vmem>>, %arg7: memref<1x1x128xf32, #tpu.memory_space<vmem>>, %arg8: memref<1x1x128xf32, #tpu.memory_space<vmem>>, %arg9: memref<3x288x128xbf16, #tpu.memory_space<vmem>>) attributes {dimension_semantics = [#tpu.dimension_semantics<parallel>], iteration_bounds = array<i64: 2>, scalar_prefetch = 0 : i64, scratch_operands = 1 : i64, tpu.core_type = #tpu.core_type<tc>, window_params = [{transform_indices = @transform_0, window_bounds = array<i64: 256, 128>}, {pipeline_mode = #tpu.pipeline_mode<synchronous>, transform_indices = @transform_1, window_bounds = array<i64: 128, 128>}, {pipeline_mode = #tpu.pipeline_mode<synchronous>, transform_indices = @transform_2, window_bounds = array<i64: 9, 128, 128>}, {pipeline_mode = #tpu.pipeline_mode<synchronous>, transform_indices = @transform_3, window_bounds = array<i64: 1, 128>}, {pipeline_mode = #tpu.pipeline_mode<synchronous>, transform_indices = @transform_4, window_bounds = array<i64: 1, 128>}, {transform_indices = @transform_5, window_bounds = array<i64: 256, 128>}, {transform_indices = @transform_6, window_bounds = array<i64: 1, 1, 128>}, {transform_indices = @transform_7, window_bounds = array<i64: 1, 1, 128>}]} {
    %c0 = arith.constant 0 : index
    %c0_0 = arith.constant 0 : index
    %0 = vector.load %arg1[%c0, %c0_0] : memref<256x128xbf16, #tpu.memory_space<vmem>>, vector<256x128xbf16>
    %c0_1 = arith.constant 0 : index
    %c0_2 = arith.constant 0 : index
    %1 = vector.load %arg2[%c0_1, %c0_2] : memref<128x128xbf16, #tpu.memory_space<vmem>>, vector<128x128xbf16>
    %cst = arith.constant dense<0.000000e+00> : vector<256x128xf32>
    %2 = tpu.matmul %0, %1, %cst {dimension_numbers = #tpu.dot_dimension_numbers<[1], [0], [0], [1], [0, 0, 1, 1], [], []>} : vector<256x128xbf16>, vector<128x128xbf16>, vector<256x128xf32> -> vector<256x128xf32>
    %c0_3 = arith.constant 0 : index
    %c0_4 = arith.constant 0 : index
    %3 = vector.load %arg4[%c0_3, %c0_4] : memref<1x128xf32, #tpu.memory_space<vmem>>, vector<1x128xf32>
    %4 = vector.broadcast %3 : vector<1x128xf32> to vector<256x128xf32>
    %5 = arith.mulf %2, %4 : vector<256x128xf32>
    %c0_5 = arith.constant 0 : index
    %c0_6 = arith.constant 0 : index
    %6 = vector.load %arg5[%c0_5, %c0_6] : memref<1x128xf32, #tpu.memory_space<vmem>>, vector<1x128xf32>
    %7 = vector.broadcast %6 : vector<1x128xf32> to vector<256x128xf32>
    %8 = arith.addf %5, %7 : vector<256x128xf32>
    %cst_7 = arith.constant 0.000000e+00 : f32
    %9 = vector.broadcast %cst_7 : f32 to vector<256x128xf32>
    %10 = arith.maximumf %8, %9 : vector<256x128xf32>
    %11 = tpu.iota {dimensions = array<i32: 0>} : vector<256x128xi32>
    %c16_i32 = arith.constant 16 : i32
    %c0_i32 = arith.constant 0 : i32
    %12 = arith.cmpi eq, %c16_i32, %c0_i32 : i32
    %c1_i32 = arith.constant 1 : i32
    %13 = arith.select %12, %c1_i32, %c16_i32 : i32
    %14 = vector.broadcast %13 : i32 to vector<256x128xi32>
    %15 = arith.remsi %11, %14 : vector<256x128xi32>
    %c0_i32_8 = arith.constant 0 : i32
    %16 = vector.broadcast %c0_i32_8 : i32 to vector<256x128xi32>
    %17 = arith.cmpi ne, %15, %16 : vector<256x128xi32>
    %c0_i32_9 = arith.constant 0 : i32
    %18 = vector.broadcast %c0_i32_9 : i32 to vector<256x128xi32>
    %19 = arith.cmpi slt, %15, %18 : vector<256x128xi32>
    %c0_i32_10 = arith.constant 0 : i32
    %20 = arith.cmpi slt, %13, %c0_i32_10 : i32
    %21 = vector.broadcast %20 : i1 to vector<256x128xi1>
    %22 = vector.broadcast %21 : vector<256x128xi1> to vector<256x128xi1>
    %23 = arith.xori %19, %22 : vector<256x128xi1>
    %24 = arith.andi %23, %17 : vector<256x128xi1>
    %25 = vector.broadcast %13 : i32 to vector<256x128xi32>
    %26 = arith.addi %15, %25 : vector<256x128xi32>
    %27 = arith.select %24, %26, %15 : vector<256x128xi1>, vector<256x128xi32>
    %28 = arith.truncf %10 : vector<256x128xf32> to vector<256x128xbf16>
    %c15_i32 = arith.constant 15 : i32
    %29 = vector.broadcast %c15_i32 : i32 to vector<256x128xi32>
    %30 = arith.cmpi eq, %27, %29 : vector<256x128xi32>
    %cst_11 = arith.constant 0.000000e+00 : f32
    %31 = vector.broadcast %cst_11 : f32 to vector<256x128xf32>
    %32 = arith.select %30, %31, %10 : vector<256x128xi1>, vector<256x128xf32>
    %33 = arith.truncf %32 : vector<256x128xf32> to vector<256x128xbf16>
    %c0_i32_12 = arith.constant 0 : i32
    %34 = vector.broadcast %c0_i32_12 : i32 to vector<256x128xi32>
    %35 = arith.cmpi eq, %27, %34 : vector<256x128xi32>
    %cst_13 = arith.constant 0.000000e+00 : f32
    %36 = vector.broadcast %cst_13 : f32 to vector<256x128xf32>
    %37 = arith.select %35, %36, %10 : vector<256x128xi1>, vector<256x128xf32>
    %38 = arith.truncf %37 : vector<256x128xf32> to vector<256x128xbf16>
    %cst_14 = arith.constant 0.000000e+00 : bf16
    %39 = vector.broadcast %cst_14 : bf16 to vector<3x17x128xbf16>
    %c0_15 = arith.constant 0 : index
    %c0_16 = arith.constant 0 : index
    %c0_17 = arith.constant 0 : index
    %40 = vector.load %arg9[%c0_15, %c0_16, %c0_17] : memref<3x288x128xbf16, #tpu.memory_space<vmem>>, vector<3x17x128xbf16>
    tpu.vector_store %arg9[%c0_15, %c0_16, %c0_17], %39 {strides = array<i32>} : memref<3x288x128xbf16, #tpu.memory_space<vmem>>, vector<3x17x128xbf16>,
    %c0_18 = arith.constant 0 : index
    %c271 = arith.constant 271 : index
    %c0_19 = arith.constant 0 : index
    %41 = vector.load %arg9[%c0_18, %c271, %c0_19] : memref<3x288x128xbf16, #tpu.memory_space<vmem>>, vector<3x17x128xbf16>
    tpu.vector_store %arg9[%c0_18, %c271, %c0_19], %39 {strides = array<i32>} : memref<3x288x128xbf16, #tpu.memory_space<vmem>>, vector<3x17x128xbf16>,
    %c0_20 = arith.constant 0 : index
    %c17 = arith.constant 17 : index
    %c0_21 = arith.constant 0 : index
    %42 = vector.load %arg9[%c0_20, %c17, %c0_21] : memref<3x288x128xbf16, #tpu.memory_space<vmem>>, vector<1x256x128xbf16>
    %43 = vector.shape_cast %42 : vector<1x256x128xbf16> to vector<256x128xbf16>
    %44 = vector.shape_cast %33 : vector<256x128xbf16> to vector<1x256x128xbf16>
    tpu.vector_store %arg9[%c0_20, %c17, %c0_21], %44 {strides = array<i32>} : memref<3x288x128xbf16, #tpu.memory_space<vmem>>, vector<1x256x128xbf16>,
    %c1 = arith.constant 1 : index
    %c16 = arith.constant 16 : index
    %c0_22 = arith.constant 0 : index
    %45 = vector.load %arg9[%c1, %c16, %c0_22] : memref<3x288x128xbf16, #tpu.memory_space<vmem>>, vector<1x256x128xbf16>
    %46 = vector.shape_cast %45 : vector<1x256x128xbf16> to vector<256x128xbf16>
    %47 = vector.shape_cast %28 : vector<256x128xbf16> to vector<1x256x128xbf16>
    tpu.vector_store %arg9[%c1, %c16, %c0_22], %47 {strides = array<i32>} : memref<3x288x128xbf16, #tpu.memory_space<vmem>>, vector<1x256x128xbf16>,
    %c2 = arith.constant 2 : index
    %c15 = arith.constant 15 : index
    %c0_23 = arith.constant 0 : index
    %48 = vector.load %arg9[%c2, %c15, %c0_23] : memref<3x288x128xbf16, #tpu.memory_space<vmem>>, vector<1x256x128xbf16>
    %49 = vector.shape_cast %48 : vector<1x256x128xbf16> to vector<256x128xbf16>
    %50 = vector.shape_cast %38 : vector<256x128xbf16> to vector<1x256x128xbf16>
    tpu.vector_store %arg9[%c2, %c15, %c0_23], %50 {strides = array<i32>} : memref<3x288x128xbf16, #tpu.memory_space<vmem>>, vector<1x256x128xbf16>,
    %c0_24 = arith.constant 0 : index
    %c0_25 = arith.constant 0 : index
    %c0_26 = arith.constant 0 : index
    %51 = vector.load %arg9[%c0_24, %c0_25, %c0_26] : memref<3x288x128xbf16, #tpu.memory_space<vmem>>, vector<1x256x128xbf16>
    %52 = vector.shape_cast %51 : vector<1x256x128xbf16> to vector<256x128xbf16>
    %c0_27 = arith.constant 0 : index
    %c0_28 = arith.constant 0 : index
    %c0_29 = arith.constant 0 : index
    %53 = vector.load %arg3[%c0_27, %c0_28, %c0_29] : memref<9x128x128xbf16, #tpu.memory_space<vmem>>, vector<1x128x128xbf16>
    %54 = vector.shape_cast %53 : vector<1x128x128xbf16> to vector<128x128xbf16>
    %cst_30 = arith.constant dense<0.000000e+00> : vector<256x128xf32>
    %55 = tpu.matmul %52, %54, %cst_30 {dimension_numbers = #tpu.dot_dimension_numbers<[1], [0], [0], [1], [0, 0, 1, 1], [], []>} : vector<256x128xbf16>, vector<128x128xbf16>, vector<256x128xf32> -> vector<256x128xf32>
    %c1_31 = arith.constant 1 : index
    %c0_32 = arith.constant 0 : index
    %c0_33 = arith.constant 0 : index
    %56 = vector.load %arg9[%c1_31, %c0_32, %c0_33] : memref<3x288x128xbf16, #tpu.memory_space<vmem>>, vector<1x256x128xbf16>
    %57 = vector.shape_cast %56 : vector<1x256x128xbf16> to vector<256x128xbf16>
    %c1_34 = arith.constant 1 : index
    %c0_35 = arith.constant 0 : index
    %c0_36 = arith.constant 0 : index
    %58 = vector.load %arg3[%c1_34, %c0_35, %c0_36] : memref<9x128x128xbf16, #tpu.memory_space<vmem>>, vector<1x128x128xbf16>
    %59 = vector.shape_cast %58 : vector<1x128x128xbf16> to vector<128x128xbf16>
    %cst_37 = arith.constant dense<0.000000e+00> : vector<256x128xf32>
    %60 = tpu.matmul %57, %59, %cst_37 {dimension_numbers = #tpu.dot_dimension_numbers<[1], [0], [0], [1], [0, 0, 1, 1], [], []>} : vector<256x128xbf16>, vector<128x128xbf16>, vector<256x128xf32> -> vector<256x128xf32>
    %61 = arith.addf %55, %60 : vector<256x128xf32>
    %c2_38 = arith.constant 2 : index
    %c0_39 = arith.constant 0 : index
    %c0_40 = arith.constant 0 : index
    %62 = vector.load %arg9[%c2_38, %c0_39, %c0_40] : memref<3x288x128xbf16, #tpu.memory_space<vmem>>, vector<1x256x128xbf16>
    %63 = vector.shape_cast %62 : vector<1x256x128xbf16> to vector<256x128xbf16>
    %c2_41 = arith.constant 2 : index
    %c0_42 = arith.constant 0 : index
    %c0_43 = arith.constant 0 : index
    %64 = vector.load %arg3[%c2_41, %c0_42, %c0_43] : memref<9x128x128xbf16, #tpu.memory_space<vmem>>, vector<1x128x128xbf16>
    %65 = vector.shape_cast %64 : vector<1x128x128xbf16> to vector<128x128xbf16>
    %cst_44 = arith.constant dense<0.000000e+00> : vector<256x128xf32>
    %66 = tpu.matmul %63, %65, %cst_44 {dimension_numbers = #tpu.dot_dimension_numbers<[1], [0], [0], [1], [0, 0, 1, 1], [], []>} : vector<256x128xbf16>, vector<128x128xbf16>, vector<256x128xf32> -> vector<256x128xf32>
    %67 = arith.addf %61, %66 : vector<256x128xf32>
    %c0_45 = arith.constant 0 : index
    %c16_46 = arith.constant 16 : index
    %c0_47 = arith.constant 0 : index
    %68 = vector.load %arg9[%c0_45, %c16_46, %c0_47] : memref<3x288x128xbf16, #tpu.memory_space<vmem>>, vector<1x256x128xbf16>
    %69 = vector.shape_cast %68 : vector<1x256x128xbf16> to vector<256x128xbf16>
    %c3 = arith.constant 3 : index
    %c0_48 = arith.constant 0 : index
    %c0_49 = arith.constant 0 : index
    %70 = vector.load %arg3[%c3, %c0_48, %c0_49] : memref<9x128x128xbf16, #tpu.memory_space<vmem>>, vector<1x128x128xbf16>
    %71 = vector.shape_cast %70 : vector<1x128x128xbf16> to vector<128x128xbf16>
    %cst_50 = arith.constant dense<0.000000e+00> : vector<256x128xf32>
    %72 = tpu.matmul %69, %71, %cst_50 {dimension_numbers = #tpu.dot_dimension_numbers<[1], [0], [0], [1], [0, 0, 1, 1], [], []>} : vector<256x128xbf16>, vector<128x128xbf16>, vector<256x128xf32> -> vector<256x128xf32>
    %73 = arith.addf %67, %72 : vector<256x128xf32>
    %c1_51 = arith.constant 1 : index
    %c16_52 = arith.constant 16 : index
    %c0_53 = arith.constant 0 : index
    %74 = vector.load %arg9[%c1_51, %c16_52, %c0_53] : memref<3x288x128xbf16, #tpu.memory_space<vmem>>, vector<1x256x128xbf16>
    %75 = vector.shape_cast %74 : vector<1x256x128xbf16> to vector<256x128xbf16>
    %c4 = arith.constant 4 : index
    %c0_54 = arith.constant 0 : index
    %c0_55 = arith.constant 0 : index
    %76 = vector.load %arg3[%c4, %c0_54, %c0_55] : memref<9x128x128xbf16, #tpu.memory_space<vmem>>, vector<1x128x128xbf16>
    %77 = vector.shape_cast %76 : vector<1x128x128xbf16> to vector<128x128xbf16>
    %cst_56 = arith.constant dense<0.000000e+00> : vector<256x128xf32>
    %78 = tpu.matmul %75, %77, %cst_56 {dimension_numbers = #tpu.dot_dimension_numbers<[1], [0], [0], [1], [0, 0, 1, 1], [], []>} : vector<256x128xbf16>, vector<128x128xbf16>, vector<256x128xf32> -> vector<256x128xf32>
    %79 = arith.addf %73, %78 : vector<256x128xf32>
    %c2_57 = arith.constant 2 : index
    %c16_58 = arith.constant 16 : index
    %c0_59 = arith.constant 0 : index
    %80 = vector.load %arg9[%c2_57, %c16_58, %c0_59] : memref<3x288x128xbf16, #tpu.memory_space<vmem>>, vector<1x256x128xbf16>
    %81 = vector.shape_cast %80 : vector<1x256x128xbf16> to vector<256x128xbf16>
    %c5 = arith.constant 5 : index
    %c0_60 = arith.constant 0 : index
    %c0_61 = arith.constant 0 : index
    %82 = vector.load %arg3[%c5, %c0_60, %c0_61] : memref<9x128x128xbf16, #tpu.memory_space<vmem>>, vector<1x128x128xbf16>
    %83 = vector.shape_cast %82 : vector<1x128x128xbf16> to vector<128x128xbf16>
    %cst_62 = arith.constant dense<0.000000e+00> : vector<256x128xf32>
    %84 = tpu.matmul %81, %83, %cst_62 {dimension_numbers = #tpu.dot_dimension_numbers<[1], [0], [0], [1], [0, 0, 1, 1], [], []>} : vector<256x128xbf16>, vector<128x128xbf16>, vector<256x128xf32> -> vector<256x128xf32>
    %85 = arith.addf %79, %84 : vector<256x128xf32>
    %c0_63 = arith.constant 0 : index
    %c32 = arith.constant 32 : index
    %c0_64 = arith.constant 0 : index
    %86 = vector.load %arg9[%c0_63, %c32, %c0_64] : memref<3x288x128xbf16, #tpu.memory_space<vmem>>, vector<1x256x128xbf16>
    %87 = vector.shape_cast %86 : vector<1x256x128xbf16> to vector<256x128xbf16>
    %c6 = arith.constant 6 : index
    %c0_65 = arith.constant 0 : index
    %c0_66 = arith.constant 0 : index
    %88 = vector.load %arg3[%c6, %c0_65, %c0_66] : memref<9x128x128xbf16, #tpu.memory_space<vmem>>, vector<1x128x128xbf16>
    %89 = vector.shape_cast %88 : vector<1x128x128xbf16> to vector<128x128xbf16>
    %cst_67 = arith.constant dense<0.000000e+00> : vector<256x128xf32>
    %90 = tpu.matmul %87, %89, %cst_67 {dimension_numbers = #tpu.dot_dimension_numbers<[1], [0], [0], [1], [0, 0, 1, 1], [], []>} : vector<256x128xbf16>, vector<128x128xbf16>, vector<256x128xf32> -> vector<256x128xf32>
    %91 = arith.addf %85, %90 : vector<256x128xf32>
    %c1_68 = arith.constant 1 : index
    %c32_69 = arith.constant 32 : index
    %c0_70 = arith.constant 0 : index
    %92 = vector.load %arg9[%c1_68, %c32_69, %c0_70] : memref<3x288x128xbf16, #tpu.memory_space<vmem>>, vector<1x256x128xbf16>
    %93 = vector.shape_cast %92 : vector<1x256x128xbf16> to vector<256x128xbf16>
    %c7 = arith.constant 7 : index
    %c0_71 = arith.constant 0 : index
    %c0_72 = arith.constant 0 : index
    %94 = vector.load %arg3[%c7, %c0_71, %c0_72] : memref<9x128x128xbf16, #tpu.memory_space<vmem>>, vector<1x128x128xbf16>
    %95 = vector.shape_cast %94 : vector<1x128x128xbf16> to vector<128x128xbf16>
    %cst_73 = arith.constant dense<0.000000e+00> : vector<256x128xf32>
    %96 = tpu.matmul %93, %95, %cst_73 {dimension_numbers = #tpu.dot_dimension_numbers<[1], [0], [0], [1], [0, 0, 1, 1], [], []>} : vector<256x128xbf16>, vector<128x128xbf16>, vector<256x128xf32> -> vector<256x128xf32>
    %97 = arith.addf %91, %96 : vector<256x128xf32>
    %c2_74 = arith.constant 2 : index
    %c32_75 = arith.constant 32 : index
    %c0_76 = arith.constant 0 : index
    %98 = vector.load %arg9[%c2_74, %c32_75, %c0_76] : memref<3x288x128xbf16, #tpu.memory_space<vmem>>, vector<1x256x128xbf16>
    %99 = vector.shape_cast %98 : vector<1x256x128xbf16> to vector<256x128xbf16>
    %c8 = arith.constant 8 : index
    %c0_77 = arith.constant 0 : index
    %c0_78 = arith.constant 0 : index
    %100 = vector.load %arg3[%c8, %c0_77, %c0_78] : memref<9x128x128xbf16, #tpu.memory_space<vmem>>, vector<1x128x128xbf16>
    %101 = vector.shape_cast %100 : vector<1x128x128xbf16> to vector<128x128xbf16>
    %cst_79 = arith.constant dense<0.000000e+00> : vector<256x128xf32>
    %102 = tpu.matmul %99, %101, %cst_79 {dimension_numbers = #tpu.dot_dimension_numbers<[1], [0], [0], [1], [0, 0, 1, 1], [], []>} : vector<256x128xbf16>, vector<128x128xbf16>, vector<256x128xf32> -> vector<256x128xf32>
    %103 = arith.addf %97, %102 : vector<256x128xf32>
    %cst_80 = arith.constant dense<0.000000e+00> : vector<128xf32>
    %104 = vector.multi_reduction <add>, %103, %cst_80 [0] : vector<256x128xf32> to vector<128xf32>
    %105 = vector.shape_cast %104 : vector<128xf32> to vector<1x128xf32>
    %c0_81 = arith.constant 0 : index
    %c0_82 = arith.constant 0 : index
    %c0_83 = arith.constant 0 : index
    %106 = vector.load %arg7[%c0_81, %c0_82, %c0_83] : memref<1x1x128xf32, #tpu.memory_space<vmem>>, vector<1x1x128xf32>
    %107 = vector.shape_cast %106 : vector<1x1x128xf32> to vector<1x128xf32>
    %108 = vector.shape_cast %105 : vector<1x128xf32> to vector<1x1x128xf32>
    tpu.vector_store %arg7[%c0_81, %c0_82, %c0_83], %108 {strides = array<i32>} : memref<1x1x128xf32, #tpu.memory_space<vmem>>, vector<1x1x128xf32>,
    %109 = arith.mulf %103, %103 : vector<256x128xf32>
    %cst_84 = arith.constant dense<0.000000e+00> : vector<128xf32>
    %110 = vector.multi_reduction <add>, %109, %cst_84 [0] : vector<256x128xf32> to vector<128xf32>
    %111 = vector.shape_cast %110 : vector<128xf32> to vector<1x128xf32>
    %c0_85 = arith.constant 0 : index
    %c0_86 = arith.constant 0 : index
    %c0_87 = arith.constant 0 : index
    %112 = vector.load %arg8[%c0_85, %c0_86, %c0_87] : memref<1x1x128xf32, #tpu.memory_space<vmem>>, vector<1x1x128xf32>
    %113 = vector.shape_cast %112 : vector<1x1x128xf32> to vector<1x128xf32>
    %114 = vector.shape_cast %111 : vector<1x128xf32> to vector<1x1x128xf32>
    tpu.vector_store %arg8[%c0_85, %c0_86, %c0_87], %114 {strides = array<i32>} : memref<1x1x128xf32, #tpu.memory_space<vmem>>, vector<1x1x128xf32>,
    %115 = arith.truncf %103 : vector<256x128xf32> to vector<256x128xbf16>
    %c0_88 = arith.constant 0 : index
    %c0_89 = arith.constant 0 : index
    %116 = vector.load %arg6[%c0_88, %c0_89] : memref<256x128xbf16, #tpu.memory_space<vmem>>, vector<256x128xbf16>
    tpu.vector_store %arg6[%c0_88, %c0_89], %115 {strides = array<i32>} : memref<256x128xbf16, #tpu.memory_space<vmem>>, vector<256x128xbf16>,
    return
  }
  func.func @transform_0(%arg0: i32) -> (i32, i32) {
    %c0_i32 = arith.constant 0 : i32
    %c0_i32_0 = arith.constant 0 : i32
    return %arg0, %c0_i32 : i32, i32
  }
  func.func @transform_1(%arg0: i32) -> (i32, i32) {
    %c0_i32 = arith.constant 0 : i32
    %c0_i32_0 = arith.constant 0 : i32
    %c0_i32_1 = arith.constant 0 : i32
    return %c0_i32, %c0_i32_0 : i32, i32
  }
  func.func @transform_2(%arg0: i32) -> (i32, i32, i32) {
    %c0_i32 = arith.constant 0 : i32
    %c0_i32_0 = arith.constant 0 : i32
    %c0_i32_1 = arith.constant 0 : i32
    %c0_i32_2 = arith.constant 0 : i32
    return %c0_i32, %c0_i32_0, %c0_i32_1 : i32, i32, i32
  }
  func.func @transform_3(%arg0: i32) -> (i32, i32) {
    %c0_i32 = arith.constant 0 : i32
    %c0_i32_0 = arith.constant 0 : i32
    %c0_i32_1 = arith.constant 0 : i32
    return %c0_i32, %c0_i32_0 : i32, i32
  }
  func.func @transform_4(%arg0: i32) -> (i32, i32) {
    %c0_i32 = arith.constant 0 : i32
    %c0_i32_0 = arith.constant 0 : i32
    %c0_i32_1 = arith.constant 0 : i32
    return %c0_i32, %c0_i32_0 : i32, i32
  }
  func.func @transform_5(%arg0: i32) -> (i32, i32) {
    %c0_i32 = arith.constant 0 : i32
    %c0_i32_0 = arith.constant 0 : i32
    return %arg0, %c0_i32 : i32, i32
  }
  func.func @transform_6(%arg0: i32) -> (i32, i32, i32) {
    %c0_i32 = arith.constant 0 : i32
    %c0_i32_0 = arith.constant 0 : i32
    %c0_i32_1 = arith.constant 0 : i32
    return %arg0, %c0_i32, %c0_i32_0 : i32, i32, i32
  }
  func.func @transform_7(%arg0: i32) -> (i32, i32, i32) {
    %c0_i32 = arith.constant 0 : i32
    %c0_i32_0 = arith.constant 0 : i32
    %c0_i32_1 = arith.constant 0 : i32
    return %arg0, %c0_i32, %c0_i32_0 : i32, i32, i32
  }
}

module attributes {stable_mosaic.version = 11 : i64} {
  func.func @_stats3_kernel(%arg0: i32, %arg1: memref<512x128xbf16, #tpu.memory_space<vmem>>, %arg2: memref<1x128xf32, #tpu.memory_space<vmem>>, %arg3: memref<1x128xf32, #tpu.memory_space<vmem>>, %arg4: memref<128x128xbf16, #tpu.memory_space<vmem>>, %arg5: memref<1x1x128xf32, #tpu.memory_space<vmem>>, %arg6: memref<1x1x128xf32, #tpu.memory_space<vmem>>) attributes {dimension_semantics = [#tpu.dimension_semantics<parallel>], iteration_bounds = array<i64: 1>, scalar_prefetch = 0 : i64, scratch_operands = 0 : i64, tpu.core_type = #tpu.core_type<tc>, window_params = [{transform_indices = @transform_0, window_bounds = array<i64: 512, 128>}, {pipeline_mode = #tpu.pipeline_mode<synchronous>, transform_indices = @transform_1, window_bounds = array<i64: 1, 128>}, {pipeline_mode = #tpu.pipeline_mode<synchronous>, transform_indices = @transform_2, window_bounds = array<i64: 1, 128>}, {pipeline_mode = #tpu.pipeline_mode<synchronous>, transform_indices = @transform_3, window_bounds = array<i64: 128, 128>}, {transform_indices = @transform_4, window_bounds = array<i64: 1, 1, 128>}, {transform_indices = @transform_5, window_bounds = array<i64: 1, 1, 128>}]} {
    %c0 = arith.constant 0 : index
    %c0_0 = arith.constant 0 : index
    %0 = vector.load %arg1[%c0, %c0_0] : memref<512x128xbf16, #tpu.memory_space<vmem>>, vector<512x128xbf16>
    %c0_1 = arith.constant 0 : index
    %c0_2 = arith.constant 0 : index
    %1 = vector.load %arg2[%c0_1, %c0_2] : memref<1x128xf32, #tpu.memory_space<vmem>>, vector<1x128xf32>
    %2 = arith.extf %0 : vector<512x128xbf16> to vector<512x128xf32>
    %3 = vector.broadcast %1 : vector<1x128xf32> to vector<512x128xf32>
    %4 = arith.mulf %2, %3 : vector<512x128xf32>
    %c0_3 = arith.constant 0 : index
    %c0_4 = arith.constant 0 : index
    %5 = vector.load %arg3[%c0_3, %c0_4] : memref<1x128xf32, #tpu.memory_space<vmem>>, vector<1x128xf32>
    %6 = vector.broadcast %5 : vector<1x128xf32> to vector<512x128xf32>
    %7 = arith.addf %4, %6 : vector<512x128xf32>
    %cst = arith.constant 0.000000e+00 : f32
    %8 = vector.broadcast %cst : f32 to vector<512x128xf32>
    %9 = arith.maximumf %7, %8 : vector<512x128xf32>
    %10 = arith.truncf %9 : vector<512x128xf32> to vector<512x128xbf16>
    %c0_5 = arith.constant 0 : index
    %c0_6 = arith.constant 0 : index
    %11 = vector.load %arg4[%c0_5, %c0_6] : memref<128x128xbf16, #tpu.memory_space<vmem>>, vector<128x128xbf16>
    %cst_7 = arith.constant dense<0.000000e+00> : vector<512x128xf32>
    %12 = tpu.matmul %10, %11, %cst_7 {dimension_numbers = #tpu.dot_dimension_numbers<[1], [0], [0], [1], [0, 0, 1, 1], [], []>} : vector<512x128xbf16>, vector<128x128xbf16>, vector<512x128xf32> -> vector<512x128xf32>
    %cst_8 = arith.constant dense<0.000000e+00> : vector<128xf32>
    %13 = vector.multi_reduction <add>, %12, %cst_8 [0] : vector<512x128xf32> to vector<128xf32>
    %14 = vector.shape_cast %13 : vector<128xf32> to vector<1x128xf32>
    %c0_9 = arith.constant 0 : index
    %c0_10 = arith.constant 0 : index
    %c0_11 = arith.constant 0 : index
    %15 = vector.load %arg5[%c0_9, %c0_10, %c0_11] : memref<1x1x128xf32, #tpu.memory_space<vmem>>, vector<1x1x128xf32>
    %16 = vector.shape_cast %15 : vector<1x1x128xf32> to vector<1x128xf32>
    %17 = vector.shape_cast %14 : vector<1x128xf32> to vector<1x1x128xf32>
    tpu.vector_store %arg5[%c0_9, %c0_10, %c0_11], %17 {strides = array<i32>} : memref<1x1x128xf32, #tpu.memory_space<vmem>>, vector<1x1x128xf32>,
    %18 = arith.mulf %12, %12 : vector<512x128xf32>
    %cst_12 = arith.constant dense<0.000000e+00> : vector<128xf32>
    %19 = vector.multi_reduction <add>, %18, %cst_12 [0] : vector<512x128xf32> to vector<128xf32>
    %20 = vector.shape_cast %19 : vector<128xf32> to vector<1x128xf32>
    %c0_13 = arith.constant 0 : index
    %c0_14 = arith.constant 0 : index
    %c0_15 = arith.constant 0 : index
    %21 = vector.load %arg6[%c0_13, %c0_14, %c0_15] : memref<1x1x128xf32, #tpu.memory_space<vmem>>, vector<1x1x128xf32>
    %22 = vector.shape_cast %21 : vector<1x1x128xf32> to vector<1x128xf32>
    %23 = vector.shape_cast %20 : vector<1x128xf32> to vector<1x1x128xf32>
    tpu.vector_store %arg6[%c0_13, %c0_14, %c0_15], %23 {strides = array<i32>} : memref<1x1x128xf32, #tpu.memory_space<vmem>>, vector<1x1x128xf32>,
    return
  }
  func.func @transform_0(%arg0: i32) -> (i32, i32) {
    %c0_i32 = arith.constant 0 : i32
    %c0_i32_0 = arith.constant 0 : i32
    return %arg0, %c0_i32 : i32, i32
  }
  func.func @transform_1(%arg0: i32) -> (i32, i32) {
    %c0_i32 = arith.constant 0 : i32
    %c0_i32_0 = arith.constant 0 : i32
    %c0_i32_1 = arith.constant 0 : i32
    return %c0_i32, %c0_i32_0 : i32, i32
  }
  func.func @transform_2(%arg0: i32) -> (i32, i32) {
    %c0_i32 = arith.constant 0 : i32
    %c0_i32_0 = arith.constant 0 : i32
    %c0_i32_1 = arith.constant 0 : i32
    return %c0_i32, %c0_i32_0 : i32, i32
  }
  func.func @transform_3(%arg0: i32) -> (i32, i32) {
    %c0_i32 = arith.constant 0 : i32
    %c0_i32_0 = arith.constant 0 : i32
    %c0_i32_1 = arith.constant 0 : i32
    return %c0_i32, %c0_i32_0 : i32, i32
  }
  func.func @transform_4(%arg0: i32) -> (i32, i32, i32) {
    %c0_i32 = arith.constant 0 : i32
    %c0_i32_0 = arith.constant 0 : i32
    %c0_i32_1 = arith.constant 0 : i32
    return %arg0, %c0_i32, %c0_i32_0 : i32, i32, i32
  }
  func.func @transform_5(%arg0: i32) -> (i32, i32, i32) {
    %c0_i32 = arith.constant 0 : i32
    %c0_i32_0 = arith.constant 0 : i32
    %c0_i32_1 = arith.constant 0 : i32
    return %arg0, %c0_i32, %c0_i32_0 : i32, i32, i32
  }
}

module attributes {stable_mosaic.version = 11 : i64} {
  func.func @_final_kernel(%arg0: i32, %arg1: memref<512x128xbf16, #tpu.memory_space<vmem>>, %arg2: memref<512x128xbf16, #tpu.memory_space<vmem>>, %arg3: memref<1x128xf32, #tpu.memory_space<vmem>>, %arg4: memref<1x128xf32, #tpu.memory_space<vmem>>, %arg5: memref<128x128xbf16, #tpu.memory_space<vmem>>, %arg6: memref<1x128xf32, #tpu.memory_space<vmem>>, %arg7: memref<1x128xf32, #tpu.memory_space<vmem>>, %arg8: memref<128x128xbf16, #tpu.memory_space<vmem>>, %arg9: memref<1x128xf32, #tpu.memory_space<vmem>>, %arg10: memref<1x128xf32, #tpu.memory_space<vmem>>, %arg11: memref<512x128xf32, #tpu.memory_space<vmem>>) attributes {dimension_semantics = [#tpu.dimension_semantics<parallel>], iteration_bounds = array<i64: 1>, scalar_prefetch = 0 : i64, scratch_operands = 0 : i64, tpu.core_type = #tpu.core_type<tc>, window_params = [{transform_indices = @transform_0, window_bounds = array<i64: 512, 128>}, {transform_indices = @transform_1, window_bounds = array<i64: 512, 128>}, {pipeline_mode = #tpu.pipeline_mode<synchronous>, transform_indices = @transform_2, window_bounds = array<i64: 1, 128>}, {pipeline_mode = #tpu.pipeline_mode<synchronous>, transform_indices = @transform_3, window_bounds = array<i64: 1, 128>}, {pipeline_mode = #tpu.pipeline_mode<synchronous>, transform_indices = @transform_4, window_bounds = array<i64: 128, 128>}, {pipeline_mode = #tpu.pipeline_mode<synchronous>, transform_indices = @transform_5, window_bounds = array<i64: 1, 128>}, {pipeline_mode = #tpu.pipeline_mode<synchronous>, transform_indices = @transform_6, window_bounds = array<i64: 1, 128>}, {pipeline_mode = #tpu.pipeline_mode<synchronous>, transform_indices = @transform_7, window_bounds = array<i64: 128, 128>}, {pipeline_mode = #tpu.pipeline_mode<synchronous>, transform_indices = @transform_8, window_bounds = array<i64: 1, 128>}, {pipeline_mode = #tpu.pipeline_mode<synchronous>, transform_indices = @transform_9, window_bounds = array<i64: 1, 128>}, {transform_indices = @transform_10, window_bounds = array<i64: 512, 128>}]} {
    %c0 = arith.constant 0 : index
    %c0_0 = arith.constant 0 : index
    %0 = vector.load %arg1[%c0, %c0_0] : memref<512x128xbf16, #tpu.memory_space<vmem>>, vector<512x128xbf16>
    %c0_1 = arith.constant 0 : index
    %c0_2 = arith.constant 0 : index
    %1 = vector.load %arg3[%c0_1, %c0_2] : memref<1x128xf32, #tpu.memory_space<vmem>>, vector<1x128xf32>
    %2 = arith.extf %0 : vector<512x128xbf16> to vector<512x128xf32>
    %3 = vector.broadcast %1 : vector<1x128xf32> to vector<512x128xf32>
    %4 = arith.mulf %2, %3 : vector<512x128xf32>
    %c0_3 = arith.constant 0 : index
    %c0_4 = arith.constant 0 : index
    %5 = vector.load %arg4[%c0_3, %c0_4] : memref<1x128xf32, #tpu.memory_space<vmem>>, vector<1x128xf32>
    %6 = vector.broadcast %5 : vector<1x128xf32> to vector<512x128xf32>
    %7 = arith.addf %4, %6 : vector<512x128xf32>
    %cst = arith.constant 0.000000e+00 : f32
    %8 = vector.broadcast %cst : f32 to vector<512x128xf32>
    %9 = arith.maximumf %7, %8 : vector<512x128xf32>
    %10 = arith.truncf %9 : vector<512x128xf32> to vector<512x128xbf16>
    %c0_5 = arith.constant 0 : index
    %c0_6 = arith.constant 0 : index
    %11 = vector.load %arg5[%c0_5, %c0_6] : memref<128x128xbf16, #tpu.memory_space<vmem>>, vector<128x128xbf16>
    %cst_7 = arith.constant dense<0.000000e+00> : vector<512x128xf32>
    %12 = tpu.matmul %10, %11, %cst_7 {dimension_numbers = #tpu.dot_dimension_numbers<[1], [0], [0], [1], [0, 0, 1, 1], [], []>} : vector<512x128xbf16>, vector<128x128xbf16>, vector<512x128xf32> -> vector<512x128xf32>
    %c0_8 = arith.constant 0 : index
    %c0_9 = arith.constant 0 : index
    %13 = vector.load %arg2[%c0_8, %c0_9] : memref<512x128xbf16, #tpu.memory_space<vmem>>, vector<512x128xbf16>
    %c0_10 = arith.constant 0 : index
    %c0_11 = arith.constant 0 : index
    %14 = vector.load %arg8[%c0_10, %c0_11] : memref<128x128xbf16, #tpu.memory_space<vmem>>, vector<128x128xbf16>
    %cst_12 = arith.constant dense<0.000000e+00> : vector<512x128xf32>
    %15 = tpu.matmul %13, %14, %cst_12 {dimension_numbers = #tpu.dot_dimension_numbers<[1], [0], [0], [1], [0, 0, 1, 1], [], []>} : vector<512x128xbf16>, vector<128x128xbf16>, vector<512x128xf32> -> vector<512x128xf32>
    %c0_13 = arith.constant 0 : index
    %c0_14 = arith.constant 0 : index
    %16 = vector.load %arg6[%c0_13, %c0_14] : memref<1x128xf32, #tpu.memory_space<vmem>>, vector<1x128xf32>
    %17 = vector.broadcast %16 : vector<1x128xf32> to vector<512x128xf32>
    %18 = arith.mulf %12, %17 : vector<512x128xf32>
    %c0_15 = arith.constant 0 : index
    %c0_16 = arith.constant 0 : index
    %19 = vector.load %arg7[%c0_15, %c0_16] : memref<1x128xf32, #tpu.memory_space<vmem>>, vector<1x128xf32>
    %20 = vector.broadcast %19 : vector<1x128xf32> to vector<512x128xf32>
    %21 = arith.addf %18, %20 : vector<512x128xf32>
    %c0_17 = arith.constant 0 : index
    %c0_18 = arith.constant 0 : index
    %22 = vector.load %arg9[%c0_17, %c0_18] : memref<1x128xf32, #tpu.memory_space<vmem>>, vector<1x128xf32>
    %23 = vector.broadcast %22 : vector<1x128xf32> to vector<512x128xf32>
    %24 = arith.mulf %15, %23 : vector<512x128xf32>
    %c0_19 = arith.constant 0 : index
    %c0_20 = arith.constant 0 : index
    %25 = vector.load %arg10[%c0_19, %c0_20] : memref<1x128xf32, #tpu.memory_space<vmem>>, vector<1x128xf32>
    %26 = vector.broadcast %25 : vector<1x128xf32> to vector<512x128xf32>
    %27 = arith.addf %24, %26 : vector<512x128xf32>
    %28 = arith.addf %21, %27 : vector<512x128xf32>
    %cst_21 = arith.constant 0.000000e+00 : f32
    %29 = vector.broadcast %cst_21 : f32 to vector<512x128xf32>
    %30 = arith.maximumf %28, %29 : vector<512x128xf32>
    %c0_22 = arith.constant 0 : index
    %c0_23 = arith.constant 0 : index
    %31 = vector.load %arg11[%c0_22, %c0_23] : memref<512x128xf32, #tpu.memory_space<vmem>>, vector<512x128xf32>
    tpu.vector_store %arg11[%c0_22, %c0_23], %30 {strides = array<i32>} : memref<512x128xf32, #tpu.memory_space<vmem>>, vector<512x128xf32>,
    return
  }
  func.func @transform_0(%arg0: i32) -> (i32, i32) {
    %c0_i32 = arith.constant 0 : i32
    %c0_i32_0 = arith.constant 0 : i32
    return %arg0, %c0_i32 : i32, i32
  }
  func.func @transform_1(%arg0: i32) -> (i32, i32) {
    %c0_i32 = arith.constant 0 : i32
    %c0_i32_0 = arith.constant 0 : i32
    return %arg0, %c0_i32 : i32, i32
  }
  func.func @transform_2(%arg0: i32) -> (i32, i32) {
    %c0_i32 = arith.constant 0 : i32
    %c0_i32_0 = arith.constant 0 : i32
    %c0_i32_1 = arith.constant 0 : i32
    return %c0_i32, %c0_i32_0 : i32, i32
  }
  func.func @transform_3(%arg0: i32) -> (i32, i32) {
    %c0_i32 = arith.constant 0 : i32
    %c0_i32_0 = arith.constant 0 : i32
    %c0_i32_1 = arith.constant 0 : i32
    return %c0_i32, %c0_i32_0 : i32, i32
  }
  func.func @transform_4(%arg0: i32) -> (i32, i32) {
    %c0_i32 = arith.constant 0 : i32
    %c0_i32_0 = arith.constant 0 : i32
    %c0_i32_1 = arith.constant 0 : i32
    return %c0_i32, %c0_i32_0 : i32, i32
  }
  func.func @transform_5(%arg0: i32) -> (i32, i32) {
    %c0_i32 = arith.constant 0 : i32
    %c0_i32_0 = arith.constant 0 : i32
    %c0_i32_1 = arith.constant 0 : i32
    return %c0_i32, %c0_i32_0 : i32, i32
  }
  func.func @transform_6(%arg0: i32) -> (i32, i32) {
    %c0_i32 = arith.constant 0 : i32
    %c0_i32_0 = arith.constant 0 : i32
    %c0_i32_1 = arith.constant 0 : i32
    return %c0_i32, %c0_i32_0 : i32, i32
  }
  func.func @transform_7(%arg0: i32) -> (i32, i32) {
    %c0_i32 = arith.constant 0 : i32
    %c0_i32_0 = arith.constant 0 : i32
    %c0_i32_1 = arith.constant 0 : i32
    return %c0_i32, %c0_i32_0 : i32, i32
  }
  func.func @transform_8(%arg0: i32) -> (i32, i32) {
    %c0_i32 = arith.constant 0 : i32
    %c0_i32_0 = arith.constant 0 : i32
    %c0_i32_1 = arith.constant 0 : i32
    return %c0_i32, %c0_i32_0 : i32, i32
  }
  func.func @transform_9(%arg0: i32) -> (i32, i32) {
    %c0_i32 = arith.constant 0 : i32
    %c0_i32_0 = arith.constant 0 : i32
    %c0_i32_1 = arith.constant 0 : i32
    return %c0_i32, %c0_i32_0 : i32, i32
  }
  func.func @transform_10(%arg0: i32) -> (i32, i32) {
    %c0_i32 = arith.constant 0 : i32
    %c0_i32_0 = arith.constant 0 : i32
    return %arg0, %c0_i32 : i32, i32
  }
}

</mosaic_0001>

<bundles_post_ra>
// kernel: bottleneck_forward.6
= control target key start
LH: loop header
LB: loop body
LE: loop exit
PB: predicated region body
PF: predicated region fallthrough
CT: control target
= control target key end

     0   :  { %s1752_s3 = inlined_call_operand.vmem [shape: bf16[128,128], index: 3, kind: input, shape index: {}]   ;;  %s1753_s0 = inlined_call_operand.vmem [shape: bf16[512,128], index: 0, kind: input, shape index: {}]   ;;  %s1754_s1 = inlined_call_operand.vmem [shape: f32[1,128], index: 1, kind: input, shape index: {}]   ;;  %s1755_s2 = inlined_call_operand.vmem [shape: f32[1,128], index: 2, kind: input, shape index: {}]   ;;  %s1756_s4 = inlined_call_operand.vmem [shape: f32[1,1,128], index: 4, kind: output, shape index: {0}]   ;;  %s1757_s5 = inlined_call_operand.vmem [shape: f32[1,1,128], index: 5, kind: output, shape index: {1}]  }
   0x1   :  { %v1256_v0 = vld [vmem:[%s1752_s3] sm:$0xff]   ;;  %v1257_v1 = vld [vmem:[%s1752_s3 + $0x8] sm:$0xff]   ;;  %v1258_v2 = vld [vmem:[%s1752_s3 + $0x10] sm:$0xff]  }
   0x2   :  { %1160 = vmatprep.subr.bf16.mxu0 %v1256_v0  ;;  %1240 = vmatprep.subr.bf16.mxu1 %v1256_v0  ;;  %v1259_v3 = vld [vmem:[%s1752_s3 + $0x18] sm:$0xff]   ;;  %v962_v4 = vld [vmem:[%s1753_s0] sm:$0xff]   ;;  %v1089_v8 = vld [vmem:[%s1753_s0 + $0x8] sm:$0xff]  }
   0x3   :  { %1161 = vmatpush3.bf16.msra.mxu0 %v1256_v0  ;;  %1248 = vmatpush3.bf16.msra.mxu1 %v1256_v0  ;;  %v1312_v5 = vld [vmem:[%s1754_s1] ss:$0 sm:$0xff]  ;;  %v963_v6 = vunpack.c.l.bf16 %v962_v4  ;;  %v964_v7 = vunpack.c.h.bf16 %v962_v4  ;;  %v1090_v9 = vld [vmem:[%s1753_s0 + $0x10] sm:$0xff]   ;;  %v967_v14 = vunpack.c.l.bf16 %v1089_v8  ;;  %v968_v15 = vunpack.c.h.bf16 %v1089_v8  ;;  %v1261_v22 = vld [vmem:[%s1752_s3 + $0x28] sm:$0xff]  }
   0x4   :  { %1162 = vmatprep.subr.bf16.mxu0 %v1257_v1  ;;  %1241 = vmatprep.subr.bf16.mxu1 %v1257_v1  ;;  %v1323_v10 = vld [vmem:[%s1755_s2] ss:$0 sm:$0xff]  ;;  %v971_v16 = vunpack.c.l.bf16 %v1090_v9  ;;  %v972_v19 = vunpack.c.h.bf16 %v1090_v9  ;;  %v1091_v26 = vld [vmem:[%s1753_s0 + $0x18] sm:$0xff]   ;;  %v1262_v31 = vld [vmem:[%s1752_s3 + $0x30] sm:$0xff]  }
   0x5   :  { %v155_v11 = vmul.f32 %v963_v6, %v1312_v5  ;;  %v156_v12 = vmul.f32 %v964_v7, %v1312_v5  ;;  %v1260_v13 = vld [vmem:[%s1752_s3 + $0x20] sm:$0xff]   ;;  %v157_v23 = vmul.f32 %v967_v14, %v1312_v5  ;;  %v158_v24 = vmul.f32 %v968_v15, %v1312_v5  ;;  %v1093_v38 = vld [vmem:[%s1753_s0 + $0x28] sm:$0xff]   ;;  %v1094_v41 = vld [vmem:[%s1753_s0 + $0x30] sm:$0xff]  }
   0x6   :  { %v159_v25 = vmul.f32 %v971_v16, %v1312_v5  ;;  %v160_v28 = vmul.f32 %v972_v19, %v1312_v5  ;;  %v1092_v29 = vld [vmem:[%s1753_s0 + $0x20] sm:$0xff]   ;;  %v975_v30 = vunpack.c.l.bf16 %v1091_v26  ;;  %v976_v35 = vunpack.c.h.bf16 %v1091_v26  ;;  %v1095_v42 = vld [vmem:[%s1753_s0 + $0x38] sm:$0xff]   ;;  %v1097_v63 = vld [vmem:[%s1753_s0 + $0x48] sm:$0xff]  }
   0x7   :  { %1163 = vmatpush3.bf16.msra.mxu0 %v1257_v1  ;;  %1249 = vmatpush3.bf16.msra.mxu1 %v1257_v1  ;;  %v226_v17 = vadd.f32 %v1323_v10, %v155_v11  ;;  %v227_v18 = vadd.f32 %v1323_v10, %v156_v12  ;;  %v228_v32 = vadd.f32 %v1323_v10, %v157_v23  ;;  %v979_v37 = vunpack.c.l.bf16 %v1092_v29  ;;  %v1263_v43 = vld [vmem:[%s1752_s3 + $0x38] sm:$0xff]   ;;  %v1096_v48 = vld [vmem:[%s1753_s0 + $0x40] sm:$0xff]   ;;  %v1098_v4 = vld [vmem:[%s1753_s0 + $0x50] sm:$0xff]  }
   0x8   :  { %1164 = vmatprep.subr.bf16.mxu0 %v1258_v2  ;;  %1242 = vmatprep.subr.bf16.mxu1 %v1258_v2  ;;  %v229_v33 = vadd.f32 %v1323_v10, %v158_v24  ;;  %v230_v34 = vadd.f32 %v1323_v10, %v159_v25  ;;  %v231_v36 = vadd.f32 %v1323_v10, %v160_v28  ;;  %v980_v40 = vunpack.c.h.bf16 %v1092_v29  ;;  %v1099_v23 = vld [vmem:[%s1753_s0 + $0x58] sm:$0xff]  }
   0x9   :  { %v290_v20 = vmax.f32 %v226_v17, 0.0  ;;  %v291_v21 = vmax.f32 %v227_v18, 0.0  ;;  %v161_v39 = vmul.f32 %v975_v30, %v1312_v5  ;;  %v292_v44 = vmax.f32 %v228_v32, 0.0 }
   0xa   :  { %v293_v45 = vmax.f32 %v229_v33, 0.0  ;;  %v294_v46 = vmax.f32 %v230_v34, 0.0  ;;  %v162_v47 = vmul.f32 %v976_v35, %v1312_v5  ;;  %v295_v49 = vmax.f32 %v231_v36, 0.0 }
   0xb   :  { %1165 = vmatpush3.bf16.msra.mxu0 %v1258_v2  ;;  %1250 = vmatpush3.bf16.msra.mxu1 %v1258_v2  ;;  %v354_v27 = vpack.c.bf16 %v291_v21, %v290_v20  ;;  %v163_v50 = vmul.f32 %v979_v37, %v1312_v5  ;;  %v983_v51 = vunpack.c.l.bf16 %v1093_v38  ;;  %v984_v52 = vunpack.c.h.bf16 %v1093_v38 }
   0xc   :  { %1166 = vmatprep.subr.bf16.mxu0 %v1259_v3  ;;  %1243 = vmatprep.subr.bf16.mxu1 %v1259_v3  ;;  %v987_v53 = vunpack.c.l.bf16 %v1094_v41  ;;  %v988_v54 = vunpack.c.h.bf16 %v1094_v41  ;;  %v991_v55 = vunpack.c.l.bf16 %v1095_v42  ;;  %v992_v56 = vunpack.c.h.bf16 %v1095_v42 }
   0xd   :  { %1176 = vmatprep.mubr.bf16.mxu0 %v354_v27  ;;  %v164_v57 = vmul.f32 %v980_v40, %v1312_v5  ;;  %v995_v58 = vunpack.c.l.bf16 %v1096_v48  ;;  %v996_v59 = vunpack.c.h.bf16 %v1096_v48  ;;  %v355_v60 = vpack.c.bf16 %v293_v45, %v292_v44  ;;  %v1104_v44 = vld [vmem:[%s1753_s0 + $0x80] sm:$0xff]  }
   0xe   :  { %v232_v61 = vadd.f32 %v1323_v10, %v161_v39  ;;  %v233_v62 = vadd.f32 %v1323_v10, %v162_v47  ;;  %v356_v0 = vpack.c.bf16 %v295_v49, %v294_v46  ;;  %v234_v1 = vadd.f32 %v1323_v10, %v163_v50 }
   0xf   :  { %1167 = vmatpush3.bf16.msra.mxu0 %v1259_v3  ;;  %1251 = vmatpush3.bf16.msra.mxu1 %v1259_v3  ;;  %v165_v2 = vmul.f32 %v983_v51, %v1312_v5  ;;  %v166_v3 = vmul.f32 %v984_v52, %v1312_v5  ;;  %v167_v6 = vmul.f32 %v987_v53, %v1312_v5  ;;  %v999_v14 = vunpack.c.l.bf16 %v1097_v63  ;;  %v1416_v52 = vld [vmem:[%s1753_s0 + $0x60] sm:$0xff]  }
  0x10   :  { %1168 = vmatprep.subr.bf16.mxu0 %v1260_v13  ;;  %1244 = vmatprep.subr.bf16.mxu1 %v1260_v13  ;;  %v168_v7 = vmul.f32 %v988_v54, %v1312_v5  ;;  %v169_v8 = vmul.f32 %v991_v55, %v1312_v5  ;;  %v170_v9 = vmul.f32 %v992_v56, %v1312_v5  ;;  %v296_v15 = vmax.f32 %v232_v61, 0.0 }
  0x11   :  { %v235_v11 = vadd.f32 %v1323_v10, %v164_v57  ;;  %v171_v12 = vmul.f32 %v995_v58, %v1312_v5  ;;  %v297_v16 = vmax.f32 %v233_v62, 0.0  ;;  %v1000_v17 = vunpack.c.h.bf16 %v1097_v63 }
  0x12   :  { %v1003_v18 = vunpack.c.l.bf16 %v1098_v4  ;;  %v298_v19 = vmax.f32 %v234_v1, 0.0  ;;  %v236_v20 = vadd.f32 %v1323_v10, %v165_v2  ;;  %v237_v21 = vadd.f32 %v1323_v10, %v166_v3 }
  0x13   :  { %1169 = vmatpush3.bf16.msra.mxu0 %v1260_v13  ;;  %1252 = vmatpush3.bf16.msra.mxu1 %v1260_v13  ;;  %v172_v13 = vmul.f32 %v996_v59, %v1312_v5  ;;  %v238_v24 = vadd.f32 %v1323_v10, %v167_v6  ;;  %v239_v25 = vadd.f32 %v1323_v10, %v168_v7  ;;  %v299_v28 = vmax.f32 %v235_v11, 0.0  ;;  %v1105_v59 = vld [vmem:[%s1753_s0 + $0x88] sm:$0xff]   ;;  %v1107_v11 = vld [vmem:[%s1753_s0 + $0x98] sm:$0xff]  }
  0x14   :  { %1170 = vmatprep.subr.bf16.mxu0 %v1261_v22  ;;  %1245 = vmatprep.subr.bf16.mxu1 %v1261_v22  ;;  %v240_v26 = vadd.f32 %v1323_v10, %v169_v8  ;;  %v241_v27 = vadd.f32 %v1323_v10, %v170_v9  ;;  %v242_v29 = vadd.f32 %v1323_v10, %v171_v12  ;;  %v1007_v35 = vunpack.c.l.bf16 %v1099_v23 }
  0x15   :  { %v243_v30 = vadd.f32 %v1323_v10, %v172_v13  ;;  %v357_v32 = vpack.c.bf16 %v297_v16, %v296_v15  ;;  %v174_v33 = vmul.f32 %v1000_v17, %v1312_v5  ;;  %v175_v34 = vmul.f32 %v1003_v18, %v1312_v5 }
  0x16   :  { %v300_v36 = vmax.f32 %v236_v20, 0.0  ;;  %v301_v37 = vmax.f32 %v237_v21, 0.0  ;;  %v1008_v39 = vunpack.c.h.bf16 %v1099_v23  ;;  %v302_v40 = vmax.f32 %v238_v24, 0.0  ;;  %v1108_v24 = vld [vmem:[%s1753_s0 + $0xa0] sm:$0xff]  }
  0x17   :  { %1171 = vmatpush3.bf16.msra.mxu0 %v1261_v22  ;;  %1253 = vmatpush3.bf16.msra.mxu1 %v1261_v22  ;;  %v1004_v22 = vunpack.c.h.bf16 %v1098_v4  ;;  %v303_v41 = vmax.f32 %v239_v25, 0.0  ;;  %v304_v42 = vmax.f32 %v240_v26, 0.0  ;;  %v358_v45 = vpack.c.bf16 %v299_v28, %v298_v19 }
  0x18   :  { %1172 = vmatprep.subr.bf16.mxu0 %v1262_v31  ;;  %1246 = vmatprep.subr.bf16.mxu1 %v1262_v31  ;;  %v306_v46 = vmax.f32 %v242_v29, 0.0  ;;  %v307_v47 = vmax.f32 %v243_v30, 0.0  ;;  %v245_v49 = vadd.f32 %v1323_v10, %v174_v33  ;;  %v1410_v50 = vadd.f32 %v1323_v10, %v175_v34  ;;  %v1109_v33 = vld [vmem:[%s1753_s0 + $0xa8] sm:$0xff]  }
  0x19   :  { %v176_v38 = vmul.f32 %v1004_v22, %v1312_v5  ;;  %v177_v51 = vmul.f32 %v1007_v35, %v1312_v5  ;;  %v178_v54 = vmul.f32 %v1008_v39, %v1312_v5  ;;  %v1027_v55 = vunpack.c.l.bf16 %v1104_v44 }
  0x1a   :  { %v359_v56 = vpack.c.bf16 %v301_v37, %v300_v36  ;;  %v360_v57 = vpack.c.bf16 %v303_v41, %v302_v40  ;;  %v1011_v62 = vunpack.c.l.bf16 %v1416_v52  ;;  %v1028_v63 = vunpack.c.h.bf16 %v1104_v44 }
  0x1b   :  { %1173 = vmatpush3.bf16.msra.mxu0 %v1262_v31  ;;  %1254 = vmatpush3.bf16.msra.mxu1 %v1262_v31  ;;  %v173_v31 = vmul.f32 %v999_v14, %v1312_v5  ;;  %v1419_v53 = vadd.f32 %v1323_v10, %v176_v38  ;;  %v309_v1 = vmax.f32 %v245_v49, 0.0  ;;  %v310_v2 = vmax.f32 %v1410_v50, 0.0 }
  0x1c   :  { %1174 = vmatprep.subr.bf16.mxu0 %v1263_v43  ;;  %1247 = vmatprep.subr.bf16.mxu1 %v1263_v43  ;;  %v1435_v3 = vadd.f32 %v1323_v10, %v177_v51  ;;  %v187_v4 = vmul.f32 %v1027_v55, %v1312_v5  ;;  %v1440_v7 = vadd.f32 %v1323_v10, %v178_v54  ;;  %v1031_v9 = vunpack.c.l.bf16 %v1105_v59 }
  0x1d   :  { %v244_v48 = vadd.f32 %v1323_v10, %v173_v31  ;;  %v311_v6 = vmax.f32 %v1419_v53, 0.0  ;;  %v188_v8 = vmul.f32 %v1028_v63, %v1312_v5  ;;  %v1012_v12 = vunpack.c.h.bf16 %v1416_v52 }
  0x1e   :  { %v258_v13 = vadd.f32 %v1323_v10, %v187_v4  ;;  %v1032_v14 = vunpack.c.h.bf16 %v1105_v59  ;;  %v1449_v16 = vmul.f32 %v1011_v62, %v1312_v5  ;;  %v189_v18 = vmul.f32 %v1031_v9, %v1312_v5 }
  0x1f   :  { %1175 = vmatpush3.bf16.msra.mxu0 %v1263_v43  ;;  %1255 = vmatpush3.bf16.msra.mxu1 %v1263_v43  ;;  %v305_v43 = vmax.f32 %v241_v27, 0.0  ;;  %v308_v61 = vmax.f32 %v244_v48, 0.0  ;;  %v259_v17 = vadd.f32 %v1323_v10, %v188_v8  ;;  %v1039_v23 = vunpack.c.l.bf16 %v1107_v11 }
  0x20   :  { %v322_v20 = vmax.f32 %v258_v13, 0.0  ;;  %v190_v21 = vmul.f32 %v1032_v14, %v1312_v5  ;;  %v260_v27 = vadd.f32 %v1323_v10, %v189_v18  ;;  %v1040_v31 = vunpack.c.h.bf16 %v1107_v11  ;;  %v1112_v18 = vld [vmem:[%s1753_s0 + $0xc0] sm:$0xff]  }
  0x21   :  { %v1422_v58 = vpack.c.bf16 %v305_v43, %v304_v42  ;;  %v1458_v25 = vpack.c.bf16 %v309_v1, %v308_v61  ;;  %v323_v26 = vmax.f32 %v259_v17, 0.0  ;;  %v1043_v37 = vunpack.c.l.bf16 %v1108_v24  ;;  %v1111_v1 = vld [vmem:[%s1753_s0 + $0xb8] sm:$0xff]  }
  0x22   :  { %1177 = vmatmul.mubr.bf16.vlgmr.msra.gmra.mrb[0].mxu0 %v355_v60  ;;  %v1427_v60 = vpack.c.bf16 %v307_v47, %v306_v46  ;;  %v261_v29 = vadd.f32 %v1323_v10, %v190_v21  ;;  %v324_v35 = vmax.f32 %v260_v27, 0.0  ;;  %v194_v40 = vmul.f32 %v1040_v31, %v1312_v5  ;;  %v1110_v46 = vld [vmem:[%s1753_s0 + $0xb0] sm:$0xff]   ;;  %v1101_v47 = vld [vmem:[%s1753_s0 + $0x68] sm:$0xff]  }
  0x23   :  { %1180 = vmatprep.mubr.bf16.mxu0 %v356_v0  ;;  %v1106_v0 = vld [vmem:[%s1753_s0 + $0x90] sm:$0xff]   ;;  %v370_v34 = vpack.c.bf16 %v323_v26, %v322_v20  ;;  %v1044_v43 = vunpack.c.h.bf16 %v1108_v24  ;;  %v195_v44 = vmul.f32 %v1043_v37, %v1312_v5  ;;  %v1048_v54 = vunpack.c.h.bf16 %v1109_v33 }
  0x24   :  { %v1035_v15 = vunpack.c.l.bf16 %v1106_v0  ;;  %v1036_v19 = vunpack.c.h.bf16 %v1106_v0  ;;  %v325_v38 = vmax.f32 %v261_v29, 0.0  ;;  %v265_v49 = vadd.f32 %v1323_v10, %v194_v40  ;;  %v1114_v40 = vld [vmem:[%s1753_s0 + $0xd0] sm:$0xff]  }
  0x25   :  { %1208 = vmatprep.mubr.bf16.mxu1 %v370_v34  ;;  %v198_v62 = vmul.f32 %v1048_v54, %v1312_v5  ;;  %v1051_v63 = vunpack.c.l.bf16 %v1110_v46  ;;  %v1052_v0 = vunpack.c.h.bf16 %v1110_v46  ;;  %v312_v4 = vmax.f32 %v1435_v3, 0.0 }
  0x26   :  { %v191_v22 = vmul.f32 %v1035_v15, %v1312_v5  ;;  %v192_v28 = vmul.f32 %v1036_v19, %v1312_v5  ;;  %v371_v48 = vpack.c.bf16 %v325_v38, %v324_v35  ;;  %v329_v61 = vmax.f32 %v265_v49, 0.0 }
  0x27   :  { %v1015_v8 = vunpack.c.l.bf16 %v1101_v47  ;;  %v313_v13 = vmax.f32 %v1440_v7, 0.0  ;;  %v1016_v14 = vunpack.c.h.bf16 %v1101_v47  ;;  %v199_v15 = vmul.f32 %v1051_v63, %v1312_v5 }
  0x28   :  { %v262_v30 = vadd.f32 %v1323_v10, %v191_v22  ;;  %v263_v36 = vadd.f32 %v1323_v10, %v192_v28  ;;  %1209 = vmatmul.mubr.bf16.vlgmr.msra.gmra.mrb[0].mxu1 %v371_v48  ;;  %v200_v17 = vmul.f32 %v1052_v0, %v1312_v5  ;;  %v180_v3 = vmul.f32 %v1012_v12, %v1312_v5 }
  0x29   :  { %v1055_v19 = vunpack.c.l.bf16 %v1111_v1  ;;  %v1056_v20 = vunpack.c.h.bf16 %v1111_v1  ;;  %v270_v24 = vadd.f32 %v1323_v10, %v199_v15  ;;  %v1059_v27 = vunpack.c.l.bf16 %v1112_v18  ;;  %v1115_v15 = vld [vmem:[%s1753_s0 + $0xd8] sm:$0xff]  }
  0x2a   :  { %1181 = vmatmul.mubr.bf16.gmra.mrb[4].mxu0 %v357_v32  ;;  %v193_v32 = vmul.f32 %v1039_v23, %v1312_v5  ;;  %v326_v39 = vmax.f32 %v262_v30, 0.0  ;;  %v327_v42 = vmax.f32 %v263_v36, 0.0  ;;  %v269_v23 = vadd.f32 %v1323_v10, %v198_v62 }
  0x2b   :  { %1184 = vmatprep.mubr.bf16.mxu0 %v358_v45  ;;  %v1047_v45 = vunpack.c.l.bf16 %v1109_v33  ;;  %v1060_v52 = vunpack.c.h.bf16 %v1112_v18  ;;  %v364_v12 = vpack.c.bf16 %v311_v6, %v310_v2  ;;  %v250_v28 = vadd.f32 %v1323_v10, %v1449_v16  ;;  %v1103_v33 = vld [vmem:[%s1753_s0 + $0x78] sm:$0xff]   ;;  %v1113_v16 = vld [vmem:[%s1753_s0 + $0xc8] sm:$0xff]  }
  0x2c   :  { %v264_v41 = vadd.f32 %v1323_v10, %v193_v32  ;;  %v372_v55 = vpack.c.bf16 %v327_v42, %v326_v39  ;;  %v251_v31 = vadd.f32 %v1323_v10, %v180_v3  ;;  %v181_v32 = vmul.f32 %v1015_v8, %v1312_v5 }
  0x2d   :  { %v197_v59 = vmul.f32 %v1047_v45, %v1312_v5  ;;  %v201_v34 = vmul.f32 %v1055_v19, %v1312_v5  ;;  %v202_v50 = vmul.f32 %v1056_v20, %v1312_v5  ;;  %v365_v35 = vpack.c.bf16 %v313_v13, %v312_v4 }
  0x2e   :  { %v328_v51 = vmax.f32 %v264_v41, 0.0  ;;  %1212 = vmatprep.mubr.bf16.mxu1 %v372_v55  ;;  %v182_v53 = vmul.f32 %v1016_v14, %v1312_v5  ;;  %v333_v6 = vmax.f32 %v269_v23, 0.0  ;;  %v334_v36 = vmax.f32 %v270_v24, 0.0 }
  0x2f   :  { %v268_v22 = vadd.f32 %v1323_v10, %v197_v59  ;;  %v203_v38 = vmul.f32 %v1059_v27, %v1312_v5  ;;  %v204_v39 = vmul.f32 %v1060_v52, %v1312_v5  ;;  %v314_v41 = vmax.f32 %v250_v28, 0.0 }
  0x30   :  { %v373_v21 = vpack.c.bf16 %v329_v61, %v328_v51  ;;  %v315_v45 = vmax.f32 %v251_v31, 0.0  ;;  %v272_v46 = vadd.f32 %v1323_v10, %v201_v34  ;;  %v273_v47 = vadd.f32 %v1323_v10, %v202_v50 }
  0x31   :  { %v332_v2 = vmax.f32 %v268_v22, 0.0  ;;  %v1063_v48 = vunpack.c.l.bf16 %v1113_v16  ;;  %v1064_v51 = vunpack.c.h.bf16 %v1113_v16  ;;  %v1067_v54 = vunpack.c.l.bf16 %v1114_v40 }
  0x32   :  { %1185 = vmatmul.mubr.bf16.gmra.mrb[8].mxu0 %v359_v56  ;;  %v196_v56 = vmul.f32 %v1044_v43, %v1312_v5  ;;  %1213 = vmatmul.mubr.bf16.gmra.mrb[4].mxu1 %v373_v21  ;;  %v1068_v55 = vunpack.c.h.bf16 %v1114_v40  ;;  %v275_v59 = vadd.f32 %v1323_v10, %v204_v39  ;;  %v253_v61 = vadd.f32 %v1323_v10, %v182_v53  ;;  %v1116_v21 = vld [vmem:[%s1753_s0 + $0xe0] sm:$0xff]  }
  0x33   :  { %1188 = vmatprep.mubr.bf16.mxu0 %v360_v57  ;;  %v266_v57 = vadd.f32 %v1323_v10, %v195_v44  ;;  %v1023_v44 = vunpack.c.l.bf16 %v1103_v33  ;;  %v375_v49 = vpack.c.bf16 %v333_v6, %v332_v2  ;;  %v1024_v0 = vunpack.c.h.bf16 %v1103_v33 }
  0x34   :  { %v267_v9 = vadd.f32 %v1323_v10, %v196_v56  ;;  %v252_v56 = vadd.f32 %v1323_v10, %v181_v32  ;;  %v366_v1 = vpack.c.bf16 %v315_v45, %v314_v41  ;;  %v336_v4 = vmax.f32 %v272_v46, 0.0  ;;  %v1118_v41 = vld [vmem:[%s1753_s0 + $0xf0] sm:$0xff]  }
  0x35   :  { %v330_v11 = vmax.f32 %v266_v57, 0.0  ;;  %v274_v57 = vadd.f32 %v1323_v10, %v203_v38  ;;  %v337_v8 = vmax.f32 %v273_v47, 0.0  ;;  %v207_v13 = vmul.f32 %v1067_v54, %v1312_v5 }
  0x36   :  { %v331_v7 = vmax.f32 %v267_v9, 0.0  ;;  %v205_v9 = vmul.f32 %v1063_v48, %v1312_v5  ;;  %v208_v14 = vmul.f32 %v1068_v55, %v1312_v5  ;;  %v339_v3 = vmax.f32 %v275_v59, 0.0 }
  0x37   :  { %v338_v18 = vmax.f32 %v274_v57, 0.0  ;;  %v186_v20 = vmul.f32 %v1024_v0, %v1312_v5  ;;  %v377_v23 = vpack.c.bf16 %v337_v8, %v336_v4  ;;  %v278_v27 = vadd.f32 %v1323_v10, %v207_v13 }
  0x38   :  { %v374_v26 = vpack.c.bf16 %v331_v7, %v330_v11  ;;  %v206_v11 = vmul.f32 %v1064_v51, %v1312_v5  ;;  %v317_v7 = vmax.f32 %v253_v61, 0.0  ;;  %v276_v24 = vadd.f32 %v1323_v10, %v205_v9 }
  0x39   :  { %v279_v52 = vadd.f32 %v1323_v10, %v208_v14  ;;  %v378_v28 = vpack.c.bf16 %v339_v3, %v338_v18  ;;  %v257_v33 = vadd.f32 %v1323_v10, %v186_v20  ;;  %v342_v2 = vmax.f32 %v278_v27, 0.0 }
  0x3a   :  { %1189 = vmatmul.mubr.bf16.gmra.mrb[12].mxu0 %v1422_v58  ;;  %v1102_v58 = vld [vmem:[%s1753_s0 + $0x70] sm:$0xff]   ;;  %1216 = vmatprep.mubr.bf16.mxu1 %v374_v26  ;;  %v1071_v26 = vunpack.c.l.bf16 %v1115_v15  ;;  %v340_v50 = vmax.f32 %v276_v24, 0.0  ;;  %v1083_v51 = vunpack.c.l.bf16 %v1118_v41  ;;  %v1084_v54 = vunpack.c.h.bf16 %v1118_v41 }
  0x3b   :  { %1192 = vmatprep.mubr.bf16.mxu0 %v1427_v60  ;;  %v271_v60 = vadd.f32 %v1323_v10, %v200_v17  ;;  %v1019_v29 = vunpack.c.l.bf16 %v1102_v58  ;;  %v1020_v30 = vunpack.c.h.bf16 %v1102_v58  ;;  %1217 = vmatmul.mubr.bf16.gmra.mrb[8].mxu1 %v375_v49  ;;  %v185_v17 = vmul.f32 %v1023_v44, %v1312_v5 }
  0x3c   :  { %v316_v58 = vmax.f32 %v252_v56, 0.0  ;;  %v343_v6 = vmax.f32 %v279_v52, 0.0  ;;  %v321_v40 = vmax.f32 %v257_v33, 0.0  ;;  %v216_v0 = vmul.f32 %v1084_v54, %v1312_v5 }
  0x3d   :  { %v335_v37 = vmax.f32 %v271_v60, 0.0  ;;  %v183_v42 = vmul.f32 %v1019_v29, %v1312_v5  ;;  %v184_v43 = vmul.f32 %v1020_v30, %v1312_v5  ;;  %v277_v60 = vadd.f32 %v1323_v10, %v206_v11 }
  0x3e   :  { %v1075_v29 = vunpack.c.l.bf16 %v1116_v21  ;;  %v1076_v30 = vunpack.c.h.bf16 %v1116_v21  ;;  %v367_v31 = vpack.c.bf16 %v317_v7, %v316_v58  ;;  %v256_v32 = vadd.f32 %v1323_v10, %v185_v17 }
  0x3f   :  { %v254_v62 = vadd.f32 %v1323_v10, %v183_v42  ;;  %v255_v63 = vadd.f32 %v1323_v10, %v184_v43  ;;  %v341_v53 = vmax.f32 %v277_v60, 0.0  ;;  %v380_v45 = vpack.c.bf16 %v343_v6, %v342_v2 }
  0x40   :  { %v212_v38 = vmul.f32 %v1076_v30, %v1312_v5  ;;  %v320_v39 = vmax.f32 %v256_v32, 0.0  ;;  %v287_v17 = vadd.f32 %v1323_v10, %v216_v0 }
  0x41   :  { %v318_v19 = vmax.f32 %v254_v62, 0.0  ;;  %v319_v22 = vmax.f32 %v255_v63, 0.0  ;;  %v379_v44 = vpack.c.bf16 %v341_v53, %v340_v50  ;;  %v215_v63 = vmul.f32 %v1083_v51, %v1312_v5 }
  0x42   :  { %1193 = vmatmul.mubr.bf16.gmra.mrb[16].mxu0 %v1458_v25  ;;  %v376_v25 = vpack.c.bf16 %v335_v37, %v334_v36  ;;  %v1117_v36 = vld [vmem:[%s1753_s0 + $0xe8] sm:$0xff]   ;;  %v211_v37 = vmul.f32 %v1075_v29, %v1312_v5  ;;  %v283_v49 = vadd.f32 %v1323_v10, %v212_v38  ;;  %v369_v55 = vpack.c.bf16 %v321_v40, %v320_v39 }
  0x43   :  { %1196 = vmatprep.mubr.bf16.mxu0 %v364_v12  ;;  %v1072_v12 = vunpack.c.h.bf16 %v1115_v15  ;;  %v368_v34 = vpack.c.bf16 %v319_v22, %v318_v19  ;;  %v1079_v43 = vunpack.c.l.bf16 %v1117_v36  ;;  %v1080_v47 = vunpack.c.h.bf16 %v1117_v36 }
  0x44   :  { %1220 = vmatprep.mubr.bf16.mxu1 %v376_v25  ;;  %v282_v48 = vadd.f32 %v1323_v10, %v211_v37  ;;  %v347_v62 = vmax.f32 %v283_v49, 0.0  ;;  %v286_v15 = vadd.f32 %v1323_v10, %v215_v63  ;;  %v351_v20 = vmax.f32 %v287_v17, 0.0 }
  0x45   :  { %1221 = vmatmul.mubr.bf16.gmra.mrb[12].mxu1 %v377_v23  ;;  %v210_v16 = vmul.f32 %v1072_v12, %v1312_v5  ;;  %v213_v56 = vmul.f32 %v1079_v43, %v1312_v5  ;;  %v214_v59 = vmul.f32 %v1080_v47, %v1312_v5 }
  0x46   :  { %1224 = vmatprep.mubr.bf16.mxu1 %v378_v28  ;;  %v346_v61 = vmax.f32 %v282_v48, 0.0  ;;  %v350_v19 = vmax.f32 %v286_v15, 0.0 }
  0x47   :  { %v281_v46 = vadd.f32 %v1323_v10, %v210_v16  ;;  %v284_v4 = vadd.f32 %v1323_v10, %v213_v56  ;;  %v285_v9 = vadd.f32 %v1323_v10, %v214_v59 }
  0x48   :  { %v382_v14 = vpack.c.bf16 %v347_v62, %v346_v61  ;;  %v384_v24 = vpack.c.bf16 %v351_v20, %v350_v19 }
  0x49   :  { %v345_v57 = vmax.f32 %v281_v46, 0.0  ;;  %v348_v18 = vmax.f32 %v284_v4, 0.0  ;;  %v349_v3 = vmax.f32 %v285_v9, 0.0 }
  0x4a   :  { %1197 = vmatmul.mubr.bf16.gmra.mrb[20].mxu0 %v365_v35  ;;  %v209_v35 = vmul.f32 %v1071_v26, %v1312_v5 }
  0x4b   :  { %1200 = vmatprep.mubr.bf16.mxu0 %v366_v1  ;;  %v1119_v1 = vld [vmem:[%s1753_s0 + $0xf8] sm:$0xff]   ;;  %v383_v21 = vpack.c.bf16 %v349_v3, %v348_v18 }
  0x4c   :  { %v280_v42 = vadd.f32 %v1323_v10, %v209_v35  ;;  %v1087_v11 = vunpack.c.l.bf16 %v1119_v1  ;;  %v1088_v13 = vunpack.c.h.bf16 %v1119_v1 }
  0x4d   :  { %1225 = vmatmul.mubr.bf16.gmra.mrb[16].mxu1 %v379_v44 }
  0x4e   :  { %v344_v25 = vmax.f32 %v280_v42, 0.0  ;;  %1228 = vmatprep.mubr.bf16.mxu1 %v380_v45  ;;  %v217_v58 = vmul.f32 %v1087_v11, %v1312_v5  ;;  %v218_v7 = vmul.f32 %v1088_v13, %v1312_v5 }
  0x50   :  { %v381_v8 = vpack.c.bf16 %v345_v57, %v344_v25  ;;  %v288_v22 = vadd.f32 %v1323_v10, %v217_v58  ;;  %v289_v23 = vadd.f32 %v1323_v10, %v218_v7 }
  0x52   :  { %1201 = vmatmul.mubr.bf16.gmra.mrb[24].mxu0 %v367_v31  ;;  %v352_v26 = vmax.f32 %v288_v22, 0.0  ;;  %v353_v60 = vmax.f32 %v289_v23, 0.0 }
  0x53   :  { %1204 = vmatprep.mubr.bf16.mxu0 %v368_v34 }
  0x54   :  { %v385_v27 = vpack.c.bf16 %v353_v60, %v352_v26 }
  0x55   :  { %1229 = vmatmul.mubr.bf16.gmra.mrb[20].mxu1 %v381_v8 }
  0x56   :  { %1232 = vmatprep.mubr.bf16.mxu1 %v382_v14 }
  0x5a   :  { %1205 = vmatmul.mubr.bf16.gmra.mrb[28].mxu0 %v369_v55 }
  0x5d   :  { %1233 = vmatmul.mubr.bf16.gmra.mrb[24].mxu1 %v383_v21 }
  0x5e   :  { %1236 = vmatprep.mubr.bf16.mxu1 %v384_v24 }
  0x65   :  { %1237 = vmatmul.mubr.bf16.gmra.mrb[28].mxu1 %v385_v27 }
  0xf5   :  { %v1178_v52 = vpop.f32.mrb[0].mxu0 }
  0xf6   :  { %v484_v12 = vpop.f32.mrb[1].mxu0  ;;  %v811_v32 = vmul.f32 %v1178_v52, %v1178_v52 }
  0xf7   :  { %v1179_v28 = vpop.f32.mrb[2].mxu0  ;;  %v809_v5 = vmul.f32 %v484_v12, %v484_v12 }
  0xf8   :  { %v487_v29 = vpop.f32.mrb[3].mxu0  ;;  %v812_v50 = vmul.f32 %v1179_v28, %v1179_v28 }
  0xf9   :  { %v739_v30 = vadd.f32 %v487_v29, %v484_v12  ;;  %v810_v31 = vmul.f32 %v487_v29, %v487_v29 }
  0xfb   :  { %v740_v33 = vadd.f32 %v1178_v52, %v739_v30  ;;  %v873_v34 = vadd.f32 %v810_v31, %v809_v5  ;;  %v1586_v1 = vpop.f32.mrb[0].mxu1 }
  0xfc   :  { %v1588_v4 = vpop.f32.mrb[1].mxu1 }
  0xfd   :  { %v874_v35 = vadd.f32 %v873_v34, %v811_v32  ;;  %v1182_v10 = vpop.f32.mrb[4].mxu0  ;;  %v741_v53 = vadd.f32 %v1179_v28, %v740_v33  ;;  %v1590_v14 = vpop.f32.mrb[2].mxu1 }
  0xfe   :  { %v500_v2 = vpop.f32.mrb[5].mxu0  ;;  %v815_v42 = vmul.f32 %v1182_v10, %v1182_v10  ;;  %v1592_v17 = vpop.f32.mrb[3].mxu1 }
  0xff   :  { %v742_v6 = vadd.f32 %v741_v53, %v500_v2  ;;  %v813_v16 = vmul.f32 %v500_v2, %v500_v2  ;;  %v875_v36 = vadd.f32 %v874_v35, %v812_v50  ;;  %v1183_v37 = vpop.f32.mrb[6].mxu0 }
 0x100   :  { %v503_v38 = vpop.f32.mrb[7].mxu0  ;;  %v816_v45 = vmul.f32 %v1183_v37, %v1183_v37 }
 0x101   :  { %v876_v39 = vadd.f32 %v875_v36, %v813_v16  ;;  %v743_v40 = vadd.f32 %v742_v6, %v503_v38  ;;  %v814_v41 = vmul.f32 %v503_v38, %v503_v38 }
 0x103   :  { %v744_v43 = vadd.f32 %v1182_v10, %v743_v40  ;;  %v877_v44 = vadd.f32 %v876_v39, %v814_v41 }
 0x105   :  { %v878_v46 = vadd.f32 %v877_v44, %v815_v42  ;;  %v1186_v47 = vpop.f32.mrb[8].mxu0  ;;  %v745_v48 = vadd.f32 %v1183_v37, %v744_v43  ;;  %v1594_v60 = vpop.f32.mrb[4].mxu1 }
 0x106   :  { %v516_v49 = vpop.f32.mrb[9].mxu0  ;;  %v819_v62 = vmul.f32 %v1186_v47, %v1186_v47  ;;  %v1596_v27 = vpop.f32.mrb[5].mxu1 }
 0x107   :  { %v746_v51 = vadd.f32 %v745_v48, %v516_v49  ;;  %v817_v54 = vmul.f32 %v516_v49, %v516_v49  ;;  %v879_v55 = vadd.f32 %v878_v46, %v816_v45  ;;  %v1187_v56 = vpop.f32.mrb[10].mxu0  ;;  %v1598_v5 = vpop.f32.mrb[6].mxu1 }
 0x108   :  { %v519_v25 = vpop.f32.mrb[11].mxu0  ;;  %v820_v8 = vmul.f32 %v1187_v56, %v1187_v56  ;;  %v1600_v31 = vpop.f32.mrb[7].mxu1 }
 0x109   :  { %v880_v57 = vadd.f32 %v879_v55, %v817_v54  ;;  %v747_v59 = vadd.f32 %v746_v51, %v519_v25  ;;  %v818_v61 = vmul.f32 %v519_v25, %v519_v25 }
 0x10b   :  { %v748_v63 = vadd.f32 %v1186_v47, %v747_v59  ;;  %v881_v0 = vadd.f32 %v880_v57, %v818_v61 }
 0x10d   :  { %v882_v9 = vadd.f32 %v881_v0, %v819_v62  ;;  %v1190_v11 = vpop.f32.mrb[12].mxu0  ;;  %v749_v13 = vadd.f32 %v1187_v56, %v748_v63 }
 0x10e   :  { %v532_v15 = vpop.f32.mrb[13].mxu0  ;;  %v823_v23 = vmul.f32 %v1190_v11, %v1190_v11  ;;  %v1602_v37 = vpop.f32.mrb[8].mxu1 }
 0x10f   :  { %v750_v18 = vadd.f32 %v749_v13, %v532_v15  ;;  %v821_v3 = vmul.f32 %v532_v15, %v532_v15  ;;  %v883_v58 = vadd.f32 %v882_v9, %v820_v8  ;;  %v1191_v7 = vpop.f32.mrb[14].mxu0  ;;  %v1604_v38 = vpop.f32.mrb[9].mxu1 }
 0x110   :  { %v535_v19 = vpop.f32.mrb[15].mxu0  ;;  %v824_v52 = vmul.f32 %v1191_v7, %v1191_v7  ;;  %v1606_v43 = vpop.f32.mrb[10].mxu1 }
 0x111   :  { %v884_v20 = vadd.f32 %v883_v58, %v821_v3  ;;  %v751_v21 = vadd.f32 %v750_v18, %v535_v19  ;;  %v822_v22 = vmul.f32 %v535_v19, %v535_v19  ;;  %v1608_v45 = vpop.f32.mrb[11].mxu1 }
 0x113   :  { %v752_v24 = vadd.f32 %v1190_v11, %v751_v21  ;;  %v885_v26 = vadd.f32 %v884_v20, %v822_v22 }
 0x115   :  { %v886_v12 = vadd.f32 %v885_v26, %v823_v23  ;;  %v1194_v28 = vpop.f32.mrb[16].mxu0  ;;  %v753_v29 = vadd.f32 %v1191_v7, %v752_v24 }
 0x116   :  { %v548_v30 = vpop.f32.mrb[17].mxu0  ;;  %v827_v6 = vmul.f32 %v1194_v28, %v1194_v28 }
 0x117   :  { %v754_v32 = vadd.f32 %v753_v29, %v548_v30  ;;  %v825_v33 = vmul.f32 %v548_v30, %v548_v30  ;;  %v887_v34 = vadd.f32 %v886_v12, %v824_v52  ;;  %v1195_v50 = vpop.f32.mrb[18].mxu0 }
 0x118   :  { %v551_v35 = vpop.f32.mrb[19].mxu0  ;;  %v828_v39 = vmul.f32 %v1195_v50, %v1195_v50  ;;  %v1610_v61 = vpop.f32.mrb[12].mxu1 }
 0x119   :  { %v888_v10 = vadd.f32 %v887_v34, %v825_v33  ;;  %v755_v53 = vadd.f32 %v754_v32, %v551_v35  ;;  %v826_v2 = vmul.f32 %v551_v35, %v551_v35  ;;  %v1612_v62 = vpop.f32.mrb[13].mxu1 }
 0x11a   :  { %v1614_v11 = vpop.f32.mrb[14].mxu1 }
 0x11b   :  { %v756_v16 = vadd.f32 %v1194_v28, %v755_v53  ;;  %v889_v36 = vadd.f32 %v888_v10, %v826_v2  ;;  %v1616_v15 = vpop.f32.mrb[15].mxu1 }
 0x11d   :  { %v890_v40 = vadd.f32 %v889_v36, %v827_v6  ;;  %v1198_v41 = vpop.f32.mrb[20].mxu0  ;;  %v757_v42 = vadd.f32 %v1195_v50, %v756_v16 }
 0x11e   :  { %v564_v44 = vpop.f32.mrb[21].mxu0  ;;  %v831_v25 = vmul.f32 %v1198_v41, %v1198_v41 }
 0x11f   :  { %v758_v46 = vadd.f32 %v757_v42, %v564_v44  ;;  %v829_v47 = vmul.f32 %v564_v44, %v564_v44  ;;  %v891_v48 = vadd.f32 %v890_v40, %v828_v39  ;;  %v1199_v49 = vpop.f32.mrb[22].mxu0 }
 0x120   :  { %v567_v51 = vpop.f32.mrb[23].mxu0  ;;  %v832_v63 = vmul.f32 %v1199_v49, %v1199_v49  ;;  %v1618_v52 = vpop.f32.mrb[16].mxu1 }
 0x121   :  { %v892_v54 = vadd.f32 %v891_v48, %v829_v47  ;;  %v759_v55 = vadd.f32 %v758_v46, %v567_v51  ;;  %v830_v56 = vmul.f32 %v567_v51, %v567_v51  ;;  %v1620_v12 = vpop.f32.mrb[17].mxu1  ;;  %v841_v51 = vmul.f32 %v1588_v4, %v1588_v4 }
 0x122   :  { %v1622_v33 = vpop.f32.mrb[18].mxu1 }
 0x123   :  { %v760_v57 = vadd.f32 %v1198_v41, %v759_v55  ;;  %v893_v59 = vadd.f32 %v892_v54, %v830_v56  ;;  %v1624_v50 = vpop.f32.mrb[19].mxu1 }
 0x125   :  { %v894_v0 = vadd.f32 %v893_v59, %v831_v25  ;;  %v1202_v8 = vpop.f32.mrb[24].mxu0  ;;  %v761_v9 = vadd.f32 %v1199_v49, %v760_v57 }
 0x126   :  { %v580_v13 = vpop.f32.mrb[25].mxu0  ;;  %v835_v23 = vmul.f32 %v1202_v8, %v1202_v8 }
 0x127   :  { %v762_v18 = vadd.f32 %v761_v9, %v580_v13  ;;  %v833_v3 = vmul.f32 %v580_v13, %v580_v13  ;;  %v895_v58 = vadd.f32 %v894_v0, %v832_v63  ;;  %v1203_v7 = vpop.f32.mrb[26].mxu0  ;;  %v842_v63 = vmul.f32 %v1592_v17, %v1592_v17 }
 0x128   :  { %v583_v19 = vpop.f32.mrb[27].mxu0  ;;  %v836_v28 = vmul.f32 %v1203_v7, %v1203_v7  ;;  %v1626_v44 = vpop.f32.mrb[20].mxu1  ;;  %v843_v0 = vmul.f32 %v1586_v1, %v1586_v1 }
 0x129   :  { %v896_v20 = vadd.f32 %v895_v58, %v833_v3  ;;  %v763_v21 = vadd.f32 %v762_v18, %v583_v19  ;;  %v834_v22 = vmul.f32 %v583_v19, %v583_v19  ;;  %v1628_v46 = vpop.f32.mrb[21].mxu1 }
 0x12a   :  { %v1632_v54 = vpop.f32.mrb[22].mxu1 }
 0x12b   :  { %v764_v24 = vadd.f32 %v1202_v8, %v763_v21  ;;  %v897_v26 = vadd.f32 %v896_v20, %v834_v22  ;;  %v1634_v55 = vpop.f32.mrb[23].mxu1 }
 0x12d   :  { %v898_v29 = vadd.f32 %v897_v26, %v835_v23  ;;  %v1206_v30 = vpop.f32.mrb[28].mxu0  ;;  %v765_v32 = vadd.f32 %v1203_v7, %v764_v24  ;;  %v845_v7 = vmul.f32 %v1596_v27, %v1596_v27  ;;  %v846_v23 = vmul.f32 %v1600_v31, %v1600_v31 }
 0x12e   :  { %v596_v34 = vpop.f32.mrb[29].mxu0  ;;  %v839_v40 = vmul.f32 %v1206_v30, %v1206_v30  ;;  %v847_v24 = vmul.f32 %v1594_v60, %v1594_v60 }
 0x12f   :  { %v766_v35 = vadd.f32 %v765_v32, %v596_v34  ;;  %v837_v10 = vmul.f32 %v596_v34, %v596_v34  ;;  %v899_v53 = vadd.f32 %v898_v29, %v836_v28  ;;  %v1207_v2 = vpop.f32.mrb[30].mxu0  ;;  %v849_v34 = vmul.f32 %v1604_v38, %v1604_v38 }
 0x130   :  { %v599_v6 = vpop.f32.mrb[31].mxu0  ;;  %v840_v47 = vmul.f32 %v1207_v2, %v1207_v2  ;;  %v1643_v13 = vpop.f32.mrb[24].mxu1 }
 0x131   :  { %v900_v16 = vadd.f32 %v899_v53, %v837_v10  ;;  %v767_v36 = vadd.f32 %v766_v35, %v599_v6  ;;  %v838_v39 = vmul.f32 %v599_v6, %v599_v6  ;;  %v1645_v18 = vpop.f32.mrb[25].mxu1  ;;  %v850_v6 = vmul.f32 %v1608_v45, %v1608_v45 }
 0x133   :  { %v768_v41 = vadd.f32 %v1206_v30, %v767_v36  ;;  %v901_v42 = vadd.f32 %v900_v16, %v838_v39  ;;  %v851_v16 = vmul.f32 %v1602_v37, %v1602_v37  ;;  %v852_v39 = vmul.f32 %v1606_v43, %v1606_v43 }
 0x135   :  { %v902_v48 = vadd.f32 %v901_v42, %v839_v40  ;;  %v769_v49 = vadd.f32 %v1207_v2, %v768_v41 }
 0x137   :  { %v770_v56 = vadd.f32 %v769_v49, %v1588_v4  ;;  %v903_v25 = vadd.f32 %v902_v48, %v840_v47  ;;  %v844_v4 = vmul.f32 %v1590_v14, %v1590_v14  ;;  %v854_v49 = vmul.f32 %v1616_v15, %v1616_v15 }
 0x139   :  { %v904_v57 = vadd.f32 %v903_v25, %v841_v51  ;;  %v771_v59 = vadd.f32 %v770_v56, %v1592_v17  ;;  %v1652_v17 = vpop.f32.mrb[26].mxu1 }
 0x13a   :  { %v1654_v19 = vpop.f32.mrb[27].mxu1 }
 0x13b   :  { %v772_v8 = vadd.f32 %v1586_v1, %v771_v59  ;;  %v905_v9 = vadd.f32 %v904_v57, %v842_v63  ;;  %v1663_v28 = vpop.f32.mrb[28].mxu1 }
 0x13c   :  { %v1665_v29 = vpop.f32.mrb[29].mxu1 }
 0x13d   :  { %v906_v3 = vadd.f32 %v905_v9, %v843_v0  ;;  %v773_v58 = vadd.f32 %v1590_v14, %v772_v8  ;;  %v858_v8 = vmul.f32 %v1624_v50, %v1624_v50 }
 0x13f   :  { %v774_v1 = vadd.f32 %v773_v58, %v1596_v27  ;;  %v907_v20 = vadd.f32 %v906_v3, %v844_v4  ;;  %v848_v27 = vmul.f32 %v1598_v5, %v1598_v5 }
 0x141   :  { %v908_v21 = vadd.f32 %v907_v20, %v845_v7  ;;  %v775_v22 = vadd.f32 %v774_v1, %v1600_v31  ;;  %v1672_v31 = vpop.f32.mrb[30].mxu1 }
 0x142   :  { %v1674_v35 = vpop.f32.mrb[31].mxu1 }
 0x143   :  { %v776_v14 = vadd.f32 %v1594_v60, %v775_v22  ;;  %v909_v26 = vadd.f32 %v908_v21, %v846_v23  ;;  %v862_v21 = vmul.f32 %v1634_v55, %v1634_v55 }
 0x145   :  { %v910_v30 = vadd.f32 %v909_v26, %v847_v24  ;;  %v777_v32 = vadd.f32 %v1598_v5, %v776_v14 }
 0x147   :  { %v778_v60 = vadd.f32 %v777_v32, %v1604_v38  ;;  %v911_v10 = vadd.f32 %v910_v30, %v848_v27  ;;  %v853_v38 = vmul.f32 %v1612_v62, %v1612_v62  ;;  %v866_v32 = vmul.f32 %v1654_v19, %v1654_v19 }
 0x149   :  { %v912_v53 = vadd.f32 %v911_v10, %v849_v34  ;;  %v779_v2 = vadd.f32 %v778_v60, %v1608_v45 }
 0x14b   :  { %v780_v5 = vadd.f32 %v1602_v37, %v779_v2  ;;  %v913_v36 = vadd.f32 %v912_v53, %v850_v6  ;;  %v855_v37 = vmul.f32 %v1610_v61, %v1610_v61 }
 0x14d   :  { %v914_v40 = vadd.f32 %v913_v36, %v851_v16  ;;  %v781_v41 = vadd.f32 %v1606_v43, %v780_v5  ;;  %v856_v43 = vmul.f32 %v1614_v11, %v1614_v11  ;;  %v870_v5 = vmul.f32 %v1674_v35, %v1674_v35 }
 0x14f   :  { %v782_v42 = vadd.f32 %v781_v41, %v1612_v62  ;;  %v915_v47 = vadd.f32 %v914_v40, %v852_v39  ;;  %v857_v62 = vmul.f32 %v1620_v12, %v1620_v12 }
 0x151   :  { %v916_v48 = vadd.f32 %v915_v47, %v853_v38  ;;  %v783_v45 = vadd.f32 %v782_v42, %v1616_v15 }
 0x153   :  { %v784_v51 = vadd.f32 %v1610_v61, %v783_v45  ;;  %v917_v56 = vadd.f32 %v916_v48, %v854_v49  ;;  %v859_v61 = vmul.f32 %v1618_v52, %v1618_v52 }
 0x155   :  { %v918_v25 = vadd.f32 %v917_v56, %v855_v37  ;;  %v785_v57 = vadd.f32 %v1614_v11, %v784_v51  ;;  %v860_v11 = vmul.f32 %v1622_v33, %v1622_v33 }
 0x157   :  { %v786_v59 = vadd.f32 %v785_v57, %v1620_v12  ;;  %v919_v63 = vadd.f32 %v918_v25, %v856_v43  ;;  %v861_v12 = vmul.f32 %v1628_v46, %v1628_v46 }
 0x159   :  { %v920_v0 = vadd.f32 %v919_v63, %v857_v62  ;;  %v787_v15 = vadd.f32 %v786_v59, %v1624_v50 }
 0x15b   :  { %v788_v9 = vadd.f32 %v1618_v52, %v787_v15  ;;  %v921_v4 = vadd.f32 %v920_v0, %v858_v8  ;;  %v863_v52 = vmul.f32 %v1626_v44, %v1626_v44 }
 0x15d   :  { %v922_v3 = vadd.f32 %v921_v4, %v859_v61  ;;  %v789_v58 = vadd.f32 %v1622_v33, %v788_v9  ;;  %v864_v33 = vmul.f32 %v1632_v54, %v1632_v54 }
 0x15f   :  { %v790_v7 = vadd.f32 %v789_v58, %v1628_v46  ;;  %v923_v1 = vadd.f32 %v922_v3, %v860_v11  ;;  %v865_v46 = vmul.f32 %v1645_v18, %v1645_v18 }
 0x161   :  { %v924_v20 = vadd.f32 %v923_v1, %v861_v12  ;;  %v791_v50 = vadd.f32 %v790_v7, %v1634_v55 }
 0x163   :  { %v792_v22 = vadd.f32 %v1626_v44, %v791_v50  ;;  %v925_v23 = vadd.f32 %v924_v20, %v862_v21  ;;  %v867_v44 = vmul.f32 %v1643_v13, %v1643_v13 }
 0x165   :  { %v926_v24 = vadd.f32 %v925_v23, %v863_v52  ;;  %v793_v14 = vadd.f32 %v1632_v54, %v792_v22  ;;  %v868_v54 = vmul.f32 %v1652_v17, %v1652_v17 }
 0x167   :  { %v794_v26 = vadd.f32 %v793_v14, %v1645_v18  ;;  %v927_v27 = vadd.f32 %v926_v24, %v864_v33  ;;  %v869_v18 = vmul.f32 %v1665_v29, %v1665_v29 }
 0x169   :  { %v928_v30 = vadd.f32 %v927_v27, %v865_v46  ;;  %v795_v55 = vadd.f32 %v794_v26, %v1654_v19 }
 0x16b   :  { %v796_v34 = vadd.f32 %v1643_v13, %v795_v55  ;;  %v929_v60 = vadd.f32 %v928_v30, %v866_v32  ;;  %v871_v13 = vmul.f32 %v1663_v28, %v1663_v28 }
 0x16d   :  { %v930_v10 = vadd.f32 %v929_v60, %v867_v44  ;;  %v797_v53 = vadd.f32 %v1652_v17, %v796_v34  ;;  %v872_v17 = vmul.f32 %v1672_v31, %v1672_v31 }
 0x16f   :  { %v798_v2 = vadd.f32 %v797_v53, %v1665_v29  ;;  %v931_v6 = vadd.f32 %v930_v10, %v868_v54 }
 0x171   :  { %v932_v16 = vadd.f32 %v931_v6, %v869_v18  ;;  %v799_v19 = vadd.f32 %v798_v2, %v1674_v35 }
 0x173   :  { %v800_v36 = vadd.f32 %v1663_v28, %v799_v19  ;;  %v933_v39 = vadd.f32 %v932_v16, %v870_v5 }
 0x175   :  { %v801_v40 = vadd.f32 %v1672_v31, %v800_v36  ;;  %v934_v41 = vadd.f32 %v933_v39, %v871_v13 }
 0x177   :  { %v802_v29 = vrot.slane %v801_v40, 4  ;;  %v935_v38 = vadd.f32 %v934_v41, %v872_v17 }
 0x179   :  { %v803_v42 = vadd.f32 %v802_v29, %v801_v40  ;;  %v936_v47 = vrot.slane %v935_v38, 4 }
 0x17b   :  { %v804_v48 = vrot.slane %v803_v42, 2  ;;  %v937_v45 = vadd.f32 %v936_v47, %v935_v38 }
 0x17d   :  { %v805_v49 = vadd.f32 %v804_v48, %v803_v42  ;;  %v938_v35 = vrot.slane %v937_v45, 2 }
 0x17f   :  { %v806_v37 = vrot.slane %v805_v49, 1  ;;  %v939_v51 = vadd.f32 %v938_v35, %v937_v45 }
 0x181   :  { %v807_v56 = vadd.f32 %v806_v37, %v805_v49  ;;  %v940_v43 = vrot.slane %v939_v51, 1 }
 0x183   :  { %808 = vst [vmem:[%s1756_s4] sm:$0x1] %v807_v56  ;;  %v941_v28 = vadd.f32 %v940_v43, %v939_v51 }
 0x185   :  { %942 = vst [vmem:[%s1757_s5] sm:$0x1] %v941_v28 }

// kernel: bottleneck_forward.4
= control target key start
LH: loop header
LB: loop body
LE: loop exit
PB: predicated region body
PF: predicated region fallthrough
CT: control target
= control target key end

     0   :  { %s1932_s1 = inlined_call_operand.vmem [shape: bf16[128,128], index: 1, kind: input, shape index: {}]   ;;  %s1933_s2 = inlined_call_operand.vmem [shape: bf16[128,128], index: 2, kind: input, shape index: {}]   ;;  %s1934_s0 = inlined_call_operand.vmem [shape: bf16[512,128], index: 0, kind: input, shape index: {}]   ;;  %s1935_s3 = inlined_call_operand.vmem [shape: f32[1,1,128], index: 3, kind: output, shape index: {0}]   ;;  %s1936_s5 = inlined_call_operand.vmem [shape: f32[1,1,128], index: 5, kind: output, shape index: {2}]   ;;  %s1937_s4 = inlined_call_operand.vmem [shape: f32[1,1,128], index: 4, kind: output, shape index: {1}]   ;;  %s1938_s6 = inlined_call_operand.vmem [shape: f32[1,1,128], index: 6, kind: output, shape index: {3}]  }
   0x1   :  { %v1693_v0 = vld [vmem:[%s1932_s1] sm:$0xff]   ;;  %v1695_v2 = vld [vmem:[%s1932_s1 + $0x8] sm:$0xff]   ;;  %v1697_v4 = vld [vmem:[%s1932_s1 + $0x10] sm:$0xff]  }
   0x2   :  { %v1694_v1 = vld [vmem:[%s1933_s2] sm:$0xff]   ;;  %1533 = vmatprep.subr.bf16.mxu0 %v1693_v0  ;;  %v1696_v3 = vld [vmem:[%s1933_s2 + $0x8] sm:$0xff]   ;;  %v1698_v5 = vld [vmem:[%s1933_s2 + $0x10] sm:$0xff]  }
   0x3   :  { %1613 = vmatprep.subr.bf16.mxu1 %v1694_v1  ;;  %1534 = vmatpush3.bf16.msra.mxu0 %v1693_v0  ;;  %v1699_v6 = vld [vmem:[%s1932_s1 + $0x18] sm:$0xff]   ;;  %v1701_v8 = vld [vmem:[%s1932_s1 + $0x20] sm:$0xff]   ;;  %v1703_v10 = vld [vmem:[%s1932_s1 + $0x28] sm:$0xff]  }
   0x4   :  { %1614 = vmatpush3.bf16.msra.mxu1 %v1694_v1  ;;  %1535 = vmatprep.subr.bf16.mxu0 %v1695_v2  ;;  %v1700_v7 = vld [vmem:[%s1933_s2 + $0x18] sm:$0xff]   ;;  %v1702_v9 = vld [vmem:[%s1933_s2 + $0x20] sm:$0xff]   ;;  %v1704_v12 = vld [vmem:[%s1933_s2 + $0x28] sm:$0xff]  }
   0x5   :  { %1615 = vmatprep.subr.bf16.mxu1 %v1696_v3  ;;  %v1709_v11 = vld [vmem:[%s1934_s0] sm:$0xff]   ;;  %v1705_v13 = vld [vmem:[%s1932_s1 + $0x30] sm:$0xff]   ;;  %v1707_v15 = vld [vmem:[%s1932_s1 + $0x38] sm:$0xff]  }
   0x6   :  { %1549 = vmatprep.mubr.bf16.mxu0 %v1709_v11  ;;  %1629 = vmatprep.mubr.bf16.mxu1 %v1709_v11  ;;  %v1706_v14 = vld [vmem:[%s1933_s2 + $0x30] sm:$0xff]   ;;  %v1708_v16 = vld [vmem:[%s1933_s2 + $0x38] sm:$0xff]   ;;  %v1710_v17 = vld [vmem:[%s1934_s0 + $0x8] sm:$0xff]  }
   0x7   :  { %1536 = vmatpush3.bf16.msra.mxu0 %v1695_v2  ;;  %v1711_v18 = vld [vmem:[%s1934_s0 + $0x10] sm:$0xff]   ;;  %v1712_v19 = vld [vmem:[%s1934_s0 + $0x18] sm:$0xff]   ;;  %v1713_v20 = vld [vmem:[%s1934_s0 + $0x20] sm:$0xff]  }
   0x8   :  { %1616 = vmatpush3.bf16.msra.mxu1 %v1696_v3  ;;  %1537 = vmatprep.subr.bf16.mxu0 %v1697_v4  ;;  %v1714_v21 = vld [vmem:[%s1934_s0 + $0x28] sm:$0xff]   ;;  %v1715_v22 = vld [vmem:[%s1934_s0 + $0x30] sm:$0xff]   ;;  %v1716_v23 = vld [vmem:[%s1934_s0 + $0x38] sm:$0xff]  }
   0x9   :  { %1617 = vmatprep.subr.bf16.mxu1 %v1698_v5  ;;  %v1717_v24 = vld [vmem:[%s1934_s0 + $0x40] sm:$0xff]   ;;  %v1718_v25 = vld [vmem:[%s1934_s0 + $0x48] sm:$0xff]   ;;  %v1719_v26 = vld [vmem:[%s1934_s0 + $0x50] sm:$0xff]  }
   0xa   :  { %v1720_v27 = vld [vmem:[%s1934_s0 + $0x58] sm:$0xff]   ;;  %v1721_v28 = vld [vmem:[%s1934_s0 + $0x60] sm:$0xff]   ;;  %v1722_v29 = vld [vmem:[%s1934_s0 + $0x68] sm:$0xff]  }
   0xb   :  { %1538 = vmatpush3.bf16.msra.mxu0 %v1697_v4  ;;  %v1723_v30 = vld [vmem:[%s1934_s0 + $0x70] sm:$0xff]   ;;  %v1724_v31 = vld [vmem:[%s1934_s0 + $0x78] sm:$0xff]   ;;  %v1725_v32 = vld [vmem:[%s1934_s0 + $0x80] sm:$0xff]  }
   0xc   :  { %1618 = vmatpush3.bf16.msra.mxu1 %v1698_v5  ;;  %1539 = vmatprep.subr.bf16.mxu0 %v1699_v6  ;;  %v1726_v33 = vld [vmem:[%s1934_s0 + $0x88] sm:$0xff]   ;;  %v1727_v34 = vld [vmem:[%s1934_s0 + $0x90] sm:$0xff]   ;;  %v1728_v35 = vld [vmem:[%s1934_s0 + $0x98] sm:$0xff]  }
   0xd   :  { %1619 = vmatprep.subr.bf16.mxu1 %v1700_v7  ;;  %v1729_v36 = vld [vmem:[%s1934_s0 + $0xa0] sm:$0xff]   ;;  %v1730_v37 = vld [vmem:[%s1934_s0 + $0xa8] sm:$0xff]   ;;  %v1731_v38 = vld [vmem:[%s1934_s0 + $0xb0] sm:$0xff]  }
   0xe   :  { %v1732_v39 = vld [vmem:[%s1934_s0 + $0xb8] sm:$0xff]   ;;  %v1733_v40 = vld [vmem:[%s1934_s0 + $0xc0] sm:$0xff]   ;;  %v1734_v41 = vld [vmem:[%s1934_s0 + $0xc8] sm:$0xff]  }
   0xf   :  { %1540 = vmatpush3.bf16.msra.mxu0 %v1699_v6  ;;  %v1735_v42 = vld [vmem:[%s1934_s0 + $0xd0] sm:$0xff]   ;;  %v1736_v43 = vld [vmem:[%s1934_s0 + $0xd8] sm:$0xff]   ;;  %v1737_v44 = vld [vmem:[%s1934_s0 + $0xe0] sm:$0xff]  }
  0x10   :  { %1620 = vmatpush3.bf16.msra.mxu1 %v1700_v7  ;;  %1541 = vmatprep.subr.bf16.mxu0 %v1701_v8  ;;  %v1738_v45 = vld [vmem:[%s1934_s0 + $0xe8] sm:$0xff]   ;;  %v1739_v46 = vld [vmem:[%s1934_s0 + $0xf0] sm:$0xff]   ;;  %v1740_v47 = vld [vmem:[%s1934_s0 + $0xf8] sm:$0xff]  }
  0x11   :  { %1621 = vmatprep.subr.bf16.mxu1 %v1702_v9 }
  0x13   :  { %1542 = vmatpush3.bf16.msra.mxu0 %v1701_v8 }
  0x14   :  { %1622 = vmatpush3.bf16.msra.mxu1 %v1702_v9  ;;  %1543 = vmatprep.subr.bf16.mxu0 %v1703_v10 }
  0x15   :  { %1623 = vmatprep.subr.bf16.mxu1 %v1704_v12 }
  0x17   :  { %1544 = vmatpush3.bf16.msra.mxu0 %v1703_v10 }
  0x18   :  { %1624 = vmatpush3.bf16.msra.mxu1 %v1704_v12  ;;  %1545 = vmatprep.subr.bf16.mxu0 %v1705_v13 }
  0x19   :  { %1625 = vmatprep.subr.bf16.mxu1 %v1706_v14 }
  0x1b   :  { %1546 = vmatpush3.bf16.msra.mxu0 %v1705_v13 }
  0x1c   :  { %1626 = vmatpush3.bf16.msra.mxu1 %v1706_v14  ;;  %1547 = vmatprep.subr.bf16.mxu0 %v1707_v15 }
  0x1d   :  { %1627 = vmatprep.subr.bf16.mxu1 %v1708_v16 }
  0x1f   :  { %1548 = vmatpush3.bf16.msra.mxu0 %v1707_v15 }
  0x20   :  { %1628 = vmatpush3.bf16.msra.mxu1 %v1708_v16 }
  0x22   :  { %1550 = vmatmul.mubr.bf16.vlgmr.msra.gmra.mrb[0].mxu0 %v1710_v17 }
  0x23   :  { %1630 = vmatmul.mubr.bf16.vlgmr.msra.gmra.mrb[0].mxu1 %v1710_v17  ;;  %1553 = vmatprep.mubr.bf16.mxu0 %v1711_v18 }
  0x24   :  { %1633 = vmatprep.mubr.bf16.mxu1 %v1711_v18 }
  0x2a   :  { %1554 = vmatmul.mubr.bf16.gmra.mrb[4].mxu0 %v1712_v19 }
  0x2b   :  { %1634 = vmatmul.mubr.bf16.gmra.mrb[4].mxu1 %v1712_v19  ;;  %1557 = vmatprep.mubr.bf16.mxu0 %v1713_v20 }
  0x2c   :  { %1637 = vmatprep.mubr.bf16.mxu1 %v1713_v20 }
  0x32   :  { %1558 = vmatmul.mubr.bf16.gmra.mrb[8].mxu0 %v1714_v21 }
  0x33   :  { %1638 = vmatmul.mubr.bf16.gmra.mrb[8].mxu1 %v1714_v21  ;;  %1561 = vmatprep.mubr.bf16.mxu0 %v1715_v22 }
  0x34   :  { %1641 = vmatprep.mubr.bf16.mxu1 %v1715_v22 }
  0x3a   :  { %1562 = vmatmul.mubr.bf16.gmra.mrb[12].mxu0 %v1716_v23 }
  0x3b   :  { %1642 = vmatmul.mubr.bf16.gmra.mrb[12].mxu1 %v1716_v23  ;;  %1565 = vmatprep.mubr.bf16.mxu0 %v1717_v24 }
  0x3c   :  { %1645 = vmatprep.mubr.bf16.mxu1 %v1717_v24 }
  0x42   :  { %1566 = vmatmul.mubr.bf16.gmra.mrb[16].mxu0 %v1718_v25 }
  0x43   :  { %1646 = vmatmul.mubr.bf16.gmra.mrb[16].mxu1 %v1718_v25  ;;  %1569 = vmatprep.mubr.bf16.mxu0 %v1719_v26 }
  0x44   :  { %1649 = vmatprep.mubr.bf16.mxu1 %v1719_v26 }
  0x4a   :  { %1570 = vmatmul.mubr.bf16.gmra.mrb[20].mxu0 %v1720_v27 }
  0x4b   :  { %1650 = vmatmul.mubr.bf16.gmra.mrb[20].mxu1 %v1720_v27  ;;  %1573 = vmatprep.mubr.bf16.mxu0 %v1721_v28 }
  0x4c   :  { %1653 = vmatprep.mubr.bf16.mxu1 %v1721_v28 }
  0x52   :  { %1574 = vmatmul.mubr.bf16.gmra.mrb[24].mxu0 %v1722_v29 }
  0x53   :  { %1654 = vmatmul.mubr.bf16.gmra.mrb[24].mxu1 %v1722_v29  ;;  %1577 = vmatprep.mubr.bf16.mxu0 %v1723_v30 }
  0x54   :  { %1657 = vmatprep.mubr.bf16.mxu1 %v1723_v30 }
  0x5a   :  { %1578 = vmatmul.mubr.bf16.gmra.mrb[28].mxu0 %v1724_v31 }
  0x5b   :  { %1658 = vmatmul.mubr.bf16.gmra.mrb[28].mxu1 %v1724_v31  ;;  %1581 = vmatprep.mubr.bf16.mxu0 %v1725_v32 }
  0x5c   :  { %1661 = vmatprep.mubr.bf16.mxu1 %v1725_v32 }
  0x62   :  { %1582 = vmatmul.mubr.bf16.gmra.mrb[32].mxu0 %v1726_v33 }
  0x63   :  { %1662 = vmatmul.mubr.bf16.gmra.mrb[32].mxu1 %v1726_v33  ;;  %1585 = vmatprep.mubr.bf16.mxu0 %v1727_v34 }
  0x64   :  { %1665 = vmatprep.mubr.bf16.mxu1 %v1727_v34 }
  0x6a   :  { %1586 = vmatmul.mubr.bf16.gmra.mrb[36].mxu0 %v1728_v35 }
  0x6b   :  { %1666 = vmatmul.mubr.bf16.gmra.mrb[36].mxu1 %v1728_v35  ;;  %1589 = vmatprep.mubr.bf16.mxu0 %v1729_v36 }
  0x6c   :  { %1669 = vmatprep.mubr.bf16.mxu1 %v1729_v36 }
  0x72   :  { %1590 = vmatmul.mubr.bf16.gmra.mrb[40].mxu0 %v1730_v37 }
  0x73   :  { %1670 = vmatmul.mubr.bf16.gmra.mrb[40].mxu1 %v1730_v37  ;;  %1593 = vmatprep.mubr.bf16.mxu0 %v1731_v38 }
  0x74   :  { %1673 = vmatprep.mubr.bf16.mxu1 %v1731_v38 }
  0x7a   :  { %1594 = vmatmul.mubr.bf16.gmra.mrb[44].mxu0 %v1732_v39 }
  0x7b   :  { %1674 = vmatmul.mubr.bf16.gmra.mrb[44].mxu1 %v1732_v39  ;;  %1597 = vmatprep.mubr.bf16.mxu0 %v1733_v40 }
  0x7c   :  { %1677 = vmatprep.mubr.bf16.mxu1 %v1733_v40 }
  0x82   :  { %1598 = vmatmul.mubr.bf16.gmra.mrb[48].mxu0 %v1734_v41 }
  0x83   :  { %1678 = vmatmul.mubr.bf16.gmra.mrb[48].mxu1 %v1734_v41  ;;  %1601 = vmatprep.mubr.bf16.mxu0 %v1735_v42 }
  0x84   :  { %1681 = vmatprep.mubr.bf16.mxu1 %v1735_v42 }
  0x8a   :  { %1602 = vmatmul.mubr.bf16.gmra.mrb[52].mxu0 %v1736_v43 }
  0x8b   :  { %1682 = vmatmul.mubr.bf16.gmra.mrb[52].mxu1 %v1736_v43  ;;  %1605 = vmatprep.mubr.bf16.mxu0 %v1737_v44 }
  0x8c   :  { %1685 = vmatprep.mubr.bf16.mxu1 %v1737_v44 }
  0x92   :  { %1606 = vmatmul.mubr.bf16.gmra.mrb[56].mxu0 %v1738_v45 }
  0x93   :  { %1686 = vmatmul.mubr.bf16.gmra.mrb[56].mxu1 %v1738_v45  ;;  %1609 = vmatprep.mubr.bf16.mxu0 %v1739_v46 }
  0x94   :  { %1689 = vmatprep.mubr.bf16.mxu1 %v1739_v46 }
  0x9a   :  { %1610 = vmatmul.mubr.bf16.gmra.mrb[60].mxu0 %v1740_v47 }
  0x9b   :  { %1690 = vmatmul.mubr.bf16.gmra.mrb[60].mxu1 %v1740_v47 }
  0xf5   :  { %v1551_v48 = vpop.f32.mrb[0].mxu0 }
  0xf6   :  { %v1631_v49 = vpop.f32.mrb[0].mxu1  ;;  %v373_v50 = vpop.f32.mrb[1].mxu0  ;;  %v1053_v62 = vmul.f32 %v1551_v48, %v1551_v48 }
  0xf7   :  { %v726_v51 = vpop.f32.mrb[1].mxu1  ;;  %v1552_v52 = vpop.f32.mrb[2].mxu0  ;;  %v1051_v55 = vmul.f32 %v373_v50, %v373_v50  ;;  %v1257_v1 = vmul.f32 %v1631_v49, %v1631_v49 }
  0xf8   :  { %v1632_v53 = vpop.f32.mrb[2].mxu1  ;;  %v376_v54 = vpop.f32.mrb[3].mxu0  ;;  %v1255_v59 = vmul.f32 %v726_v51, %v726_v51  ;;  %v1054_v4 = vmul.f32 %v1552_v52, %v1552_v52 }
  0xf9   :  { %v981_v56 = vadd.f32 %v376_v54, %v373_v50  ;;  %v1052_v57 = vmul.f32 %v376_v54, %v376_v54  ;;  %v729_v58 = vpop.f32.mrb[3].mxu1  ;;  %v1258_v8 = vmul.f32 %v1632_v53, %v1632_v53 }
  0xfa   :  { %v1185_v60 = vadd.f32 %v729_v58, %v726_v51  ;;  %v1256_v61 = vmul.f32 %v729_v58, %v729_v58 }
  0xfb   :  { %v982_v63 = vadd.f32 %v1551_v48, %v981_v56  ;;  %v1115_v0 = vadd.f32 %v1052_v57, %v1051_v55 }
  0xfc   :  { %v1186_v2 = vadd.f32 %v1631_v49, %v1185_v60  ;;  %v1319_v3 = vadd.f32 %v1256_v61, %v1255_v59 }
  0xfd   :  { %v1116_v5 = vadd.f32 %v1115_v0, %v1053_v62  ;;  %v1555_v6 = vpop.f32.mrb[4].mxu0  ;;  %v983_v7 = vadd.f32 %v1552_v52, %v982_v63 }
  0xfe   :  { %v1320_v9 = vadd.f32 %v1319_v3, %v1257_v1  ;;  %v1635_v10 = vpop.f32.mrb[4].mxu1  ;;  %v389_v11 = vpop.f32.mrb[5].mxu0  ;;  %v1187_v12 = vadd.f32 %v1632_v53, %v1186_v2  ;;  %v1057_v30 = vmul.f32 %v1555_v6, %v1555_v6 }
  0xff   :  { %v984_v13 = vadd.f32 %v983_v7, %v389_v11  ;;  %v1055_v14 = vmul.f32 %v389_v11, %v389_v11  ;;  %v1117_v15 = vadd.f32 %v1116_v5, %v1054_v4  ;;  %v742_v16 = vpop.f32.mrb[5].mxu1  ;;  %v1556_v17 = vpop.f32.mrb[6].mxu0  ;;  %v1261_v33 = vmul.f32 %v1635_v10, %v1635_v10 }
 0x100   :  { %v1188_v18 = vadd.f32 %v1187_v12, %v742_v16  ;;  %v1259_v19 = vmul.f32 %v742_v16, %v742_v16  ;;  %v1321_v20 = vadd.f32 %v1320_v9, %v1258_v8  ;;  %v1636_v21 = vpop.f32.mrb[6].mxu1  ;;  %v392_v22 = vpop.f32.mrb[7].mxu0  ;;  %v1058_v36 = vmul.f32 %v1556_v17, %v1556_v17 }
 0x101   :  { %v1118_v23 = vadd.f32 %v1117_v15, %v1055_v14  ;;  %v985_v24 = vadd.f32 %v984_v13, %v392_v22  ;;  %v1056_v25 = vmul.f32 %v392_v22, %v392_v22  ;;  %v745_v26 = vpop.f32.mrb[7].mxu1  ;;  %v1262_v40 = vmul.f32 %v1636_v21, %v1636_v21 }
 0x102   :  { %v1322_v27 = vadd.f32 %v1321_v20, %v1259_v19  ;;  %v1189_v28 = vadd.f32 %v1188_v18, %v745_v26  ;;  %v1260_v29 = vmul.f32 %v745_v26, %v745_v26 }
 0x103   :  { %v986_v31 = vadd.f32 %v1555_v6, %v985_v24  ;;  %v1119_v32 = vadd.f32 %v1118_v23, %v1056_v25 }
 0x104   :  { %v1190_v34 = vadd.f32 %v1635_v10, %v1189_v28  ;;  %v1323_v35 = vadd.f32 %v1322_v27, %v1260_v29 }
 0x105   :  { %v1120_v37 = vadd.f32 %v1119_v32, %v1057_v30  ;;  %v1559_v38 = vpop.f32.mrb[8].mxu0  ;;  %v987_v39 = vadd.f32 %v1556_v17, %v986_v31 }
 0x106   :  { %v1324_v41 = vadd.f32 %v1323_v35, %v1261_v33  ;;  %v1639_v42 = vpop.f32.mrb[8].mxu1  ;;  %v405_v43 = vpop.f32.mrb[9].mxu0  ;;  %v1191_v44 = vadd.f32 %v1636_v21, %v1190_v34  ;;  %v1061_v62 = vmul.f32 %v1559_v38, %v1559_v38 }
 0x107   :  { %v988_v45 = vadd.f32 %v987_v39, %v405_v43  ;;  %v1059_v46 = vmul.f32 %v405_v43, %v405_v43  ;;  %v1121_v47 = vadd.f32 %v1120_v37, %v1058_v36  ;;  %v758_v48 = vpop.f32.mrb[9].mxu1  ;;  %v1560_v49 = vpop.f32.mrb[10].mxu0  ;;  %v1265_v1 = vmul.f32 %v1639_v42, %v1639_v42 }
 0x108   :  { %v1192_v50 = vadd.f32 %v1191_v44, %v758_v48  ;;  %v1263_v51 = vmul.f32 %v758_v48, %v758_v48  ;;  %v1325_v52 = vadd.f32 %v1324_v41, %v1262_v40  ;;  %v1640_v53 = vpop.f32.mrb[10].mxu1  ;;  %v408_v54 = vpop.f32.mrb[11].mxu0  ;;  %v1062_v4 = vmul.f32 %v1560_v49, %v1560_v49 }
 0x109   :  { %v1122_v55 = vadd.f32 %v1121_v47, %v1059_v46  ;;  %v989_v56 = vadd.f32 %v988_v45, %v408_v54  ;;  %v1060_v57 = vmul.f32 %v408_v54, %v408_v54  ;;  %v761_v58 = vpop.f32.mrb[11].mxu1  ;;  %v1266_v8 = vmul.f32 %v1640_v53, %v1640_v53 }
 0x10a   :  { %v1326_v59 = vadd.f32 %v1325_v52, %v1263_v51  ;;  %v1193_v60 = vadd.f32 %v1192_v50, %v761_v58  ;;  %v1264_v61 = vmul.f32 %v761_v58, %v761_v58 }
 0x10b   :  { %v990_v63 = vadd.f32 %v1559_v38, %v989_v56  ;;  %v1123_v0 = vadd.f32 %v1122_v55, %v1060_v57 }
 0x10c   :  { %v1194_v2 = vadd.f32 %v1639_v42, %v1193_v60  ;;  %v1327_v3 = vadd.f32 %v1326_v59, %v1264_v61 }
 0x10d   :  { %v1124_v5 = vadd.f32 %v1123_v0, %v1061_v62  ;;  %v1563_v6 = vpop.f32.mrb[12].mxu0  ;;  %v991_v7 = vadd.f32 %v1560_v49, %v990_v63 }
 0x10e   :  { %v1328_v9 = vadd.f32 %v1327_v3, %v1265_v1  ;;  %v1643_v10 = vpop.f32.mrb[12].mxu1  ;;  %v421_v11 = vpop.f32.mrb[13].mxu0  ;;  %v1195_v12 = vadd.f32 %v1640_v53, %v1194_v2  ;;  %v1065_v30 = vmul.f32 %v1563_v6, %v1563_v6 }
 0x10f   :  { %v992_v13 = vadd.f32 %v991_v7, %v421_v11  ;;  %v1063_v14 = vmul.f32 %v421_v11, %v421_v11  ;;  %v1125_v15 = vadd.f32 %v1124_v5, %v1062_v4  ;;  %v774_v16 = vpop.f32.mrb[13].mxu1  ;;  %v1564_v17 = vpop.f32.mrb[14].mxu0  ;;  %v1269_v33 = vmul.f32 %v1643_v10, %v1643_v10 }
 0x110   :  { %v1196_v18 = vadd.f32 %v1195_v12, %v774_v16  ;;  %v1267_v19 = vmul.f32 %v774_v16, %v774_v16  ;;  %v1329_v20 = vadd.f32 %v1328_v9, %v1266_v8  ;;  %v1644_v21 = vpop.f32.mrb[14].mxu1  ;;  %v424_v22 = vpop.f32.mrb[15].mxu0  ;;  %v1066_v36 = vmul.f32 %v1564_v17, %v1564_v17 }
 0x111   :  { %v1126_v23 = vadd.f32 %v1125_v15, %v1063_v14  ;;  %v993_v24 = vadd.f32 %v992_v13, %v424_v22  ;;  %v1064_v25 = vmul.f32 %v424_v22, %v424_v22  ;;  %v777_v26 = vpop.f32.mrb[15].mxu1  ;;  %v1270_v40 = vmul.f32 %v1644_v21, %v1644_v21 }
 0x112   :  { %v1330_v27 = vadd.f32 %v1329_v20, %v1267_v19  ;;  %v1197_v28 = vadd.f32 %v1196_v18, %v777_v26  ;;  %v1268_v29 = vmul.f32 %v777_v26, %v777_v26 }
 0x113   :  { %v994_v31 = vadd.f32 %v1563_v6, %v993_v24  ;;  %v1127_v32 = vadd.f32 %v1126_v23, %v1064_v25 }
 0x114   :  { %v1198_v34 = vadd.f32 %v1643_v10, %v1197_v28  ;;  %v1331_v35 = vadd.f32 %v1330_v27, %v1268_v29 }
 0x115   :  { %v1128_v37 = vadd.f32 %v1127_v32, %v1065_v30  ;;  %v1567_v38 = vpop.f32.mrb[16].mxu0  ;;  %v995_v39 = vadd.f32 %v1564_v17, %v994_v31 }
 0x116   :  { %v1332_v41 = vadd.f32 %v1331_v35, %v1269_v33  ;;  %v1647_v42 = vpop.f32.mrb[16].mxu1  ;;  %v437_v43 = vpop.f32.mrb[17].mxu0  ;;  %v1199_v44 = vadd.f32 %v1644_v21, %v1198_v34  ;;  %v1069_v62 = vmul.f32 %v1567_v38, %v1567_v38 }
 0x117   :  { %v996_v45 = vadd.f32 %v995_v39, %v437_v43  ;;  %v1067_v46 = vmul.f32 %v437_v43, %v437_v43  ;;  %v1129_v47 = vadd.f32 %v1128_v37, %v1066_v36  ;;  %v790_v48 = vpop.f32.mrb[17].mxu1  ;;  %v1568_v49 = vpop.f32.mrb[18].mxu0  ;;  %v1273_v1 = vmul.f32 %v1647_v42, %v1647_v42 }
 0x118   :  { %v1200_v50 = vadd.f32 %v1199_v44, %v790_v48  ;;  %v1271_v51 = vmul.f32 %v790_v48, %v790_v48  ;;  %v1333_v52 = vadd.f32 %v1332_v41, %v1270_v40  ;;  %v1648_v53 = vpop.f32.mrb[18].mxu1  ;;  %v440_v54 = vpop.f32.mrb[19].mxu0  ;;  %v1070_v4 = vmul.f32 %v1568_v49, %v1568_v49 }
 0x119   :  { %v1130_v55 = vadd.f32 %v1129_v47, %v1067_v46  ;;  %v997_v56 = vadd.f32 %v996_v45, %v440_v54  ;;  %v1068_v57 = vmul.f32 %v440_v54, %v440_v54  ;;  %v793_v58 = vpop.f32.mrb[19].mxu1  ;;  %v1274_v8 = vmul.f32 %v1648_v53, %v1648_v53 }
 0x11a   :  { %v1334_v59 = vadd.f32 %v1333_v52, %v1271_v51  ;;  %v1201_v60 = vadd.f32 %v1200_v50, %v793_v58  ;;  %v1272_v61 = vmul.f32 %v793_v58, %v793_v58 }
 0x11b   :  { %v998_v63 = vadd.f32 %v1567_v38, %v997_v56  ;;  %v1131_v0 = vadd.f32 %v1130_v55, %v1068_v57 }
 0x11c   :  { %v1202_v2 = vadd.f32 %v1647_v42, %v1201_v60  ;;  %v1335_v3 = vadd.f32 %v1334_v59, %v1272_v61 }
 0x11d   :  { %v1132_v5 = vadd.f32 %v1131_v0, %v1069_v62  ;;  %v1571_v6 = vpop.f32.mrb[20].mxu0  ;;  %v999_v7 = vadd.f32 %v1568_v49, %v998_v63 }
 0x11e   :  { %v1336_v9 = vadd.f32 %v1335_v3, %v1273_v1  ;;  %v1651_v10 = vpop.f32.mrb[20].mxu1  ;;  %v453_v11 = vpop.f32.mrb[21].mxu0  ;;  %v1203_v12 = vadd.f32 %v1648_v53, %v1202_v2  ;;  %v1073_v30 = vmul.f32 %v1571_v6, %v1571_v6 }
 0x11f   :  { %v1000_v13 = vadd.f32 %v999_v7, %v453_v11  ;;  %v1071_v14 = vmul.f32 %v453_v11, %v453_v11  ;;  %v1133_v15 = vadd.f32 %v1132_v5, %v1070_v4  ;;  %v806_v16 = vpop.f32.mrb[21].mxu1  ;;  %v1572_v17 = vpop.f32.mrb[22].mxu0  ;;  %v1277_v33 = vmul.f32 %v1651_v10, %v1651_v10 }
 0x120   :  { %v1204_v18 = vadd.f32 %v1203_v12, %v806_v16  ;;  %v1275_v19 = vmul.f32 %v806_v16, %v806_v16  ;;  %v1337_v20 = vadd.f32 %v1336_v9, %v1274_v8  ;;  %v1652_v21 = vpop.f32.mrb[22].mxu1  ;;  %v456_v22 = vpop.f32.mrb[23].mxu0  ;;  %v1074_v36 = vmul.f32 %v1572_v17, %v1572_v17 }
 0x121   :  { %v1134_v23 = vadd.f32 %v1133_v15, %v1071_v14  ;;  %v1001_v24 = vadd.f32 %v1000_v13, %v456_v22  ;;  %v1072_v25 = vmul.f32 %v456_v22, %v456_v22  ;;  %v809_v26 = vpop.f32.mrb[23].mxu1  ;;  %v1278_v40 = vmul.f32 %v1652_v21, %v1652_v21 }
 0x122   :  { %v1338_v27 = vadd.f32 %v1337_v20, %v1275_v19  ;;  %v1205_v28 = vadd.f32 %v1204_v18, %v809_v26  ;;  %v1276_v29 = vmul.f32 %v809_v26, %v809_v26 }
 0x123   :  { %v1002_v31 = vadd.f32 %v1571_v6, %v1001_v24  ;;  %v1135_v32 = vadd.f32 %v1134_v23, %v1072_v25 }
 0x124   :  { %v1206_v34 = vadd.f32 %v1651_v10, %v1205_v28  ;;  %v1339_v35 = vadd.f32 %v1338_v27, %v1276_v29 }
 0x125   :  { %v1136_v37 = vadd.f32 %v1135_v32, %v1073_v30  ;;  %v1575_v38 = vpop.f32.mrb[24].mxu0  ;;  %v1003_v39 = vadd.f32 %v1572_v17, %v1002_v31 }
 0x126   :  { %v1340_v41 = vadd.f32 %v1339_v35, %v1277_v33  ;;  %v1655_v42 = vpop.f32.mrb[24].mxu1  ;;  %v469_v43 = vpop.f32.mrb[25].mxu0  ;;  %v1207_v44 = vadd.f32 %v1652_v21, %v1206_v34  ;;  %v1077_v62 = vmul.f32 %v1575_v38, %v1575_v38 }
 0x127   :  { %v1004_v45 = vadd.f32 %v1003_v39, %v469_v43  ;;  %v1075_v46 = vmul.f32 %v469_v43, %v469_v43  ;;  %v1137_v47 = vadd.f32 %v1136_v37, %v1074_v36  ;;  %v822_v48 = vpop.f32.mrb[25].mxu1  ;;  %v1576_v49 = vpop.f32.mrb[26].mxu0  ;;  %v1281_v1 = vmul.f32 %v1655_v42, %v1655_v42 }
 0x128   :  { %v1208_v50 = vadd.f32 %v1207_v44, %v822_v48  ;;  %v1279_v51 = vmul.f32 %v822_v48, %v822_v48  ;;  %v1341_v52 = vadd.f32 %v1340_v41, %v1278_v40  ;;  %v1656_v53 = vpop.f32.mrb[26].mxu1  ;;  %v472_v54 = vpop.f32.mrb[27].mxu0  ;;  %v1078_v4 = vmul.f32 %v1576_v49, %v1576_v49 }
 0x129   :  { %v1138_v55 = vadd.f32 %v1137_v47, %v1075_v46  ;;  %v1005_v56 = vadd.f32 %v1004_v45, %v472_v54  ;;  %v1076_v57 = vmul.f32 %v472_v54, %v472_v54  ;;  %v825_v58 = vpop.f32.mrb[27].mxu1  ;;  %v1282_v8 = vmul.f32 %v1656_v53, %v1656_v53 }
 0x12a   :  { %v1342_v59 = vadd.f32 %v1341_v52, %v1279_v51  ;;  %v1209_v60 = vadd.f32 %v1208_v50, %v825_v58  ;;  %v1280_v61 = vmul.f32 %v825_v58, %v825_v58 }
 0x12b   :  { %v1006_v63 = vadd.f32 %v1575_v38, %v1005_v56  ;;  %v1139_v0 = vadd.f32 %v1138_v55, %v1076_v57 }
 0x12c   :  { %v1210_v2 = vadd.f32 %v1655_v42, %v1209_v60  ;;  %v1343_v3 = vadd.f32 %v1342_v59, %v1280_v61 }
 0x12d   :  { %v1140_v5 = vadd.f32 %v1139_v0, %v1077_v62  ;;  %v1579_v6 = vpop.f32.mrb[28].mxu0  ;;  %v1007_v7 = vadd.f32 %v1576_v49, %v1006_v63 }
 0x12e   :  { %v1344_v9 = vadd.f32 %v1343_v3, %v1281_v1  ;;  %v1659_v10 = vpop.f32.mrb[28].mxu1  ;;  %v485_v11 = vpop.f32.mrb[29].mxu0  ;;  %v1211_v12 = vadd.f32 %v1656_v53, %v1210_v2  ;;  %v1081_v30 = vmul.f32 %v1579_v6, %v1579_v6 }
 0x12f   :  { %v1008_v13 = vadd.f32 %v1007_v7, %v485_v11  ;;  %v1079_v14 = vmul.f32 %v485_v11, %v485_v11  ;;  %v1141_v15 = vadd.f32 %v1140_v5, %v1078_v4  ;;  %v838_v16 = vpop.f32.mrb[29].mxu1  ;;  %v1580_v17 = vpop.f32.mrb[30].mxu0  ;;  %v1285_v33 = vmul.f32 %v1659_v10, %v1659_v10 }
 0x130   :  { %v1212_v18 = vadd.f32 %v1211_v12, %v838_v16  ;;  %v1283_v19 = vmul.f32 %v838_v16, %v838_v16  ;;  %v1345_v20 = vadd.f32 %v1344_v9, %v1282_v8  ;;  %v1660_v21 = vpop.f32.mrb[30].mxu1  ;;  %v488_v22 = vpop.f32.mrb[31].mxu0  ;;  %v1082_v36 = vmul.f32 %v1580_v17, %v1580_v17 }
 0x131   :  { %v1142_v23 = vadd.f32 %v1141_v15, %v1079_v14  ;;  %v1009_v24 = vadd.f32 %v1008_v13, %v488_v22  ;;  %v1080_v25 = vmul.f32 %v488_v22, %v488_v22  ;;  %v841_v26 = vpop.f32.mrb[31].mxu1  ;;  %v1286_v40 = vmul.f32 %v1660_v21, %v1660_v21 }
 0x132   :  { %v1346_v27 = vadd.f32 %v1345_v20, %v1283_v19  ;;  %v1213_v28 = vadd.f32 %v1212_v18, %v841_v26  ;;  %v1284_v29 = vmul.f32 %v841_v26, %v841_v26 }
 0x133   :  { %v1010_v31 = vadd.f32 %v1579_v6, %v1009_v24  ;;  %v1143_v32 = vadd.f32 %v1142_v23, %v1080_v25 }
 0x134   :  { %v1214_v34 = vadd.f32 %v1659_v10, %v1213_v28  ;;  %v1347_v35 = vadd.f32 %v1346_v27, %v1284_v29 }
 0x135   :  { %v1144_v37 = vadd.f32 %v1143_v32, %v1081_v30  ;;  %v1583_v38 = vpop.f32.mrb[32].mxu0  ;;  %v1011_v39 = vadd.f32 %v1580_v17, %v1010_v31 }
 0x136   :  { %v1348_v41 = vadd.f32 %v1347_v35, %v1285_v33  ;;  %v1663_v42 = vpop.f32.mrb[32].mxu1  ;;  %v501_v43 = vpop.f32.mrb[33].mxu0  ;;  %v1215_v44 = vadd.f32 %v1660_v21, %v1214_v34  ;;  %v1085_v62 = vmul.f32 %v1583_v38, %v1583_v38 }
 0x137   :  { %v1012_v45 = vadd.f32 %v1011_v39, %v501_v43  ;;  %v1083_v46 = vmul.f32 %v501_v43, %v501_v43  ;;  %v1145_v47 = vadd.f32 %v1144_v37, %v1082_v36  ;;  %v854_v48 = vpop.f32.mrb[33].mxu1  ;;  %v1584_v49 = vpop.f32.mrb[34].mxu0  ;;  %v1289_v1 = vmul.f32 %v1663_v42, %v1663_v42 }
 0x138   :  { %v1216_v50 = vadd.f32 %v1215_v44, %v854_v48  ;;  %v1287_v51 = vmul.f32 %v854_v48, %v854_v48  ;;  %v1349_v52 = vadd.f32 %v1348_v41, %v1286_v40  ;;  %v1664_v53 = vpop.f32.mrb[34].mxu1  ;;  %v504_v54 = vpop.f32.mrb[35].mxu0  ;;  %v1086_v4 = vmul.f32 %v1584_v49, %v1584_v49 }
 0x139   :  { %v1146_v55 = vadd.f32 %v1145_v47, %v1083_v46  ;;  %v1013_v56 = vadd.f32 %v1012_v45, %v504_v54  ;;  %v1084_v57 = vmul.f32 %v504_v54, %v504_v54  ;;  %v857_v58 = vpop.f32.mrb[35].mxu1  ;;  %v1290_v8 = vmul.f32 %v1664_v53, %v1664_v53 }
 0x13a   :  { %v1350_v59 = vadd.f32 %v1349_v52, %v1287_v51  ;;  %v1217_v60 = vadd.f32 %v1216_v50, %v857_v58  ;;  %v1288_v61 = vmul.f32 %v857_v58, %v857_v58 }
 0x13b   :  { %v1014_v63 = vadd.f32 %v1583_v38, %v1013_v56  ;;  %v1147_v0 = vadd.f32 %v1146_v55, %v1084_v57 }
 0x13c   :  { %v1218_v2 = vadd.f32 %v1663_v42, %v1217_v60  ;;  %v1351_v3 = vadd.f32 %v1350_v59, %v1288_v61 }
 0x13d   :  { %v1148_v5 = vadd.f32 %v1147_v0, %v1085_v62  ;;  %v1587_v6 = vpop.f32.mrb[36].mxu0  ;;  %v1015_v7 = vadd.f32 %v1584_v49, %v1014_v63 }
 0x13e   :  { %v1352_v9 = vadd.f32 %v1351_v3, %v1289_v1  ;;  %v1667_v10 = vpop.f32.mrb[36].mxu1  ;;  %v517_v11 = vpop.f32.mrb[37].mxu0  ;;  %v1219_v12 = vadd.f32 %v1664_v53, %v1218_v2  ;;  %v1089_v30 = vmul.f32 %v1587_v6, %v1587_v6 }
 0x13f   :  { %v1016_v13 = vadd.f32 %v1015_v7, %v517_v11  ;;  %v1087_v14 = vmul.f32 %v517_v11, %v517_v11  ;;  %v1149_v15 = vadd.f32 %v1148_v5, %v1086_v4  ;;  %v870_v16 = vpop.f32.mrb[37].mxu1  ;;  %v1588_v17 = vpop.f32.mrb[38].mxu0  ;;  %v1293_v33 = vmul.f32 %v1667_v10, %v1667_v10 }
 0x140   :  { %v1220_v18 = vadd.f32 %v1219_v12, %v870_v16  ;;  %v1291_v19 = vmul.f32 %v870_v16, %v870_v16  ;;  %v1353_v20 = vadd.f32 %v1352_v9, %v1290_v8  ;;  %v1668_v21 = vpop.f32.mrb[38].mxu1  ;;  %v520_v22 = vpop.f32.mrb[39].mxu0  ;;  %v1090_v36 = vmul.f32 %v1588_v17, %v1588_v17 }
 0x141   :  { %v1150_v23 = vadd.f32 %v1149_v15, %v1087_v14  ;;  %v1017_v24 = vadd.f32 %v1016_v13, %v520_v22  ;;  %v1088_v25 = vmul.f32 %v520_v22, %v520_v22  ;;  %v873_v26 = vpop.f32.mrb[39].mxu1  ;;  %v1294_v40 = vmul.f32 %v1668_v21, %v1668_v21 }
 0x142   :  { %v1354_v27 = vadd.f32 %v1353_v20, %v1291_v19  ;;  %v1221_v28 = vadd.f32 %v1220_v18, %v873_v26  ;;  %v1292_v29 = vmul.f32 %v873_v26, %v873_v26 }
 0x143   :  { %v1018_v31 = vadd.f32 %v1587_v6, %v1017_v24  ;;  %v1151_v32 = vadd.f32 %v1150_v23, %v1088_v25 }
 0x144   :  { %v1222_v34 = vadd.f32 %v1667_v10, %v1221_v28  ;;  %v1355_v35 = vadd.f32 %v1354_v27, %v1292_v29 }
 0x145   :  { %v1152_v37 = vadd.f32 %v1151_v32, %v1089_v30  ;;  %v1591_v38 = vpop.f32.mrb[40].mxu0  ;;  %v1019_v39 = vadd.f32 %v1588_v17, %v1018_v31 }
 0x146   :  { %v1356_v41 = vadd.f32 %v1355_v35, %v1293_v33  ;;  %v1671_v42 = vpop.f32.mrb[40].mxu1  ;;  %v533_v43 = vpop.f32.mrb[41].mxu0  ;;  %v1223_v44 = vadd.f32 %v1668_v21, %v1222_v34  ;;  %v1093_v62 = vmul.f32 %v1591_v38, %v1591_v38 }
 0x147   :  { %v1020_v45 = vadd.f32 %v1019_v39, %v533_v43  ;;  %v1091_v46 = vmul.f32 %v533_v43, %v533_v43  ;;  %v1153_v47 = vadd.f32 %v1152_v37, %v1090_v36  ;;  %v886_v48 = vpop.f32.mrb[41].mxu1  ;;  %v1592_v49 = vpop.f32.mrb[42].mxu0  ;;  %v1297_v1 = vmul.f32 %v1671_v42, %v1671_v42 }
 0x148   :  { %v1224_v50 = vadd.f32 %v1223_v44, %v886_v48  ;;  %v1295_v51 = vmul.f32 %v886_v48, %v886_v48  ;;  %v1357_v52 = vadd.f32 %v1356_v41, %v1294_v40  ;;  %v1672_v53 = vpop.f32.mrb[42].mxu1  ;;  %v536_v54 = vpop.f32.mrb[43].mxu0  ;;  %v1094_v4 = vmul.f32 %v1592_v49, %v1592_v49 }
 0x149   :  { %v1154_v55 = vadd.f32 %v1153_v47, %v1091_v46  ;;  %v1021_v56 = vadd.f32 %v1020_v45, %v536_v54  ;;  %v1092_v57 = vmul.f32 %v536_v54, %v536_v54  ;;  %v889_v58 = vpop.f32.mrb[43].mxu1  ;;  %v1298_v8 = vmul.f32 %v1672_v53, %v1672_v53 }
 0x14a   :  { %v1358_v59 = vadd.f32 %v1357_v52, %v1295_v51  ;;  %v1225_v60 = vadd.f32 %v1224_v50, %v889_v58  ;;  %v1296_v61 = vmul.f32 %v889_v58, %v889_v58 }
 0x14b   :  { %v1022_v63 = vadd.f32 %v1591_v38, %v1021_v56  ;;  %v1155_v0 = vadd.f32 %v1154_v55, %v1092_v57 }
 0x14c   :  { %v1226_v2 = vadd.f32 %v1671_v42, %v1225_v60  ;;  %v1359_v3 = vadd.f32 %v1358_v59, %v1296_v61 }
 0x14d   :  { %v1156_v5 = vadd.f32 %v1155_v0, %v1093_v62  ;;  %v1595_v6 = vpop.f32.mrb[44].mxu0  ;;  %v1023_v7 = vadd.f32 %v1592_v49, %v1022_v63 }
 0x14e   :  { %v1360_v9 = vadd.f32 %v1359_v3, %v1297_v1  ;;  %v1675_v10 = vpop.f32.mrb[44].mxu1  ;;  %v549_v11 = vpop.f32.mrb[45].mxu0  ;;  %v1227_v12 = vadd.f32 %v1672_v53, %v1226_v2  ;;  %v1097_v30 = vmul.f32 %v1595_v6, %v1595_v6 }
 0x14f   :  { %v1024_v13 = vadd.f32 %v1023_v7, %v549_v11  ;;  %v1095_v14 = vmul.f32 %v549_v11, %v549_v11  ;;  %v1157_v15 = vadd.f32 %v1156_v5, %v1094_v4  ;;  %v902_v16 = vpop.f32.mrb[45].mxu1  ;;  %v1596_v17 = vpop.f32.mrb[46].mxu0  ;;  %v1301_v33 = vmul.f32 %v1675_v10, %v1675_v10 }
 0x150   :  { %v1228_v18 = vadd.f32 %v1227_v12, %v902_v16  ;;  %v1299_v19 = vmul.f32 %v902_v16, %v902_v16  ;;  %v1361_v20 = vadd.f32 %v1360_v9, %v1298_v8  ;;  %v1676_v21 = vpop.f32.mrb[46].mxu1  ;;  %v552_v22 = vpop.f32.mrb[47].mxu0  ;;  %v1098_v36 = vmul.f32 %v1596_v17, %v1596_v17 }
 0x151   :  { %v1158_v23 = vadd.f32 %v1157_v15, %v1095_v14  ;;  %v1025_v24 = vadd.f32 %v1024_v13, %v552_v22  ;;  %v1096_v25 = vmul.f32 %v552_v22, %v552_v22  ;;  %v905_v26 = vpop.f32.mrb[47].mxu1  ;;  %v1302_v40 = vmul.f32 %v1676_v21, %v1676_v21 }
 0x152   :  { %v1362_v27 = vadd.f32 %v1361_v20, %v1299_v19  ;;  %v1229_v28 = vadd.f32 %v1228_v18, %v905_v26  ;;  %v1300_v29 = vmul.f32 %v905_v26, %v905_v26 }
 0x153   :  { %v1026_v31 = vadd.f32 %v1595_v6, %v1025_v24  ;;  %v1159_v32 = vadd.f32 %v1158_v23, %v1096_v25 }
 0x154   :  { %v1230_v34 = vadd.f32 %v1675_v10, %v1229_v28  ;;  %v1363_v35 = vadd.f32 %v1362_v27, %v1300_v29 }
 0x155   :  { %v1160_v37 = vadd.f32 %v1159_v32, %v1097_v30  ;;  %v1599_v38 = vpop.f32.mrb[48].mxu0  ;;  %v1027_v39 = vadd.f32 %v1596_v17, %v1026_v31 }
 0x156   :  { %v1364_v41 = vadd.f32 %v1363_v35, %v1301_v33  ;;  %v1679_v42 = vpop.f32.mrb[48].mxu1  ;;  %v565_v43 = vpop.f32.mrb[49].mxu0  ;;  %v1231_v44 = vadd.f32 %v1676_v21, %v1230_v34  ;;  %v1101_v62 = vmul.f32 %v1599_v38, %v1599_v38 }
 0x157   :  { %v1028_v45 = vadd.f32 %v1027_v39, %v565_v43  ;;  %v1099_v46 = vmul.f32 %v565_v43, %v565_v43  ;;  %v1161_v47 = vadd.f32 %v1160_v37, %v1098_v36  ;;  %v918_v48 = vpop.f32.mrb[49].mxu1  ;;  %v1600_v49 = vpop.f32.mrb[50].mxu0  ;;  %v1305_v1 = vmul.f32 %v1679_v42, %v1679_v42 }
 0x158   :  { %v1232_v50 = vadd.f32 %v1231_v44, %v918_v48  ;;  %v1303_v51 = vmul.f32 %v918_v48, %v918_v48  ;;  %v1365_v52 = vadd.f32 %v1364_v41, %v1302_v40  ;;  %v1680_v53 = vpop.f32.mrb[50].mxu1  ;;  %v568_v54 = vpop.f32.mrb[51].mxu0  ;;  %v1102_v4 = vmul.f32 %v1600_v49, %v1600_v49 }
 0x159   :  { %v1162_v55 = vadd.f32 %v1161_v47, %v1099_v46  ;;  %v1029_v56 = vadd.f32 %v1028_v45, %v568_v54  ;;  %v1100_v57 = vmul.f32 %v568_v54, %v568_v54  ;;  %v921_v58 = vpop.f32.mrb[51].mxu1  ;;  %v1306_v8 = vmul.f32 %v1680_v53, %v1680_v53 }
 0x15a   :  { %v1366_v59 = vadd.f32 %v1365_v52, %v1303_v51  ;;  %v1233_v60 = vadd.f32 %v1232_v50, %v921_v58  ;;  %v1304_v61 = vmul.f32 %v921_v58, %v921_v58 }
 0x15b   :  { %v1030_v63 = vadd.f32 %v1599_v38, %v1029_v56  ;;  %v1163_v0 = vadd.f32 %v1162_v55, %v1100_v57 }
 0x15c   :  { %v1234_v2 = vadd.f32 %v1679_v42, %v1233_v60  ;;  %v1367_v3 = vadd.f32 %v1366_v59, %v1304_v61 }
 0x15d   :  { %v1164_v5 = vadd.f32 %v1163_v0, %v1101_v62  ;;  %v1603_v6 = vpop.f32.mrb[52].mxu0  ;;  %v1031_v7 = vadd.f32 %v1600_v49, %v1030_v63 }
 0x15e   :  { %v1368_v9 = vadd.f32 %v1367_v3, %v1305_v1  ;;  %v1683_v10 = vpop.f32.mrb[52].mxu1  ;;  %v581_v11 = vpop.f32.mrb[53].mxu0  ;;  %v1235_v12 = vadd.f32 %v1680_v53, %v1234_v2  ;;  %v1105_v30 = vmul.f32 %v1603_v6, %v1603_v6 }
 0x15f   :  { %v1032_v13 = vadd.f32 %v1031_v7, %v581_v11  ;;  %v1103_v14 = vmul.f32 %v581_v11, %v581_v11  ;;  %v1165_v15 = vadd.f32 %v1164_v5, %v1102_v4  ;;  %v934_v16 = vpop.f32.mrb[53].mxu1  ;;  %v1604_v17 = vpop.f32.mrb[54].mxu0  ;;  %v1309_v33 = vmul.f32 %v1683_v10, %v1683_v10 }
 0x160   :  { %v1236_v18 = vadd.f32 %v1235_v12, %v934_v16  ;;  %v1307_v19 = vmul.f32 %v934_v16, %v934_v16  ;;  %v1369_v20 = vadd.f32 %v1368_v9, %v1306_v8  ;;  %v1684_v21 = vpop.f32.mrb[54].mxu1  ;;  %v584_v22 = vpop.f32.mrb[55].mxu0  ;;  %v1106_v36 = vmul.f32 %v1604_v17, %v1604_v17 }
 0x161   :  { %v1166_v23 = vadd.f32 %v1165_v15, %v1103_v14  ;;  %v1033_v24 = vadd.f32 %v1032_v13, %v584_v22  ;;  %v1104_v25 = vmul.f32 %v584_v22, %v584_v22  ;;  %v937_v26 = vpop.f32.mrb[55].mxu1  ;;  %v1310_v40 = vmul.f32 %v1684_v21, %v1684_v21 }
 0x162   :  { %v1370_v27 = vadd.f32 %v1369_v20, %v1307_v19  ;;  %v1237_v28 = vadd.f32 %v1236_v18, %v937_v26  ;;  %v1308_v29 = vmul.f32 %v937_v26, %v937_v26 }
 0x163   :  { %v1034_v31 = vadd.f32 %v1603_v6, %v1033_v24  ;;  %v1167_v32 = vadd.f32 %v1166_v23, %v1104_v25 }
 0x164   :  { %v1238_v34 = vadd.f32 %v1683_v10, %v1237_v28  ;;  %v1371_v35 = vadd.f32 %v1370_v27, %v1308_v29 }
 0x165   :  { %v1168_v37 = vadd.f32 %v1167_v32, %v1105_v30  ;;  %v1607_v38 = vpop.f32.mrb[56].mxu0  ;;  %v1035_v39 = vadd.f32 %v1604_v17, %v1034_v31 }
 0x166   :  { %v1372_v41 = vadd.f32 %v1371_v35, %v1309_v33  ;;  %v1687_v42 = vpop.f32.mrb[56].mxu1  ;;  %v597_v43 = vpop.f32.mrb[57].mxu0  ;;  %v1239_v44 = vadd.f32 %v1684_v21, %v1238_v34  ;;  %v1109_v62 = vmul.f32 %v1607_v38, %v1607_v38 }
 0x167   :  { %v1036_v45 = vadd.f32 %v1035_v39, %v597_v43  ;;  %v1107_v46 = vmul.f32 %v597_v43, %v597_v43  ;;  %v1169_v47 = vadd.f32 %v1168_v37, %v1106_v36  ;;  %v950_v48 = vpop.f32.mrb[57].mxu1  ;;  %v1608_v49 = vpop.f32.mrb[58].mxu0  ;;  %v1313_v1 = vmul.f32 %v1687_v42, %v1687_v42 }
 0x168   :  { %v1240_v50 = vadd.f32 %v1239_v44, %v950_v48  ;;  %v1311_v51 = vmul.f32 %v950_v48, %v950_v48  ;;  %v1373_v52 = vadd.f32 %v1372_v41, %v1310_v40  ;;  %v1688_v53 = vpop.f32.mrb[58].mxu1  ;;  %v600_v54 = vpop.f32.mrb[59].mxu0  ;;  %v1110_v4 = vmul.f32 %v1608_v49, %v1608_v49 }
 0x169   :  { %v1170_v55 = vadd.f32 %v1169_v47, %v1107_v46  ;;  %v1037_v56 = vadd.f32 %v1036_v45, %v600_v54  ;;  %v1108_v57 = vmul.f32 %v600_v54, %v600_v54  ;;  %v953_v58 = vpop.f32.mrb[59].mxu1  ;;  %v1314_v8 = vmul.f32 %v1688_v53, %v1688_v53 }
 0x16a   :  { %v1374_v59 = vadd.f32 %v1373_v52, %v1311_v51  ;;  %v1241_v60 = vadd.f32 %v1240_v50, %v953_v58  ;;  %v1312_v61 = vmul.f32 %v953_v58, %v953_v58 }
 0x16b   :  { %v1038_v63 = vadd.f32 %v1607_v38, %v1037_v56  ;;  %v1171_v0 = vadd.f32 %v1170_v55, %v1108_v57 }
 0x16c   :  { %v1242_v2 = vadd.f32 %v1687_v42, %v1241_v60  ;;  %v1375_v3 = vadd.f32 %v1374_v59, %v1312_v61 }
 0x16d   :  { %v1172_v5 = vadd.f32 %v1171_v0, %v1109_v62  ;;  %v1611_v6 = vpop.f32.mrb[60].mxu0  ;;  %v1039_v7 = vadd.f32 %v1608_v49, %v1038_v63 }
 0x16e   :  { %v1376_v9 = vadd.f32 %v1375_v3, %v1313_v1  ;;  %v1691_v10 = vpop.f32.mrb[60].mxu1  ;;  %v613_v11 = vpop.f32.mrb[61].mxu0  ;;  %v1243_v12 = vadd.f32 %v1688_v53, %v1242_v2  ;;  %v1113_v30 = vmul.f32 %v1611_v6, %v1611_v6 }
 0x16f   :  { %v1040_v13 = vadd.f32 %v1039_v7, %v613_v11  ;;  %v1111_v14 = vmul.f32 %v613_v11, %v613_v11  ;;  %v1173_v15 = vadd.f32 %v1172_v5, %v1110_v4  ;;  %v966_v16 = vpop.f32.mrb[61].mxu1  ;;  %v1612_v17 = vpop.f32.mrb[62].mxu0  ;;  %v1317_v33 = vmul.f32 %v1691_v10, %v1691_v10 }
 0x170   :  { %v1244_v18 = vadd.f32 %v1243_v12, %v966_v16  ;;  %v1315_v19 = vmul.f32 %v966_v16, %v966_v16  ;;  %v1377_v20 = vadd.f32 %v1376_v9, %v1314_v8  ;;  %v1692_v21 = vpop.f32.mrb[62].mxu1  ;;  %v616_v22 = vpop.f32.mrb[63].mxu0  ;;  %v1114_v36 = vmul.f32 %v1612_v17, %v1612_v17 }
 0x171   :  { %v1174_v23 = vadd.f32 %v1173_v15, %v1111_v14  ;;  %v1041_v24 = vadd.f32 %v1040_v13, %v616_v22  ;;  %v1112_v25 = vmul.f32 %v616_v22, %v616_v22  ;;  %v969_v26 = vpop.f32.mrb[63].mxu1  ;;  %v1318_v39 = vmul.f32 %v1692_v21, %v1692_v21 }
 0x172   :  { %v1378_v27 = vadd.f32 %v1377_v20, %v1315_v19  ;;  %v1245_v28 = vadd.f32 %v1244_v18, %v969_v26  ;;  %v1316_v29 = vmul.f32 %v969_v26, %v969_v26 }
 0x173   :  { %v1042_v31 = vadd.f32 %v1611_v6, %v1041_v24  ;;  %v1175_v32 = vadd.f32 %v1174_v23, %v1112_v25 }
 0x174   :  { %v1246_v34 = vadd.f32 %v1691_v10, %v1245_v28  ;;  %v1379_v35 = vadd.f32 %v1378_v27, %v1316_v29 }
 0x175   :  { %v1043_v37 = vadd.f32 %v1612_v17, %v1042_v31  ;;  %v1176_v38 = vadd.f32 %v1175_v32, %v1113_v30 }
 0x176   :  { %v1247_v40 = vadd.f32 %v1692_v21, %v1246_v34  ;;  %v1380_v41 = vadd.f32 %v1379_v35, %v1317_v33 }
 0x177   :  { %v1044_v42 = vrot.slane %v1043_v37, 4  ;;  %v1177_v43 = vadd.f32 %v1176_v38, %v1114_v36 }
 0x178   :  { %v1248_v44 = vrot.slane %v1247_v40, 4  ;;  %v1381_v45 = vadd.f32 %v1380_v41, %v1318_v39 }
 0x179   :  { %v1045_v46 = vadd.f32 %v1044_v42, %v1043_v37  ;;  %v1178_v47 = vrot.slane %v1177_v43, 4 }
 0x17a   :  { %v1249_v48 = vadd.f32 %v1248_v44, %v1247_v40  ;;  %v1382_v49 = vrot.slane %v1381_v45, 4 }
 0x17b   :  { %v1046_v50 = vrot.slane %v1045_v46, 2  ;;  %v1179_v51 = vadd.f32 %v1178_v47, %v1177_v43 }
 0x17c   :  { %v1250_v52 = vrot.slane %v1249_v48, 2  ;;  %v1383_v53 = vadd.f32 %v1382_v49, %v1381_v45 }
 0x17d   :  { %v1047_v54 = vadd.f32 %v1046_v50, %v1045_v46  ;;  %v1180_v55 = vrot.slane %v1179_v51, 2 }
 0x17e   :  { %v1251_v56 = vadd.f32 %v1250_v52, %v1249_v48  ;;  %v1384_v57 = vrot.slane %v1383_v53, 2 }
 0x17f   :  { %v1048_v58 = vrot.slane %v1047_v54, 1  ;;  %v1181_v59 = vadd.f32 %v1180_v55, %v1179_v51 }
 0x180   :  { %v1252_v60 = vrot.slane %v1251_v56, 1  ;;  %v1385_v61 = vadd.f32 %v1384_v57, %v1383_v53 }
 0x181   :  { %v1049_v62 = vadd.f32 %v1048_v58, %v1047_v54  ;;  %v1182_v63 = vrot.slane %v1181_v59, 1 }
 0x182   :  { %v1253_v0 = vadd.f32 %v1252_v60, %v1251_v56  ;;  %v1386_v1 = vrot.slane %v1385_v61, 1 }
 0x183   :  { %1050 = vst [vmem:[%s1935_s3] sm:$0x1] %v1049_v62  ;;  %v1183_v2 = vadd.f32 %v1182_v63, %v1181_v59 }
 0x184   :  { %1254 = vst [vmem:[%s1936_s5] sm:$0x1] %v1253_v0  ;;  %v1387_v3 = vadd.f32 %v1386_v1, %v1385_v61 }
 0x185   :  { %1184 = vst [vmem:[%s1937_s4] sm:$0x1] %v1183_v2 }
 0x186   :  { %1388 = vst [vmem:[%s1938_s6] sm:$0x1] %v1387_v3 }

// kernel: bottleneck_forward.7
= control target key start
LH: loop header
LB: loop body
LE: loop exit
PB: predicated region body
PF: predicated region fallthrough
CT: control target
= control target key end

     0   :  { %s3233_s4 = inlined_call_operand.vmem [shape: bf16[128,128], index: 4, kind: input, shape index: {}]   ;;  %s3234_s7 = inlined_call_operand.vmem [shape: bf16[128,128], index: 7, kind: input, shape index: {}]   ;;  %s3235_s0 = inlined_call_operand.vmem [shape: bf16[512,128], index: 0, kind: input, shape index: {}]   ;;  %s3236_s2 = inlined_call_operand.vmem [shape: f32[1,128], index: 2, kind: input, shape index: {}]   ;;  %s3237_s3 = inlined_call_operand.vmem [shape: f32[1,128], index: 3, kind: input, shape index: {}]   ;;  %s3238_s1 = inlined_call_operand.vmem [shape: bf16[512,128], index: 1, kind: input, shape index: {}]   ;;  %s3239_s5 = inlined_call_operand.vmem [shape: f32[1,128], index: 5, kind: input, shape index: {}]   ;;  %s3240_s8 = inlined_call_operand.vmem [shape: f32[1,128], index: 8, kind: input, shape index: {}]   ;;  %s3241_s6 = inlined_call_operand.vmem [shape: f32[1,128], index: 6, kind: input, shape index: {}]   ;;  %s3242_s9 = inlined_call_operand.vmem [shape: f32[1,128], index: 9, kind: input, shape index: {}]   ;;  %s3243_s10 = inlined_call_operand.vmem [shape: f32[512,128], index: 10, kind: output, shape index: {}]  }
   0x1   :  { %v2297_v0 = vld [vmem:[%s3233_s4] sm:$0xff]   ;;  %v2299_v2 = vld [vmem:[%s3233_s4 + $0x8] sm:$0xff]   ;;  %v2301_v4 = vld [vmem:[%s3233_s4 + $0x10] sm:$0xff]  }
   0x2   :  { %v2298_v1 = vld [vmem:[%s3234_s7] sm:$0xff]   ;;  %2137 = vmatprep.subr.bf16.mxu0 %v2297_v0  ;;  %v2300_v3 = vld [vmem:[%s3234_s7 + $0x8] sm:$0xff]   ;;  %v2302_v5 = vld [vmem:[%s3234_s7 + $0x10] sm:$0xff]  }
   0x3   :  { %2217 = vmatprep.subr.bf16.mxu1 %v2298_v1  ;;  %2138 = vmatpush3.bf16.msra.mxu0 %v2297_v0  ;;  %v2303_v6 = vld [vmem:[%s3233_s4 + $0x18] sm:$0xff]   ;;  %v2305_v8 = vld [vmem:[%s3233_s4 + $0x20] sm:$0xff]   ;;  %v2307_v10 = vld [vmem:[%s3233_s4 + $0x28] sm:$0xff]  }
   0x4   :  { %2218 = vmatpush3.bf16.msra.mxu1 %v2298_v1  ;;  %2139 = vmatprep.subr.bf16.mxu0 %v2299_v2  ;;  %v2304_v7 = vld [vmem:[%s3234_s7 + $0x18] sm:$0xff]   ;;  %v2306_v9 = vld [vmem:[%s3234_s7 + $0x20] sm:$0xff]   ;;  %v2308_v11 = vld [vmem:[%s3234_s7 + $0x28] sm:$0xff]  }
   0x5   :  { %2219 = vmatprep.subr.bf16.mxu1 %v2300_v3  ;;  %v1899_v12 = vld [vmem:[%s3235_s0] sm:$0xff]   ;;  %v2026_v18 = vld [vmem:[%s3235_s0 + $0x8] sm:$0xff]   ;;  %v2027_v23 = vld [vmem:[%s3235_s0 + $0x10] sm:$0xff]  }
   0x6   :  { %v2446_v13 = vld [vmem:[%s3236_s2] ss:$0 sm:$0xff]  ;;  %v1900_v15 = vunpack.c.l.bf16 %v1899_v12  ;;  %v1901_v16 = vunpack.c.h.bf16 %v1899_v12  ;;  %v1904_v21 = vunpack.c.l.bf16 %v2026_v18  ;;  %v1905_v22 = vunpack.c.h.bf16 %v2026_v18  ;;  %v2309_v24 = vld [vmem:[%s3233_s4 + $0x30] sm:$0xff]   ;;  %v2028_v27 = vld [vmem:[%s3235_s0 + $0x18] sm:$0xff]  }
   0x7   :  { %2140 = vmatpush3.bf16.msra.mxu0 %v2299_v2  ;;  %v2451_v14 = vld [vmem:[%s3237_s3] ss:$0 sm:$0xff]  ;;  %v1908_v25 = vunpack.c.l.bf16 %v2027_v23  ;;  %v1909_v26 = vunpack.c.h.bf16 %v2027_v23  ;;  %v2310_v28 = vld [vmem:[%s3234_s7 + $0x30] sm:$0xff]   ;;  %v1912_v35 = vunpack.c.l.bf16 %v2028_v27  ;;  %v1913_v36 = vunpack.c.h.bf16 %v2028_v27  ;;  %v2311_v42 = vld [vmem:[%s3233_s4 + $0x38] sm:$0xff]  }
   0x8   :  { %2220 = vmatpush3.bf16.msra.mxu1 %v2300_v3  ;;  %2141 = vmatprep.subr.bf16.mxu0 %v2301_v4  ;;  %v2313_v17 = vld [vmem:[%s3238_s1] sm:$0xff]   ;;  %v171_v19 = vmul.f32 %v1900_v15, %v2446_v13  ;;  %v172_v20 = vmul.f32 %v1901_v16, %v2446_v13  ;;  %v173_v31 = vmul.f32 %v1904_v21, %v2446_v13  ;;  %v2312_v43 = vld [vmem:[%s3234_s7 + $0x38] sm:$0xff]   ;;  %v2030_v55 = vld [vmem:[%s3235_s0 + $0x28] sm:$0xff]  }
   0x9   :  { %2221 = vmatprep.subr.bf16.mxu1 %v2302_v5  ;;  %2233 = vmatprep.mubr.bf16.mxu1 %v2313_v17  ;;  %v174_v32 = vmul.f32 %v1905_v22, %v2446_v13  ;;  %v175_v33 = vmul.f32 %v1908_v25, %v2446_v13  ;;  %v176_v34 = vmul.f32 %v1909_v26, %v2446_v13  ;;  %v2029_v37 = vld [vmem:[%s3235_s0 + $0x20] sm:$0xff]   ;;  %v2031_v58 = vld [vmem:[%s3235_s0 + $0x30] sm:$0xff]   ;;  %v1920_v60 = vunpack.c.l.bf16 %v2030_v55  ;;  %v2314_v1 = vld [vmem:[%s3238_s1 + $0x8] sm:$0xff]  }
   0xa   :  { %v242_v29 = vadd.f32 %v2451_v14, %v171_v19  ;;  %v243_v30 = vadd.f32 %v2451_v14, %v172_v20  ;;  %v244_v40 = vadd.f32 %v2451_v14, %v173_v31  ;;  %v1916_v46 = vunpack.c.l.bf16 %v2029_v37  ;;  %v2033_v18 = vld [vmem:[%s3235_s0 + $0x40] sm:$0xff]   ;;  %v2316_v25 = vld [vmem:[%s3238_s1 + $0x18] sm:$0xff]  }
   0xb   :  { %2142 = vmatpush3.bf16.msra.mxu0 %v2301_v4  ;;  %v245_v41 = vadd.f32 %v2451_v14, %v174_v32  ;;  %v246_v44 = vadd.f32 %v2451_v14, %v175_v33  ;;  %v247_v45 = vadd.f32 %v2451_v14, %v176_v34  ;;  %v177_v50 = vmul.f32 %v1912_v35, %v2446_v13 }
   0xc   :  { %2222 = vmatpush3.bf16.msra.mxu1 %v2302_v5  ;;  %2143 = vmatprep.subr.bf16.mxu0 %v2303_v6  ;;  %v306_v38 = vmax.f32 %v242_v29, 0.0  ;;  %v307_v39 = vmax.f32 %v243_v30, 0.0  ;;  %v308_v48 = vmax.f32 %v244_v40, 0.0  ;;  %v178_v53 = vmul.f32 %v1913_v36, %v2446_v13  ;;  %v2317_v30 = vld [vmem:[%s3238_s1 + $0x20] sm:$0xff]   ;;  %v2034_v36 = vld [vmem:[%s3235_s0 + $0x48] sm:$0xff]   ;;  %v2035_v40 = vld [vmem:[%s3235_s0 + $0x50] sm:$0xff]  }
   0xd   :  { %2223 = vmatprep.subr.bf16.mxu1 %v2304_v7  ;;  %v309_v49 = vmax.f32 %v245_v41, 0.0  ;;  %v310_v51 = vmax.f32 %v246_v44, 0.0  ;;  %v311_v52 = vmax.f32 %v247_v45, 0.0  ;;  %v1917_v54 = vunpack.c.h.bf16 %v2029_v37 }
   0xe   :  { %v370_v47 = vpack.c.bf16 %v307_v39, %v306_v38  ;;  %v179_v56 = vmul.f32 %v1916_v46, %v2446_v13  ;;  %v248_v59 = vadd.f32 %v2451_v14, %v177_v50  ;;  %v249_v63 = vadd.f32 %v2451_v14, %v178_v53 }
   0xf   :  { %2144 = vmatpush3.bf16.msra.mxu0 %v2303_v6  ;;  %v180_v57 = vmul.f32 %v1917_v54, %v2446_v13  ;;  %v371_v61 = vpack.c.bf16 %v309_v49, %v308_v48  ;;  %v372_v62 = vpack.c.bf16 %v311_v52, %v310_v51  ;;  %v1921_v0 = vunpack.c.h.bf16 %v2030_v55  ;;  %v2315_v6 = vld [vmem:[%s3238_s1 + $0x10] sm:$0xff]  }
  0x10   :  { %2224 = vmatpush3.bf16.msra.mxu1 %v2304_v7  ;;  %2145 = vmatprep.subr.bf16.mxu0 %v2305_v8  ;;  %v250_v2 = vadd.f32 %v2451_v14, %v179_v56  ;;  %v1924_v4 = vunpack.c.l.bf16 %v2031_v58  ;;  %v1925_v5 = vunpack.c.h.bf16 %v2031_v58  ;;  %v181_v7 = vmul.f32 %v1920_v60, %v2446_v13  ;;  %v2319_v52 = vld [vmem:[%s3238_s1 + $0x30] sm:$0xff]  }
  0x11   :  { %2225 = vmatprep.subr.bf16.mxu1 %v2306_v9  ;;  %2153 = vmatprep.mubr.bf16.mxu0 %v370_v47  ;;  %v251_v3 = vadd.f32 %v2451_v14, %v180_v57  ;;  %v1933_v29 = vunpack.c.h.bf16 %v2033_v18  ;;  %v1936_v41 = vunpack.c.l.bf16 %v2034_v36  ;;  %v2318_v47 = vld [vmem:[%s3238_s1 + $0x28] sm:$0xff]   ;;  %v1940_v50 = vunpack.c.l.bf16 %v2035_v40  ;;  %v2036_v57 = vld [vmem:[%s3235_s0 + $0x58] sm:$0xff]  }
  0x12   :  { %v314_v12 = vmax.f32 %v250_v2, 0.0  ;;  %v183_v16 = vmul.f32 %v1924_v4, %v2446_v13  ;;  %v184_v17 = vmul.f32 %v1925_v5, %v2446_v13  ;;  %v252_v19 = vadd.f32 %v2451_v14, %v181_v7  ;;  %v2320_v5 = vld [vmem:[%s3238_s1 + $0x38] sm:$0xff]  }
  0x13   :  { %2146 = vmatpush3.bf16.msra.mxu0 %v2305_v8  ;;  %v312_v8 = vmax.f32 %v248_v59, 0.0  ;;  %v315_v15 = vmax.f32 %v251_v3, 0.0  ;;  %v188_v39 = vmul.f32 %v1933_v29, %v2446_v13  ;;  %v1941_v51 = vunpack.c.h.bf16 %v2035_v40  ;;  %v2322_v29 = vld [vmem:[%s3238_s1 + $0x48] sm:$0xff]  }
  0x14   :  { %2226 = vmatpush3.bf16.msra.mxu1 %v2306_v9  ;;  %2147 = vmatprep.subr.bf16.mxu0 %v2307_v10  ;;  %v313_v9 = vmax.f32 %v249_v63, 0.0  ;;  %v254_v27 = vadd.f32 %v2451_v14, %v183_v16  ;;  %v316_v31 = vmax.f32 %v252_v19, 0.0  ;;  %v189_v53 = vmul.f32 %v1936_v41, %v2446_v13 }
  0x15   :  { %2227 = vmatprep.subr.bf16.mxu1 %v2308_v11  ;;  %v374_v26 = vpack.c.bf16 %v315_v15, %v314_v12  ;;  %v259_v49 = vadd.f32 %v2451_v14, %v188_v39  ;;  %v191_v60 = vmul.f32 %v1940_v50, %v2446_v13  ;;  %v1945_v3 = vunpack.c.h.bf16 %v2036_v57  ;;  %v2040_v39 = vld [vmem:[%s3235_s0 + $0x78] sm:$0xff]  }
  0x16   :  { %v373_v21 = vpack.c.bf16 %v313_v9, %v312_v8  ;;  %v318_v37 = vmax.f32 %v254_v27, 0.0  ;;  %v260_v63 = vadd.f32 %v2451_v14, %v189_v53 }
  0x17   :  { %2148 = vmatpush3.bf16.msra.mxu0 %v2307_v10  ;;  %v182_v10 = vmul.f32 %v1921_v0, %v2446_v13  ;;  %v323_v59 = vmax.f32 %v259_v49, 0.0  ;;  %v262_v7 = vadd.f32 %v2451_v14, %v191_v60  ;;  %v194_v16 = vmul.f32 %v1945_v3, %v2446_v13 }
  0x18   :  { %2228 = vmatpush3.bf16.msra.mxu1 %v2308_v11  ;;  %2149 = vmatprep.subr.bf16.mxu0 %v2309_v24  ;;  %v2032_v11 = vld [vmem:[%s3235_s0 + $0x38] sm:$0xff]  }
  0x19   :  { %2229 = vmatprep.subr.bf16.mxu1 %v2310_v28  ;;  %v1928_v20 = vunpack.c.l.bf16 %v2032_v11  ;;  %v253_v22 = vadd.f32 %v2451_v14, %v182_v10  ;;  %v1929_v23 = vunpack.c.h.bf16 %v2032_v11  ;;  %v2321_v10 = vld [vmem:[%s3238_s1 + $0x40] sm:$0xff]   ;;  %v324_v11 = vmax.f32 %v260_v63, 0.0 }
  0x1b   :  { %2150 = vmatpush3.bf16.msra.mxu0 %v2309_v24  ;;  %v1932_v24 = vunpack.c.l.bf16 %v2033_v18  ;;  %v317_v32 = vmax.f32 %v253_v22, 0.0  ;;  %v185_v33 = vmul.f32 %v1928_v20, %v2446_v13  ;;  %v186_v34 = vmul.f32 %v1929_v23, %v2446_v13  ;;  %v2039_v22 = vld [vmem:[%s3235_s0 + $0x70] sm:$0xff]  }
  0x1c   :  { %2230 = vmatpush3.bf16.msra.mxu1 %v2310_v28  ;;  %2151 = vmatprep.subr.bf16.mxu0 %v2311_v42  ;;  %v255_v28 = vadd.f32 %v2451_v14, %v184_v17  ;;  %v326_v18 = vmax.f32 %v262_v7, 0.0 }
  0x1d   :  { %2231 = vmatprep.subr.bf16.mxu1 %v2312_v43  ;;  %v187_v35 = vmul.f32 %v1932_v24, %v2446_v13  ;;  %v256_v44 = vadd.f32 %v2451_v14, %v185_v33  ;;  %v257_v45 = vadd.f32 %v2451_v14, %v186_v34  ;;  %v1957_v33 = vunpack.c.h.bf16 %v2039_v22  ;;  %v2323_v34 = vld [vmem:[%s3238_s1 + $0x50] sm:$0xff]  }
  0x1e   :  { %v319_v38 = vmax.f32 %v255_v28, 0.0 }
  0x1f   :  { %2152 = vmatpush3.bf16.msra.mxu0 %v2311_v42  ;;  %v1937_v42 = vunpack.c.h.bf16 %v2034_v36  ;;  %v258_v46 = vadd.f32 %v2451_v14, %v187_v35  ;;  %v320_v55 = vmax.f32 %v256_v44, 0.0  ;;  %v321_v56 = vmax.f32 %v257_v45, 0.0  ;;  %v2041_v44 = vld [vmem:[%s3235_s0 + $0x80] sm:$0xff]  }
  0x20   :  { %2232 = vmatpush3.bf16.msra.mxu1 %v2312_v43  ;;  %v375_v43 = vpack.c.bf16 %v317_v32, %v316_v31  ;;  %v376_v48 = vpack.c.bf16 %v319_v38, %v318_v37  ;;  %v1956_v32 = vunpack.c.l.bf16 %v2039_v22  ;;  %v1960_v45 = vunpack.c.l.bf16 %v2040_v39 }
  0x21   :  { %v190_v54 = vmul.f32 %v1937_v42, %v2446_v13  ;;  %v322_v58 = vmax.f32 %v258_v46, 0.0  ;;  %v377_v2 = vpack.c.bf16 %v321_v56, %v320_v55  ;;  %v1961_v46 = vunpack.c.h.bf16 %v2040_v39  ;;  %v2325_v56 = vld [vmem:[%s3238_s1 + $0x60] sm:$0xff]  }
  0x22   :  { %2154 = vmatmul.mubr.bf16.vlgmr.msra.gmra.mrb[0].mxu0 %v371_v61  ;;  %v192_v61 = vmul.f32 %v1941_v51, %v2446_v13  ;;  %v199_v42 = vmul.f32 %v1956_v32, %v2446_v13  ;;  %v1964_v50 = vunpack.c.l.bf16 %v2041_v44  ;;  %v2324_v51 = vld [vmem:[%s3238_s1 + $0x58] sm:$0xff]   ;;  %v1965_v55 = vunpack.c.h.bf16 %v2041_v44  ;;  %v2046_v44 = vld [vmem:[%s3235_s0 + $0xa8] sm:$0xff]  }
  0x23   :  { %2234 = vmatmul.mubr.bf16.vlgmr.msra.gmra.mrb[0].mxu1 %v2314_v1  ;;  %2157 = vmatprep.mubr.bf16.mxu0 %v372_v62  ;;  %v2037_v62 = vld [vmem:[%s3235_s0 + $0x60] sm:$0xff]   ;;  %v261_v0 = vadd.f32 %v2451_v14, %v190_v54  ;;  %v1944_v1 = vunpack.c.l.bf16 %v2036_v57  ;;  %v201_v57 = vmul.f32 %v1960_v45, %v2446_v13 }
  0x24   :  { %2237 = vmatprep.mubr.bf16.mxu1 %v2315_v6  ;;  %v1948_v4 = vunpack.c.l.bf16 %v2037_v62  ;;  %v378_v6 = vpack.c.bf16 %v323_v59, %v322_v58  ;;  %v263_v8 = vadd.f32 %v2451_v14, %v192_v61  ;;  %v1949_v9 = vunpack.c.h.bf16 %v2037_v62  ;;  %v2042_v62 = vld [vmem:[%s3235_s0 + $0x88] sm:$0xff]  }
  0x25   :  { %v325_v12 = vmax.f32 %v261_v0, 0.0  ;;  %v193_v15 = vmul.f32 %v1944_v1, %v2446_v13  ;;  %v270_v53 = vadd.f32 %v2451_v14, %v199_v42  ;;  %v202_v58 = vmul.f32 %v1961_v46, %v2446_v13 }
  0x26   :  { %v195_v17 = vmul.f32 %v1948_v4, %v2446_v13  ;;  %v327_v19 = vmax.f32 %v263_v8, 0.0  ;;  %v196_v20 = vmul.f32 %v1949_v9, %v2446_v13  ;;  %v203_v61 = vmul.f32 %v1964_v50, %v2446_v13  ;;  %v2326_v9 = vld [vmem:[%s3238_s1 + $0x68] sm:$0xff]  }
  0x27   :  { %v379_v23 = vpack.c.bf16 %v325_v12, %v324_v11  ;;  %v264_v24 = vadd.f32 %v2451_v14, %v193_v15  ;;  %v334_v63 = vmax.f32 %v270_v53, 0.0  ;;  %v204_v1 = vmul.f32 %v1965_v55, %v2446_v13  ;;  %v2330_v55 = vld [vmem:[%s3238_s1 + $0x88] sm:$0xff]  }
  0x28   :  { %v267_v31 = vadd.f32 %v2451_v14, %v196_v20  ;;  %v272_v3 = vadd.f32 %v2451_v14, %v201_v57  ;;  %v273_v4 = vadd.f32 %v2451_v14, %v202_v58  ;;  %v274_v7 = vadd.f32 %v2451_v14, %v203_v61 }
  0x29   :  { %v328_v35 = vmax.f32 %v264_v24, 0.0  ;;  %v1969_v8 = vunpack.c.h.bf16 %v2042_v62  ;;  %v275_v11 = vadd.f32 %v2451_v14, %v204_v1  ;;  %v1985_v50 = vunpack.c.h.bf16 %v2046_v44  ;;  %v2048_v1 = vld [vmem:[%s3235_s0 + $0xb8] sm:$0xff]  }
  0x2a   :  { %2158 = vmatmul.mubr.bf16.gmra.mrb[4].mxu0 %v373_v21  ;;  %v2038_v21 = vld [vmem:[%s3235_s0 + $0x68] sm:$0xff]   ;;  %v331_v41 = vmax.f32 %v267_v31, 0.0 }
  0x2b   :  { %2238 = vmatmul.mubr.bf16.gmra.mrb[4].mxu1 %v2316_v25  ;;  %2161 = vmatprep.mubr.bf16.mxu0 %v374_v26  ;;  %v265_v25 = vadd.f32 %v2451_v14, %v194_v16  ;;  %v266_v26 = vadd.f32 %v2451_v14, %v195_v17  ;;  %v1952_v27 = vunpack.c.l.bf16 %v2038_v21  ;;  %v1953_v28 = vunpack.c.h.bf16 %v2038_v21  ;;  %v2327_v16 = vld [vmem:[%s3238_s1 + $0x70] sm:$0xff]  }
  0x2c   :  { %2241 = vmatprep.mubr.bf16.mxu1 %v2317_v30  ;;  %v380_v30 = vpack.c.bf16 %v327_v19, %v326_v18  ;;  %v336_v17 = vmax.f32 %v272_v3, 0.0  ;;  %v337_v18 = vmax.f32 %v273_v4, 0.0  ;;  %v206_v20 = vmul.f32 %v1969_v8, %v2446_v13 }
  0x2d   :  { %v329_v36 = vmax.f32 %v265_v25, 0.0  ;;  %v197_v37 = vmul.f32 %v1952_v27, %v2446_v13  ;;  %v198_v38 = vmul.f32 %v1953_v28, %v2446_v13  ;;  %v330_v40 = vmax.f32 %v266_v26, 0.0  ;;  %v2044_v25 = vld [vmem:[%s3235_s0 + $0x98] sm:$0xff]   ;;  %v2045_v26 = vld [vmem:[%s3235_s0 + $0xa0] sm:$0xff]  }
  0x2e   :  { %v338_v21 = vmax.f32 %v274_v7, 0.0  ;;  %v339_v22 = vmax.f32 %v275_v11, 0.0  ;;  %v385_v27 = vpack.c.bf16 %v337_v18, %v336_v17  ;;  %v1977_v31 = vunpack.c.h.bf16 %v2044_v25 }
  0x2f   :  { %v269_v49 = vadd.f32 %v2451_v14, %v198_v38  ;;  %v1980_v32 = vunpack.c.l.bf16 %v2045_v26  ;;  %v2329_v38 = vld [vmem:[%s3238_s1 + $0x80] sm:$0xff]   ;;  %v1993_v11 = vunpack.c.h.bf16 %v2048_v1 }
  0x30   :  { %v210_v42 = vmul.f32 %v1977_v31, %v2446_v13 }
  0x31   :  { %v333_v60 = vmax.f32 %v269_v49, 0.0  ;;  %v1984_v49 = vunpack.c.l.bf16 %v2046_v44 }
  0x32   :  { %2162 = vmatmul.mubr.bf16.gmra.mrb[8].mxu0 %v375_v43  ;;  %v200_v43 = vmul.f32 %v1957_v33, %v2446_v13  ;;  %v2328_v33 = vld [vmem:[%s3238_s1 + $0x78] sm:$0xff]   ;;  %v281_v53 = vadd.f32 %v2451_v14, %v210_v42  ;;  %v2335_v42 = vld [vmem:[%s3238_s1 + $0xb0] sm:$0xff]  }
  0x33   :  { %2242 = vmatmul.mubr.bf16.gmra.mrb[8].mxu1 %v2318_v47  ;;  %2165 = vmatprep.mubr.bf16.mxu0 %v376_v48  ;;  %v381_v47 = vpack.c.bf16 %v329_v36, %v328_v35  ;;  %v268_v48 = vadd.f32 %v2451_v14, %v197_v37  ;;  %v1981_v37 = vunpack.c.h.bf16 %v2045_v26  ;;  %v213_v61 = vmul.f32 %v1984_v49, %v2446_v13 }
  0x34   :  { %2245 = vmatprep.mubr.bf16.mxu1 %v2319_v52  ;;  %v382_v52 = vpack.c.bf16 %v331_v41, %v330_v40  ;;  %v271_v54 = vadd.f32 %v2451_v14, %v200_v43  ;;  %v211_v43 = vmul.f32 %v1980_v32, %v2446_v13 }
  0x35   :  { %v332_v59 = vmax.f32 %v268_v48, 0.0  ;;  %v2047_v48 = vld [vmem:[%s3235_s0 + $0xb0] sm:$0xff]   ;;  %v284_v7 = vadd.f32 %v2451_v14, %v213_v61 }
  0x36   :  { %v335_v0 = vmax.f32 %v271_v54, 0.0  ;;  %v282_v54 = vadd.f32 %v2451_v14, %v211_v43  ;;  %v1988_v58 = vunpack.c.l.bf16 %v2047_v48 }
  0x38   :  { %v215_v4 = vmul.f32 %v1988_v58, %v2446_v13 }
  0x3a   :  { %2166 = vmatmul.mubr.bf16.gmra.mrb[12].mxu0 %v377_v2  ;;  %v2043_v2 = vld [vmem:[%s3235_s0 + $0x90] sm:$0xff]   ;;  %v286_v17 = vadd.f32 %v2451_v14, %v215_v4 }
  0x3b   :  { %2246 = vmatmul.mubr.bf16.gmra.mrb[12].mxu1 %v2320_v5  ;;  %2169 = vmatprep.mubr.bf16.mxu0 %v378_v6  ;;  %v1968_v5 = vunpack.c.l.bf16 %v2042_v62  ;;  %v383_v6 = vpack.c.bf16 %v333_v60, %v332_v59  ;;  %v1972_v12 = vunpack.c.l.bf16 %v2043_v2  ;;  %v1973_v15 = vunpack.c.h.bf16 %v2043_v2  ;;  %v2331_v60 = vld [vmem:[%s3238_s1 + $0x90] sm:$0xff]  }
  0x3c   :  { %2249 = vmatprep.mubr.bf16.mxu1 %v2321_v10  ;;  %v384_v10 = vpack.c.bf16 %v335_v0, %v334_v63  ;;  %v1989_v59 = vunpack.c.h.bf16 %v2047_v48  ;;  %v214_v62 = vmul.f32 %v1985_v50, %v2446_v13  ;;  %v345_v0 = vmax.f32 %v281_v53, 0.0 }
  0x3d   :  { %v205_v19 = vmul.f32 %v1968_v5, %v2446_v13  ;;  %v208_v24 = vmul.f32 %v1973_v15, %v2446_v13  ;;  %v346_v2 = vmax.f32 %v282_v54, 0.0  ;;  %v2332_v15 = vld [vmem:[%s3238_s1 + $0x98] sm:$0xff]   ;;  %v350_v26 = vmax.f32 %v286_v17, 0.0 }
  0x3e   :  { %v216_v5 = vmul.f32 %v1989_v59, %v2446_v13  ;;  %v285_v8 = vadd.f32 %v2451_v14, %v214_v62  ;;  %v2336_v59 = vld [vmem:[%s3238_s1 + $0xb8] sm:$0xff]  }
  0x3f   :  { %v276_v28 = vadd.f32 %v2451_v14, %v205_v19  ;;  %v279_v36 = vadd.f32 %v2451_v14, %v208_v24  ;;  %v218_v24 = vmul.f32 %v1993_v11, %v2446_v13 }
  0x40   :  { %v287_v18 = vadd.f32 %v2451_v14, %v216_v5 }
  0x41   :  { %v340_v39 = vmax.f32 %v276_v28, 0.0  ;;  %v343_v46 = vmax.f32 %v279_v36, 0.0 }
  0x42   :  { %2170 = vmatmul.mubr.bf16.gmra.mrb[16].mxu0 %v379_v23  ;;  %v207_v23 = vmul.f32 %v1972_v12, %v2446_v13 }
  0x43   :  { %2250 = vmatmul.mubr.bf16.gmra.mrb[16].mxu1 %v2322_v29  ;;  %2173 = vmatprep.mubr.bf16.mxu0 %v380_v30  ;;  %v277_v29 = vadd.f32 %v2451_v14, %v206_v20  ;;  %v1976_v30 = vunpack.c.l.bf16 %v2044_v25  ;;  %v2333_v20 = vld [vmem:[%s3238_s1 + $0xa0] sm:$0xff]  }
  0x44   :  { %2253 = vmatprep.mubr.bf16.mxu1 %v2323_v34  ;;  %v386_v34 = vpack.c.bf16 %v339_v22, %v338_v21  ;;  %v278_v35 = vadd.f32 %v2451_v14, %v207_v23  ;;  %v348_v21 = vmax.f32 %v284_v7, 0.0  ;;  %v349_v22 = vmax.f32 %v285_v8, 0.0 }
  0x45   :  { %v341_v40 = vmax.f32 %v277_v29, 0.0  ;;  %v209_v41 = vmul.f32 %v1976_v30, %v2446_v13  ;;  %v2050_v29 = vld [vmem:[%s3235_s0 + $0xc8] sm:$0xff]   ;;  %v2051_v30 = vld [vmem:[%s3235_s0 + $0xd0] sm:$0xff]  }
  0x46   :  { %v342_v45 = vmax.f32 %v278_v35, 0.0  ;;  %v391_v31 = vpack.c.bf16 %v349_v22, %v348_v21  ;;  %v2000_v35 = vunpack.c.l.bf16 %v2050_v29  ;;  %v2001_v36 = vunpack.c.h.bf16 %v2050_v29 }
  0x4a   :  { %2174 = vmatmul.mubr.bf16.gmra.mrb[20].mxu0 %v381_v47  ;;  %v212_v47 = vmul.f32 %v1981_v37, %v2446_v13  ;;  %v2334_v37 = vld [vmem:[%s3238_s1 + $0xa8] sm:$0xff]  }
  0x4b   :  { %2254 = vmatmul.mubr.bf16.gmra.mrb[20].mxu1 %v2324_v51  ;;  %2177 = vmatprep.mubr.bf16.mxu0 %v382_v52  ;;  %v387_v51 = vpack.c.bf16 %v341_v40, %v340_v39  ;;  %v280_v52 = vadd.f32 %v2451_v14, %v209_v41  ;;  %v2004_v40 = vunpack.c.l.bf16 %v2051_v30  ;;  %v2005_v41 = vunpack.c.h.bf16 %v2051_v30 }
  0x4c   :  { %2257 = vmatprep.mubr.bf16.mxu1 %v2325_v56  ;;  %v388_v56 = vpack.c.bf16 %v343_v46, %v342_v45  ;;  %v283_v57 = vadd.f32 %v2451_v14, %v212_v47  ;;  %v221_v45 = vmul.f32 %v2000_v35, %v2446_v13  ;;  %v222_v46 = vmul.f32 %v2001_v36, %v2446_v13  ;;  %v2052_v47 = vld [vmem:[%s3235_s0 + $0xd8] sm:$0xff]  }
  0x4d   :  { %v344_v63 = vmax.f32 %v280_v52, 0.0  ;;  %v223_v50 = vmul.f32 %v2004_v40, %v2446_v13  ;;  %v2053_v52 = vld [vmem:[%s3235_s0 + $0xe0] sm:$0xff]   ;;  %v2008_v53 = vunpack.c.l.bf16 %v2052_v47  ;;  %v2009_v54 = vunpack.c.h.bf16 %v2052_v47 }
  0x4e   :  { %v347_v3 = vmax.f32 %v283_v57, 0.0  ;;  %v293_v57 = vadd.f32 %v2451_v14, %v222_v46  ;;  %v2012_v58 = vunpack.c.l.bf16 %v2053_v52 }
  0x4f   :  { %v294_v61 = vadd.f32 %v2451_v14, %v223_v50 }
  0x50   :  { %v357_v4 = vmax.f32 %v293_v57, 0.0  ;;  %v227_v5 = vmul.f32 %v2012_v58, %v2446_v13  ;;  %v2785_v58 = vld [vmem:[%s3239_s5] ss:$0 sm:$0xff] }
  0x52   :  { %2178 = vmatmul.mubr.bf16.gmra.mrb[24].mxu0 %v383_v6  ;;  %v2049_v6 = vld [vmem:[%s3235_s0 + $0xc0] sm:$0xff]  }
  0x53   :  { %2258 = vmatmul.mubr.bf16.gmra.mrb[24].mxu1 %v2326_v9  ;;  %2181 = vmatprep.mubr.bf16.mxu0 %v384_v10  ;;  %v1992_v9 = vunpack.c.l.bf16 %v2048_v1  ;;  %v389_v10 = vpack.c.bf16 %v345_v0, %v344_v63  ;;  %v1996_v12 = vunpack.c.l.bf16 %v2049_v6  ;;  %v1997_v19 = vunpack.c.h.bf16 %v2049_v6  ;;  %v2337_v0 = vld [vmem:[%s3238_s1 + $0xc0] sm:$0xff]  }
  0x54   :  { %2261 = vmatprep.mubr.bf16.mxu1 %v2327_v16  ;;  %v390_v16 = vpack.c.bf16 %v347_v3, %v346_v2  ;;  %v2013_v63 = vunpack.c.h.bf16 %v2053_v52  ;;  %v225_v1 = vmul.f32 %v2008_v53, %v2446_v13  ;;  %v226_v2 = vmul.f32 %v2009_v54, %v2446_v13  ;;  %v2342_v53 = vld [vmem:[%s3238_s1 + $0xe8] sm:$0xff]  }
  0x55   :  { %v217_v23 = vmul.f32 %v1992_v9, %v2446_v13  ;;  %v219_v25 = vmul.f32 %v1996_v12, %v2446_v13  ;;  %v220_v28 = vmul.f32 %v1997_v19, %v2446_v13  ;;  %v358_v6 = vmax.f32 %v294_v61, 0.0  ;;  %v2054_v9 = vld [vmem:[%s3235_s0 + $0xe8] sm:$0xff]   ;;  %v2795_v61 = vld [vmem:[%s3241_s6] ss:$0 sm:$0xff] }
  0x56   :  { %v228_v8 = vmul.f32 %v2013_v63, %v2446_v13  ;;  %v296_v11 = vadd.f32 %v2451_v14, %v225_v1  ;;  %v297_v12 = vadd.f32 %v2451_v14, %v226_v2  ;;  %v2016_v17 = vunpack.c.l.bf16 %v2054_v9  ;;  %v2338_v19 = vld [vmem:[%s3238_s1 + $0xc8] sm:$0xff]  }
  0x57   :  { %v288_v32 = vadd.f32 %v2451_v14, %v217_v23  ;;  %v291_v39 = vadd.f32 %v2451_v14, %v220_v28 }
  0x58   :  { %v299_v21 = vadd.f32 %v2451_v14, %v228_v8 }
  0x59   :  { %v352_v43 = vmax.f32 %v288_v32, 0.0  ;;  %v355_v49 = vmax.f32 %v291_v39, 0.0  ;;  %v2340_v39 = vld [vmem:[%s3238_s1 + $0xd8] sm:$0xff]  }
  0x5a   :  { %2182 = vmatmul.mubr.bf16.gmra.mrb[28].mxu0 %v385_v27  ;;  %v351_v27 = vmax.f32 %v287_v18, 0.0  ;;  %v2017_v18 = vunpack.c.h.bf16 %v2054_v9  ;;  %v363_v30 = vmax.f32 %v299_v21, 0.0 }
  0x5b   :  { %2262 = vmatmul.mubr.bf16.gmra.mrb[28].mxu1 %v2328_v33  ;;  %2185 = vmatprep.mubr.bf16.mxu0 %v386_v34  ;;  %v289_v33 = vadd.f32 %v2451_v14, %v218_v24  ;;  %v290_v34 = vadd.f32 %v2451_v14, %v219_v25  ;;  %v2339_v24 = vld [vmem:[%s3238_s1 + $0xd0] sm:$0xff]   ;;  %v360_v25 = vmax.f32 %v296_v11, 0.0 }
  0x5c   :  { %2265 = vmatprep.mubr.bf16.mxu1 %v2329_v38  ;;  %v392_v38 = vpack.c.bf16 %v351_v27, %v350_v26  ;;  %v361_v26 = vmax.f32 %v297_v12, 0.0  ;;  %v229_v27 = vmul.f32 %v2016_v17, %v2446_v13  ;;  %v230_v28 = vmul.f32 %v2017_v18, %v2446_v13 }
  0x5d   :  { %v353_v44 = vmax.f32 %v289_v33, 0.0  ;;  %v354_v48 = vmax.f32 %v290_v34, 0.0  ;;  %v2056_v33 = vld [vmem:[%s3235_s0 + $0xf8] sm:$0xff]  }
  0x5e   :  { %v397_v34 = vpack.c.bf16 %v361_v26, %v360_v25  ;;  %v300_v35 = vadd.f32 %v2451_v14, %v229_v27  ;;  %v301_v36 = vadd.f32 %v2451_v14, %v230_v28 }
  0x62   :  { %2186 = vmatmul.mubr.bf16.gmra.mrb[32].mxu0 %v387_v51  ;;  %v224_v51 = vmul.f32 %v2005_v41, %v2446_v13 }
  0x63   :  { %2266 = vmatmul.mubr.bf16.gmra.mrb[32].mxu1 %v2330_v55  ;;  %2189 = vmatprep.mubr.bf16.mxu0 %v388_v56  ;;  %v393_v55 = vpack.c.bf16 %v353_v44, %v352_v43  ;;  %v292_v56 = vadd.f32 %v2451_v14, %v221_v45  ;;  %v2341_v43 = vld [vmem:[%s3238_s1 + $0xe0] sm:$0xff]   ;;  %v364_v44 = vmax.f32 %v300_v35, 0.0  ;;  %v365_v45 = vmax.f32 %v301_v36, 0.0 }
  0x64   :  { %2269 = vmatprep.mubr.bf16.mxu1 %v2331_v60  ;;  %v394_v60 = vpack.c.bf16 %v355_v49, %v354_v48  ;;  %v295_v62 = vadd.f32 %v2451_v14, %v224_v51 }
  0x65   :  { %v356_v3 = vmax.f32 %v292_v56, 0.0  ;;  %v399_v50 = vpack.c.bf16 %v365_v45, %v364_v44 }
  0x66   :  { %v359_v7 = vmax.f32 %v295_v62, 0.0 }
  0x6a   :  { %2190 = vmatmul.mubr.bf16.gmra.mrb[36].mxu0 %v389_v10  ;;  %v2055_v10 = vld [vmem:[%s3235_s0 + $0xf0] sm:$0xff]  }
  0x6b   :  { %2270 = vmatmul.mubr.bf16.gmra.mrb[36].mxu1 %v2332_v15  ;;  %2193 = vmatprep.mubr.bf16.mxu0 %v390_v16  ;;  %v395_v15 = vpack.c.bf16 %v357_v4, %v356_v3  ;;  %v298_v16 = vadd.f32 %v2451_v14, %v227_v5  ;;  %v2020_v22 = vunpack.c.l.bf16 %v2055_v10  ;;  %v2021_v23 = vunpack.c.h.bf16 %v2055_v10 }
  0x6c   :  { %2273 = vmatprep.mubr.bf16.mxu1 %v2333_v20  ;;  %v396_v20 = vpack.c.bf16 %v359_v7, %v358_v6 }
  0x6d   :  { %v362_v29 = vmax.f32 %v298_v16, 0.0  ;;  %v232_v32 = vmul.f32 %v2021_v23, %v2446_v13 }
  0x6f   :  { %v398_v40 = vpack.c.bf16 %v363_v30, %v362_v29 }
  0x72   :  { %2194 = vmatmul.mubr.bf16.gmra.mrb[40].mxu0 %v391_v31  ;;  %v231_v31 = vmul.f32 %v2020_v22, %v2446_v13 }
  0x73   :  { %2274 = vmatmul.mubr.bf16.gmra.mrb[40].mxu1 %v2334_v37  ;;  %2197 = vmatprep.mubr.bf16.mxu0 %v392_v38  ;;  %v2024_v37 = vunpack.c.l.bf16 %v2056_v33  ;;  %v2025_v38 = vunpack.c.h.bf16 %v2056_v33 }
  0x74   :  { %2277 = vmatprep.mubr.bf16.mxu1 %v2335_v42  ;;  %v302_v41 = vadd.f32 %v2451_v14, %v231_v31  ;;  %v303_v42 = vadd.f32 %v2451_v14, %v232_v32 }
  0x75   :  { %v233_v46 = vmul.f32 %v2024_v37, %v2446_v13  ;;  %v234_v47 = vmul.f32 %v2025_v38, %v2446_v13 }
  0x76   :  { %v366_v48 = vmax.f32 %v302_v41, 0.0  ;;  %v367_v49 = vmax.f32 %v303_v42, 0.0 }
  0x77   :  { %v304_v51 = vadd.f32 %v2451_v14, %v233_v46  ;;  %v305_v52 = vadd.f32 %v2451_v14, %v234_v47  ;;  %v2344_v14 = vld [vmem:[%s3238_s1 + $0xf8] sm:$0xff]  }
  0x78   :  { %v400_v54 = vpack.c.bf16 %v367_v49, %v366_v48 }
  0x79   :  { %v368_v13 = vmax.f32 %v304_v51, 0.0  ;;  %v369_v56 = vmax.f32 %v305_v52, 0.0 }
  0x7a   :  { %2198 = vmatmul.mubr.bf16.gmra.mrb[44].mxu0 %v393_v55  ;;  %v2343_v55 = vld [vmem:[%s3238_s1 + $0xf0] sm:$0xff]  }
  0x7b   :  { %2278 = vmatmul.mubr.bf16.gmra.mrb[44].mxu1 %v2336_v59  ;;  %2201 = vmatprep.mubr.bf16.mxu0 %v394_v60  ;;  %v401_v57 = vpack.c.bf16 %v369_v56, %v368_v13  ;;  %v2790_v59 = vld [vmem:[%s3240_s8] ss:$0 sm:$0xff] }
  0x7c   :  { %2281 = vmatprep.mubr.bf16.mxu1 %v2337_v0  ;;  %v2801_v0 = vld [vmem:[%s3242_s9] ss:$0 sm:$0xff] }
  0x82   :  { %2202 = vmatmul.mubr.bf16.gmra.mrb[48].mxu0 %v395_v15 }
  0x83   :  { %2282 = vmatmul.mubr.bf16.gmra.mrb[48].mxu1 %v2338_v19  ;;  %2205 = vmatprep.mubr.bf16.mxu0 %v396_v20 }
  0x84   :  { %2285 = vmatprep.mubr.bf16.mxu1 %v2339_v24 }
  0x8a   :  { %2206 = vmatmul.mubr.bf16.gmra.mrb[52].mxu0 %v397_v34 }
  0x8b   :  { %2286 = vmatmul.mubr.bf16.gmra.mrb[52].mxu1 %v2340_v39  ;;  %2209 = vmatprep.mubr.bf16.mxu0 %v398_v40 }
  0x8c   :  { %2289 = vmatprep.mubr.bf16.mxu1 %v2341_v43 }
  0x92   :  { %2210 = vmatmul.mubr.bf16.gmra.mrb[56].mxu0 %v399_v50 }
  0x93   :  { %2290 = vmatmul.mubr.bf16.gmra.mrb[56].mxu1 %v2342_v53  ;;  %2213 = vmatprep.mubr.bf16.mxu0 %v400_v54 }
  0x94   :  { %2293 = vmatprep.mubr.bf16.mxu1 %v2343_v55 }
  0x9a   :  { %2214 = vmatmul.mubr.bf16.gmra.mrb[60].mxu0 %v401_v57 }
  0x9b   :  { %2294 = vmatmul.mubr.bf16.gmra.mrb[60].mxu1 %v2344_v14 }
  0xf5   :  { %v2155_v60 = vpop.f32.mrb[0].mxu0 }
  0xf6   :  { %v1373_v62 = vmul.f32 %v2155_v60, %v2785_v58  ;;  %v2235_v63 = vpop.f32.mrb[0].mxu1  ;;  %v500_v1 = vpop.f32.mrb[1].mxu0 }
  0xf7   :  { %v1515_v2 = vmul.f32 %v2235_v63, %v2790_v59  ;;  %v1371_v3 = vmul.f32 %v2785_v58, %v500_v1  ;;  %v1109_v4 = vpop.f32.mrb[1].mxu1  ;;  %v2156_v5 = vpop.f32.mrb[2].mxu0 }
  0xf8   :  { %v1444_v6 = vadd.f32 %v2795_v61, %v1373_v62  ;;  %v1513_v7 = vmul.f32 %v2790_v59, %v1109_v4  ;;  %v1374_v8 = vmul.f32 %v2156_v5, %v2785_v58  ;;  %v2236_v9 = vpop.f32.mrb[2].mxu1  ;;  %v503_v10 = vpop.f32.mrb[3].mxu0 }
  0xf9   :  { %v1586_v11 = vadd.f32 %v2801_v0, %v1515_v2  ;;  %v1442_v12 = vadd.f32 %v2795_v61, %v1371_v3  ;;  %v1516_v15 = vmul.f32 %v2236_v9, %v2790_v59  ;;  %v1372_v16 = vmul.f32 %v2785_v58, %v503_v10  ;;  %v1112_v17 = vpop.f32.mrb[3].mxu1 }
  0xfa   :  { %v1584_v18 = vadd.f32 %v2801_v0, %v1513_v7  ;;  %v1445_v19 = vadd.f32 %v2795_v61, %v1374_v8  ;;  %v1514_v20 = vmul.f32 %v2790_v59, %v1112_v17 }
  0xfb   :  { %v1650_v21 = vadd.f32 %v1586_v11, %v1444_v6  ;;  %v1587_v22 = vadd.f32 %v2801_v0, %v1516_v15  ;;  %v1443_v23 = vadd.f32 %v2795_v61, %v1372_v16 }
  0xfc   :  { %v1648_v24 = vadd.f32 %v1584_v18, %v1442_v12  ;;  %v1585_v25 = vadd.f32 %v2801_v0, %v1514_v20 }
  0xfd   :  { %v1714_v26 = vmax.f32 %v1650_v21, 0.0  ;;  %v1651_v27 = vadd.f32 %v1587_v22, %v1445_v19  ;;  %v2159_v28 = vpop.f32.mrb[4].mxu0 }
  0xfe   :  { %v1712_v29 = vmax.f32 %v1648_v24, 0.0  ;;  %v1649_v30 = vadd.f32 %v1585_v25, %v1443_v23  ;;  %v1377_v31 = vmul.f32 %v2159_v28, %v2785_v58  ;;  %v2239_v32 = vpop.f32.mrb[4].mxu1  ;;  %v516_v33 = vpop.f32.mrb[5].mxu0 }
  0xff   :  { %1778 = vst [vmem:[%s3243_s10 + $0x10] sm:$0xff] %v1714_v26  ;;  %v1715_v34 = vmax.f32 %v1651_v27, 0.0  ;;  %v1519_v35 = vmul.f32 %v2239_v32, %v2790_v59  ;;  %v1375_v36 = vmul.f32 %v2785_v58, %v516_v33  ;;  %v1125_v37 = vpop.f32.mrb[5].mxu1  ;;  %v2160_v38 = vpop.f32.mrb[6].mxu0 }
 0x100   :  { %1776 = vst [vmem:[%s3243_s10] sm:$0xff] %v1712_v29  ;;  %v1713_v39 = vmax.f32 %v1649_v30, 0.0  ;;  %v1448_v40 = vadd.f32 %v2795_v61, %v1377_v31  ;;  %v1517_v41 = vmul.f32 %v2790_v59, %v1125_v37  ;;  %v1378_v42 = vmul.f32 %v2160_v38, %v2785_v58  ;;  %v2240_v43 = vpop.f32.mrb[6].mxu1  ;;  %v519_v44 = vpop.f32.mrb[7].mxu0 }
 0x101   :  { %1779 = vst [vmem:[%s3243_s10 + $0x18] sm:$0xff] %v1715_v34  ;;  %v1590_v45 = vadd.f32 %v2801_v0, %v1519_v35  ;;  %v1446_v46 = vadd.f32 %v2795_v61, %v1375_v36  ;;  %v1520_v47 = vmul.f32 %v2240_v43, %v2790_v59  ;;  %v1376_v48 = vmul.f32 %v2785_v58, %v519_v44  ;;  %v1128_v49 = vpop.f32.mrb[7].mxu1 }
 0x102   :  { %1777 = vst [vmem:[%s3243_s10 + $0x8] sm:$0xff] %v1713_v39  ;;  %v1588_v50 = vadd.f32 %v2801_v0, %v1517_v41  ;;  %v1449_v51 = vadd.f32 %v2795_v61, %v1378_v42  ;;  %v1518_v52 = vmul.f32 %v2790_v59, %v1128_v49 }
 0x103   :  { %v1654_v53 = vadd.f32 %v1590_v45, %v1448_v40  ;;  %v1591_v54 = vadd.f32 %v2801_v0, %v1520_v47  ;;  %v1447_v55 = vadd.f32 %v2795_v61, %v1376_v48 }
 0x104   :  { %v1652_v13 = vadd.f32 %v1588_v50, %v1446_v46  ;;  %v1589_v56 = vadd.f32 %v2801_v0, %v1518_v52 }
 0x105   :  { %v1718_v57 = vmax.f32 %v1654_v53, 0.0  ;;  %v1655_v14 = vadd.f32 %v1591_v54, %v1449_v51  ;;  %v2163_v60 = vpop.f32.mrb[8].mxu0 }
 0x106   :  { %v1716_v62 = vmax.f32 %v1652_v13, 0.0  ;;  %v1653_v63 = vadd.f32 %v1589_v56, %v1447_v55  ;;  %v1381_v1 = vmul.f32 %v2163_v60, %v2785_v58  ;;  %v2243_v2 = vpop.f32.mrb[8].mxu1  ;;  %v532_v3 = vpop.f32.mrb[9].mxu0 }
 0x107   :  { %1782 = vst [vmem:[%s3243_s10 + $0x30] sm:$0xff] %v1718_v57  ;;  %v1719_v4 = vmax.f32 %v1655_v14, 0.0  ;;  %v1523_v5 = vmul.f32 %v2243_v2, %v2790_v59  ;;  %v1379_v6 = vmul.f32 %v2785_v58, %v532_v3  ;;  %v1141_v7 = vpop.f32.mrb[9].mxu1  ;;  %v2164_v8 = vpop.f32.mrb[10].mxu0 }
 0x108   :  { %1780 = vst [vmem:[%s3243_s10 + $0x20] sm:$0xff] %v1716_v62  ;;  %v1717_v9 = vmax.f32 %v1653_v63, 0.0  ;;  %v1452_v10 = vadd.f32 %v2795_v61, %v1381_v1  ;;  %v1521_v11 = vmul.f32 %v2790_v59, %v1141_v7  ;;  %v1382_v12 = vmul.f32 %v2164_v8, %v2785_v58  ;;  %v2244_v15 = vpop.f32.mrb[10].mxu1  ;;  %v535_v16 = vpop.f32.mrb[11].mxu0 }
 0x109   :  { %1783 = vst [vmem:[%s3243_s10 + $0x38] sm:$0xff] %v1719_v4  ;;  %v1594_v17 = vadd.f32 %v2801_v0, %v1523_v5  ;;  %v1450_v18 = vadd.f32 %v2795_v61, %v1379_v6  ;;  %v1524_v19 = vmul.f32 %v2244_v15, %v2790_v59  ;;  %v1380_v20 = vmul.f32 %v2785_v58, %v535_v16  ;;  %v1144_v21 = vpop.f32.mrb[11].mxu1 }
 0x10a   :  { %1781 = vst [vmem:[%s3243_s10 + $0x28] sm:$0xff] %v1717_v9  ;;  %v1592_v22 = vadd.f32 %v2801_v0, %v1521_v11  ;;  %v1453_v23 = vadd.f32 %v2795_v61, %v1382_v12  ;;  %v1522_v24 = vmul.f32 %v2790_v59, %v1144_v21 }
 0x10b   :  { %v1658_v25 = vadd.f32 %v1594_v17, %v1452_v10  ;;  %v1595_v26 = vadd.f32 %v2801_v0, %v1524_v19  ;;  %v1451_v27 = vadd.f32 %v2795_v61, %v1380_v20 }
 0x10c   :  { %v1656_v28 = vadd.f32 %v1592_v22, %v1450_v18  ;;  %v1593_v29 = vadd.f32 %v2801_v0, %v1522_v24 }
 0x10d   :  { %v1722_v30 = vmax.f32 %v1658_v25, 0.0  ;;  %v1659_v31 = vadd.f32 %v1595_v26, %v1453_v23  ;;  %v2167_v32 = vpop.f32.mrb[12].mxu0 }
 0x10e   :  { %v1720_v33 = vmax.f32 %v1656_v28, 0.0  ;;  %v1657_v34 = vadd.f32 %v1593_v29, %v1451_v27  ;;  %v1385_v35 = vmul.f32 %v2167_v32, %v2785_v58  ;;  %v2247_v36 = vpop.f32.mrb[12].mxu1  ;;  %v548_v37 = vpop.f32.mrb[13].mxu0 }
 0x10f   :  { %1786 = vst [vmem:[%s3243_s10 + $0x50] sm:$0xff] %v1722_v30  ;;  %v1723_v38 = vmax.f32 %v1659_v31, 0.0  ;;  %v1527_v39 = vmul.f32 %v2247_v36, %v2790_v59  ;;  %v1383_v40 = vmul.f32 %v2785_v58, %v548_v37  ;;  %v1157_v41 = vpop.f32.mrb[13].mxu1  ;;  %v2168_v42 = vpop.f32.mrb[14].mxu0 }
 0x110   :  { %1784 = vst [vmem:[%s3243_s10 + $0x40] sm:$0xff] %v1720_v33  ;;  %v1721_v43 = vmax.f32 %v1657_v34, 0.0  ;;  %v1456_v44 = vadd.f32 %v2795_v61, %v1385_v35  ;;  %v1525_v45 = vmul.f32 %v2790_v59, %v1157_v41  ;;  %v1386_v46 = vmul.f32 %v2168_v42, %v2785_v58  ;;  %v2248_v47 = vpop.f32.mrb[14].mxu1  ;;  %v551_v48 = vpop.f32.mrb[15].mxu0 }
 0x111   :  { %1787 = vst [vmem:[%s3243_s10 + $0x58] sm:$0xff] %v1723_v38  ;;  %v1598_v49 = vadd.f32 %v2801_v0, %v1527_v39  ;;  %v1454_v50 = vadd.f32 %v2795_v61, %v1383_v40  ;;  %v1528_v51 = vmul.f32 %v2248_v47, %v2790_v59  ;;  %v1384_v52 = vmul.f32 %v2785_v58, %v551_v48  ;;  %v1160_v53 = vpop.f32.mrb[15].mxu1 }
 0x112   :  { %1785 = vst [vmem:[%s3243_s10 + $0x48] sm:$0xff] %v1721_v43  ;;  %v1596_v54 = vadd.f32 %v2801_v0, %v1525_v45  ;;  %v1457_v55 = vadd.f32 %v2795_v61, %v1386_v46  ;;  %v1526_v13 = vmul.f32 %v2790_v59, %v1160_v53 }
 0x113   :  { %v1662_v56 = vadd.f32 %v1598_v49, %v1456_v44  ;;  %v1599_v57 = vadd.f32 %v2801_v0, %v1528_v51  ;;  %v1455_v14 = vadd.f32 %v2795_v61, %v1384_v52 }
 0x114   :  { %v1660_v60 = vadd.f32 %v1596_v54, %v1454_v50  ;;  %v1597_v62 = vadd.f32 %v2801_v0, %v1526_v13 }
 0x115   :  { %v1726_v63 = vmax.f32 %v1662_v56, 0.0  ;;  %v1663_v1 = vadd.f32 %v1599_v57, %v1457_v55  ;;  %v2171_v2 = vpop.f32.mrb[16].mxu0 }
 0x116   :  { %v1724_v3 = vmax.f32 %v1660_v60, 0.0  ;;  %v1661_v4 = vadd.f32 %v1597_v62, %v1455_v14  ;;  %v1389_v5 = vmul.f32 %v2171_v2, %v2785_v58  ;;  %v2251_v6 = vpop.f32.mrb[16].mxu1  ;;  %v564_v7 = vpop.f32.mrb[17].mxu0 }
 0x117   :  { %1790 = vst [vmem:[%s3243_s10 + $0x70] sm:$0xff] %v1726_v63  ;;  %v1727_v8 = vmax.f32 %v1663_v1, 0.0  ;;  %v1531_v9 = vmul.f32 %v2251_v6, %v2790_v59  ;;  %v1387_v10 = vmul.f32 %v2785_v58, %v564_v7  ;;  %v1173_v11 = vpop.f32.mrb[17].mxu1  ;;  %v2172_v12 = vpop.f32.mrb[18].mxu0 }
 0x118   :  { %1788 = vst [vmem:[%s3243_s10 + $0x60] sm:$0xff] %v1724_v3  ;;  %v1725_v15 = vmax.f32 %v1661_v4, 0.0  ;;  %v1460_v16 = vadd.f32 %v2795_v61, %v1389_v5  ;;  %v1529_v17 = vmul.f32 %v2790_v59, %v1173_v11  ;;  %v1390_v18 = vmul.f32 %v2172_v12, %v2785_v58  ;;  %v2252_v19 = vpop.f32.mrb[18].mxu1  ;;  %v567_v20 = vpop.f32.mrb[19].mxu0 }
 0x119   :  { %1791 = vst [vmem:[%s3243_s10 + $0x78] sm:$0xff] %v1727_v8  ;;  %v1602_v21 = vadd.f32 %v2801_v0, %v1531_v9  ;;  %v1458_v22 = vadd.f32 %v2795_v61, %v1387_v10  ;;  %v1532_v23 = vmul.f32 %v2252_v19, %v2790_v59  ;;  %v1388_v24 = vmul.f32 %v2785_v58, %v567_v20  ;;  %v1176_v25 = vpop.f32.mrb[19].mxu1 }
 0x11a   :  { %1789 = vst [vmem:[%s3243_s10 + $0x68] sm:$0xff] %v1725_v15  ;;  %v1600_v26 = vadd.f32 %v2801_v0, %v1529_v17  ;;  %v1461_v27 = vadd.f32 %v2795_v61, %v1390_v18  ;;  %v1530_v28 = vmul.f32 %v2790_v59, %v1176_v25 }
 0x11b   :  { %v1666_v29 = vadd.f32 %v1602_v21, %v1460_v16  ;;  %v1603_v30 = vadd.f32 %v2801_v0, %v1532_v23  ;;  %v1459_v31 = vadd.f32 %v2795_v61, %v1388_v24 }
 0x11c   :  { %v1664_v32 = vadd.f32 %v1600_v26, %v1458_v22  ;;  %v1601_v33 = vadd.f32 %v2801_v0, %v1530_v28 }
 0x11d   :  { %v1730_v34 = vmax.f32 %v1666_v29, 0.0  ;;  %v1667_v35 = vadd.f32 %v1603_v30, %v1461_v27  ;;  %v2175_v36 = vpop.f32.mrb[20].mxu0 }
 0x11e   :  { %v1728_v37 = vmax.f32 %v1664_v32, 0.0  ;;  %v1665_v38 = vadd.f32 %v1601_v33, %v1459_v31  ;;  %v1393_v39 = vmul.f32 %v2175_v36, %v2785_v58  ;;  %v2255_v40 = vpop.f32.mrb[20].mxu1  ;;  %v580_v41 = vpop.f32.mrb[21].mxu0 }
 0x11f   :  { %1794 = vst [vmem:[%s3243_s10 + $0x90] sm:$0xff] %v1730_v34  ;;  %v1731_v42 = vmax.f32 %v1667_v35, 0.0  ;;  %v1535_v43 = vmul.f32 %v2255_v40, %v2790_v59  ;;  %v1391_v44 = vmul.f32 %v2785_v58, %v580_v41  ;;  %v1189_v45 = vpop.f32.mrb[21].mxu1  ;;  %v2176_v46 = vpop.f32.mrb[22].mxu0 }
 0x120   :  { %1792 = vst [vmem:[%s3243_s10 + $0x80] sm:$0xff] %v1728_v37  ;;  %v1729_v47 = vmax.f32 %v1665_v38, 0.0  ;;  %v1464_v48 = vadd.f32 %v2795_v61, %v1393_v39  ;;  %v1533_v49 = vmul.f32 %v2790_v59, %v1189_v45  ;;  %v1394_v50 = vmul.f32 %v2176_v46, %v2785_v58  ;;  %v2256_v51 = vpop.f32.mrb[22].mxu1  ;;  %v583_v52 = vpop.f32.mrb[23].mxu0 }
 0x121   :  { %1795 = vst [vmem:[%s3243_s10 + $0x98] sm:$0xff] %v1731_v42  ;;  %v1606_v53 = vadd.f32 %v2801_v0, %v1535_v43  ;;  %v1462_v54 = vadd.f32 %v2795_v61, %v1391_v44  ;;  %v1536_v55 = vmul.f32 %v2256_v51, %v2790_v59  ;;  %v1392_v13 = vmul.f32 %v2785_v58, %v583_v52  ;;  %v1192_v56 = vpop.f32.mrb[23].mxu1 }
 0x122   :  { %1793 = vst [vmem:[%s3243_s10 + $0x88] sm:$0xff] %v1729_v47  ;;  %v1604_v57 = vadd.f32 %v2801_v0, %v1533_v49  ;;  %v1465_v14 = vadd.f32 %v2795_v61, %v1394_v50  ;;  %v1534_v60 = vmul.f32 %v2790_v59, %v1192_v56 }
 0x123   :  { %v1670_v62 = vadd.f32 %v1606_v53, %v1464_v48  ;;  %v1607_v63 = vadd.f32 %v2801_v0, %v1536_v55  ;;  %v1463_v1 = vadd.f32 %v2795_v61, %v1392_v13 }
 0x124   :  { %v1668_v2 = vadd.f32 %v1604_v57, %v1462_v54  ;;  %v1605_v3 = vadd.f32 %v2801_v0, %v1534_v60 }
 0x125   :  { %v1734_v4 = vmax.f32 %v1670_v62, 0.0  ;;  %v1671_v5 = vadd.f32 %v1607_v63, %v1465_v14  ;;  %v2179_v6 = vpop.f32.mrb[24].mxu0 }
 0x126   :  { %v1732_v7 = vmax.f32 %v1668_v2, 0.0  ;;  %v1669_v8 = vadd.f32 %v1605_v3, %v1463_v1  ;;  %v1397_v9 = vmul.f32 %v2179_v6, %v2785_v58  ;;  %v2259_v10 = vpop.f32.mrb[24].mxu1  ;;  %v596_v11 = vpop.f32.mrb[25].mxu0 }
 0x127   :  { %1798 = vst [vmem:[%s3243_s10 + $0xb0] sm:$0xff] %v1734_v4  ;;  %v1735_v12 = vmax.f32 %v1671_v5, 0.0  ;;  %v1539_v15 = vmul.f32 %v2259_v10, %v2790_v59  ;;  %v1395_v16 = vmul.f32 %v2785_v58, %v596_v11  ;;  %v1205_v17 = vpop.f32.mrb[25].mxu1  ;;  %v2180_v18 = vpop.f32.mrb[26].mxu0 }
 0x128   :  { %1796 = vst [vmem:[%s3243_s10 + $0xa0] sm:$0xff] %v1732_v7  ;;  %v1733_v19 = vmax.f32 %v1669_v8, 0.0  ;;  %v1468_v20 = vadd.f32 %v2795_v61, %v1397_v9  ;;  %v1537_v21 = vmul.f32 %v2790_v59, %v1205_v17  ;;  %v1398_v22 = vmul.f32 %v2180_v18, %v2785_v58  ;;  %v2260_v23 = vpop.f32.mrb[26].mxu1  ;;  %v599_v24 = vpop.f32.mrb[27].mxu0 }
 0x129   :  { %1799 = vst [vmem:[%s3243_s10 + $0xb8] sm:$0xff] %v1735_v12  ;;  %v1610_v25 = vadd.f32 %v2801_v0, %v1539_v15  ;;  %v1466_v26 = vadd.f32 %v2795_v61, %v1395_v16  ;;  %v1540_v27 = vmul.f32 %v2260_v23, %v2790_v59  ;;  %v1396_v28 = vmul.f32 %v2785_v58, %v599_v24  ;;  %v1208_v29 = vpop.f32.mrb[27].mxu1 }
 0x12a   :  { %1797 = vst [vmem:[%s3243_s10 + $0xa8] sm:$0xff] %v1733_v19  ;;  %v1608_v30 = vadd.f32 %v2801_v0, %v1537_v21  ;;  %v1469_v31 = vadd.f32 %v2795_v61, %v1398_v22  ;;  %v1538_v32 = vmul.f32 %v2790_v59, %v1208_v29 }
 0x12b   :  { %v1674_v33 = vadd.f32 %v1610_v25, %v1468_v20  ;;  %v1611_v34 = vadd.f32 %v2801_v0, %v1540_v27  ;;  %v1467_v35 = vadd.f32 %v2795_v61, %v1396_v28 }
 0x12c   :  { %v1672_v36 = vadd.f32 %v1608_v30, %v1466_v26  ;;  %v1609_v37 = vadd.f32 %v2801_v0, %v1538_v32 }
 0x12d   :  { %v1738_v38 = vmax.f32 %v1674_v33, 0.0  ;;  %v1675_v39 = vadd.f32 %v1611_v34, %v1469_v31  ;;  %v2183_v40 = vpop.f32.mrb[28].mxu0 }
 0x12e   :  { %v1736_v41 = vmax.f32 %v1672_v36, 0.0  ;;  %v1673_v42 = vadd.f32 %v1609_v37, %v1467_v35  ;;  %v1401_v43 = vmul.f32 %v2183_v40, %v2785_v58  ;;  %v2263_v44 = vpop.f32.mrb[28].mxu1  ;;  %v612_v45 = vpop.f32.mrb[29].mxu0 }
 0x12f   :  { %1802 = vst [vmem:[%s3243_s10 + $0xd0] sm:$0xff] %v1738_v38  ;;  %v1739_v46 = vmax.f32 %v1675_v39, 0.0  ;;  %v1543_v47 = vmul.f32 %v2263_v44, %v2790_v59  ;;  %v1399_v48 = vmul.f32 %v2785_v58, %v612_v45  ;;  %v1221_v49 = vpop.f32.mrb[29].mxu1  ;;  %v2184_v50 = vpop.f32.mrb[30].mxu0 }
 0x130   :  { %1800 = vst [vmem:[%s3243_s10 + $0xc0] sm:$0xff] %v1736_v41  ;;  %v1737_v51 = vmax.f32 %v1673_v42, 0.0  ;;  %v1472_v52 = vadd.f32 %v2795_v61, %v1401_v43  ;;  %v1541_v53 = vmul.f32 %v2790_v59, %v1221_v49  ;;  %v1402_v54 = vmul.f32 %v2184_v50, %v2785_v58  ;;  %v2264_v55 = vpop.f32.mrb[30].mxu1  ;;  %v615_v13 = vpop.f32.mrb[31].mxu0 }
 0x131   :  { %1803 = vst [vmem:[%s3243_s10 + $0xd8] sm:$0xff] %v1739_v46  ;;  %v1614_v56 = vadd.f32 %v2801_v0, %v1543_v47  ;;  %v1470_v57 = vadd.f32 %v2795_v61, %v1399_v48  ;;  %v1544_v14 = vmul.f32 %v2264_v55, %v2790_v59  ;;  %v1400_v60 = vmul.f32 %v2785_v58, %v615_v13  ;;  %v1224_v62 = vpop.f32.mrb[31].mxu1 }
 0x132   :  { %1801 = vst [vmem:[%s3243_s10 + $0xc8] sm:$0xff] %v1737_v51  ;;  %v1612_v63 = vadd.f32 %v2801_v0, %v1541_v53  ;;  %v1473_v1 = vadd.f32 %v2795_v61, %v1402_v54  ;;  %v1542_v2 = vmul.f32 %v2790_v59, %v1224_v62 }
 0x133   :  { %v1678_v3 = vadd.f32 %v1614_v56, %v1472_v52  ;;  %v1615_v4 = vadd.f32 %v2801_v0, %v1544_v14  ;;  %v1471_v5 = vadd.f32 %v2795_v61, %v1400_v60 }
 0x134   :  { %v1676_v6 = vadd.f32 %v1612_v63, %v1470_v57  ;;  %v1613_v7 = vadd.f32 %v2801_v0, %v1542_v2 }
 0x135   :  { %v1742_v8 = vmax.f32 %v1678_v3, 0.0  ;;  %v1679_v9 = vadd.f32 %v1615_v4, %v1473_v1  ;;  %v2187_v10 = vpop.f32.mrb[32].mxu0 }
 0x136   :  { %v1740_v11 = vmax.f32 %v1676_v6, 0.0  ;;  %v1677_v12 = vadd.f32 %v1613_v7, %v1471_v5  ;;  %v1405_v15 = vmul.f32 %v2187_v10, %v2785_v58  ;;  %v2267_v16 = vpop.f32.mrb[32].mxu1  ;;  %v628_v17 = vpop.f32.mrb[33].mxu0 }
 0x137   :  { %1806 = vst [vmem:[%s3243_s10 + $0xf0] sm:$0xff] %v1742_v8  ;;  %v1743_v18 = vmax.f32 %v1679_v9, 0.0  ;;  %v1547_v19 = vmul.f32 %v2267_v16, %v2790_v59  ;;  %v1403_v20 = vmul.f32 %v2785_v58, %v628_v17  ;;  %v1237_v21 = vpop.f32.mrb[33].mxu1  ;;  %v2188_v22 = vpop.f32.mrb[34].mxu0 }
 0x138   :  { %1804 = vst [vmem:[%s3243_s10 + $0xe0] sm:$0xff] %v1740_v11  ;;  %v1741_v23 = vmax.f32 %v1677_v12, 0.0  ;;  %v1476_v24 = vadd.f32 %v2795_v61, %v1405_v15  ;;  %v1545_v25 = vmul.f32 %v2790_v59, %v1237_v21  ;;  %v1406_v26 = vmul.f32 %v2188_v22, %v2785_v58  ;;  %v2268_v27 = vpop.f32.mrb[34].mxu1  ;;  %v631_v28 = vpop.f32.mrb[35].mxu0 }
 0x139   :  { %1807 = vst [vmem:[%s3243_s10 + $0xf8] sm:$0xff] %v1743_v18  ;;  %v1618_v29 = vadd.f32 %v2801_v0, %v1547_v19  ;;  %v1474_v30 = vadd.f32 %v2795_v61, %v1403_v20  ;;  %v1548_v31 = vmul.f32 %v2268_v27, %v2790_v59  ;;  %v1404_v32 = vmul.f32 %v2785_v58, %v631_v28  ;;  %v1240_v33 = vpop.f32.mrb[35].mxu1 }
 0x13a   :  { %1805 = vst [vmem:[%s3243_s10 + $0xe8] sm:$0xff] %v1741_v23  ;;  %v1616_v34 = vadd.f32 %v2801_v0, %v1545_v25  ;;  %v1477_v35 = vadd.f32 %v2795_v61, %v1406_v26  ;;  %v1546_v36 = vmul.f32 %v2790_v59, %v1240_v33 }
 0x13b   :  { %v1682_v37 = vadd.f32 %v1618_v29, %v1476_v24  ;;  %v1619_v38 = vadd.f32 %v2801_v0, %v1548_v31  ;;  %v1475_v39 = vadd.f32 %v2795_v61, %v1404_v32 }
 0x13c   :  { %v1680_v40 = vadd.f32 %v1616_v34, %v1474_v30  ;;  %v1617_v41 = vadd.f32 %v2801_v0, %v1546_v36 }
 0x13d   :  { %v1746_v42 = vmax.f32 %v1682_v37, 0.0  ;;  %v1683_v43 = vadd.f32 %v1619_v38, %v1477_v35  ;;  %v2191_v44 = vpop.f32.mrb[36].mxu0 }
 0x13e   :  { %v1744_v45 = vmax.f32 %v1680_v40, 0.0  ;;  %v1681_v46 = vadd.f32 %v1617_v41, %v1475_v39  ;;  %v1409_v47 = vmul.f32 %v2191_v44, %v2785_v58  ;;  %v2271_v48 = vpop.f32.mrb[36].mxu1  ;;  %v644_v49 = vpop.f32.mrb[37].mxu0 }
 0x13f   :  { %1810 = vst [vmem:[%s3243_s10 + $0x110] sm:$0xff] %v1746_v42  ;;  %v1747_v50 = vmax.f32 %v1683_v43, 0.0  ;;  %v1551_v51 = vmul.f32 %v2271_v48, %v2790_v59  ;;  %v1407_v52 = vmul.f32 %v2785_v58, %v644_v49  ;;  %v1253_v53 = vpop.f32.mrb[37].mxu1  ;;  %v2192_v54 = vpop.f32.mrb[38].mxu0 }
 0x140   :  { %1808 = vst [vmem:[%s3243_s10 + $0x100] sm:$0xff] %v1744_v45  ;;  %v1745_v55 = vmax.f32 %v1681_v46, 0.0  ;;  %v1480_v13 = vadd.f32 %v2795_v61, %v1409_v47  ;;  %v1549_v56 = vmul.f32 %v2790_v59, %v1253_v53  ;;  %v1410_v57 = vmul.f32 %v2192_v54, %v2785_v58  ;;  %v2272_v14 = vpop.f32.mrb[38].mxu1  ;;  %v647_v60 = vpop.f32.mrb[39].mxu0 }
 0x141   :  { %1811 = vst [vmem:[%s3243_s10 + $0x118] sm:$0xff] %v1747_v50  ;;  %v1622_v62 = vadd.f32 %v2801_v0, %v1551_v51  ;;  %v1478_v63 = vadd.f32 %v2795_v61, %v1407_v52  ;;  %v1552_v1 = vmul.f32 %v2272_v14, %v2790_v59  ;;  %v1408_v2 = vmul.f32 %v2785_v58, %v647_v60  ;;  %v1256_v3 = vpop.f32.mrb[39].mxu1 }
 0x142   :  { %1809 = vst [vmem:[%s3243_s10 + $0x108] sm:$0xff] %v1745_v55  ;;  %v1620_v4 = vadd.f32 %v2801_v0, %v1549_v56  ;;  %v1481_v5 = vadd.f32 %v2795_v61, %v1410_v57  ;;  %v1550_v6 = vmul.f32 %v2790_v59, %v1256_v3 }
 0x143   :  { %v1686_v7 = vadd.f32 %v1622_v62, %v1480_v13  ;;  %v1623_v8 = vadd.f32 %v2801_v0, %v1552_v1  ;;  %v1479_v9 = vadd.f32 %v2795_v61, %v1408_v2 }
 0x144   :  { %v1684_v10 = vadd.f32 %v1620_v4, %v1478_v63  ;;  %v1621_v11 = vadd.f32 %v2801_v0, %v1550_v6 }
 0x145   :  { %v1750_v12 = vmax.f32 %v1686_v7, 0.0  ;;  %v1687_v15 = vadd.f32 %v1623_v8, %v1481_v5  ;;  %v2195_v16 = vpop.f32.mrb[40].mxu0 }
 0x146   :  { %v1748_v17 = vmax.f32 %v1684_v10, 0.0  ;;  %v1685_v18 = vadd.f32 %v1621_v11, %v1479_v9  ;;  %v1413_v19 = vmul.f32 %v2195_v16, %v2785_v58  ;;  %v2275_v20 = vpop.f32.mrb[40].mxu1  ;;  %v660_v21 = vpop.f32.mrb[41].mxu0 }
 0x147   :  { %1814 = vst [vmem:[%s3243_s10 + $0x130] sm:$0xff] %v1750_v12  ;;  %v1751_v22 = vmax.f32 %v1687_v15, 0.0  ;;  %v1555_v23 = vmul.f32 %v2275_v20, %v2790_v59  ;;  %v1411_v24 = vmul.f32 %v2785_v58, %v660_v21  ;;  %v1269_v25 = vpop.f32.mrb[41].mxu1  ;;  %v2196_v26 = vpop.f32.mrb[42].mxu0 }
 0x148   :  { %1812 = vst [vmem:[%s3243_s10 + $0x120] sm:$0xff] %v1748_v17  ;;  %v1749_v27 = vmax.f32 %v1685_v18, 0.0  ;;  %v1484_v28 = vadd.f32 %v2795_v61, %v1413_v19  ;;  %v1553_v29 = vmul.f32 %v2790_v59, %v1269_v25  ;;  %v1414_v30 = vmul.f32 %v2196_v26, %v2785_v58  ;;  %v2276_v31 = vpop.f32.mrb[42].mxu1  ;;  %v663_v32 = vpop.f32.mrb[43].mxu0 }
 0x149   :  { %1815 = vst [vmem:[%s3243_s10 + $0x138] sm:$0xff] %v1751_v22  ;;  %v1626_v33 = vadd.f32 %v2801_v0, %v1555_v23  ;;  %v1482_v34 = vadd.f32 %v2795_v61, %v1411_v24  ;;  %v1556_v35 = vmul.f32 %v2276_v31, %v2790_v59  ;;  %v1412_v36 = vmul.f32 %v2785_v58, %v663_v32  ;;  %v1272_v37 = vpop.f32.mrb[43].mxu1 }
 0x14a   :  { %1813 = vst [vmem:[%s3243_s10 + $0x128] sm:$0xff] %v1749_v27  ;;  %v1624_v38 = vadd.f32 %v2801_v0, %v1553_v29  ;;  %v1485_v39 = vadd.f32 %v2795_v61, %v1414_v30  ;;  %v1554_v40 = vmul.f32 %v2790_v59, %v1272_v37 }
 0x14b   :  { %v1690_v41 = vadd.f32 %v1626_v33, %v1484_v28  ;;  %v1627_v42 = vadd.f32 %v2801_v0, %v1556_v35  ;;  %v1483_v43 = vadd.f32 %v2795_v61, %v1412_v36 }
 0x14c   :  { %v1688_v44 = vadd.f32 %v1624_v38, %v1482_v34  ;;  %v1625_v45 = vadd.f32 %v2801_v0, %v1554_v40 }
 0x14d   :  { %v1754_v46 = vmax.f32 %v1690_v41, 0.0  ;;  %v1691_v47 = vadd.f32 %v1627_v42, %v1485_v39  ;;  %v2199_v48 = vpop.f32.mrb[44].mxu0 }
 0x14e   :  { %v1752_v49 = vmax.f32 %v1688_v44, 0.0  ;;  %v1689_v50 = vadd.f32 %v1625_v45, %v1483_v43  ;;  %v1417_v51 = vmul.f32 %v2199_v48, %v2785_v58  ;;  %v2279_v52 = vpop.f32.mrb[44].mxu1  ;;  %v676_v53 = vpop.f32.mrb[45].mxu0 }
 0x14f   :  { %1818 = vst [vmem:[%s3243_s10 + $0x150] sm:$0xff] %v1754_v46  ;;  %v1755_v54 = vmax.f32 %v1691_v47, 0.0  ;;  %v1559_v55 = vmul.f32 %v2279_v52, %v2790_v59  ;;  %v1415_v13 = vmul.f32 %v2785_v58, %v676_v53  ;;  %v1285_v56 = vpop.f32.mrb[45].mxu1  ;;  %v2200_v57 = vpop.f32.mrb[46].mxu0 }
 0x150   :  { %1816 = vst [vmem:[%s3243_s10 + $0x140] sm:$0xff] %v1752_v49  ;;  %v1753_v14 = vmax.f32 %v1689_v50, 0.0  ;;  %v1488_v60 = vadd.f32 %v2795_v61, %v1417_v51  ;;  %v1557_v62 = vmul.f32 %v2790_v59, %v1285_v56  ;;  %v1418_v63 = vmul.f32 %v2200_v57, %v2785_v58  ;;  %v2280_v1 = vpop.f32.mrb[46].mxu1  ;;  %v679_v2 = vpop.f32.mrb[47].mxu0 }
 0x151   :  { %1819 = vst [vmem:[%s3243_s10 + $0x158] sm:$0xff] %v1755_v54  ;;  %v1630_v3 = vadd.f32 %v2801_v0, %v1559_v55  ;;  %v1486_v4 = vadd.f32 %v2795_v61, %v1415_v13  ;;  %v1560_v5 = vmul.f32 %v2280_v1, %v2790_v59  ;;  %v1416_v6 = vmul.f32 %v2785_v58, %v679_v2  ;;  %v1288_v7 = vpop.f32.mrb[47].mxu1 }
 0x152   :  { %1817 = vst [vmem:[%s3243_s10 + $0x148] sm:$0xff] %v1753_v14  ;;  %v1628_v8 = vadd.f32 %v2801_v0, %v1557_v62  ;;  %v1489_v9 = vadd.f32 %v2795_v61, %v1418_v63  ;;  %v1558_v10 = vmul.f32 %v2790_v59, %v1288_v7 }
 0x153   :  { %v1694_v11 = vadd.f32 %v1630_v3, %v1488_v60  ;;  %v1631_v12 = vadd.f32 %v2801_v0, %v1560_v5  ;;  %v1487_v15 = vadd.f32 %v2795_v61, %v1416_v6 }
 0x154   :  { %v1692_v16 = vadd.f32 %v1628_v8, %v1486_v4  ;;  %v1629_v17 = vadd.f32 %v2801_v0, %v1558_v10 }
 0x155   :  { %v1758_v18 = vmax.f32 %v1694_v11, 0.0  ;;  %v1695_v19 = vadd.f32 %v1631_v12, %v1489_v9  ;;  %v2203_v20 = vpop.f32.mrb[48].mxu0 }
 0x156   :  { %v1756_v21 = vmax.f32 %v1692_v16, 0.0  ;;  %v1693_v22 = vadd.f32 %v1629_v17, %v1487_v15  ;;  %v1421_v23 = vmul.f32 %v2203_v20, %v2785_v58  ;;  %v2283_v24 = vpop.f32.mrb[48].mxu1  ;;  %v692_v25 = vpop.f32.mrb[49].mxu0 }
 0x157   :  { %1822 = vst [vmem:[%s3243_s10 + $0x170] sm:$0xff] %v1758_v18  ;;  %v1759_v26 = vmax.f32 %v1695_v19, 0.0  ;;  %v1563_v27 = vmul.f32 %v2283_v24, %v2790_v59  ;;  %v1419_v28 = vmul.f32 %v2785_v58, %v692_v25  ;;  %v1301_v29 = vpop.f32.mrb[49].mxu1  ;;  %v2204_v30 = vpop.f32.mrb[50].mxu0 }
 0x158   :  { %1820 = vst [vmem:[%s3243_s10 + $0x160] sm:$0xff] %v1756_v21  ;;  %v1757_v31 = vmax.f32 %v1693_v22, 0.0  ;;  %v1492_v32 = vadd.f32 %v2795_v61, %v1421_v23  ;;  %v1561_v33 = vmul.f32 %v2790_v59, %v1301_v29  ;;  %v1422_v34 = vmul.f32 %v2204_v30, %v2785_v58  ;;  %v2284_v35 = vpop.f32.mrb[50].mxu1  ;;  %v695_v36 = vpop.f32.mrb[51].mxu0 }
 0x159   :  { %1823 = vst [vmem:[%s3243_s10 + $0x178] sm:$0xff] %v1759_v26  ;;  %v1634_v37 = vadd.f32 %v2801_v0, %v1563_v27  ;;  %v1490_v38 = vadd.f32 %v2795_v61, %v1419_v28  ;;  %v1564_v39 = vmul.f32 %v2284_v35, %v2790_v59  ;;  %v1420_v40 = vmul.f32 %v2785_v58, %v695_v36  ;;  %v1304_v41 = vpop.f32.mrb[51].mxu1  ;;  %v2346_v36 = vld [vmem:[%s3240_s8] ss:$0 sm:$0xff] }
 0x15a   :  { %1821 = vst [vmem:[%s3243_s10 + $0x168] sm:$0xff] %v1757_v31  ;;  %v1632_v42 = vadd.f32 %v2801_v0, %v1561_v33  ;;  %v1493_v43 = vadd.f32 %v2795_v61, %v1422_v34  ;;  %v1562_v44 = vmul.f32 %v2790_v59, %v1304_v41  ;;  %v2345_v34 = vld [vmem:[%s3241_s6] ss:$0 sm:$0xff] }
 0x15b   :  { %v1698_v45 = vadd.f32 %v1634_v37, %v1492_v32  ;;  %v1635_v46 = vadd.f32 %v2801_v0, %v1564_v39  ;;  %v1491_v47 = vadd.f32 %v2795_v61, %v1420_v40  ;;  %v2348_v40 = vld [vmem:[%s3242_s9] ss:$0 sm:$0xff] }
 0x15c   :  { %v1696_v48 = vadd.f32 %v1632_v42, %v1490_v38  ;;  %v1633_v49 = vadd.f32 %v2801_v0, %v1562_v44 }
 0x15d   :  { %v1762_v50 = vmax.f32 %v1698_v45, 0.0  ;;  %v1699_v51 = vadd.f32 %v1635_v46, %v1493_v43  ;;  %v2207_v52 = vpop.f32.mrb[52].mxu0 }
 0x15e   :  { %v1760_v53 = vmax.f32 %v1696_v48, 0.0  ;;  %v1697_v54 = vadd.f32 %v1633_v49, %v1491_v47  ;;  %v1425_v55 = vmul.f32 %v2207_v52, %v2785_v58  ;;  %v2287_v13 = vpop.f32.mrb[52].mxu1  ;;  %v708_v56 = vpop.f32.mrb[53].mxu0 }
 0x15f   :  { %1826 = vst [vmem:[%s3243_s10 + $0x190] sm:$0xff] %v1762_v50  ;;  %v1763_v57 = vmax.f32 %v1699_v51, 0.0  ;;  %v1567_v14 = vmul.f32 %v2287_v13, %v2790_v59  ;;  %v1423_v60 = vmul.f32 %v2785_v58, %v708_v56  ;;  %v1317_v62 = vpop.f32.mrb[53].mxu1  ;;  %v2208_v63 = vpop.f32.mrb[54].mxu0 }
 0x160   :  { %1824 = vst [vmem:[%s3243_s10 + $0x180] sm:$0xff] %v1760_v53  ;;  %v1761_v1 = vmax.f32 %v1697_v54, 0.0  ;;  %v1496_v2 = vadd.f32 %v2795_v61, %v1425_v55  ;;  %v1565_v3 = vmul.f32 %v2790_v59, %v1317_v62  ;;  %v1426_v4 = vmul.f32 %v2208_v63, %v2785_v58  ;;  %v2288_v5 = vpop.f32.mrb[54].mxu1  ;;  %v711_v6 = vpop.f32.mrb[55].mxu0 }
 0x161   :  { %1827 = vst [vmem:[%s3243_s10 + $0x198] sm:$0xff] %v1763_v57  ;;  %v1638_v7 = vadd.f32 %v2801_v0, %v1567_v14  ;;  %v1494_v8 = vadd.f32 %v2795_v61, %v1423_v60  ;;  %v1568_v9 = vmul.f32 %v2288_v5, %v2790_v59  ;;  %v1424_v10 = vmul.f32 %v2785_v58, %v711_v6  ;;  %v1320_v11 = vpop.f32.mrb[55].mxu1 }
 0x162   :  { %1825 = vst [vmem:[%s3243_s10 + $0x188] sm:$0xff] %v1761_v1  ;;  %v1636_v12 = vadd.f32 %v2801_v0, %v1565_v3  ;;  %v1497_v15 = vadd.f32 %v2795_v61, %v1426_v4  ;;  %v1566_v16 = vmul.f32 %v2790_v59, %v1320_v11 }
 0x163   :  { %v1702_v17 = vadd.f32 %v1638_v7, %v1496_v2  ;;  %v1639_v18 = vadd.f32 %v2801_v0, %v1568_v9  ;;  %v1495_v19 = vadd.f32 %v2795_v61, %v1424_v10 }
 0x164   :  { %v1700_v20 = vadd.f32 %v1636_v12, %v1494_v8  ;;  %v1637_v21 = vadd.f32 %v2801_v0, %v1566_v16 }
 0x165   :  { %v1766_v22 = vmax.f32 %v1702_v17, 0.0  ;;  %v1703_v23 = vadd.f32 %v1639_v18, %v1497_v15  ;;  %v2211_v24 = vpop.f32.mrb[56].mxu0 }
 0x166   :  { %v1764_v25 = vmax.f32 %v1700_v20, 0.0  ;;  %v1701_v26 = vadd.f32 %v1637_v21, %v1495_v19  ;;  %v1429_v27 = vmul.f32 %v2211_v24, %v2785_v58  ;;  %v2291_v28 = vpop.f32.mrb[56].mxu1  ;;  %v724_v29 = vpop.f32.mrb[57].mxu0 }
 0x167   :  { %1830 = vst [vmem:[%s3243_s10 + $0x1b0] sm:$0xff] %v1766_v22  ;;  %v1767_v30 = vmax.f32 %v1703_v23, 0.0  ;;  %v1571_v31 = vmul.f32 %v2291_v28, %v2790_v59  ;;  %v1427_v61 = vmul.f32 %v2785_v58, %v724_v29  ;;  %v1333_v32 = vpop.f32.mrb[57].mxu1  ;;  %v2212_v0 = vpop.f32.mrb[58].mxu0  ;;  %v2347_v58 = vld [vmem:[%s3239_s5] ss:$0 sm:$0xff] }
 0x168   :  { %1828 = vst [vmem:[%s3243_s10 + $0x1a0] sm:$0xff] %v1764_v25  ;;  %v1765_v33 = vmax.f32 %v1701_v26, 0.0  ;;  %v1500_v35 = vadd.f32 %v2345_v34, %v1429_v27  ;;  %v1569_v37 = vmul.f32 %v2346_v36, %v1333_v32  ;;  %v1430_v59 = vmul.f32 %v2347_v58, %v2212_v0  ;;  %v2292_v38 = vpop.f32.mrb[58].mxu1  ;;  %v727_v39 = vpop.f32.mrb[59].mxu0 }
 0x169   :  { %1831 = vst [vmem:[%s3243_s10 + $0x1b8] sm:$0xff] %v1767_v30  ;;  %v1642_v41 = vadd.f32 %v2348_v40, %v1571_v31  ;;  %v1498_v42 = vadd.f32 %v2345_v34, %v1427_v61  ;;  %v1572_v43 = vmul.f32 %v2346_v36, %v2292_v38  ;;  %v1428_v44 = vmul.f32 %v2347_v58, %v727_v39  ;;  %v1336_v45 = vpop.f32.mrb[59].mxu1 }
 0x16a   :  { %1829 = vst [vmem:[%s3243_s10 + $0x1a8] sm:$0xff] %v1765_v33  ;;  %v1640_v46 = vadd.f32 %v2348_v40, %v1569_v37  ;;  %v1501_v47 = vadd.f32 %v2345_v34, %v1430_v59  ;;  %v1570_v48 = vmul.f32 %v2346_v36, %v1336_v45 }
 0x16b   :  { %v1706_v49 = vadd.f32 %v1642_v41, %v1500_v35  ;;  %v1643_v50 = vadd.f32 %v2348_v40, %v1572_v43  ;;  %v1499_v51 = vadd.f32 %v2345_v34, %v1428_v44 }
 0x16c   :  { %v1704_v52 = vadd.f32 %v1640_v46, %v1498_v42  ;;  %v1641_v53 = vadd.f32 %v2348_v40, %v1570_v48 }
 0x16d   :  { %v1770_v54 = vmax.f32 %v1706_v49, 0.0  ;;  %v1707_v55 = vadd.f32 %v1643_v50, %v1501_v47  ;;  %v2215_v13 = vpop.f32.mrb[60].mxu0 }
 0x16e   :  { %v1768_v56 = vmax.f32 %v1704_v52, 0.0  ;;  %v1705_v57 = vadd.f32 %v1641_v53, %v1499_v51  ;;  %v1433_v14 = vmul.f32 %v2347_v58, %v2215_v13  ;;  %v2295_v60 = vpop.f32.mrb[60].mxu1  ;;  %v740_v62 = vpop.f32.mrb[61].mxu0 }
 0x16f   :  { %1834 = vst [vmem:[%s3243_s10 + $0x1d0] sm:$0xff] %v1770_v54  ;;  %v1771_v63 = vmax.f32 %v1707_v55, 0.0  ;;  %v1575_v1 = vmul.f32 %v2346_v36, %v2295_v60  ;;  %v1431_v2 = vmul.f32 %v2347_v58, %v740_v62  ;;  %v1349_v3 = vpop.f32.mrb[61].mxu1  ;;  %v2216_v4 = vpop.f32.mrb[62].mxu0 }
 0x170   :  { %1832 = vst [vmem:[%s3243_s10 + $0x1c0] sm:$0xff] %v1768_v56  ;;  %v1769_v5 = vmax.f32 %v1705_v57, 0.0  ;;  %v1504_v6 = vadd.f32 %v2345_v34, %v1433_v14  ;;  %v1573_v7 = vmul.f32 %v2346_v36, %v1349_v3  ;;  %v1434_v8 = vmul.f32 %v2347_v58, %v2216_v4  ;;  %v2296_v9 = vpop.f32.mrb[62].mxu1  ;;  %v743_v10 = vpop.f32.mrb[63].mxu0 }
 0x171   :  { %1835 = vst [vmem:[%s3243_s10 + $0x1d8] sm:$0xff] %v1771_v63  ;;  %v1646_v11 = vadd.f32 %v2348_v40, %v1575_v1  ;;  %v1502_v12 = vadd.f32 %v2345_v34, %v1431_v2  ;;  %v1576_v15 = vmul.f32 %v2346_v36, %v2296_v9  ;;  %v1432_v16 = vmul.f32 %v2347_v58, %v743_v10  ;;  %v1352_v17 = vpop.f32.mrb[63].mxu1 }
 0x172   :  { %1833 = vst [vmem:[%s3243_s10 + $0x1c8] sm:$0xff] %v1769_v5  ;;  %v1644_v18 = vadd.f32 %v2348_v40, %v1573_v7  ;;  %v1505_v19 = vadd.f32 %v2345_v34, %v1434_v8  ;;  %v1574_v20 = vmul.f32 %v2346_v36, %v1352_v17 }
 0x173   :  { %v1710_v21 = vadd.f32 %v1646_v11, %v1504_v6  ;;  %v1647_v22 = vadd.f32 %v2348_v40, %v1576_v15  ;;  %v1503_v23 = vadd.f32 %v2345_v34, %v1432_v16 }
 0x174   :  { %v1708_v24 = vadd.f32 %v1644_v18, %v1502_v12  ;;  %v1645_v25 = vadd.f32 %v2348_v40, %v1574_v20 }
 0x175   :  { %v1774_v26 = vmax.f32 %v1710_v21, 0.0  ;;  %v1711_v27 = vadd.f32 %v1647_v22, %v1505_v19 }
 0x176   :  { %v1772_v28 = vmax.f32 %v1708_v24, 0.0  ;;  %v1709_v29 = vadd.f32 %v1645_v25, %v1503_v23 }
 0x177   :  { %1838 = vst [vmem:[%s3243_s10 + $0x1f0] sm:$0xff] %v1774_v26  ;;  %v1775_v30 = vmax.f32 %v1711_v27, 0.0 }
 0x178   :  { %1836 = vst [vmem:[%s3243_s10 + $0x1e0] sm:$0xff] %v1772_v28  ;;  %v1773_v31 = vmax.f32 %v1709_v29, 0.0 }
 0x179   :  { %1839 = vst [vmem:[%s3243_s10 + $0x1f8] sm:$0xff] %v1775_v30 }
 0x17a   :  { %1837 = vst [vmem:[%s3243_s10 + $0x1e8] sm:$0xff] %v1773_v31 }

// kernel: bottleneck_forward.5
= control target key start
LH: loop header
LB: loop body
LE: loop exit
PB: predicated region body
PF: predicated region fallthrough
CT: control target
= control target key end

     0   :  { %s6041_s24 = smov 0   ;;  %s7242_s0 = inlined_call_operand.vmem [shape: bf16[512,128], index: 0, kind: input, shape index: {}]   ;;  %s7243_s1 = inlined_call_operand.vmem [shape: bf16[128,128], index: 1, kind: input, shape index: {}]   ;;  %s7244_s2 = inlined_call_operand.vmem [shape: bf16[9,128,128], index: 2, kind: input, shape index: {}]   ;;  %s7245_s3 = inlined_call_operand.vmem [shape: f32[1,128], index: 3, kind: input, shape index: {}]   ;;  %s7246_s4 = inlined_call_operand.vmem [shape: f32[1,128], index: 4, kind: input, shape index: {}]   ;;  %s7247_s5 = inlined_call_operand.vmem [shape: bf16[512,128], index: 5, kind: output, shape index: {0}]   ;;  %s7248_s6 = inlined_call_operand.vmem [shape: f32[2,1,128], index: 6, kind: output, shape index: {1}]   ;;  %s7249_s7 = inlined_call_operand.vmem [shape: f32[2,1,128], index: 7, kind: output, shape index: {2}]  }
   0x1 LB: > { %s6047_s25 = sadd.s32 4294967295, %s5998_s24   ;;  %p4518_p0 = scmp.ge.s32.totalorder %s5998_s24, 1  ;;  %s5998_s24 = sphi %s6041_s24, %s18_s24  }
   0x2   : > { %p243_p1 = scmp.lt.s32.totalorder %s5998_s24, 3 }
   0x4   : > { %p244_p2 = pnand %p4518_p0, %p243_p1 }
   0x5   : > { %v5895_v0 = vld [vmem:[%s7243_s1] sm:$0xff] (!%p244_p2)   ;;  %s4519_s28 = sshll.u32 (!%p244_p2), %s6047_s25, 5  ;;  %v5896_v1 = vld [vmem:[%s7243_s1 + $0x8] sm:$0xff] (!%p244_p2)   ;;  %v5897_v2 = vld [vmem:[%s7243_s1 + $0x10] sm:$0xff] (!%p244_p2)   ;;  %vm1357_vm0 = vcmask (!%p244_p2), 1040384   ;;  %v6000_v38 = vmov (!%p244_p2), 0   ;;  %v763_v57 = vlaneseq (!%p244_p2) }
   0x6   : > { %247 = sbr.rel (%p244_p2) target bundleno = 841 (0x349), region = 40  ;;  %p282_p3 = scmp.lt.s32.totalorder (!%p244_p2), %s4519_s28, 63  ;;  %5150 = vmatprep.subr.bf16.mxu0 (!%p244_p2), %v5895_v0  ;;  %v5898_v3 = vld [vmem:[%s7243_s1 + $0x18] sm:$0xff] (!%p244_p2)   ;;  %v5899_v5 = vld [vmem:[%s7243_s1 + $0x20] sm:$0xff] (!%p244_p2)   ;;  %v5900_v6 = vld [vmem:[%s7243_s1 + $0x28] sm:$0xff] (!%p244_p2)   ;;  %1367 = vst [vmem:[#allocation2 + $0x120] sm:$0xff] (!%p244_p2), %v6000_v38 }
   0x7   : > { %5151 = vmatpush3.bf16.msra.mxu0 (!%p244_p2), %v5895_v0  ;;  %v5901_v7 = vld [vmem:[%s7243_s1 + $0x30] sm:$0xff] (!%p244_p2)   ;;  %v5902_v8 = vld [vmem:[%s7243_s1 + $0x38] sm:$0xff] (!%p244_p2)   ;;  %v5920_v9 = vld [vmem:[%s7244_s2 + $0x100] sm:$0xff] (!%p244_p2)   ;;  %vm1358_vm1 = vsmask.f32 (!%p244_p2), 256  ;;  %1356 = vst [vmem:[#allocation2] sm:$0xff] (!%p244_p2), %v6000_v38 }
   0x8   : > { %5152 = vmatprep.subr.bf16.mxu0 (!%p244_p2), %v5896_v1  ;;  %5390 = vmatprep.subr.bf16.mxu1 (!%p244_p2), %v5920_v9  ;;  %v5922_v10 = vld [vmem:[%s7244_s2 + $0x108] sm:$0xff] (!%p244_p2)   ;;  %v5919_v12 = vld [vmem:[%s7244_s2 + $0x40] sm:$0xff] (!%p244_p2)   ;;  %v5924_v14 = vld [vmem:[%s7244_s2 + $0x110] sm:$0xff] (!%p244_p2)   ;;  %1377 = vst [vmem:[#allocation2 + $0x88] sm:$0xff] (!%p244_p2), %v6000_v38  ;;  %vm1371_vm3 = vcmask (!%p244_p2), 1047559   ;;  %v6183_v58 = vshrl.u32 (!%p244_p2), %v763_v57, 7 }
   0x9   : > { %5391 = vmatpush3.bf16.msra.mxu1 (!%p244_p2), %v5920_v9  ;;  %v5921_v15 = vld [vmem:[%s7244_s2 + $0x48] sm:$0xff] (!%p244_p2)   ;;  %v5923_v16 = vld [vmem:[%s7244_s2 + $0x50] sm:$0xff] (!%p244_p2)   ;;  %v5925_v30 = vld [vmem:[%s7244_s2 + $0x58] sm:$0xff] (!%p244_p2)   ;;  %vm1372_vm4 = vsmask.f32 (!%p244_p2), 7966  ;;  %vm1530_vm11 = vcmask (!%p244_p2), 1047552  }
   0xa   : > { %5392 = vmatprep.subr.bf16.mxu1 (!%p244_p2), %v5922_v10  ;;  %v5926_v31 = vld [vmem:[%s7244_s2 + $0x118] sm:$0xff] (!%p244_p2)   ;;  %v5927_v32 = vld [vmem:[%s7244_s2 + $0x60] sm:$0xff] (!%p244_p2)   ;;  %v5929_v34 = vld [vmem:[%s7244_s2 + $0x68] sm:$0xff] (!%p244_p2)   ;;  %v766_v59 = vadd.s32 (!%p244_p2), 16, %v6183_v58  ;;  %v767_v60 = vadd.s32 (!%p244_p2), 24, %v6183_v58  ;;  %v765_v61 = vadd.s32 (!%p244_p2), 8, %v6183_v58 }
   0xb   : > { %5153 = vmatpush3.bf16.msra.mxu0 (!%p244_p2), %v5896_v1  ;;  %v5928_v33 = vld [vmem:[%s7244_s2 + $0x120] sm:$0xff] (!%p244_p2)   ;;  %v5930_v35 = vld [vmem:[%s7244_s2 + $0x128] sm:$0xff] (!%p244_p2)   ;;  %v5931_v36 = vld [vmem:[%s7244_s2 + $0x70] sm:$0xff] (!%p244_p2)   ;;  %v6189_v62 = vadd.s32 (!%p244_p2), 48, %v6183_v58  ;;  %v6192_v63 = vadd.s32 (!%p244_p2), 32, %v6183_v58  ;;  %v6195_v0 = vadd.s32 (!%p244_p2), 56, %v6183_v58 }
   0xc   : > { %5154 = vmatprep.subr.bf16.mxu0 (!%p244_p2), %v5897_v2  ;;  %v5932_v37 = vld [vmem:[%s7244_s2 + $0x130] sm:$0xff] (!%p244_p2)   ;;  %vm6145_vm2 = vmand (!%p244_p2), %vm1357_vm0, %vm1358_vm1  ;;  %v1360_v40 = vld [vmem:[#allocation2 + $0x8] sm:$0x1] (!%p244_p2)  ;;  %v814_v1 = vand.u32 (!%p244_p2), 15, %v766_v59  ;;  %v6302_v57 = vadd.s32 (!%p244_p2), 216, %v6183_v58  ;;  %p293_p4 = scmp.lt.s32.totalorder (!%p244_p2), %s6047_s25, 1 }
   0xd   : > { %s7339_s28 = smov (!%p282_p3, %s4519_s28), 63  ;;  %5393 = vmatpush3.bf16.msra.mxu1 %v5922_v10  ;;  %v1364_v41 = vld [vmem:[#allocation2 + $0x98] sm:$0x1]  ;;  %v1361_v42 = vsel %vm6145_vm2, 0, %v1360_v40  ;;  %v1368_v46 = vld [vmem:[#allocation2 + $0x128] sm:$0x1]  ;;  %vm6159_vm5 = vmand %vm1371_vm3, %vm1372_vm4 }
   0xe   : > { %s4520_s10 = sshll.u32 %s7339_s28, 2  ;;  %5394 = vmatprep.subr.bf16.mxu1 %v5924_v14  ;;  %v1365_v43 = vsel %vm6145_vm2, 0, %v1364_v41  ;;  %v5933_v44 = vld [vmem:[%s7244_s2 + $0x78] sm:$0xff]   ;;  %1362 = vst [vmem:[#allocation2 + $0x8] sm:$0x1] %v1361_v42  ;;  %v1369_v49 = vsel %vm6145_vm2, 0, %v1368_v46 }
   0xf   : > { %s6069_s13 = scalar_lea.vmem %s7242_s0, %s4520_s10  ;;  %5155 = vmatpush3.bf16.msra.mxu0 %v5897_v2  ;;  %1366 = vst [vmem:[#allocation2 + $0x98] sm:$0x1] %v1365_v43  ;;  %v5934_v45 = vld [vmem:[%s7244_s2 + $0x138] sm:$0xff]   ;;  %v1382_v48 = vld [vmem:[#allocation2 + $0x1a0] sm:$0x80]  ;;  %v800_v2 = vand.u32 15, %v6183_v58  ;;  %s7189_s23 = scalar_lea.vmem %s7247_s5, %s4520_s10 }
  0x10   : > { %v5903_v4 = vld [vmem:[%s6069_s13] sm:$0xff]   ;;  %5156 = vmatprep.subr.bf16.mxu0 %v5898_v3  ;;  %v5904_v11 = vld [vmem:[%s6069_s13 + $0x8] sm:$0xff]   ;;  %v5905_v13 = vld [vmem:[%s6069_s13 + $0x10] sm:$0xff]   ;;  %v1383_v50 = vsel %vm6159_vm5, 0, %v1382_v48  ;;  %1370 = vst [vmem:[#allocation2 + $0x128] sm:$0x1] %v1369_v49 }
  0x11   : > { %5166 = vmatprep.mubr.bf16.mxu0 %v5903_v4  ;;  %v5906_v17 = vld [vmem:[%s6069_s13 + $0x18] sm:$0xff]   ;;  %5395 = vmatpush3.bf16.msra.mxu1 %v5924_v14  ;;  %v5907_v18 = vld [vmem:[%s6069_s13 + $0x20] sm:$0xff]   ;;  %v5908_v19 = vld [vmem:[%s6069_s13 + $0x28] sm:$0xff]   ;;  %1384 = vst [vmem:[#allocation2 + $0x1a0] sm:$0x80] %v1383_v50  ;;  %v807_v4 = vand.u32 15, %v765_v61 }
  0x12   : > { %v5909_v20 = vld [vmem:[%s6069_s13 + $0x30] sm:$0xff]   ;;  %v5910_v21 = vld [vmem:[%s6069_s13 + $0x38] sm:$0xff]   ;;  %v5911_v22 = vld [vmem:[%s6069_s13 + $0x40] sm:$0xff]   ;;  %5396 = vmatprep.subr.bf16.mxu1 %v5926_v31  ;;  %v828_v9 = vand.u32 15, %v6192_v63  ;;  %v6210_v10 = vadd.s32 88, %v6183_v58  ;;  %v6220_v14 = vadd.s32 96, %v6183_v58 }
  0x13   : > { %5157 = vmatpush3.bf16.msra.mxu0 %v5898_v3  ;;  %v5912_v23 = vld [vmem:[%s6069_s13 + $0x48] sm:$0xff]   ;;  %v5913_v24 = vld [vmem:[%s6069_s13 + $0x50] sm:$0xff]   ;;  %v5914_v25 = vld [vmem:[%s6069_s13 + $0x58] sm:$0xff]   ;;  %v821_v3 = vand.u32 15, %v767_v60  ;;  %vm6228_vm6 = vcmp.eq.s32.totalorder %v814_v1, 0  ;;  %vm6244_vm7 = vcmp.eq.s32.totalorder %v800_v2, 0 }
  0x14   : > { %5158 = vmatprep.subr.bf16.mxu0 %v5899_v5  ;;  %v5915_v26 = vld [vmem:[%s6069_s13 + $0x60] sm:$0xff]   ;;  %v5916_v27 = vld [vmem:[%s6069_s13 + $0x68] sm:$0xff]   ;;  %v5917_v28 = vld [vmem:[%s6069_s13 + $0x70] sm:$0xff]   ;;  %vm6274_vm9 = vcmp.eq.s32.totalorder %v807_v4, 15  ;;  %v6291_v49 = vadd.s32 168, %v6183_v58  ;;  %v6294_v50 = vadd.s32 208, %v6183_v58 }
  0x15   : > { %v5918_v29 = vld [vmem:[%s6069_s13 + $0x78] sm:$0xff]   ;;  %5397 = vmatpush3.bf16.msra.mxu1 %v5926_v31  ;;  %v6170_v51 = vld [vmem:[%s7244_s2 + $0x140] sm:$0xff]   ;;  %v1378_v53 = vld [vmem:[#allocation2 + $0x110] sm:$0x80]  ;;  %vm6259_vm8 = vcmp.eq.s32.totalorder %v821_v3, 15  ;;  %v6308_v1 = vadd.s32 200, %v6183_v58 }
  0x16   : > { %5398 = vmatprep.subr.bf16.mxu1 %v5928_v33  ;;  %v6176_v52 = vld [vmem:[%s7244_s2] sm:$0xff]   ;;  %v1379_v54 = vsel %vm6159_vm5, 0, %v1378_v53  ;;  %vm1531_vm12 = vsmask.f32 7938  ;;  %vm1571_vm13 = vsmask.f32 7424 }
  0x17   : > { %5159 = vmatpush3.bf16.msra.mxu0 %v5899_v5  ;;  %1380 = vst [vmem:[#allocation2 + $0x110] sm:$0x80] %v1379_v54  ;;  %v1374_v55 = vld [vmem:[#allocation2 + $0x80] sm:$0x80]  ;;  %v842_v5 = vand.u32 15, %v6189_v62  ;;  %vm6345_vm14 = vcmp.eq.s32.totalorder %v828_v9, 0  ;;  %vm6397_vm4 = vmand %vm1530_vm11, %vm1531_vm12 }
  0x18   : > { %5160 = vmatprep.subr.bf16.mxu0 %v5900_v6  ;;  %v1375_v56 = vsel %vm6159_vm5, 0, %v1374_v55  ;;  %v6880_v39 = vld [vmem:[#allocation2] sm:$0xff]  ;;  %s7341_s25 = smov (!%p293_p4, %s6047_s25), 1 }
  0x19   : > { %5399 = vmatpush3.bf16.msra.mxu1 %v5928_v33  ;;  %1376 = vst [vmem:[#allocation2 + $0x80] sm:$0x80] %v1375_v56  ;;  %v6272_v33 = vld [vmem:[%s7246_s4] ss:$0 sm:$0xff]  ;;  %v6299_v56 = vadd.s32 192, %v6183_v58  ;;  %vm6312_vm10 = vcmp.eq.s32.totalorder %v842_v5, 0  ;;  %s295_s26 = scalar_lea.vmem %s7248_s6, %s7341_s25  ;;  %s298_s29 = scalar_lea.vmem %s7249_s7, %s7341_s25 }
  0x1a   : > { %5400 = vmatprep.subr.bf16.mxu1 %v5930_v35 }
  0x1b   : > { %5161 = vmatpush3.bf16.msra.mxu0 %v5900_v6  ;;  %v6200_v6 = vadd.s32 40, %v6183_v58 }
  0x1c   : > { %5162 = vmatprep.subr.bf16.mxu0 %v5901_v7 }
  0x1d   : > { %5401 = vmatpush3.bf16.msra.mxu1 %v5930_v35 }
  0x1e   : > { %5402 = vmatprep.subr.bf16.mxu1 %v5932_v37 }
  0x1f   : > { %5163 = vmatpush3.bf16.msra.mxu0 %v5901_v7  ;;  %v6203_v7 = vadd.s32 80, %v6183_v58 }
  0x20   : > { %5164 = vmatprep.subr.bf16.mxu0 %v5902_v8 }
  0x21   : > { %5403 = vmatpush3.bf16.msra.mxu1 %v5932_v37 }
  0x22   : > { %5404 = vmatprep.subr.bf16.mxu1 %v5934_v45 }
  0x23   : > { %5165 = vmatpush3.bf16.msra.mxu0 %v5902_v8  ;;  %v6206_v8 = vadd.s32 64, %v6183_v58 }
  0x24   : > { %5198 = vmatprep.subr.bf16.mxu0 %v5919_v12 }
  0x25   : > { %5405 = vmatpush3.bf16.msra.mxu1 %v5934_v45 }
  0x26   : > { %5167 = vmatmul.mubr.bf16.vlgmr.msra.gmra.mrb[0].mxu0 %v5904_v11  ;;  %5438 = vmatprep.subr.bf16.mxu1 %v6170_v51  ;;  %v6213_v11 = vadd.s32 72, %v6183_v58 }
  0x27   : > { %5170 = vmatprep.mubr.bf16.mxu0 %v5905_v13  ;;  %5199 = vmatpush3.bf16.msra.mxu0 %v5919_v12  ;;  %v6216_v12 = vadd.s32 112, %v6183_v58  ;;  %v849_v13 = vand.u32 15, %v6195_v0  ;;  %v5936_v0 = vld [vmem:[%s7244_s2 + $0x148] sm:$0xff]  }
  0x28   : > { %5200 = vmatprep.subr.bf16.mxu0 %v5921_v15 }
  0x29   : > { %v898_v31 = vand.u32 15, %v6216_v12  ;;  %vm6353_vm15 = vcmp.eq.s32.totalorder %v849_v13, 15  ;;  %v5941_v13 = vld [vmem:[%s7244_s2 + $0x8] sm:$0xff]  }
  0x2b   : > { %5201 = vmatpush3.bf16.msra.mxu0 %v5921_v15  ;;  %v6223_v15 = vadd.s32 120, %v6183_v58 }
  0x2c   : > { %5202 = vmatprep.subr.bf16.mxu0 %v5923_v16 }
  0x2e   : > { %5171 = vmatmul.mubr.bf16.gmra.mrb[4].mxu0 %v5906_v17 }
  0x2f   : > { %5174 = vmatprep.mubr.bf16.mxu0 %v5907_v18  ;;  %5203 = vmatpush3.bf16.msra.mxu0 %v5923_v16  ;;  %v6226_v16 = vadd.s32 104, %v6183_v58  ;;  %v6233_v18 = vadd.s32 144, %v6183_v58 }
  0x30   : > { %5204 = vmatprep.subr.bf16.mxu0 %v5925_v30 }
  0x33   : > { %5205 = vmatpush3.bf16.msra.mxu0 %v5925_v30  ;;  %v863_v30 = vand.u32 15, %v6213_v11 }
  0x34   : > { %5206 = vmatprep.subr.bf16.mxu0 %v5927_v32 }
  0x36   : > { %5175 = vmatmul.mubr.bf16.gmra.mrb[8].mxu0 %v5908_v19  ;;  %v6236_v19 = vadd.s32 128, %v6183_v58 }
  0x37   : > { %5178 = vmatprep.mubr.bf16.mxu0 %v5909_v20  ;;  %5207 = vmatpush3.bf16.msra.mxu0 %v5927_v32  ;;  %v6239_v20 = vadd.s32 152, %v6183_v58  ;;  %v6267_v32 = vadd.s32 160, %v6183_v58 }
  0x38   : > { %5208 = vmatprep.subr.bf16.mxu0 %v5929_v34 }
  0x3b   : > { %5209 = vmatpush3.bf16.msra.mxu0 %v5929_v34  ;;  %v5940_v34 = vld [vmem:[%s7244_s2 + $0x160] sm:$0xff]  }
  0x3c   : > { %5210 = vmatprep.subr.bf16.mxu0 %v5931_v36 }
  0x3e   : > { %5179 = vmatmul.mubr.bf16.gmra.mrb[12].mxu0 %v5910_v21  ;;  %v6242_v21 = vadd.s32 136, %v6183_v58 }
  0x3f   : > { %5182 = vmatprep.mubr.bf16.mxu0 %v5911_v22  ;;  %5211 = vmatpush3.bf16.msra.mxu0 %v5931_v36  ;;  %v5938_v22 = vld [vmem:[%s7244_s2 + $0x158] sm:$0xff]  }
  0x40   : > { %5212 = vmatprep.subr.bf16.mxu0 %v5933_v44 }
  0x43   : > { %5213 = vmatpush3.bf16.msra.mxu0 %v5933_v44 }
  0x44   : > { %5246 = vmatprep.subr.bf16.mxu0 %v6176_v52 }
  0x46   : > { %5183 = vmatmul.mubr.bf16.gmra.mrb[16].mxu0 %v5912_v23  ;;  %v835_v23 = vand.u32 15, %v6200_v6 }
  0x47   : > { %5186 = vmatprep.mubr.bf16.mxu0 %v5913_v24  ;;  %v870_v24 = vand.u32 15, %v6203_v7 }
  0x48   : > { %vm6361_vm0 = vcmp.eq.s32.totalorder %v835_v23, 15 }
  0x49   : > { %vm6384_vm3 = vcmp.eq.s32.totalorder %v870_v24, 0  ;;  %v1533_v24 = vld [vmem:[#allocation2 + $0x8] sm:$0xff] }
  0x4e   : > { %5187 = vmatmul.mubr.bf16.gmra.mrb[20].mxu0 %v5914_v25  ;;  %v856_v25 = vand.u32 15, %v6206_v8 }
  0x4f   : > { %5190 = vmatprep.mubr.bf16.mxu0 %v5915_v26  ;;  %v6252_v26 = vadd.s32 176, %v6183_v58 }
  0x56   : > { %5191 = vmatmul.mubr.bf16.gmra.mrb[24].mxu0 %v5916_v27  ;;  %v6257_v27 = vld [vmem:[%s7245_s3] ss:$0 sm:$0xff] }
  0x57   : > { %5194 = vmatprep.mubr.bf16.mxu0 %v5917_v28 }
  0x5e   : > { %5195 = vmatmul.mubr.bf16.gmra.mrb[28].mxu0 %v5918_v29  ;;  %v877_v29 = vand.u32 15, %v6210_v10 }
  0x5f   : > { %5214 = vmatprep.mubr.bf16.mxu0 %v6000_v38  ;;  %v6282_v38 = vadd.s32 184, %v6183_v58 }
  0xf9   : > { %v5168_v40 = vpop.f32.mrb[0].mxu0 }
  0xfa   : > { %v662_v45 = vmul.f32 %v5168_v40, %v6257_v27  ;;  %v526_v46 = vpop.f32.mrb[1].mxu0  ;;  %v6317_v40 = vadd.s32 240, %v6183_v58 }
  0xfb   : > { %v660_v53 = vmul.f32 %v6257_v27, %v526_v46  ;;  %v5169_v54 = vpop.f32.mrb[2].mxu0 }
  0xfc   : > { %v701_v59 = vadd.f32 %v6272_v33, %v662_v45  ;;  %v663_v60 = vmul.f32 %v5169_v54, %v6257_v27  ;;  %v529_v61 = vpop.f32.mrb[3].mxu0  ;;  %v6320_v45 = vadd.s32 224, %v6183_v58 }
  0xfd   : > { %v699_v2 = vadd.f32 %v6272_v33, %v660_v53  ;;  %v661_v3 = vmul.f32 %v6257_v27, %v529_v61 }
  0xfe   : > { %v733_v46 = vmax.f32 %v701_v59, 0.0  ;;  %v702_v54 = vadd.f32 %v6272_v33, %v663_v60  ;;  %v6332_v60 = vadd.s32 248, %v6183_v58 }
  0xff   : > { %v731_v61 = vmax.f32 %v699_v2, 0.0  ;;  %v700_v5 = vadd.f32 %v6272_v33, %v661_v3 }
 0x100   : > { %v1310_v44 = vsel %vm6228_vm6, 0.0, %v733_v46  ;;  %v734_v43 = vmax.f32 %v702_v54, 0.0  ;;  %vm6406_vm6 = vcmp.eq.s32.totalorder %v856_v25, 0 }
 0x101   : > { %v1308_v53 = vsel %vm6244_vm7, 0.0, %v731_v61  ;;  %v732_v2 = vmax.f32 %v700_v5, 0.0  ;;  %v5172_v62 = vpop.f32.mrb[4].mxu0  ;;  %vm6435_vm7 = vcmp.eq.s32.totalorder %v863_v30, 15 }
 0x102   : > { %v1181_v48 = vpack.c.bf16 %v734_v43, %v733_v46  ;;  %v1231_v17 = vsel %vm6259_vm8, 0.0, %v734_v43  ;;  %v6340_v54 = vpack.c.bf16 %v734_v43, %v1310_v44  ;;  %v666_v59 = vmul.f32 %v5172_v62, %v6257_v27  ;;  %v542_v42 = vpop.f32.mrb[5].mxu0 }
 0x103   : > { %v1261_v5 = vpack.c.bf16 %v1231_v17, %v733_v46  ;;  %v1180_v41 = vpack.c.bf16 %v732_v2, %v731_v61  ;;  %v1229_v55 = vsel %vm6274_vm9, 0.0, %v732_v2  ;;  %v1340_v3 = vpack.c.bf16 %v732_v2, %v1308_v53  ;;  %v5173_v37 = vpop.f32.mrb[6].mxu0  ;;  %v1717_v2 = vld [vmem:[#allocation2 + $0x120] sm:$0x80] }
 0x104   : > { %1556 = vst [vmem:[#allocation2 + $0xa0] sm:$0xff] %v1181_v48  ;;  %v1580_v63 = vshll.u32 %v6340_v54, 16  ;;  %v1260_v9 = vpack.c.bf16 %v1229_v55, %v731_v61  ;;  %v705_v43 = vadd.f32 %v6272_v33, %v666_v59  ;;  %v545_v44 = vpop.f32.mrb[7].mxu0  ;;  %v1584_v53 = vshrl.u32 %v6340_v54, 16 }
 0x105   : > { %v1394_v55 = vshrl.u32 %v1261_v5, 16  ;;  %v1397_v46 = vshll.u32 %v1261_v5, 16  ;;  %1555 = vst [vmem:[#allocation2 + $0x98] sm:$0xff] %v1180_v41  ;;  %v1573_v6 = vshll.u32 %v1340_v3, 16  ;;  %5215 = vmatmul.mubr.bf16.vlgmr.msra.gmra.mrb[32].mxu0 %v1180_v41  ;;  %5406 = vmatprep.mubr.bf16.mxu1 %v1180_v41  ;;  %v1576_v59 = vshrl.u32 %v1340_v3, 16 }
 0x106   : > { %v1582_v23 = vrot.slane %v1580_v63, 1  ;;  %v1387_v61 = vshrl.u32 %v1260_v9, 16  ;;  %v737_v17 = vmax.f32 %v705_v43, 0.0  ;;  %5218 = vmatprep.mubr.bf16.mxu0 %v1181_v48  ;;  %5407 = vmatmul.mubr.bf16.vlgmr.msra.gmra.mrb[0].mxu1 %v1181_v48  ;;  %v664_v62 = vmul.f32 %v6257_v27, %v542_v42  ;;  %v5943_v48 = vld [vmem:[%s7244_s2 + $0x168] sm:$0xff]  }
 0x107   : > { %v6373_v36 = vrot.slane %v1394_v55, 7  ;;  %v1575_v35 = vrot.slane %v1573_v6, 1  ;;  %v667_v5 = vmul.f32 %v5173_v37, %v6257_v27  ;;  %5439 = vmatpush3.bf16.msra.mxu1 %v6170_v51  ;;  %5247 = vmatpush3.bf16.msra.mxu0 %v6176_v52  ;;  %v1390_v41 = vshll.u32 %v1260_v9, 16  ;;  %v5937_v51 = vld [vmem:[%s7244_s2 + $0x150] sm:$0xff]  }
 0x108   : > { %v1389_v54 = vrot.slane %v1387_v61, 7  ;;  %v1314_v3 = vsel %vm6312_vm10, 0.0, %v737_v17  ;;  %v665_v63 = vmul.f32 %v6257_v27, %v545_v44  ;;  %5440 = vmatprep.subr.bf16.mxu1 %v5936_v0  ;;  %5248 = vmatprep.subr.bf16.mxu0 %v5941_v13  ;;  %v5942_v52 = vld [vmem:[%s7244_s2 + $0x10] sm:$0xff]   ;;  %v703_v9 = vadd.f32 %v6272_v33, %v664_v62 }
 0x109   : > { %v1399_v37 = vor.u32 %v1397_v46, %v6373_v36  ;;  %v1578_v42 = vor.u32 %v1576_v59, %v1575_v35  ;;  %v1718_v4 = vsel %vm6159_vm5, %v1575_v35, %v1717_v2  ;;  %v5176_v43 = vpop.f32.mrb[8].mxu0  ;;  %v706_v46 = vadd.f32 %v6272_v33, %v667_v5 }
 0x10a   : > { %v1392_v55 = vor.u32 %v1390_v41, %v1389_v54  ;;  %1719 = vst [vmem:[#allocation2 + $0x120] sm:$0x80] %v1718_v4  ;;  %v704_v6 = vadd.f32 %v6272_v33, %v665_v63  ;;  %v670_v61 = vmul.f32 %v5176_v43, %v6257_v27  ;;  %v558_v59 = vpop.f32.mrb[9].mxu0  ;;  %v735_v62 = vmax.f32 %v703_v9, 0.0 }
 0x10b   : > { %v1400_v47 = vsel %vm1358_vm1, %v1389_v54, %v1399_v37  ;;  %v1583_v35 = vsel %vm1571_vm13, %v1578_v42, %v1582_v23  ;;  %v668_v8 = vmul.f32 %v6257_v27, %v558_v59  ;;  %v5177_v25 = vpop.f32.mrb[10].mxu0  ;;  %5441 = vmatpush3.bf16.msra.mxu1 %v5936_v0  ;;  %5249 = vmatpush3.bf16.msra.mxu0 %v5941_v13  ;;  %v738_v5 = vmax.f32 %v706_v46, 0.0 }
 0x10c   : > { %v1534_v2 = vsel %vm6397_vm4, %v1392_v55, %v1533_v24  ;;  %1536 = vst [vmem:[#allocation2 + $0x10] sm:$0xff] %v1400_v47  ;;  %1720 = vst [vmem:[#allocation2 + $0x128] sm:$0xff] %v1583_v35  ;;  %v736_v41 = vmax.f32 %v704_v6, 0.0  ;;  %v709_v63 = vadd.f32 %v6272_v33, %v670_v61  ;;  %vm6421_vm5 = vcmp.eq.s32.totalorder %v877_v29, 15  ;;  %v561_v37 = vpop.f32.mrb[11].mxu0  ;;  %5442 = vmatprep.subr.bf16.mxu1 %v5937_v51 }
 0x10d   : > { %5250 = vmatprep.subr.bf16.mxu0 %v5942_v52  ;;  %v1586_v0 = vor.u32 %v1584_v53, %v1582_v23  ;;  %1535 = vst [vmem:[#allocation2 + $0x8] sm:$0xff] %v1534_v2  ;;  %v1312_v13 = vsel %vm6345_vm14, 0.0, %v735_v62  ;;  %v707_v7 = vadd.f32 %v6272_v33, %v668_v8  ;;  %v671_v24 = vmul.f32 %v5177_v25, %v6257_v27  ;;  %v5944_v53 = vld [vmem:[%s7244_s2 + $0x18] sm:$0xff]  }
 0x10e   : > { %v1183_v42 = vpack.c.bf16 %v738_v5, %v737_v17  ;;  %v1235_v10 = vsel %vm6353_vm15, 0.0, %v738_v5  ;;  %v6431_v29 = vpack.c.bf16 %v738_v5, %v1314_v3  ;;  %v1182_v4 = vpack.c.bf16 %v736_v41, %v735_v62  ;;  %v5950_v25 = vld [vmem:[%s7244_s2 + $0x38] sm:$0xff]  }
 0x10f   : > { %v1263_v23 = vpack.c.bf16 %v1235_v10, %v737_v17  ;;  %v1233_v28 = vsel %vm6361_vm0, 0.0, %v736_v41  ;;  %v1342_v3 = vpack.c.bf16 %v736_v41, %v1312_v13  ;;  %v6447_v43 = vmax.f32 %v709_v63, 0.0  ;;  %5443 = vmatpush3.bf16.msra.mxu1 %v5937_v51  ;;  %5251 = vmatpush3.bf16.msra.mxu0 %v5942_v52  ;;  %v5945_v17 = vld [vmem:[%s7244_s2 + $0x20] sm:$0xff]  }
 0x110   : > { %1558 = vst [vmem:[#allocation2 + $0xb0] sm:$0xff] %v1183_v42  ;;  %v1596_v11 = vshll.u32 %v6431_v29, 16  ;;  %v1262_v30 = vpack.c.bf16 %v1233_v28, %v735_v62  ;;  %1557 = vst [vmem:[#allocation2 + $0xa8] sm:$0xff] %v1182_v4  ;;  %v6450_v55 = vmax.f32 %v707_v7, 0.0  ;;  %v669_v46 = vmul.f32 %v6257_v27, %v561_v37  ;;  %5219 = vmatmul.mubr.bf16.gmra.mrb[36].mxu0 %v1182_v4  ;;  %v5947_v28 = vld [vmem:[%s7244_s2 + $0x28] sm:$0xff]  }
 0x111   : > { %5410 = vmatprep.mubr.bf16.mxu1 %v1182_v4  ;;  %v1410_v51 = vshrl.u32 %v1263_v23, 16  ;;  %v1413_v52 = vshll.u32 %v1263_v23, 16  ;;  %v1600_v6 = vshrl.u32 %v6431_v29, 16  ;;  %v1588_v61 = vshll.u32 %v1342_v3, 16  ;;  %v5180_v59 = vpop.f32.mrb[12].mxu0  ;;  %5222 = vmatprep.mubr.bf16.mxu0 %v1183_v42 }
 0x112   : > { %5411 = vmatmul.mubr.bf16.gmra.mrb[4].mxu1 %v1183_v42  ;;  %v1598_v47 = vrot.slane %v1596_v11, 1  ;;  %v1402_v35 = vshrl.u32 %v1262_v30, 16  ;;  %v1405_v62 = vshll.u32 %v1262_v30, 16  ;;  %v1592_v8 = vshrl.u32 %v1342_v3, 16  ;;  %v574_v2 = vpop.f32.mrb[13].mxu0  ;;  %5444 = vmatprep.subr.bf16.mxu1 %v5938_v22 }
 0x113   : > { %vm6462_vm8 = vcmp.eq.s32.totalorder %v898_v31, 0  ;;  %5252 = vmatprep.subr.bf16.mxu0 %v5944_v53  ;;  %v6466_v5 = vrot.slane %v1410_v51, 7  ;;  %v1590_v41 = vrot.slane %v1588_v61, 1  ;;  %v1318_v63 = vsel %vm6384_vm3, 0.0, %v6447_v43  ;;  %v6472_v13 = vpop.f32.mrb[14].mxu0  ;;  %5445 = vmatpush3.bf16.msra.mxu1 %v5938_v22 }
 0x114   : > { %v710_v37 = vadd.f32 %v6272_v33, %v671_v24  ;;  %5253 = vmatpush3.bf16.msra.mxu0 %v5944_v53  ;;  %v1404_v12 = vrot.slane %v1402_v35, 7  ;;  %v1316_v31 = vsel %vm6406_vm6, 0.0, %v6450_v55  ;;  %v708_v7 = vadd.f32 %v6272_v33, %v669_v46  ;;  %v6479_v10 = vpop.f32.mrb[15].mxu0  ;;  %5446 = vmatprep.subr.bf16.mxu1 %v5940_v34 }
 0x115   : > { %v674_v42 = vmul.f32 %v5180_v59, %v6257_v27  ;;  %5254 = vmatprep.subr.bf16.mxu0 %v5945_v17  ;;  %v1415_v24 = vor.u32 %v1413_v52, %v6466_v5  ;;  %v1591_v4 = vsel %vm1571_vm13, %v1586_v0, %v1590_v41  ;;  %v1594_v22 = vor.u32 %v1592_v8, %v1590_v41  ;;  %v6601_v59 = vld [vmem:[%s7244_s2 + $0x180] sm:$0xff]  }
 0x116   : > { %v742_v53 = vmax.f32 %v710_v37, 0.0  ;;  %v7282_v44 = vand.u32 15, %v6220_v14  ;;  %v1407_v3 = vor.u32 %v1405_v62, %v1404_v12  ;;  %1721 = vst [vmem:[#allocation2 + $0x130] sm:$0xff] %v1591_v4  ;;  %v740_v11 = vmax.f32 %v708_v7, 0.0 }
 0x117   : > { %v713_v30 = vadd.f32 %v6272_v33, %v674_v42  ;;  %v672_v46 = vmul.f32 %v6257_v27, %v574_v2  ;;  %v1416_v0 = vsel %vm1358_vm1, %v1404_v12, %v1415_v24  ;;  %v1599_v51 = vsel %vm1571_vm13, %v1594_v22, %v1598_v47  ;;  %5447 = vmatpush3.bf16.msra.mxu1 %v5940_v34 }
 0x118   : > { %vm6488_vm9 = vcmp.eq.s32.totalorder %v7282_v44, 0  ;;  %v1185_v14 = vpack.c.bf16 %v742_v53, %v6447_v43  ;;  %v1239_v52 = vsel %vm6421_vm5, 0.0, %v742_v53  ;;  %v7285_v61 = vand.u32 15, %v6223_v15  ;;  %5255 = vmatpush3.bf16.msra.mxu0 %v5945_v17  ;;  %1538 = vst [vmem:[#allocation2 + $0x20] sm:$0xff] %v1416_v0  ;;  %1722 = vst [vmem:[#allocation2 + $0x138] sm:$0xff] %v1599_v51  ;;  %5448 = vmatprep.subr.bf16.mxu1 %v5943_v48 }
 0x119   : > { %v1408_v35 = vsel %vm1358_vm1, %v6373_v36, %v1407_v3  ;;  %v1265_v62 = vpack.c.bf16 %v1239_v52, %v6447_v43  ;;  %v1345_v8 = vpack.c.bf16 %v742_v53, %v1318_v63  ;;  %v1184_v2 = vpack.c.bf16 %v740_v11, %v6450_v55  ;;  %v5184_v41 = vpop.f32.mrb[16].mxu0  ;;  %5256 = vmatprep.subr.bf16.mxu0 %v5947_v28  ;;  %v5948_v63 = vld [vmem:[%s7244_s2 + $0x30] sm:$0xff]  }
 0x11a   : > { %vm6504_vm10 = vcmp.eq.s32.totalorder %v7285_v61, 15  ;;  %v7288_v54 = vand.u32 15, %v6226_v16  ;;  %1537 = vst [vmem:[#allocation2 + $0x18] sm:$0xff] %v1408_v35  ;;  %1560 = vst [vmem:[#allocation2 + $0xc0] sm:$0xff] %v1185_v14  ;;  %v1237_v34 = vsel %vm6435_vm7, 0.0, %v740_v11  ;;  %v1344_v36 = vpack.c.bf16 %v740_v11, %v1316_v31  ;;  %v5946_v16 = vld [vmem:[%s7244_s2 + $0x170] sm:$0xff]  }
 0x11b   : > { %v6520_v17 = vmax.f32 %v713_v30, 0.0  ;;  %v711_v43 = vadd.f32 %v6272_v33, %v672_v46  ;;  %v1602_v37 = vor.u32 %v1600_v6, %v1598_v47  ;;  %v1426_v9 = vshrl.u32 %v1265_v62, 16  ;;  %1559 = vst [vmem:[#allocation2 + $0xb8] sm:$0xff] %v1184_v2  ;;  %v590_v7 = vpop.f32.mrb[17].mxu0  ;;  %5223 = vmatmul.mubr.bf16.gmra.mrb[40].mxu0 %v1184_v2  ;;  %5414 = vmatprep.mubr.bf16.mxu1 %v1184_v2 }
 0x11c   : > { %vm6514_vm12 = vcmp.eq.s32.totalorder %v7288_v54, 15  ;;  %v1429_v12 = vshll.u32 %v1265_v62, 16  ;;  %v1612_v31 = vshll.u32 %v1345_v8, 16  ;;  %v1616_v42 = vshrl.u32 %v1345_v8, 16  ;;  %v5185_v53 = vpop.f32.mrb[18].mxu0  ;;  %5226 = vmatprep.mubr.bf16.mxu0 %v1185_v14  ;;  %5415 = vmatmul.mubr.bf16.gmra.mrb[8].mxu1 %v1185_v14 }
 0x11d   : > { %v1264_v24 = vpack.c.bf16 %v1237_v34, %v6450_v55  ;;  %v1604_v4 = vshll.u32 %v1344_v36, 16  ;;  %v1608_v22 = vshrl.u32 %v1344_v36, 16  ;;  %v6532_v44 = vrot.slane %v1426_v9, 7  ;;  %v6536_v47 = vpop.f32.mrb[19].mxu0  ;;  %5449 = vmatpush3.bf16.msra.mxu1 %v5943_v48  ;;  %5257 = vmatpush3.bf16.msra.mxu0 %v5947_v28 }
 0x11e   : > { %v1614_v3 = vrot.slane %v1612_v31, 1  ;;  %v743_v29 = vmax.f32 %v711_v43, 0.0  ;;  %v675_v6 = vmul.f32 %v6472_v13, %v6257_v27  ;;  %v1322_v55 = vsel %vm6462_vm8, 0.0, %v6520_v17  ;;  %5450 = vmatprep.subr.bf16.mxu1 %v5946_v16  ;;  %5258 = vmatprep.subr.bf16.mxu0 %v5948_v63  ;;  %v5949_v13 = vld [vmem:[%s7244_s2 + $0x178] sm:$0xff]  }
 0x11f   : > { %v1418_v11 = vshrl.u32 %v1264_v24, 16  ;;  %v1606_v30 = vrot.slane %v1604_v4, 1  ;;  %v673_v46 = vmul.f32 %v6257_v27, %v6479_v10  ;;  %v7291_v0 = vand.u32 15, %v6233_v18 }
 0x120   : > { %v1431_v48 = vor.u32 %v1429_v12, %v6532_v44  ;;  %v6556_v28 = vor.u32 %v1616_v42, %v1614_v3  ;;  %v1421_v10 = vshll.u32 %v1264_v24, 16  ;;  %v714_v18 = vadd.f32 %v6272_v33, %v675_v6  ;;  %v6606_v6 = vld [vmem:[%s7244_s2 + $0x80] sm:$0xff]  }
 0x121   : > { %vm6545_vm14 = vcmp.eq.s32.totalorder %v7291_v0, 0  ;;  %v7294_v14 = vand.u32 15, %v6236_v19  ;;  %v1420_v61 = vrot.slane %v1418_v11, 7  ;;  %v6566_v35 = vsel %vm1571_vm13, %v1602_v37, %v1606_v30  ;;  %5451 = vmatpush3.bf16.msra.mxu1 %v5946_v16  ;;  %5259 = vmatpush3.bf16.msra.mxu0 %v5948_v63  ;;  %v5188_v23 = vpop.f32.mrb[20].mxu0 }
 0x122   : > { %v1610_v62 = vor.u32 %v1608_v22, %v1606_v30  ;;  %v712_v8 = vadd.f32 %v6272_v33, %v673_v46  ;;  %1723 = vst [vmem:[#allocation2 + $0x140] sm:$0xff] %v6566_v35  ;;  %v1320_v2 = vsel %vm6488_vm9, 0.0, %v743_v29  ;;  %v746_v54 = vmax.f32 %v714_v18, 0.0  ;;  %5452 = vmatprep.subr.bf16.mxu1 %v5949_v13  ;;  %5260 = vmatprep.subr.bf16.mxu0 %v5950_v25 }
 0x123   : > { %vm6561_vm15 = vcmp.eq.s32.totalorder %v7294_v14, 0  ;;  %v678_v34 = vmul.f32 %v5184_v41, %v6257_v27  ;;  %v676_v19 = vmul.f32 %v6257_v27, %v590_v7  ;;  %v1423_v36 = vor.u32 %v1421_v10, %v1420_v61 }
 0x124   : > { %v1432_v43 = vsel %vm1358_vm1, %v1420_v61, %v1431_v48  ;;  %v6576_v37 = vsel %vm1571_vm13, %v1610_v62, %v1614_v3  ;;  %v744_v9 = vmax.f32 %v712_v8, 0.0  ;;  %v7297_v12 = vand.u32 15, %v6239_v20  ;;  %v606_v20 = vpop.f32.mrb[21].mxu0 }
 0x125   : > { %1540 = vst [vmem:[#allocation2 + $0x30] sm:$0xff] %v1432_v43  ;;  %1724 = vst [vmem:[#allocation2 + $0x148] sm:$0xff] %v6576_v37  ;;  %v1187_v41 = vpack.c.bf16 %v746_v54, %v6520_v17  ;;  %v1243_v16 = vsel %vm6504_vm10, 0.0, %v746_v54  ;;  %v6588_v63 = vpack.c.bf16 %v746_v54, %v1322_v55  ;;  %v717_v7 = vadd.f32 %v6272_v33, %v678_v34  ;;  %v6596_v3 = vpop.f32.mrb[22].mxu0 }
 0x126   : > { %vm6580_vm0 = vcmp.eq.s32.totalorder %v7297_v12, 15  ;;  %v1424_v42 = vsel %vm1358_vm1, %v6466_v5, %v1423_v36  ;;  %v1267_v24 = vpack.c.bf16 %v1243_v16, %v6520_v17  ;;  %v1186_v4 = vpack.c.bf16 %v744_v9, %v743_v29  ;;  %v6610_v30 = vpop.f32.mrb[23].mxu0  ;;  %5453 = vmatpush3.bf16.msra.mxu1 %v5949_v13  ;;  %5261 = vmatpush3.bf16.msra.mxu0 %v5950_v25 }
 0x127   : > { %v1241_v22 = vsel %vm6514_vm12, 0.0, %v744_v9  ;;  %1539 = vst [vmem:[#allocation2 + $0x28] sm:$0xff] %v1424_v42  ;;  %1562 = vst [vmem:[#allocation2 + $0xd0] sm:$0xff] %v1187_v41  ;;  %v1628_v5 = vshll.u32 %v6588_v63, 16  ;;  %v1346_v11 = vpack.c.bf16 %v744_v9, %v1320_v2  ;;  %v679_v15 = vmul.f32 %v5185_v53, %v6257_v27  ;;  %5486 = vmatprep.subr.bf16.mxu1 %v6601_v59 }
 0x128   : > { %v1266_v17 = vpack.c.bf16 %v1241_v22, %v743_v29  ;;  %v1442_v55 = vshrl.u32 %v1267_v24, 16  ;;  %v1632_v46 = vshrl.u32 %v6588_v63, 16  ;;  %1561 = vst [vmem:[#allocation2 + $0xc8] sm:$0xff] %v1186_v4  ;;  %v749_v0 = vmax.f32 %v717_v7, 0.0  ;;  %5227 = vmatmul.mubr.bf16.gmra.mrb[44].mxu0 %v1186_v4  ;;  %5418 = vmatprep.mubr.bf16.mxu1 %v1186_v4 }
 0x129   : > { %v715_v48 = vadd.f32 %v6272_v33, %v676_v19  ;;  %v7300_v10 = vand.u32 15, %v6242_v21  ;;  %v1445_v53 = vshll.u32 %v1267_v24, 16  ;;  %v1630_v29 = vrot.slane %v1628_v5, 1  ;;  %5230 = vmatprep.mubr.bf16.mxu0 %v1187_v41  ;;  %5419 = vmatmul.mubr.bf16.gmra.mrb[12].mxu1 %v1187_v41  ;;  %v5192_v51 = vpop.f32.mrb[24].mxu0 }
 0x12a   : > { %v1434_v14 = vshrl.u32 %v1266_v17, 16  ;;  %v1620_v13 = vshll.u32 %v1346_v11, 16  ;;  %v7303_v25 = vand.u32 15, %v6252_v26  ;;  %v6626_v62 = vrot.slane %v1442_v55, 7  ;;  %5294 = vmatprep.subr.bf16.mxu0 %v6606_v6  ;;  %v622_v24 = vpop.f32.mrb[25].mxu0 }
 0x12b   : > { %vm6616_vm3 = vcmp.eq.s32.totalorder %v7300_v10, 15  ;;  %v1437_v21 = vshll.u32 %v1266_v17, 16  ;;  %v1624_v8 = vshrl.u32 %v1346_v11, 16  ;;  %v747_v2 = vmax.f32 %v715_v48, 0.0 }
 0x12c   : > { %vm6622_vm4 = vcmp.eq.s32.totalorder %v7303_v25, 0  ;;  %v1436_v54 = vrot.slane %v1434_v14, 7  ;;  %v1622_v34 = vrot.slane %v1620_v13, 1  ;;  %v1326_v26 = vsel %vm6545_vm14, 0.0, %v749_v0 }
 0x12d   : > { %v718_v19 = vadd.f32 %v6272_v33, %v679_v15  ;;  %v1447_v36 = vor.u32 %v1445_v53, %v6626_v62  ;;  %v1324_v43 = vsel %vm6561_vm15, 0.0, %v747_v2  ;;  %v677_v9 = vmul.f32 %v6257_v27, %v6536_v47 }
 0x12e   : > { %v682_v12 = vmul.f32 %v5188_v23, %v6257_v27  ;;  %v7306_v41 = vand.u32 15, %v6267_v32  ;;  %v1439_v63 = vor.u32 %v1437_v21, %v1436_v54  ;;  %v6647_v7 = vsel %vm1571_vm13, %v6556_v28, %v1622_v34  ;;  %v5193_v28 = vpop.f32.mrb[26].mxu0 }
 0x12f   : > { %v1626_v42 = vor.u32 %v1624_v8, %v1622_v34  ;;  %v750_v52 = vmax.f32 %v718_v19, 0.0  ;;  %v6650_v4 = vsel %vm1358_vm1, %v1436_v54, %v1447_v36  ;;  %1725 = vst [vmem:[#allocation2 + $0x150] sm:$0xff] %v6647_v7  ;;  %v716_v32 = vadd.f32 %v6272_v33, %v677_v9  ;;  %v6672_v55 = vpop.f32.mrb[27].mxu0 }
 0x130   : > { %vm6641_vm6 = vcmp.eq.s32.totalorder %v7306_v41, 0  ;;  %v721_v47 = vadd.f32 %v6272_v33, %v682_v12  ;;  %v680_v23 = vmul.f32 %v6257_v27, %v606_v20  ;;  %v7309_v22 = vand.u32 15, %v6282_v38  ;;  %1542 = vst [vmem:[#allocation2 + $0x40] sm:$0xff] %v6650_v4 }
 0x131   : > { %v6664_v17 = vsel %vm1358_vm1, %v6532_v44, %v1439_v63  ;;  %v6668_v11 = vsel %vm1571_vm13, %v1626_v42, %v1630_v29  ;;  %v1189_v15 = vpack.c.bf16 %v750_v52, %v749_v0  ;;  %v1247_v20 = vsel %vm6580_vm0, 0.0, %v750_v52  ;;  %v6698_v9 = vpop.f32.mrb[28].mxu0 }
 0x132   : > { %vm6658_vm5 = vcmp.eq.s32.totalorder %v7309_v22, 15  ;;  %1541 = vst [vmem:[#allocation2 + $0x38] sm:$0xff] %v6664_v17  ;;  %1726 = vst [vmem:[#allocation2 + $0x158] sm:$0xff] %v6668_v11  ;;  %v1269_v38 = vpack.c.bf16 %v1247_v20, %v749_v0  ;;  %v6676_v48 = vpack.c.bf16 %v750_v52, %v1326_v26  ;;  %v748_v44 = vmax.f32 %v716_v32, 0.0  ;;  %v6708_v61 = vpop.f32.mrb[29].mxu0 }
 0x133   : > { %v753_v10 = vmax.f32 %v721_v47, 0.0  ;;  %v7312_v53 = vand.u32 15, %v6291_v49  ;;  %v1634_v13 = vor.u32 %v1632_v46, %v1630_v29  ;;  %1564 = vst [vmem:[#allocation2 + $0xe0] sm:$0xff] %v1189_v15  ;;  %v719_v31 = vadd.f32 %v6272_v33, %v680_v23  ;;  %v6711_v47 = vpop.f32.mrb[30].mxu0 }
 0x134   : > { %v683_v25 = vmul.f32 %v6596_v3, %v6257_v27  ;;  %v681_v0 = vmul.f32 %v6257_v27, %v6610_v30  ;;  %v1458_v21 = vshrl.u32 %v1269_v38, 16  ;;  %v1461_v8 = vshll.u32 %v1269_v38, 16  ;;  %v6715_v38 = vpop.f32.mrb[31].mxu0 }
 0x135   : > { %vm6680_vm7 = vcmp.eq.s32.totalorder %v7312_v53, 15  ;;  %v1644_v54 = vshll.u32 %v6676_v48, 16  ;;  %v686_v49 = vmul.f32 %v5192_v51, %v6257_v27  ;;  %v1648_v34 = vshrl.u32 %v6676_v48, 16 }
 0x136   : > { %v1188_v26 = vpack.c.bf16 %v748_v44, %v747_v2  ;;  %v1245_v46 = vsel %vm6616_vm3, 0.0, %v748_v44  ;;  %v1348_v29 = vpack.c.bf16 %v748_v44, %v1324_v43  ;;  %v6694_v19 = vrot.slane %v1458_v21, 7 }
 0x137   : > { %v1268_v36 = vpack.c.bf16 %v1245_v46, %v747_v2  ;;  %v1330_v3 = vsel %vm6622_vm4, 0.0, %v753_v10  ;;  %v751_v30 = vmax.f32 %v719_v31, 0.0  ;;  %v1646_v12 = vrot.slane %v1644_v54, 1  ;;  %vm1735_vm4 = vmand %vm1530_vm11, %vm1571_vm13 }
 0x138   : > { %1563 = vst [vmem:[#allocation2 + $0xd8] sm:$0xff] %v1188_v26  ;;  %v1636_v41 = vshll.u32 %v1348_v29, 16  ;;  %v722_v51 = vadd.f32 %v6272_v33, %v683_v25  ;;  %v720_v63 = vadd.f32 %v6272_v33, %v681_v0  ;;  %v7315_v18 = vand.u32 15, %v6294_v50  ;;  %5231 = vmatmul.mubr.bf16.gmra.mrb[48].mxu0 %v1188_v26  ;;  %5422 = vmatprep.mubr.bf16.mxu1 %v1188_v26 }
 0x139   : > { %v1463_v2 = vor.u32 %v1461_v8, %v6694_v19  ;;  %v1450_v42 = vshrl.u32 %v1268_v36, 16  ;;  %v1453_v52 = vshll.u32 %v1268_v36, 16  ;;  %v1640_v32 = vshrl.u32 %v1348_v29, 16  ;;  %5234 = vmatprep.mubr.bf16.mxu0 %v1189_v15  ;;  %5423 = vmatmul.mubr.bf16.gmra.mrb[16].mxu1 %v1189_v15 }
 0x13a   : > { %vm6704_vm8 = vcmp.eq.s32.totalorder %v7315_v18, 0  ;;  %v1638_v23 = vrot.slane %v1636_v41, 1  ;;  %v1328_v50 = vsel %vm6641_vm6, 0.0, %v751_v30  ;;  %v754_v22 = vmax.f32 %v722_v51, 0.0 }
 0x13b   : > { %v752_v20 = vmax.f32 %v720_v63, 0.0  ;;  %v1452_v48 = vrot.slane %v1450_v42, 7  ;;  %v725_v44 = vadd.f32 %v6272_v33, %v686_v49  ;;  %v684_v53 = vmul.f32 %v6257_v27, %v622_v24 }
 0x13c   : > { %v687_v31 = vmul.f32 %v5193_v28, %v6257_v27  ;;  %v6721_v25 = vsel %vm1571_vm13, %v1634_v13, %v1638_v23  ;;  %v1642_v15 = vor.u32 %v1640_v32, %v1638_v23  ;;  %v1191_v0 = vpack.c.bf16 %v754_v22, %v753_v10 }
 0x13d   : > { %v1251_v16 = vsel %vm6658_vm5, 0.0, %v754_v22  ;;  %v7318_v21 = vand.u32 15, %v6302_v57  ;;  %v1455_v54 = vor.u32 %v1453_v52, %v1452_v48  ;;  %v6732_v49 = vsel %vm1358_vm1, %v1452_v48, %v1463_v2  ;;  %1727 = vst [vmem:[#allocation2 + $0x160] sm:$0xff] %v6721_v25 }
 0x13e   : > { %v1271_v24 = vpack.c.bf16 %v1251_v16, %v753_v10  ;;  %v6735_v28 = vpack.c.bf16 %v754_v22, %v1330_v3  ;;  %v7321_v13 = vand.u32 15, %v6299_v56  ;;  %1544 = vst [vmem:[#allocation2 + $0x50] sm:$0xff] %v6732_v49  ;;  %v6745_v57 = vsel %vm1571_vm13, %v1642_v15, %v1646_v12  ;;  %1566 = vst [vmem:[#allocation2 + $0xf0] sm:$0xff] %v1191_v0 }
 0x13f   : > { %vm6727_vm9 = vcmp.eq.s32.totalorder %v7318_v21, 15  ;;  %v1190_v26 = vpack.c.bf16 %v752_v20, %v751_v30  ;;  %v1249_v46 = vsel %vm6680_vm7, 0.0, %v752_v20  ;;  %v1350_v29 = vpack.c.bf16 %v752_v20, %v1328_v50  ;;  %1728 = vst [vmem:[#allocation2 + $0x168] sm:$0xff] %v6745_v57 }
 0x140   : > { %vm6739_vm10 = vcmp.eq.s32.totalorder %v7321_v13, 0  ;;  %v6751_v10 = vsel %vm1358_vm1, %v6626_v62, %v1455_v54  ;;  %v1474_v56 = vshrl.u32 %v1271_v24, 16  ;;  %v1660_v36 = vshll.u32 %v6735_v28, 16 }
 0x141   : > { %v793_v3 = vadd.s32 232, %v6183_v58  ;;  %v1650_v41 = vor.u32 %v1648_v34, %v1646_v12  ;;  %1543 = vst [vmem:[#allocation2 + $0x48] sm:$0xff] %v6751_v10  ;;  %v1477_v51 = vshll.u32 %v1271_v24, 16  ;;  %v1270_v63 = vpack.c.bf16 %v1249_v46, %v751_v30  ;;  %1565 = vst [vmem:[#allocation2 + $0xe8] sm:$0xff] %v1190_v26  ;;  %5235 = vmatmul.mubr.bf16.gmra.mrb[52].mxu0 %v1190_v26 }
 0x142   : > { %v1652_v14 = vshll.u32 %v1350_v29, 16  ;;  %v7324_v18 = vand.u32 15, %v6308_v1  ;;  %5426 = vmatprep.mubr.bf16.mxu1 %v1190_v26  ;;  %v6763_v62 = vrot.slane %v1474_v56, 7  ;;  %v1656_v42 = vshrl.u32 %v1350_v29, 16  ;;  %5238 = vmatprep.mubr.bf16.mxu0 %v1191_v0  ;;  %v1736_v29 = vld [vmem:[#allocation2 + $0x1a0] sm:$0xff] }
 0x143   : > { %v757_v52 = vmax.f32 %v725_v44, 0.0  ;;  %v723_v58 = vadd.f32 %v6272_v33, %v684_v53  ;;  %v7327_v34 = vand.u32 15, %v6317_v40  ;;  %5427 = vmatmul.mubr.bf16.gmra.mrb[20].mxu1 %v1191_v0  ;;  %v1662_v1 = vrot.slane %v1660_v36, 1 }
 0x144   : > { %vm6759_vm12 = vcmp.eq.s32.totalorder %v7324_v18, 15  ;;  %v1466_v12 = vshrl.u32 %v1270_v63, 16  ;;  %v1654_v32 = vrot.slane %v1652_v14, 1  ;;  %v726_v23 = vadd.f32 %v6272_v33, %v687_v31 }
 0x145   : > { %vm6768_vm14 = vcmp.eq.s32.totalorder %v7327_v34, 0  ;;  %v1479_v50 = vor.u32 %v1477_v51, %v6763_v62  ;;  %v1469_v22 = vshll.u32 %v1270_v63, 16  ;;  %v1334_v20 = vsel %vm6704_vm8, 0.0, %v757_v52 }
 0x146   : > { %v755_v48 = vmax.f32 %v723_v58, 0.0  ;;  %v1468_v44 = vrot.slane %v1466_v12, 7  ;;  %v6777_v40 = vsel %vm1571_vm13, %v1650_v41, %v1654_v32  ;;  %v1658_v53 = vor.u32 %v1656_v42, %v1654_v32 }
 0x147   : > { %v758_v15 = vmax.f32 %v726_v23, 0.0  ;;  %1729 = vst [vmem:[#allocation2 + $0x170] sm:$0xff] %v6777_v40  ;;  %v685_v0 = vmul.f32 %v6257_v27, %v6672_v55  ;;  %v690_v31 = vmul.f32 %v6698_v9, %v6257_v27  ;;  %v688_v16 = vmul.f32 %v6257_v27, %v6708_v61 }
 0x148   : > { %v1003_v43 = vand.u32 15, %v793_v3  ;;  %v1471_v21 = vor.u32 %v1469_v22, %v1468_v44  ;;  %v6787_v54 = vsel %vm1358_vm1, %v1468_v44, %v1479_v50  ;;  %v6790_v24 = vsel %vm1571_vm13, %v1658_v53, %v1662_v1 }
 0x149   : > { %v1193_v13 = vpack.c.bf16 %v758_v15, %v757_v52  ;;  %1546 = vst [vmem:[#allocation2 + $0x60] sm:$0xff] %v6787_v54  ;;  %1730 = vst [vmem:[#allocation2 + $0x178] sm:$0xff] %v6790_v24  ;;  %v1255_v55 = vsel %vm6727_vm9, 0.0, %v758_v15  ;;  %v6796_v9 = vpack.c.bf16 %v758_v15, %v1334_v20  ;;  %v724_v61 = vadd.f32 %v6272_v33, %v685_v0 }
 0x14a   : > { %v729_v26 = vadd.f32 %v6272_v33, %v690_v31  ;;  %v7330_v46 = vand.u32 15, %v6320_v45  ;;  %v6808_v56 = vsel %vm1358_vm1, %v6694_v19, %v1471_v21  ;;  %v1332_v8 = vsel %vm6739_vm10, 0.0, %v755_v48 }
 0x14b   : > { %v1273_v36 = vpack.c.bf16 %v1255_v55, %v757_v52  ;;  %1568 = vst [vmem:[#allocation2 + $0x100] sm:$0xff] %v1193_v13  ;;  %v691_v3 = vmul.f32 %v6711_v47, %v6257_v27  ;;  %v1664_v41 = vshrl.u32 %v6735_v28, 16  ;;  %1545 = vst [vmem:[#allocation2 + $0x58] sm:$0xff] %v6808_v56  ;;  %v756_v45 = vmax.f32 %v724_v61, 0.0 }
 0x14c   : > { %vm6802_vm15 = vcmp.eq.s32.totalorder %v7330_v46, 0  ;;  %v761_v51 = vmax.f32 %v729_v26, 0.0  ;;  %v727_v63 = vadd.f32 %v6272_v33, %v688_v16  ;;  %v7333_v18 = vand.u32 15, %v6332_v60 }
 0x14d   : > { %v1490_v14 = vshrl.u32 %v1273_v36, 16  ;;  %v730_v19 = vadd.f32 %v6272_v33, %v691_v3  ;;  %vm6824_vm3 = vcmp.eq.s32.totalorder %v1003_v43, 15  ;;  %v1666_v47 = vor.u32 %v1664_v41, %v1662_v1 }
 0x14e   : > { %vm6820_vm0 = vcmp.eq.s32.totalorder %v7333_v18, 15  ;;  %v1192_v28 = vpack.c.bf16 %v756_v45, %v755_v48  ;;  %v1253_v52 = vsel %vm6759_vm12, 0.0, %v756_v45  ;;  %v1352_v58 = vpack.c.bf16 %v756_v45, %v1332_v8 }
 0x14f   : > { %v6830_v34 = vrot.slane %v1490_v14, 7  ;;  %v1493_v12 = vshll.u32 %v1273_v36, 16  ;;  %v1272_v32 = vpack.c.bf16 %v1253_v52, %v755_v48  ;;  %v1338_v60 = vsel %vm6768_vm14, 0.0, %v761_v51  ;;  %v1551_v36 = vld [vmem:[#allocation2 + $0x88] sm:$0x1] }
 0x150   : > { %v1676_v23 = vshll.u32 %v6796_v9, 16  ;;  %1567 = vst [vmem:[#allocation2 + $0xf8] sm:$0xff] %v1192_v28  ;;  %v1668_v50 = vshll.u32 %v1352_v58, 16  ;;  %v759_v22 = vmax.f32 %v727_v63, 0.0  ;;  %v762_v20 = vmax.f32 %v730_v19, 0.0  ;;  %5239 = vmatmul.mubr.bf16.gmra.mrb[56].mxu0 %v1192_v28  ;;  %5430 = vmatprep.mubr.bf16.mxu1 %v1192_v28 }
 0x151   : > { %v1495_v1 = vor.u32 %v1493_v12, %v6830_v34  ;;  %v1482_v2 = vshrl.u32 %v1272_v32, 16  ;;  %v1672_v44 = vshrl.u32 %v1352_v58, 16  ;;  %v689_v53 = vmul.f32 %v6257_v27, %v6715_v38  ;;  %5242 = vmatprep.mubr.bf16.mxu0 %v1193_v13  ;;  %5431 = vmatmul.mubr.bf16.gmra.mrb[24].mxu1 %v1193_v13 }
 0x152   : > { %v1670_v48 = vrot.slane %v1668_v50, 1  ;;  %v6838_v30 = vpack.c.bf16 %v762_v20, %v761_v51  ;;  %v1259_v15 = vsel %vm6820_vm0, 0.0, %v762_v20  ;;  %v1355_v0 = vpack.c.bf16 %v762_v20, %v1338_v60  ;;  %v6878_v60 = vld [vmem:[#allocation2 + $0x128] sm:$0xff] }
 0x153   : > { %v1484_v31 = vrot.slane %v1482_v2, 7  ;;  %v1485_v16 = vshll.u32 %v1272_v32, 16  ;;  %v1275_v43 = vpack.c.bf16 %v1259_v15, %v761_v51  ;;  %v728_v21 = vadd.f32 %v6272_v33, %v689_v53 }
 0x154   : > { %v1678_v55 = vrot.slane %v1676_v23, 1  ;;  %v6844_v61 = vsel %vm1571_vm13, %v1666_v47, %v1670_v48  ;;  %v1674_v26 = vor.u32 %v1672_v44, %v1670_v48  ;;  %1570 = vst [vmem:[#allocation2 + $0x110] sm:$0xff] %v6838_v30  ;;  %v1692_v27 = vshll.u32 %v1355_v0, 16 }
 0x155   : > { %v1487_v38 = vor.u32 %v1485_v16, %v1484_v31  ;;  %v6848_v13 = vsel %vm1358_vm1, %v1484_v31, %v1495_v1  ;;  %1731 = vst [vmem:[#allocation2 + $0x180] sm:$0xff] %v6844_v61  ;;  %v1336_v46 = vsel %vm6802_vm15, 0.0, %v759_v22  ;;  %v1506_v8 = vshrl.u32 %v1275_v43, 16  ;;  %v5952_v31 = vld [vmem:[%s7244_s2 + $0x188] sm:$0xff]   ;;  %v6904_v16 = vld [vmem:[#allocation2 + $0x10] sm:$0xff] }
 0x156   : > { %1548 = vst [vmem:[#allocation2 + $0x70] sm:$0xff] %v6848_v13  ;;  %v6855_v33 = vsel %vm1571_vm13, %v1674_v26, %v1678_v55  ;;  %v1694_v3 = vrot.slane %v1692_v27, 1  ;;  %v1696_v41 = vshrl.u32 %v1355_v0, 16  ;;  %v760_v45 = vmax.f32 %v728_v21, 0.0  ;;  %v6898_v0 = vld [vmem:[#allocation2 + $0x8] sm:$0xff]  ;;  %v5958_v26 = vld [vmem:[%s7244_s2 + $0x90] sm:$0xff]  }
 0x157   : > { %v6859_v51 = vsel %vm1358_vm1, %v6763_v62, %v1487_v38  ;;  %1732 = vst [vmem:[#allocation2 + $0x188] sm:$0xff] %v6855_v33  ;;  %v1508_v63 = vrot.slane %v1506_v8, 7  ;;  %v1509_v47 = vshll.u32 %v1275_v43, 16  ;;  %v1680_v52 = vshrl.u32 %v6796_v9, 16  ;;  %v6906_v43 = vld [vmem:[#allocation2 + $0x130] sm:$0xff]  ;;  %v5957_v21 = vld [vmem:[%s7244_s2 + $0x88] sm:$0xff]  }
 0x158   : > { %1547 = vst [vmem:[#allocation2 + $0x68] sm:$0xff] %v6859_v51  ;;  %v1698_v14 = vor.u32 %v1696_v41, %v1694_v3  ;;  %v6865_v19 = vpack.c.bf16 %v760_v45, %v759_v22  ;;  %v1257_v18 = vsel %vm6824_vm3, 0.0, %v760_v45  ;;  %v1354_v5 = vpack.c.bf16 %v760_v45, %v1336_v46  ;;  %v6924_v27 = vld [vmem:[#allocation2 + $0x18] sm:$0xff]  ;;  %v6930_v38 = vld [vmem:[#allocation2 + $0x20] sm:$0xff]  ;;  %v5962_v41 = vld [vmem:[%s7244_s2 + $0x1b0] sm:$0xff]  }
 0x159   : > { %v1552_v62 = vsel %vm6145_vm2, %v1508_v63, %v1551_v36  ;;  %v1274_v28 = vpack.c.bf16 %v1257_v18, %v759_v22  ;;  %v1511_v32 = vor.u32 %v1509_v47, %v1508_v63  ;;  %v1682_v9 = vor.u32 %v1680_v52, %v1678_v55  ;;  %v5953_v55 = vld [vmem:[%s7244_s2 + $0x190] sm:$0xff]   ;;  %v5956_v46 = vld [vmem:[%s7244_s2 + $0x1a0] sm:$0xff]   ;;  %v6944_v36 = vld [vmem:[#allocation2 + $0x28] sm:$0xff] }
 0x15a   : > { %1553 = vst [vmem:[#allocation2 + $0x88] sm:$0x1] %v1552_v62  ;;  %v6872_v58 = vsel %vm1735_vm4, %v1698_v14, %v1736_v29  ;;  %v1684_v12 = vshll.u32 %v1354_v5, 16  ;;  %5243 = vmatmul.mubr.bf16.gmra.mrb[60].mxu0 %v6865_v19  ;;  %5434 = vmatprep.mubr.bf16.mxu1 %v6865_v19  ;;  %v1688_v50 = vshrl.u32 %v1354_v5, 16  ;;  %v5961_v8 = vld [vmem:[%s7244_s2 + $0xa0] sm:$0xff]   ;;  %v5964_v45 = vld [vmem:[%s7244_s2 + $0xb0] sm:$0xff]  }
 0x15b   : > { %1738 = vst [vmem:[#allocation2 + $0x1a0] sm:$0xff] %v6872_v58  ;;  %v1498_v42 = vshrl.u32 %v1274_v28, 16  ;;  %5435 = vmatmul.mubr.bf16.gmra.mrb[28].mxu1 %v6838_v30  ;;  %5262 = vmatprep.mubr.bf16.mxu0 %v6880_v39  ;;  %v1501_v20 = vshll.u32 %v1274_v28, 16  ;;  %v5967_v63 = vld [vmem:[%s7244_s2 + $0x1c0] sm:$0xff]   ;;  %v5970_v29 = vld [vmem:[%s7244_s2 + $0x1d8] sm:$0xff]   ;;  %v7029_v62 = vld [vmem:[#allocation2 + $0x148] sm:$0xff] }
 0x15c   : > { %v1686_v23 = vrot.slane %v1684_v12, 1  ;;  %5454 = vmatprep.mubr.bf16.mxu1 %v6878_v60  ;;  %v7015_v14 = vld [vmem:[#allocation2 + $0x140] sm:$0xff]  ;;  %v5976_v18 = vld [vmem:[%s7244_s2 + $0xd8] sm:$0xff]   ;;  %v5975_v28 = vld [vmem:[%s7244_s2 + $0x1e8] sm:$0xff]  }
 0x15d   : > { %v1500_v22 = vrot.slane %v1498_v42, 7  ;;  %v5972_v5 = vld [vmem:[%s7244_s2 + $0x1e0] sm:$0xff]   ;;  %v7035_v52 = vld [vmem:[#allocation2 + $0x150] sm:$0xff]  ;;  %v5979_v12 = vld [vmem:[%s7244_s2 + $0xe8] sm:$0xff]  }
 0x15e   : > { %v6885_v1 = vsel %vm1571_vm13, %v1682_v9, %v1686_v23  ;;  %v1690_v2 = vor.u32 %v1688_v50, %v1686_v23  ;;  %v5977_v47 = vld [vmem:[%s7244_s2 + $0xe0] sm:$0xff]   ;;  %v5978_v42 = vld [vmem:[%s7244_s2 + $0x1f0] sm:$0xff]   ;;  %v7053_v9 = vld [vmem:[#allocation2 + $0x158] sm:$0xff] }
 0x15f   : > { %v1503_v44 = vor.u32 %v1501_v20, %v1500_v22  ;;  %v6888_v53 = vsel %vm1358_vm1, %v1500_v22, %v1511_v32  ;;  %v7044_v32 = vld [vmem:[#allocation2 + $0x40] sm:$0xff]  ;;  %v5981_v23 = vld [vmem:[%s7244_s2 + $0x1f8] sm:$0xff]   ;;  %v7061_v22 = vld [vmem:[#allocation2 + $0x48] sm:$0xff] }
 0x160   : > { %1550 = vst [vmem:[#allocation2 + $0x80] sm:$0xff] %v6888_v53  ;;  %v6892_v48 = vsel %vm1571_vm13, %v1690_v2, %v1694_v3  ;;  %v5963_v3 = vld [vmem:[%s7244_s2 + $0xa8] sm:$0xff]   ;;  %v7059_v50 = vld [vmem:[#allocation2 + $0x160] sm:$0xff]  ;;  %v5982_v20 = vld [vmem:[%s7244_s2 + $0xf8] sm:$0xff]  }
 0x161   : > { %v6896_v15 = vsel %vm1358_vm1, %v6830_v34, %v1503_v44  ;;  %v6913_v34 = vld [vmem:[#allocation2 + $0x138] sm:$0xff]  ;;  %v7068_v2 = vld [vmem:[#allocation2 + $0x50] sm:$0xff]  ;;  %v5983_v44 = vld [vmem:[%s7244_s2 + $0x200] sm:$0xff]  }
 0x162   : > { %5263 = vmatmul.mubr.bf16.vlgmr.msra.gmra.mrb[32].mxu0 %v6898_v0 }
 0x163   : > { %5266 = vmatprep.mubr.bf16.mxu0 %v6904_v16  ;;  %5455 = vmatmul.mubr.bf16.vlgmr.msra.gmra.mrb[0].mxu1 %v6906_v43 }
 0x164   : > { %5487 = vmatpush3.bf16.msra.mxu1 %v6601_v59  ;;  %5458 = vmatprep.mubr.bf16.mxu1 %v6913_v34  ;;  %v5954_v59 = vld [vmem:[%s7244_s2 + $0x198] sm:$0xff]  }
 0x165   : > { %5488 = vmatprep.subr.bf16.mxu1 %v5952_v31  ;;  %5295 = vmatpush3.bf16.msra.mxu0 %v6606_v6  ;;  %v5960_v6 = vld [vmem:[%s7244_s2 + $0x98] sm:$0xff]  }
 0x166   : > { %5296 = vmatprep.subr.bf16.mxu0 %v5957_v21 }
 0x168   : > { %5489 = vmatpush3.bf16.msra.mxu1 %v5952_v31  ;;  %v7074_v31 = vld [vmem:[#allocation2 + $0x168] sm:$0xff] }
 0x169   : > { %5490 = vmatprep.subr.bf16.mxu1 %v5953_v55  ;;  %5297 = vmatpush3.bf16.msra.mxu0 %v5957_v21  ;;  %v5988_v21 = vld [vmem:[%s7244_s2 + $0x228] sm:$0xff]  }
 0x16a   : > { %5267 = vmatmul.mubr.bf16.gmra.mrb[36].mxu0 %v6924_v27  ;;  %5298 = vmatprep.subr.bf16.mxu0 %v5958_v26 }
 0x16b   : > { %5270 = vmatprep.mubr.bf16.mxu0 %v6930_v38  ;;  %5459 = vmatmul.mubr.bf16.gmra.mrb[4].mxu1 %v6566_v35  ;;  %v5959_v35 = vld [vmem:[%s7244_s2 + $0x1a8] sm:$0xff]  }
 0x16c   : > { %5462 = vmatprep.mubr.bf16.mxu1 %v6576_v37  ;;  %5491 = vmatpush3.bf16.msra.mxu1 %v5953_v55  ;;  %v6950_v37 = vld [vmem:[#allocation2 + $0x30] sm:$0xff]  ;;  %v3597_v55 = vld [vmem:[#allocation2 + $0xc8] sm:$0xff] }
 0x16d   : > { %5492 = vmatprep.subr.bf16.mxu1 %v5954_v59  ;;  %5299 = vmatpush3.bf16.msra.mxu0 %v5958_v26  ;;  %v3598_v26 = vld [vmem:[#allocation2 + $0xd0] sm:$0xff] }
 0x16e   : > { %5300 = vmatprep.subr.bf16.mxu0 %v5960_v6 }
 0x170   : > { %5493 = vmatpush3.bf16.msra.mxu1 %v5954_v59  ;;  %v5990_v59 = vld [vmem:[%s7244_s2 + $0x238] sm:$0xff]  }
 0x171   : > { %5494 = vmatprep.subr.bf16.mxu1 %v5956_v46  ;;  %5301 = vmatpush3.bf16.msra.mxu0 %v5960_v6  ;;  %v3600_v6 = vld [vmem:[#allocation2 + $0xe0] sm:$0xff] }
 0x172   : > { %5271 = vmatmul.mubr.bf16.gmra.mrb[40].mxu0 %v6944_v36  ;;  %5302 = vmatprep.subr.bf16.mxu0 %v5961_v8 }
 0x173   : > { %5274 = vmatprep.mubr.bf16.mxu0 %v6950_v37  ;;  %5463 = vmatmul.mubr.bf16.gmra.mrb[8].mxu1 %v6647_v7  ;;  %v5965_v7 = vld [vmem:[%s7244_s2 + $0x1b8] sm:$0xff]  }
 0x174   : > { %5466 = vmatprep.mubr.bf16.mxu1 %v6668_v11  ;;  %5495 = vmatpush3.bf16.msra.mxu1 %v5956_v46  ;;  %v5966_v11 = vld [vmem:[%s7244_s2 + $0xb8] sm:$0xff]  }
 0x175   : > { %5496 = vmatprep.subr.bf16.mxu1 %v5959_v35  ;;  %5303 = vmatpush3.bf16.msra.mxu0 %v5961_v8  ;;  %v2506_v46 = vld [vmem:[#allocation2 + $0x58] sm:$0xff]  ;;  %v3601_v8 = vld [vmem:[#allocation2 + $0xe8] sm:$0xff] }
 0x176   : > { %5304 = vmatprep.subr.bf16.mxu0 %v5963_v3 }
 0x178   : > { %5497 = vmatpush3.bf16.msra.mxu1 %v5959_v35  ;;  %v2507_v35 = vld [vmem:[#allocation2 + $0x60] sm:$0xff] }
 0x179   : > { %5498 = vmatprep.subr.bf16.mxu1 %v5962_v41  ;;  %5305 = vmatpush3.bf16.msra.mxu0 %v5963_v3  ;;  %v3603_v3 = vld [vmem:[#allocation2 + $0xf8] sm:$0xff] }
 0x17a   : > { %5275 = vmatmul.mubr.bf16.gmra.mrb[44].mxu0 %v6664_v17  ;;  %5306 = vmatprep.subr.bf16.mxu0 %v5964_v45  ;;  %v5971_v17 = vld [vmem:[%s7244_s2 + $0xc0] sm:$0xff]  }
 0x17b   : > { %5278 = vmatprep.mubr.bf16.mxu0 %v6650_v4  ;;  %5467 = vmatmul.mubr.bf16.gmra.mrb[12].mxu1 %v6721_v25  ;;  %v2222_v4 = vld [vmem:[#allocation2 + $0x120] sm:$0xff]  ;;  %v5968_v25 = vld [vmem:[%s7244_s2 + $0x1c8] sm:$0xff]  }
 0x17c   : > { %5470 = vmatprep.mubr.bf16.mxu1 %v6745_v57  ;;  %5499 = vmatpush3.bf16.msra.mxu1 %v5962_v41  ;;  %v5969_v57 = vld [vmem:[%s7244_s2 + $0x1d0] sm:$0xff]   ;;  %v3604_v41 = vld [vmem:[#allocation2 + $0x100] sm:$0xff] }
 0x17d   : > { %5500 = vmatprep.subr.bf16.mxu1 %v5965_v7  ;;  %5307 = vmatpush3.bf16.msra.mxu0 %v5964_v45  ;;  %v2509_v45 = vld [vmem:[#allocation2 + $0x70] sm:$0xff] }
 0x17e   : > { %5308 = vmatprep.subr.bf16.mxu0 %v5966_v11 }
 0x180   : > { %5501 = vmatpush3.bf16.msra.mxu1 %v5965_v7 }
 0x181   : > { %5309 = vmatpush3.bf16.msra.mxu0 %v5966_v11  ;;  %5534 = vmatprep.subr.bf16.mxu1 %v5967_v63 }
 0x182   : > { %5279 = vmatmul.mubr.bf16.gmra.mrb[48].mxu0 %v6751_v10  ;;  %5342 = vmatprep.subr.bf16.mxu0 %v5971_v17  ;;  %v5974_v10 = vld [vmem:[%s7244_s2 + $0xd0] sm:$0xff]  }
 0x183   : > { %5282 = vmatprep.mubr.bf16.mxu0 %v6732_v49  ;;  %5471 = vmatmul.mubr.bf16.gmra.mrb[16].mxu1 %v6777_v40  ;;  %v5973_v49 = vld [vmem:[%s7244_s2 + $0xc8] sm:$0xff]  }
 0x184   : > { %5474 = vmatprep.mubr.bf16.mxu1 %v6790_v24 }
 0x18a   : > { %5283 = vmatmul.mubr.bf16.gmra.mrb[52].mxu0 %v6808_v56 }
 0x18b   : > { %5286 = vmatprep.mubr.bf16.mxu0 %v6787_v54  ;;  %5475 = vmatmul.mubr.bf16.gmra.mrb[20].mxu1 %v6844_v61 }
 0x18c   : > { %5478 = vmatprep.mubr.bf16.mxu1 %v6855_v33 }
 0x192   : > { %5287 = vmatmul.mubr.bf16.gmra.mrb[56].mxu0 %v6859_v51 }
 0x193   : > { %5290 = vmatprep.mubr.bf16.mxu0 %v6848_v13  ;;  %5479 = vmatmul.mubr.bf16.gmra.mrb[24].mxu1 %v6885_v1 }
 0x194   : > { %5482 = vmatprep.mubr.bf16.mxu1 %v6892_v48 }
 0x19a   : > { %5291 = vmatmul.mubr.bf16.gmra.mrb[60].mxu0 %v6896_v15 }
 0x19b   : > { %5310 = vmatprep.mubr.bf16.mxu0 %v2222_v4  ;;  %5483 = vmatmul.mubr.bf16.gmra.mrb[28].mxu1 %v6872_v58  ;;  %v7037_v58 = vld [vmem:[#allocation2 + $0x38] sm:$0xff] }
 0x19c   : > { %5502 = vmatprep.mubr.bf16.mxu1 %v6904_v16 }
 0x1a2   : > { %5311 = vmatmul.mubr.bf16.vlgmr.msra.gmra.mrb[32].mxu0 %v6878_v60  ;;  %v5980_v60 = vld [vmem:[%s7244_s2 + $0xf0] sm:$0xff]  }
 0x1a3   : > { %5314 = vmatprep.mubr.bf16.mxu0 %v6906_v43  ;;  %5503 = vmatmul.mubr.bf16.vlgmr.msra.gmra.mrb[0].mxu1 %v6924_v27 }
 0x1a4   : > { %5535 = vmatpush3.bf16.msra.mxu1 %v5967_v63  ;;  %5506 = vmatprep.mubr.bf16.mxu1 %v6930_v38 }
 0x1a5   : > { %5536 = vmatprep.subr.bf16.mxu1 %v5968_v25  ;;  %5343 = vmatpush3.bf16.msra.mxu0 %v5971_v17 }
 0x1a6   : > { %5344 = vmatprep.subr.bf16.mxu0 %v5973_v49 }
 0x1a8   : > { %5537 = vmatpush3.bf16.msra.mxu1 %v5968_v25 }
 0x1a9   : > { %5538 = vmatprep.subr.bf16.mxu1 %v5969_v57  ;;  %5345 = vmatpush3.bf16.msra.mxu0 %v5973_v49 }
 0x1aa   : > { %5315 = vmatmul.mubr.bf16.gmra.mrb[36].mxu0 %v6913_v34  ;;  %5346 = vmatprep.subr.bf16.mxu0 %v5974_v10 }
 0x1ab   : > { %5318 = vmatprep.mubr.bf16.mxu0 %v7015_v14  ;;  %5507 = vmatmul.mubr.bf16.gmra.mrb[4].mxu1 %v6944_v36 }
 0x1ac   : > { %5510 = vmatprep.mubr.bf16.mxu1 %v6950_v37  ;;  %5539 = vmatpush3.bf16.msra.mxu1 %v5969_v57 }
 0x1ad   : > { %5540 = vmatprep.subr.bf16.mxu1 %v5970_v29  ;;  %5347 = vmatpush3.bf16.msra.mxu0 %v5974_v10 }
 0x1ae   : > { %5348 = vmatprep.subr.bf16.mxu0 %v5976_v18 }
 0x1b0   : > { %5541 = vmatpush3.bf16.msra.mxu1 %v5970_v29 }
 0x1b1   : > { %5542 = vmatprep.subr.bf16.mxu1 %v5972_v5  ;;  %5349 = vmatpush3.bf16.msra.mxu0 %v5976_v18 }
 0x1b2   : > { %5319 = vmatmul.mubr.bf16.gmra.mrb[40].mxu0 %v7029_v62  ;;  %5350 = vmatprep.subr.bf16.mxu0 %v5977_v47 }
 0x1b3   : > { %5322 = vmatprep.mubr.bf16.mxu0 %v7035_v52  ;;  %5511 = vmatmul.mubr.bf16.gmra.mrb[8].mxu1 %v7037_v58 }
 0x1b4   : > { %5514 = vmatprep.mubr.bf16.mxu1 %v7044_v32  ;;  %5543 = vmatpush3.bf16.msra.mxu1 %v5972_v5 }
 0x1b5   : > { %5544 = vmatprep.subr.bf16.mxu1 %v5975_v28  ;;  %5351 = vmatpush3.bf16.msra.mxu0 %v5977_v47 }
 0x1b6   : > { %5352 = vmatprep.subr.bf16.mxu0 %v5979_v12 }
 0x1b8   : > { %5545 = vmatpush3.bf16.msra.mxu1 %v5975_v28 }
 0x1b9   : > { %5546 = vmatprep.subr.bf16.mxu1 %v5978_v42  ;;  %5353 = vmatpush3.bf16.msra.mxu0 %v5979_v12 }
 0x1ba   : > { %5323 = vmatmul.mubr.bf16.gmra.mrb[44].mxu0 %v7053_v9  ;;  %5354 = vmatprep.subr.bf16.mxu0 %v5980_v60 }
 0x1bb   : > { %5326 = vmatprep.mubr.bf16.mxu0 %v7059_v50  ;;  %5515 = vmatmul.mubr.bf16.gmra.mrb[12].mxu1 %v7061_v22 }
 0x1bc   : > { %5518 = vmatprep.mubr.bf16.mxu1 %v7068_v2  ;;  %5547 = vmatpush3.bf16.msra.mxu1 %v5978_v42 }
 0x1bd   : > { %5548 = vmatprep.subr.bf16.mxu1 %v5981_v23  ;;  %5355 = vmatpush3.bf16.msra.mxu0 %v5980_v60 }
 0x1be   : > { %5356 = vmatprep.subr.bf16.mxu0 %v5982_v20 }
 0x1c0   : > { %5549 = vmatpush3.bf16.msra.mxu1 %v5981_v23 }
 0x1c1   : > { %5357 = vmatpush3.bf16.msra.mxu0 %v5982_v20  ;;  %5582 = vmatprep.subr.bf16.mxu1 %v5983_v44 }
 0x1c2   : > { %5327 = vmatmul.mubr.bf16.gmra.mrb[48].mxu0 %v7074_v31 }
 0x1c3   : > { %5330 = vmatprep.mubr.bf16.mxu0 %v6777_v40  ;;  %5519 = vmatmul.mubr.bf16.gmra.mrb[16].mxu1 %v6808_v56  ;;  %v3333_v40 = vld [vmem:[#allocation2 + $0x88] sm:$0xff] }
 0x1c4   : > { %5522 = vmatprep.mubr.bf16.mxu1 %v6787_v54  ;;  %v3592_v54 = vld [vmem:[#allocation2 + $0xa0] sm:$0xff]  ;;  %v3593_v56 = vld [vmem:[#allocation2 + $0xa8] sm:$0xff] }
 0x1ca   : > { %5331 = vmatmul.mubr.bf16.gmra.mrb[52].mxu0 %v6790_v24  ;;  %v5984_v24 = vld [vmem:[%s7244_s2 + $0x208] sm:$0xff]  }
 0x1cb   : > { %5334 = vmatprep.mubr.bf16.mxu0 %v6844_v61  ;;  %5523 = vmatmul.mubr.bf16.gmra.mrb[20].mxu1 %v6859_v51  ;;  %v3594_v61 = vld [vmem:[#allocation2 + $0xb0] sm:$0xff]  ;;  %v3595_v51 = vld [vmem:[#allocation2 + $0xb8] sm:$0xff] }
 0x1cc   : > { %5526 = vmatprep.mubr.bf16.mxu1 %v6848_v13  ;;  %v5985_v13 = vld [vmem:[%s7244_s2 + $0x210] sm:$0xff]  }
 0x1d2   : > { %5335 = vmatmul.mubr.bf16.gmra.mrb[56].mxu0 %v6855_v33  ;;  %v5986_v33 = vld [vmem:[%s7244_s2 + $0x218] sm:$0xff]  }
 0x1d3   : > { %5338 = vmatprep.mubr.bf16.mxu0 %v6885_v1  ;;  %5527 = vmatmul.mubr.bf16.gmra.mrb[24].mxu1 %v6896_v15 }
 0x1d4   : > { %5530 = vmatprep.mubr.bf16.mxu1 %v6888_v53 }
 0x1da   : > { %5339 = vmatmul.mubr.bf16.gmra.mrb[60].mxu0 %v6892_v48 }
 0x1db   : > { %5358 = vmatprep.mubr.bf16.mxu0 %v6898_v0  ;;  %5531 = vmatmul.mubr.bf16.gmra.mrb[28].mxu1 %v3333_v40  ;;  %v3596_v0 = vld [vmem:[#allocation2 + $0xc0] sm:$0xff] }
 0x1dc   : > { %5550 = vmatprep.mubr.bf16.mxu1 %v3592_v54 }
 0x1e2   : > { %5359 = vmatmul.mubr.bf16.vlgmr.msra.gmra.mrb[32].mxu0 %v6904_v16  ;;  %v5987_v16 = vld [vmem:[%s7244_s2 + $0x220] sm:$0xff]  }
 0x1e3   : > { %5362 = vmatprep.mubr.bf16.mxu0 %v6924_v27  ;;  %5551 = vmatmul.mubr.bf16.vlgmr.msra.gmra.mrb[0].mxu1 %v3593_v56  ;;  %v5989_v27 = vld [vmem:[%s7244_s2 + $0x230] sm:$0xff]  }
 0x1e4   : > { %5583 = vmatpush3.bf16.msra.mxu1 %v5983_v44  ;;  %5554 = vmatprep.mubr.bf16.mxu1 %v3594_v61 }
 0x1e5   : > { %5584 = vmatprep.subr.bf16.mxu1 %v5984_v24 }
 0x1e8   : > { %5585 = vmatpush3.bf16.msra.mxu1 %v5984_v24 }
 0x1e9   : > { %5586 = vmatprep.subr.bf16.mxu1 %v5985_v13 }
 0x1ea   : > { %5363 = vmatmul.mubr.bf16.gmra.mrb[36].mxu0 %v6930_v38  ;;  %v3599_v38 = vld [vmem:[#allocation2 + $0xd8] sm:$0xff] }
 0x1eb   : > { %5366 = vmatprep.mubr.bf16.mxu0 %v6944_v36  ;;  %5555 = vmatmul.mubr.bf16.gmra.mrb[4].mxu1 %v3595_v51  ;;  %v3602_v36 = vld [vmem:[#allocation2 + $0xf0] sm:$0xff] }
 0x1ec   : > { %5558 = vmatprep.mubr.bf16.mxu1 %v3596_v0  ;;  %5587 = vmatpush3.bf16.msra.mxu1 %v5985_v13 }
 0x1ed   : > { %5588 = vmatprep.subr.bf16.mxu1 %v5986_v33 }
 0x1f0   : > { %5589 = vmatpush3.bf16.msra.mxu1 %v5986_v33 }
 0x1f1   : > { %5590 = vmatprep.subr.bf16.mxu1 %v5987_v16 }
 0x1f2   : > { %5367 = vmatmul.mubr.bf16.gmra.mrb[40].mxu0 %v6950_v37  ;;  %v2508_v37 = vld [vmem:[#allocation2 + $0x68] sm:$0xff] }
 0x1f3   : > { %5370 = vmatprep.mubr.bf16.mxu0 %v7037_v58  ;;  %5559 = vmatmul.mubr.bf16.gmra.mrb[8].mxu1 %v3597_v55 }
 0x1f4   : > { %5562 = vmatprep.mubr.bf16.mxu1 %v3598_v26  ;;  %5591 = vmatpush3.bf16.msra.mxu1 %v5987_v16 }
 0x1f5   : > { %5592 = vmatprep.subr.bf16.mxu1 %v5988_v21 }
 0x1f8   : > { %5593 = vmatpush3.bf16.msra.mxu1 %v5988_v21 }
 0x1f9   : > { %5594 = vmatprep.subr.bf16.mxu1 %v5989_v27 }
 0x1fa   : > { %5371 = vmatmul.mubr.bf16.gmra.mrb[44].mxu0 %v7044_v32 }
 0x1fb   : > { %5374 = vmatprep.mubr.bf16.mxu0 %v7061_v22  ;;  %5563 = vmatmul.mubr.bf16.gmra.mrb[12].mxu1 %v3599_v38 }
 0x1fc   : > { %5566 = vmatprep.mubr.bf16.mxu1 %v3600_v6  ;;  %5595 = vmatpush3.bf16.msra.mxu1 %v5989_v27 }
 0x1fd   : > { %5596 = vmatprep.subr.bf16.mxu1 %v5990_v59 }
 0x200   : > { %5597 = vmatpush3.bf16.msra.mxu1 %v5990_v59 }
 0x202   : > { %5375 = vmatmul.mubr.bf16.gmra.mrb[48].mxu0 %v7068_v2 }
 0x203   : > { %5378 = vmatprep.mubr.bf16.mxu0 %v2506_v46  ;;  %5567 = vmatmul.mubr.bf16.gmra.mrb[16].mxu1 %v3601_v8 }
 0x204   : > { %5570 = vmatprep.mubr.bf16.mxu1 %v3602_v36 }
 0x20a   : > { %5379 = vmatmul.mubr.bf16.gmra.mrb[52].mxu0 %v2507_v35 }
 0x20b   : > { %5382 = vmatprep.mubr.bf16.mxu0 %v2508_v37  ;;  %5571 = vmatmul.mubr.bf16.gmra.mrb[20].mxu1 %v3603_v3 }
 0x20c   : > { %5574 = vmatprep.mubr.bf16.mxu1 %v3604_v41 }
 0x212   : > { %5383 = vmatmul.mubr.bf16.gmra.mrb[56].mxu0 %v2509_v45 }
 0x213   : > { %5386 = vmatprep.mubr.bf16.mxu0 %v6896_v15  ;;  %5575 = vmatmul.mubr.bf16.gmra.mrb[24].mxu1 %v6865_v19  ;;  %v3875_v19 = vld [vmem:[#allocation2 + $0x178] sm:$0xff]  ;;  %v3877_v15 = vld [vmem:[#allocation2 + $0x188] sm:$0xff] }
 0x214   : > { %5578 = vmatprep.mubr.bf16.mxu1 %v6838_v30  ;;  %v3874_v30 = vld [vmem:[#allocation2 + $0x170] sm:$0xff] }
 0x21a   : > { %5387 = vmatmul.mubr.bf16.gmra.mrb[60].mxu0 %v6888_v53  ;;  %v3876_v53 = vld [vmem:[#allocation2 + $0x180] sm:$0xff] }
 0x21b   : > { %5579 = vmatmul.mubr.bf16.gmra.mrb[28].mxu1 %v6880_v39 }
 0x21c   : > { %5598 = vmatprep.mubr.bf16.mxu1 %v6906_v43  ;;  %v3880_v43 = vld [vmem:[#allocation2 + $0x1a0] sm:$0xff] }
 0x223   : > { %5599 = vmatmul.mubr.bf16.vlgmr.msra.gmra.mrb[0].mxu1 %v6913_v34 }
 0x224   : > { %5602 = vmatprep.mubr.bf16.mxu1 %v7015_v14 }
 0x22b   : > { %5603 = vmatmul.mubr.bf16.gmra.mrb[4].mxu1 %v7029_v62 }
 0x22c   : > { %5606 = vmatprep.mubr.bf16.mxu1 %v7035_v52 }
 0x233   : > { %5607 = vmatmul.mubr.bf16.gmra.mrb[8].mxu1 %v7053_v9 }
 0x234   : > { %5610 = vmatprep.mubr.bf16.mxu1 %v7059_v50 }
 0x23b   : > { %5611 = vmatmul.mubr.bf16.gmra.mrb[12].mxu1 %v7074_v31 }
 0x23c   : > { %5614 = vmatprep.mubr.bf16.mxu1 %v3874_v30 }
 0x243   : > { %5615 = vmatmul.mubr.bf16.gmra.mrb[16].mxu1 %v3875_v19 }
 0x244   : > { %5618 = vmatprep.mubr.bf16.mxu1 %v3876_v53 }
 0x24b   : > { %5619 = vmatmul.mubr.bf16.gmra.mrb[20].mxu1 %v3877_v15 }
 0x24c   : > { %5622 = vmatprep.mubr.bf16.mxu1 %v6885_v1 }
 0x253   : > { %5623 = vmatmul.mubr.bf16.gmra.mrb[24].mxu1 %v6892_v48 }
 0x254   : > { %5626 = vmatprep.mubr.bf16.mxu1 %v3880_v43 }
 0x25b   : > { %5627 = vmatmul.mubr.bf16.gmra.mrb[28].mxu1 %v6880_v39 }
 0x2b5   : > { %v5360_v34 = vpop.f32.mrb[32].mxu0 }
 0x2b6   : > { %v2611_v7 = vpop.f32.mrb[33].mxu0 }
 0x2b7   : > { %v5361_v11 = vpop.f32.mrb[34].mxu0 }
 0x2b8   : > { %v2614_v63 = vpop.f32.mrb[35].mxu0 }
 0x2bd   : > { %v5364_v17 = vpop.f32.mrb[36].mxu0 }
 0x2be   : > { %v2627_v4 = vpop.f32.mrb[37].mxu0 }
 0x2bf   : > { %v5365_v25 = vpop.f32.mrb[38].mxu0 }
 0x2c0   : > { %v2630_v49 = vpop.f32.mrb[39].mxu0 }
 0x2c5   : > { %v7136_v57 = vpop.f32.mrb[40].mxu0 }
 0x2c6   : > { %v7138_v10 = vpop.f32.mrb[41].mxu0 }
 0x2c7   : > { %v7140_v29 = vpop.f32.mrb[42].mxu0 }
 0x2c8   : > { %v7142_v1 = vpop.f32.mrb[43].mxu0 }
 0x2cd   : > { %v7144_v48 = vpop.f32.mrb[44].mxu0 }
 0x2ce   : > { %v7146_v14 = vpop.f32.mrb[45].mxu0 }
 0x2cf   : > { %v7148_v39 = vpop.f32.mrb[46].mxu0 }
 0x2d0   : > { %v7150_v18 = vpop.f32.mrb[47].mxu0 }
 0x2d5   : > { %v7152_v5 = vpop.f32.mrb[48].mxu0 }
 0x2d6   : > { %v7154_v47 = vpop.f32.mrb[49].mxu0 }
 0x2d7   : > { %v7156_v62 = vpop.f32.mrb[50].mxu0 }
 0x2d8   : > { %v7158_v28 = vpop.f32.mrb[51].mxu0 }
 0x2dd   : > { %v7160_v52 = vpop.f32.mrb[52].mxu0 }
 0x2de   : > { %v7162_v58 = vpop.f32.mrb[53].mxu0 }
 0x2df   : > { %v7164_v12 = vpop.f32.mrb[54].mxu0 }
 0x2e0   : > { %v7166_v32 = vpop.f32.mrb[55].mxu0 }
 0x2e5   : > { %v7168_v42 = vpop.f32.mrb[56].mxu0 }
 0x2e6   : > { %v7170_v60 = vpop.f32.mrb[57].mxu0 }
 0x2e7   : > { %v7172_v9 = vpop.f32.mrb[58].mxu0 }
 0x2e8   : > { %v7174_v23 = vpop.f32.mrb[59].mxu0 }
 0x2ed   : > { %v7176_v50 = vpop.f32.mrb[60].mxu0 }
 0x2ee   : > { %v7178_v22 = vpop.f32.mrb[61].mxu0 }
 0x2ef   : > { %v7180_v20 = vpop.f32.mrb[62].mxu0 }
 0x2f0   : > { %v7182_v2 = vpop.f32.mrb[63].mxu0 }
 0x2f6   : > { %v5600_v44 = vpop.f32.mrb[0].mxu1 }
 0x2f7   : > { %v5630_v31 = vadd.f32 %v5600_v44, %v5360_v34  ;;  %v3981_v40 = vpop.f32.mrb[1].mxu1 }
 0x2f8   : > { %v5631_v54 = vadd.f32 %v3981_v40, %v2611_v7  ;;  %v5601_v24 = vpop.f32.mrb[2].mxu1 }
 0x2f9   : > { %v5632_v56 = vadd.f32 %v5601_v24, %v5361_v11  ;;  %v3984_v61 = vpop.f32.mrb[3].mxu1  ;;  %v4180_v55 = vmul.f32 %v5630_v31, %v5630_v31 }
 0x2fa   : > { %v5633_v13 = vadd.f32 %v3984_v61, %v2614_v63  ;;  %v4178_v51 = vmul.f32 %v5631_v54, %v5631_v54 }
 0x2fb   : > { %v4823_v33 = vpack.c.bf16 %v5632_v56, %v5630_v31  ;;  %v4181_v46 = vmul.f32 %v5632_v56, %v5632_v56 }
 0x2fc   : > { %v4140_v0 = vadd.f32 %v5633_v13, %v5631_v54  ;;  %v4179_v16 = vmul.f32 %v5633_v13, %v5633_v13  ;;  %v4818_v21 = vpack.c.bf16 %v5633_v13, %v5631_v54 }
 0x2fd   : > { %4895 = vst [vmem:[%s7189_s23 + $0x8] sm:$0xff] %v4823_v33  }
 0x2fe   : > { %v4141_v26 = vadd.f32 %v5630_v31, %v4140_v0  ;;  %v4210_v27 = vadd.f32 %v4179_v16, %v4178_v51  ;;  %4819 = vst [vmem:[%s7189_s23] sm:$0xff] %v4818_v21   ;;  %v5604_v59 = vpop.f32.mrb[4].mxu1 }
 0x2ff   : > { %v5634_v38 = vadd.f32 %v5604_v59, %v5364_v17  ;;  %v3997_v6 = vpop.f32.mrb[5].mxu1 }
 0x300   : > { %v4211_v8 = vadd.f32 %v4210_v27, %v4180_v55  ;;  %v5635_v36 = vadd.f32 %v3997_v6, %v2627_v4  ;;  %v4142_v35 = vadd.f32 %v5632_v56, %v4141_v26  ;;  %v5605_v37 = vpop.f32.mrb[6].mxu1 }
 0x301   : > { %v5636_v3 = vadd.f32 %v5605_v37, %v5365_v25  ;;  %v4000_v41 = vpop.f32.mrb[7].mxu1  ;;  %v4184_v63 = vmul.f32 %v5634_v38, %v5634_v38 }
 0x302   : > { %v4143_v45 = vadd.f32 %v5635_v36, %v4142_v35  ;;  %v4182_v30 = vmul.f32 %v5635_v36, %v5635_v36  ;;  %v4212_v19 = vadd.f32 %v4211_v8, %v4181_v46  ;;  %v5637_v53 = vadd.f32 %v4000_v41, %v2630_v49 }
 0x303   : > { %v4833_v15 = vpack.c.bf16 %v5636_v3, %v5634_v38  ;;  %v4185_v25 = vmul.f32 %v5636_v3, %v5636_v3 }
 0x304   : > { %v4213_v43 = vadd.f32 %v4212_v19, %v4182_v30  ;;  %v4144_v34 = vadd.f32 %v5637_v53, %v4143_v45  ;;  %v4183_v7 = vmul.f32 %v5637_v53, %v5637_v53  ;;  %v4828_v11 = vpack.c.bf16 %v5637_v53, %v5635_v36 }
 0x305   : > { %4897 = vst [vmem:[%s7189_s23 + $0x18] sm:$0xff] %v4833_v15  }
 0x306   : > { %v4145_v17 = vadd.f32 %v5634_v38, %v4144_v34  ;;  %v4214_v44 = vadd.f32 %v4213_v43, %v4183_v7  ;;  %4896 = vst [vmem:[%s7189_s23 + $0x10] sm:$0xff] %v4828_v11   ;;  %v5608_v4 = vpop.f32.mrb[8].mxu1 }
 0x307   : > { %v5638_v31 = vadd.f32 %v5608_v4, %v7136_v57  ;;  %v4013_v40 = vpop.f32.mrb[9].mxu1 }
 0x308   : > { %v4215_v54 = vadd.f32 %v4214_v44, %v4184_v63  ;;  %v5639_v24 = vadd.f32 %v4013_v40, %v7138_v10  ;;  %v4146_v49 = vadd.f32 %v5636_v3, %v4145_v17  ;;  %v5609_v56 = vpop.f32.mrb[10].mxu1 }
 0x309   : > { %v5640_v61 = vadd.f32 %v5609_v56, %v7140_v29  ;;  %v4016_v13 = vpop.f32.mrb[11].mxu1  ;;  %v4188_v59 = vmul.f32 %v5638_v31, %v5638_v31 }
 0x30a   : > { %v4147_v33 = vadd.f32 %v5639_v24, %v4146_v49  ;;  %v4186_v51 = vmul.f32 %v5639_v24, %v5639_v24  ;;  %v4216_v0 = vadd.f32 %v4215_v54, %v4185_v25  ;;  %v5641_v16 = vadd.f32 %v4016_v13, %v7142_v1 }
 0x30b   : > { %v4843_v21 = vpack.c.bf16 %v5640_v61, %v5638_v31  ;;  %v4189_v8 = vmul.f32 %v5640_v61, %v5640_v61 }
 0x30c   : > { %v4217_v55 = vadd.f32 %v4216_v0, %v4186_v51  ;;  %v4148_v57 = vadd.f32 %v5641_v16, %v4147_v33  ;;  %v4187_v26 = vmul.f32 %v5641_v16, %v5641_v16  ;;  %v4838_v27 = vpack.c.bf16 %v5641_v16, %v5639_v24 }
 0x30d   : > { %4899 = vst [vmem:[%s7189_s23 + $0x28] sm:$0xff] %v4843_v21  }
 0x30e   : > { %v4149_v38 = vadd.f32 %v5638_v31, %v4148_v57  ;;  %v4218_v10 = vadd.f32 %v4217_v55, %v4187_v26  ;;  %4898 = vst [vmem:[%s7189_s23 + $0x20] sm:$0xff] %v4838_v27   ;;  %v5612_v6 = vpop.f32.mrb[12].mxu1 }
 0x30f   : > { %v5642_v46 = vadd.f32 %v5612_v6, %v7144_v48  ;;  %v4029_v29 = vpop.f32.mrb[13].mxu1 }
 0x310   : > { %v4219_v36 = vadd.f32 %v4218_v10, %v4188_v59  ;;  %v5643_v35 = vadd.f32 %v4029_v29, %v7146_v14  ;;  %v4150_v1 = vadd.f32 %v5640_v61, %v4149_v38  ;;  %v5613_v37 = vpop.f32.mrb[14].mxu1 }
 0x311   : > { %v5644_v3 = vadd.f32 %v5613_v37, %v7148_v39  ;;  %v4032_v41 = vpop.f32.mrb[15].mxu1  ;;  %v4192_v11 = vmul.f32 %v5642_v46, %v5642_v46 }
 0x312   : > { %v4151_v45 = vadd.f32 %v5643_v35, %v4150_v1  ;;  %v4190_v30 = vmul.f32 %v5643_v35, %v5643_v35  ;;  %v4220_v19 = vadd.f32 %v4219_v36, %v4189_v8  ;;  %v5645_v53 = vadd.f32 %v4032_v41, %v7150_v18 }
 0x313   : > { %v4853_v15 = vpack.c.bf16 %v5644_v3, %v5642_v46  ;;  %v4193_v4 = vmul.f32 %v5644_v3, %v5644_v3 }
 0x314   : > { %v4221_v43 = vadd.f32 %v4220_v19, %v4190_v30  ;;  %v4152_v48 = vadd.f32 %v5645_v53, %v4151_v45  ;;  %v4191_v34 = vmul.f32 %v5645_v53, %v5645_v53  ;;  %v4848_v7 = vpack.c.bf16 %v5645_v53, %v5643_v35 }
 0x315   : > { %4901 = vst [vmem:[%s7189_s23 + $0x38] sm:$0xff] %v4853_v15  }
 0x316   : > { %v4153_v63 = vadd.f32 %v5642_v46, %v4152_v48  ;;  %v4222_v14 = vadd.f32 %v4221_v43, %v4191_v34  ;;  %4900 = vst [vmem:[%s7189_s23 + $0x30] sm:$0xff] %v4848_v7   ;;  %v5616_v17 = vpop.f32.mrb[16].mxu1 }
 0x317   : > { %v5646_v44 = vadd.f32 %v5616_v17, %v7152_v5  ;;  %v4045_v39 = vpop.f32.mrb[17].mxu1 }
 0x318   : > { %v4223_v31 = vadd.f32 %v4222_v14, %v4192_v11  ;;  %v5647_v40 = vadd.f32 %v4045_v39, %v7154_v47  ;;  %v4154_v18 = vadd.f32 %v5644_v3, %v4153_v63  ;;  %v5617_v25 = vpop.f32.mrb[18].mxu1 }
 0x319   : > { %v5648_v54 = vadd.f32 %v5617_v25, %v7156_v62  ;;  %v4048_v24 = vpop.f32.mrb[19].mxu1  ;;  %v4196_v21 = vmul.f32 %v5646_v44, %v5646_v44 }
 0x31a   : > { %v4155_v49 = vadd.f32 %v5647_v40, %v4154_v18  ;;  %v4194_v56 = vmul.f32 %v5647_v40, %v5647_v40  ;;  %v4224_v61 = vadd.f32 %v4223_v31, %v4193_v4  ;;  %v5649_v13 = vadd.f32 %v4048_v24, %v7158_v28 }
 0x31b   : > { %v4863_v33 = vpack.c.bf16 %v5648_v54, %v5646_v44  ;;  %v4197_v27 = vmul.f32 %v5648_v54, %v5648_v54 }
 0x31c   : > { %v4225_v51 = vadd.f32 %v4224_v61, %v4194_v56  ;;  %v4156_v5 = vadd.f32 %v5649_v13, %v4155_v49  ;;  %v4195_v0 = vmul.f32 %v5649_v13, %v5649_v13  ;;  %v4858_v16 = vpack.c.bf16 %v5649_v13, %v5647_v40 }
 0x31d   : > { %4903 = vst [vmem:[%s7189_s23 + $0x48] sm:$0xff] %v4863_v33  }
 0x31e   : > { %v4157_v55 = vadd.f32 %v5646_v44, %v4156_v5  ;;  %v4226_v47 = vadd.f32 %v4225_v51, %v4195_v0  ;;  %4902 = vst [vmem:[%s7189_s23 + $0x40] sm:$0xff] %v4858_v16   ;;  %v5620_v57 = vpop.f32.mrb[20].mxu1 }
 0x31f   : > { %v5650_v26 = vadd.f32 %v5620_v57, %v7160_v52  ;;  %v4061_v62 = vpop.f32.mrb[21].mxu1 }
 0x320   : > { %v4227_v59 = vadd.f32 %v4226_v47, %v4196_v21  ;;  %v5651_v38 = vadd.f32 %v4061_v62, %v7162_v58  ;;  %v4158_v28 = vadd.f32 %v5648_v54, %v4157_v55  ;;  %v5621_v10 = vpop.f32.mrb[22].mxu1 }
 0x321   : > { %v5652_v6 = vadd.f32 %v5621_v10, %v7164_v12  ;;  %v4064_v46 = vpop.f32.mrb[23].mxu1  ;;  %v4200_v45 = vmul.f32 %v5650_v26, %v5650_v26 }
 0x322   : > { %v4159_v29 = vadd.f32 %v5651_v38, %v4158_v28  ;;  %v4198_v8 = vmul.f32 %v5651_v38, %v5651_v38  ;;  %v4228_v36 = vadd.f32 %v4227_v59, %v4197_v27  ;;  %v5653_v35 = vadd.f32 %v4064_v46, %v7166_v32 }
 0x323   : > { %v4873_v1 = vpack.c.bf16 %v5652_v6, %v5650_v26  ;;  %v4201_v15 = vmul.f32 %v5652_v6, %v5652_v6 }
 0x324   : > { %v4229_v37 = vadd.f32 %v4228_v36, %v4198_v8  ;;  %v4160_v52 = vadd.f32 %v5653_v35, %v4159_v29  ;;  %v4199_v3 = vmul.f32 %v5653_v35, %v5653_v35  ;;  %v4868_v41 = vpack.c.bf16 %v5653_v35, %v5651_v38 }
 0x325   : > { %4905 = vst [vmem:[%s7189_s23 + $0x58] sm:$0xff] %v4873_v1  }
 0x326   : > { %v4161_v30 = vadd.f32 %v5650_v26, %v4160_v52  ;;  %v4230_v58 = vadd.f32 %v4229_v37, %v4199_v3  ;;  %4904 = vst [vmem:[%s7189_s23 + $0x50] sm:$0xff] %v4868_v41   ;;  %v5624_v19 = vpop.f32.mrb[24].mxu1 }
 0x327   : > { %v5654_v53 = vadd.f32 %v5624_v19, %v7168_v42  ;;  %v4077_v12 = vpop.f32.mrb[25].mxu1 }
 0x328   : > { %v4231_v43 = vadd.f32 %v4230_v58, %v4200_v45  ;;  %v5655_v48 = vadd.f32 %v4077_v12, %v7170_v60  ;;  %v4162_v32 = vadd.f32 %v5652_v6, %v4161_v30  ;;  %v5625_v34 = vpop.f32.mrb[26].mxu1 }
 0x329   : > { %v5656_v7 = vadd.f32 %v5625_v34, %v7172_v9  ;;  %v4080_v11 = vpop.f32.mrb[27].mxu1  ;;  %v4204_v18 = vmul.f32 %v5654_v53, %v5654_v53 }
 0x32a   : > { %v4163_v63 = vadd.f32 %v5655_v48, %v4162_v32  ;;  %v4202_v14 = vmul.f32 %v5655_v48, %v5655_v48  ;;  %v4232_v17 = vadd.f32 %v4231_v43, %v4201_v15  ;;  %v5657_v44 = vadd.f32 %v4080_v11, %v7174_v23 }
 0x32b   : > { %v4883_v39 = vpack.c.bf16 %v5656_v7, %v5654_v53  ;;  %v4205_v49 = vmul.f32 %v5656_v7, %v5656_v7 }
 0x32c   : > { %v4233_v4 = vadd.f32 %v4232_v17, %v4202_v14  ;;  %v4164_v42 = vadd.f32 %v5657_v44, %v4163_v63  ;;  %v4203_v31 = vmul.f32 %v5657_v44, %v5657_v44  ;;  %v4878_v40 = vpack.c.bf16 %v5657_v44, %v5655_v48 }
 0x32d   : > { %4907 = vst [vmem:[%s7189_s23 + $0x68] sm:$0xff] %v4883_v39  }
 0x32e   : > { %v4165_v25 = vadd.f32 %v5654_v53, %v4164_v42  ;;  %v4234_v60 = vadd.f32 %v4233_v4, %v4203_v31  ;;  %4906 = vst [vmem:[%s7189_s23 + $0x60] sm:$0xff] %v4878_v40   ;;  %v5628_v54 = vpop.f32.mrb[28].mxu1 }
 0x32f   : > { %v5658_v24 = vadd.f32 %v5628_v54, %v7176_v50  ;;  %v4093_v9 = vpop.f32.mrb[29].mxu1 }
 0x330   : > { %v4235_v56 = vadd.f32 %v4234_v60, %v4204_v18  ;;  %v5659_v61 = vadd.f32 %v4093_v9, %v7178_v22  ;;  %v4166_v23 = vadd.f32 %v5656_v7, %v4165_v25  ;;  %v5629_v13 = vpop.f32.mrb[30].mxu1 }
 0x331   : > { %v5660_v33 = vadd.f32 %v5629_v13, %v7180_v20  ;;  %v4096_v51 = vpop.f32.mrb[31].mxu1  ;;  %v4208_v22 = vmul.f32 %v5658_v24, %v5658_v24 }
 0x332   : > { %v4167_v5 = vadd.f32 %v5659_v61, %v4166_v23  ;;  %v4206_v0 = vmul.f32 %v5659_v61, %v5659_v61  ;;  %v4236_v16 = vadd.f32 %v4235_v56, %v4205_v49  ;;  %v5661_v21 = vadd.f32 %v4096_v51, %v7182_v2 }
 0x333   : > { %v4893_v55 = vpack.c.bf16 %v5660_v33, %v5658_v24  ;;  %v4209_v59 = vmul.f32 %v5660_v33, %v5660_v33 }
 0x334   : > { %v4237_v50 = vadd.f32 %v4236_v16, %v4206_v0  ;;  %v4168_v47 = vadd.f32 %v5661_v21, %v4167_v5  ;;  %v4207_v57 = vmul.f32 %v5661_v21, %v5661_v21  ;;  %v4888_v26 = vpack.c.bf16 %v5661_v21, %v5659_v61 }
 0x335   : > { %4909 = vst [vmem:[%s7189_s23 + $0x78] sm:$0xff] %v4893_v55  }
 0x336   : > { %v4169_v62 = vadd.f32 %v5658_v24, %v4168_v47  ;;  %v4238_v27 = vadd.f32 %v4237_v50, %v4207_v57  ;;  %4908 = vst [vmem:[%s7189_s23 + $0x70] sm:$0xff] %v4888_v26  }
 0x338   : > { %v4170_v20 = vadd.f32 %v5660_v33, %v4169_v62  ;;  %v4239_v38 = vadd.f32 %v4238_v27, %v4208_v22 }
 0x33a   : > { %v4171_v28 = vrot.slane %v4170_v20, 4  ;;  %v4240_v10 = vadd.f32 %v4239_v38, %v4209_v59 }
 0x33c   : > { %v4172_v6 = vadd.f32 %v4171_v28, %v4170_v20  ;;  %v4241_v2 = vrot.slane %v4240_v10, 4 }
 0x33e   : > { %v4173_v46 = vrot.slane %v4172_v6, 2  ;;  %v4242_v29 = vadd.f32 %v4241_v2, %v4240_v10 }
 0x340   : > { %v4174_v8 = vadd.f32 %v4173_v46, %v4172_v6  ;;  %v4243_v36 = vrot.slane %v4242_v29, 2 }
 0x342   : > { %v4175_v35 = vrot.slane %v4174_v8, 1  ;;  %v4244_v1 = vadd.f32 %v4243_v36, %v4242_v29 }
 0x344   : > { %v4176_v37 = vadd.f32 %v4175_v35, %v4174_v8  ;;  %v4245_v52 = vrot.slane %v4244_v1, 1 }
 0x346   : > { %4177 = vst [vmem:[%s295_s26] sm:$0x1] %v4176_v37  ;;  %v4246_v3 = vadd.f32 %v4245_v52, %v4244_v1 }
 0x348   : > { %4247 = vst [vmem:[%s298_s29] sm:$0x1] %v4246_v3 }
 0x349 PF: > { %s18_s24 = sadd.s32 1, %s5998_s24  }
 0x34a   : > { %p15_p5 = scmp.ge.s32.totalorder %s18_s24, 4  }
 0x34c   :  { %17 = sbr.rel (!%p15_p5) target bundleno = 1 (0x1), region = 104 }

</bundles_post_ra>
